<compile_context>
chip_gen: v6e
topology: v6e:2x2x1
jax: 0.10.0
libtpu: 0.0.40
codegen_flags: <defaults>
</compile_context>

<pallas_src>
import functools

import jax
import jax.numpy as jnp
from jax import lax
from jax.experimental import pallas as pl
from jax.experimental.pallas import tpu as pltpu


def _round_up(v, m):
    return ((v + m - 1) // m) * m


def _conv3x3_flat(flat_pad, w_ref, H, Wp, mxu_dtype):
    """3x3 'same' conv on a zero-padded flat image.

    flat_pad: ((H+4)*Wp, C_in) f32.  Logical layout is (H+4, Wp, C_in): image
        row h lives at logical row 2+h, columns [0, W); logical rows 0, 1,
        H+2, H+3 and columns [W, Wp) are all zero.
    w_ref:    (3, 3, C_in, C_out) Ref in `mxu_dtype` (HWIO).
    Returns:  (H*Wp, C_out) f32.  Columns [W, Wp) of each logical row are
        garbage and must be masked / sliced away by the caller.
    """
    c_out = w_ref.shape[3]
    src = flat_pad.astype(mxu_dtype)

    # One column-shifted view per horizontal tap dx.  Only dx != 1 pays a
    # sublane relayout (the shift work lands on the XLU, not on 18 VMEM
    # load/store materialisations as before).
    span = (H + 2) * Wp
    shifted = [src[(dx - 1) + Wp:(dx - 1) + Wp + span, :] for dx in range(3)]

    acc = jnp.zeros((H * Wp, c_out), jnp.float32)
    for dy in range(3):
        lo = dy * Wp                    # 8-aligned because Wp % 8 == 0
        for dx in range(3):
            operand = shifted[dx][lo:lo + H * Wp, :]
            acc = acc + jnp.dot(operand, w_ref[dy, dx],
                                preferred_element_type=jnp.float32)
    return acc


def _resblock_kernel(x_ref, w1_ref, b1_ref, w2_ref, b2_ref, o_ref, *,
                     res_scale, mxu_dtype):
    """One batch element per grid step (NHWC, C on lanes). No scratch refs."""
    H, W, C = x_ref.shape[1], x_ref.shape[2], x_ref.shape[3]
    Wp = _round_up(W + 1, 8)            # padded row width, 8-sublane aligned

    x = x_ref[0].astype(jnp.float32)                       # (H, W, C)

    # --- build the zero-padded flat input for conv1 (values only) ---
    zcols = jnp.zeros((H, Wp - W, C), jnp.float32)
    zrows = jnp.zeros((2 * Wp, C), jnp.float32)
    x_rows = jnp.concatenate([x, zcols], axis=1)           # (H, Wp, C)
    x_pad = jnp.concatenate([zrows, x_rows.reshape(H * Wp, C), zrows], axis=0)

    # --- conv1 + bias + ReLU (f32 accumulate) ---
    acc1 = _conv3x3_flat(x_pad, w1_ref, H, Wp, mxu_dtype)
    y = jnp.maximum(acc1 + b1_ref[...], 0.0)               # (H*Wp, C)

    # Zero the garbage columns [W, Wp) so they act as conv2's zero padding.
    col = lax.broadcasted_iota(jnp.int32, (H, Wp, 1), 1)
    y = jnp.where(col < W, y.reshape(H, Wp, C), 0.0).reshape(H * Wp, C)
    y_pad = jnp.concatenate([zrows, y, zrows], axis=0)

    # --- conv2 + bias ---
    acc2 = _conv3x3_flat(y_pad, w2_ref, H, Wp, mxu_dtype)
    z = (acc2 + b2_ref[...]).reshape(H, Wp, C)[:, :W, :]   # (H, W, C)

    # --- residual add with res_scale, single output store ---
    out = x + z * res_scale
    o_ref[...] = out[None].astype(o_ref.dtype)


def residual_block_no_bn_nhwc(x, w1, b1, w2, b2, *, res_scale=1.0,
                              mxu_dtype=jnp.bfloat16):
    """x: (N, H, W, C) f32.  w1/w2: (3, 3, C, C) HWIO.  b1/b2: (C,)."""
    N, H, W, C = x.shape
    w1c = w1.astype(mxu_dtype)
    w2c = w2.astype(mxu_dtype)
    b1_2d = b1.reshape(1, C).astype(jnp.float32)
    b2_2d = b2.reshape(1, C).astype(jnp.float32)

    kernel = functools.partial(_resblock_kernel,
                               res_scale=float(res_scale),
                               mxu_dtype=mxu_dtype)

    return pl.pallas_call(
        kernel,
        out_shape=jax.ShapeDtypeStruct((N, H, W, C), x.dtype),
        grid_spec=pltpu.PrefetchScalarGridSpec(
            num_scalar_prefetch=0,
            grid=(N,),
            in_specs=[
                pl.BlockSpec((1, H, W, C), lambda n: (n, 0, 0, 0)),
                pl.BlockSpec((3, 3, C, C), lambda n: (0, 0, 0, 0)),
                pl.BlockSpec((1, C), lambda n: (0, 0)),
                pl.BlockSpec((3, 3, C, C), lambda n: (0, 0, 0, 0)),
                pl.BlockSpec((1, C), lambda n: (0, 0)),
            ],
            out_specs=pl.BlockSpec((1, H, W, C), lambda n: (n, 0, 0, 0)),
        ),
        compiler_params=pltpu.CompilerParams(
            dimension_semantics=("parallel",)),
    )(x, w1c, b1_2d, w2c, b2_2d)


def residual_block_no_bn(x_nchw, w1, b1, w2, b2, *, res_scale=1.0,
                         mxu_dtype=jnp.bfloat16):
    """PyTorch-parity wrapper (NCHW).  In an NHWC-native pipeline call
    residual_block_no_bn_nhwc directly and these two transposes disappear."""
    x = jnp.transpose(x_nchw, (0, 2, 3, 1))
    out = residual_block_no_bn_nhwc(x, w1, b1, w2, b2,
                                    res_scale=res_scale, mxu_dtype=mxu_dtype)
    return jnp.transpose(out, (0, 3, 1, 2))


def _reference(x_nchw, w1, b1, w2, b2, res_scale):
    """Pure-JAX reference (NCHW, matches the PyTorch module)."""
    dn = lax.conv_dimension_numbers(x_nchw.shape, (1, 1, 3, 3),
                                    ("NCHW", "OIHW", "NCHW"))
    w1_oihw = jnp.transpose(w1, (3, 2, 0, 1))
    w2_oihw = jnp.transpose(w2, (3, 2, 0, 1))
    y = lax.conv_general_dilated(x_nchw, w1_oihw, (1, 1), ((1, 1), (1, 1)),
                                 dimension_numbers=dn)
    y = jnp.maximum(y + b1.reshape(1, -1, 1, 1), 0.0)
    z = lax.conv_general_dilated(y, w2_oihw, (1, 1), ((1, 1), (1, 1)),
                                 dimension_numbers=dn)
    z = z + b2.reshape(1, -1, 1, 1)
    return x_nchw + z * res_scale


if __name__ == "__main__":
    key = jax.random.PRNGKey(0)
    N, C, H, W = 2, 32, 16, 16   # mid_channels = 32 (small, synthetic)
    res_scale = 0.5

    k_x, k_w1, k_b1, k_w2, k_b2 = jax.random.split(key, 5)
    x = jax.random.normal(k_x, (N, C, H, W), jnp.float32)
    fan_in = C * 3 * 3
    bound = 1.0 / (fan_in ** 0.5)
    w1 = jax.random.uniform(k_w1, (3, 3, C, C), jnp.float32, -bound, bound)
    b1 = jax.random.uniform(k_b1, (C,), jnp.float32, -bound, bound)
    w2 = jax.random.uniform(k_w2, (3, 3, C, C), jnp.float32, -bound, bound)
    b2 = jax.random.uniform(k_b2, (C,), jnp.float32, -bound, bound)

    ref = _reference(x, w1, b1, w2, b2, res_scale)

    # Exact-math check: f32 MXU operands.
    out_f32 = residual_block_no_bn(x, w1, b1, w2, b2, res_scale=res_scale,
                                   mxu_dtype=jnp.float32)
    out_f32 = jax.block_until_ready(out_f32)
    assert out_f32.shape == (N, C, H, W)
    assert jnp.allclose(out_f32, ref, atol=2e-4, rtol=2e-4), \
        f"f32 max err {jnp.max(jnp.abs(out_f32 - ref))}"

    # Production path: bf16 MXU operands, f32 accumulation.
    out_bf16 = residual_block_no_bn(x, w1, b1, w2, b2, res_scale=res_scale)
    out_bf16 = jax.block_until_ready(out_bf16)
    assert out_bf16.shape == (N, C, H, W)
    assert jnp.allclose(out_bf16, ref, atol=5e-2, rtol=5e-2), \
        f"bf16 max err {jnp.max(jnp.abs(out_bf16 - ref))}"

    print("KERNEL_OK")
</pallas_src>

<mosaic_0001>
module attributes {stable_mosaic.version = 11 : i64} {
  func.func @_resblock_kernel(%arg0: i32, %arg1: memref<1x16x16x32xf32, #tpu.memory_space<vmem>>, %arg2: memref<3x3x32x32xf32, #tpu.memory_space<vmem>>, %arg3: memref<1x32xf32, #tpu.memory_space<vmem>>, %arg4: memref<3x3x32x32xf32, #tpu.memory_space<vmem>>, %arg5: memref<1x32xf32, #tpu.memory_space<vmem>>, %arg6: memref<1x16x16x32xf32, #tpu.memory_space<vmem>>) attributes {dimension_semantics = [#tpu.dimension_semantics<parallel>], iteration_bounds = array<i64: 2>, scalar_prefetch = 0 : i64, scratch_operands = 0 : i64, tpu.core_type = #tpu.core_type<tc>, window_params = [{transform_indices = @transform_0, window_bounds = array<i64: 1, 16, 16, 32>}, {pipeline_mode = #tpu.pipeline_mode<synchronous>, transform_indices = @transform_1, window_bounds = array<i64: 3, 3, 32, 32>}, {pipeline_mode = #tpu.pipeline_mode<synchronous>, transform_indices = @transform_2, window_bounds = array<i64: 1, 32>}, {pipeline_mode = #tpu.pipeline_mode<synchronous>, transform_indices = @transform_3, window_bounds = array<i64: 3, 3, 32, 32>}, {pipeline_mode = #tpu.pipeline_mode<synchronous>, transform_indices = @transform_4, window_bounds = array<i64: 1, 32>}, {transform_indices = @transform_5, window_bounds = array<i64: 1, 16, 16, 32>}]} {
    %c0 = arith.constant 0 : index
    %c0_0 = arith.constant 0 : index
    %c0_1 = arith.constant 0 : index
    %c0_2 = arith.constant 0 : index
    %0 = vector.load %arg1[%c0, %c0_0, %c0_1, %c0_2] : memref<1x16x16x32xf32, #tpu.memory_space<vmem>>, vector<1x16x16x32xf32>
    %1 = vector.shape_cast %0 : vector<1x16x16x32xf32> to vector<16x16x32xf32>
    %cst = arith.constant 0.000000e+00 : f32
    %2 = vector.broadcast %cst : f32 to vector<16x8x32xf32>
    %cst_3 = arith.constant 0.000000e+00 : f32
    %3 = vector.broadcast %cst_3 : f32 to vector<48x32xf32>
    %4 = tpu.concatenate %1, %2 in 1 : vector<16x16x32xf32>, vector<16x8x32xf32> -> vector<16x24x32xf32>
    %5 = vector.shape_cast %4 : vector<16x24x32xf32> to vector<384x32xf32>
    %6 = tpu.concatenate %3, %5, %3 in 0 : vector<48x32xf32>, vector<384x32xf32>, vector<48x32xf32> -> vector<480x32xf32>
    %7 = vector.extract_strided_slice %6 {offsets = [23, 0], sizes = [432, 32], strides = [1, 1]} : vector<480x32xf32> to vector<432x32xf32>
    %8 = vector.extract_strided_slice %6 {offsets = [24, 0], sizes = [432, 32], strides = [1, 1]} : vector<480x32xf32> to vector<432x32xf32>
    %9 = vector.extract_strided_slice %6 {offsets = [25, 0], sizes = [432, 32], strides = [1, 1]} : vector<480x32xf32> to vector<432x32xf32>
    %cst_4 = arith.constant 0.000000e+00 : f32
    %10 = vector.broadcast %cst_4 : f32 to vector<384x32xf32>
    %11 = vector.extract_strided_slice %7 {offsets = [0, 0], sizes = [384, 32], strides = [1, 1]} : vector<432x32xf32> to vector<384x32xf32>
    %c0_5 = arith.constant 0 : index
    %c0_6 = arith.constant 0 : index
    %c0_7 = arith.constant 0 : index
    %c0_8 = arith.constant 0 : index
    %12 = vector.load %arg2[%c0_5, %c0_6, %c0_7, %c0_8] : memref<3x3x32x32xf32, #tpu.memory_space<vmem>>, vector<1x1x32x32xf32>
    %13 = vector.shape_cast %12 : vector<1x1x32x32xf32> to vector<32x32xf32>
    %cst_9 = arith.constant dense<0.000000e+00> : vector<384x32xf32>
    %14 = tpu.matmul %11, %13, %cst_9 {dimension_numbers = #tpu.dot_dimension_numbers<[1], [0], [0], [1], [0, 0, 1, 1], [], []>} : vector<384x32xf32>, vector<32x32xf32>, vector<384x32xf32> -> vector<384x32xf32>
    %15 = arith.addf %10, %14 : vector<384x32xf32>
    %16 = vector.extract_strided_slice %8 {offsets = [0, 0], sizes = [384, 32], strides = [1, 1]} : vector<432x32xf32> to vector<384x32xf32>
    %c0_10 = arith.constant 0 : index
    %c1 = arith.constant 1 : index
    %c0_11 = arith.constant 0 : index
    %c0_12 = arith.constant 0 : index
    %17 = vector.load %arg2[%c0_10, %c1, %c0_11, %c0_12] : memref<3x3x32x32xf32, #tpu.memory_space<vmem>>, vector<1x1x32x32xf32>
    %18 = vector.shape_cast %17 : vector<1x1x32x32xf32> to vector<32x32xf32>
    %cst_13 = arith.constant dense<0.000000e+00> : vector<384x32xf32>
    %19 = tpu.matmul %16, %18, %cst_13 {dimension_numbers = #tpu.dot_dimension_numbers<[1], [0], [0], [1], [0, 0, 1, 1], [], []>} : vector<384x32xf32>, vector<32x32xf32>, vector<384x32xf32> -> vector<384x32xf32>
    %20 = arith.addf %15, %19 : vector<384x32xf32>
    %21 = vector.extract_strided_slice %9 {offsets = [0, 0], sizes = [384, 32], strides = [1, 1]} : vector<432x32xf32> to vector<384x32xf32>
    %c0_14 = arith.constant 0 : index
    %c2 = arith.constant 2 : index
    %c0_15 = arith.constant 0 : index
    %c0_16 = arith.constant 0 : index
    %22 = vector.load %arg2[%c0_14, %c2, %c0_15, %c0_16] : memref<3x3x32x32xf32, #tpu.memory_space<vmem>>, vector<1x1x32x32xf32>
    %23 = vector.shape_cast %22 : vector<1x1x32x32xf32> to vector<32x32xf32>
    %cst_17 = arith.constant dense<0.000000e+00> : vector<384x32xf32>
    %24 = tpu.matmul %21, %23, %cst_17 {dimension_numbers = #tpu.dot_dimension_numbers<[1], [0], [0], [1], [0, 0, 1, 1], [], []>} : vector<384x32xf32>, vector<32x32xf32>, vector<384x32xf32> -> vector<384x32xf32>
    %25 = arith.addf %20, %24 : vector<384x32xf32>
    %26 = vector.extract_strided_slice %7 {offsets = [24, 0], sizes = [384, 32], strides = [1, 1]} : vector<432x32xf32> to vector<384x32xf32>
    %c1_18 = arith.constant 1 : index
    %c0_19 = arith.constant 0 : index
    %c0_20 = arith.constant 0 : index
    %c0_21 = arith.constant 0 : index
    %27 = vector.load %arg2[%c1_18, %c0_19, %c0_20, %c0_21] : memref<3x3x32x32xf32, #tpu.memory_space<vmem>>, vector<1x1x32x32xf32>
    %28 = vector.shape_cast %27 : vector<1x1x32x32xf32> to vector<32x32xf32>
    %cst_22 = arith.constant dense<0.000000e+00> : vector<384x32xf32>
    %29 = tpu.matmul %26, %28, %cst_22 {dimension_numbers = #tpu.dot_dimension_numbers<[1], [0], [0], [1], [0, 0, 1, 1], [], []>} : vector<384x32xf32>, vector<32x32xf32>, vector<384x32xf32> -> vector<384x32xf32>
    %30 = arith.addf %25, %29 : vector<384x32xf32>
    %31 = vector.extract_strided_slice %8 {offsets = [24, 0], sizes = [384, 32], strides = [1, 1]} : vector<432x32xf32> to vector<384x32xf32>
    %c1_23 = arith.constant 1 : index
    %c1_24 = arith.constant 1 : index
    %c0_25 = arith.constant 0 : index
    %c0_26 = arith.constant 0 : index
    %32 = vector.load %arg2[%c1_23, %c1_24, %c0_25, %c0_26] : memref<3x3x32x32xf32, #tpu.memory_space<vmem>>, vector<1x1x32x32xf32>
    %33 = vector.shape_cast %32 : vector<1x1x32x32xf32> to vector<32x32xf32>
    %cst_27 = arith.constant dense<0.000000e+00> : vector<384x32xf32>
    %34 = tpu.matmul %31, %33, %cst_27 {dimension_numbers = #tpu.dot_dimension_numbers<[1], [0], [0], [1], [0, 0, 1, 1], [], []>} : vector<384x32xf32>, vector<32x32xf32>, vector<384x32xf32> -> vector<384x32xf32>
    %35 = arith.addf %30, %34 : vector<384x32xf32>
    %36 = vector.extract_strided_slice %9 {offsets = [24, 0], sizes = [384, 32], strides = [1, 1]} : vector<432x32xf32> to vector<384x32xf32>
    %c1_28 = arith.constant 1 : index
    %c2_29 = arith.constant 2 : index
    %c0_30 = arith.constant 0 : index
    %c0_31 = arith.constant 0 : index
    %37 = vector.load %arg2[%c1_28, %c2_29, %c0_30, %c0_31] : memref<3x3x32x32xf32, #tpu.memory_space<vmem>>, vector<1x1x32x32xf32>
    %38 = vector.shape_cast %37 : vector<1x1x32x32xf32> to vector<32x32xf32>
    %cst_32 = arith.constant dense<0.000000e+00> : vector<384x32xf32>
    %39 = tpu.matmul %36, %38, %cst_32 {dimension_numbers = #tpu.dot_dimension_numbers<[1], [0], [0], [1], [0, 0, 1, 1], [], []>} : vector<384x32xf32>, vector<32x32xf32>, vector<384x32xf32> -> vector<384x32xf32>
    %40 = arith.addf %35, %39 : vector<384x32xf32>
    %41 = vector.extract_strided_slice %7 {offsets = [48, 0], sizes = [384, 32], strides = [1, 1]} : vector<432x32xf32> to vector<384x32xf32>
    %c2_33 = arith.constant 2 : index
    %c0_34 = arith.constant 0 : index
    %c0_35 = arith.constant 0 : index
    %c0_36 = arith.constant 0 : index
    %42 = vector.load %arg2[%c2_33, %c0_34, %c0_35, %c0_36] : memref<3x3x32x32xf32, #tpu.memory_space<vmem>>, vector<1x1x32x32xf32>
    %43 = vector.shape_cast %42 : vector<1x1x32x32xf32> to vector<32x32xf32>
    %cst_37 = arith.constant dense<0.000000e+00> : vector<384x32xf32>
    %44 = tpu.matmul %41, %43, %cst_37 {dimension_numbers = #tpu.dot_dimension_numbers<[1], [0], [0], [1], [0, 0, 1, 1], [], []>} : vector<384x32xf32>, vector<32x32xf32>, vector<384x32xf32> -> vector<384x32xf32>
    %45 = arith.addf %40, %44 : vector<384x32xf32>
    %46 = vector.extract_strided_slice %8 {offsets = [48, 0], sizes = [384, 32], strides = [1, 1]} : vector<432x32xf32> to vector<384x32xf32>
    %c2_38 = arith.constant 2 : index
    %c1_39 = arith.constant 1 : index
    %c0_40 = arith.constant 0 : index
    %c0_41 = arith.constant 0 : index
    %47 = vector.load %arg2[%c2_38, %c1_39, %c0_40, %c0_41] : memref<3x3x32x32xf32, #tpu.memory_space<vmem>>, vector<1x1x32x32xf32>
    %48 = vector.shape_cast %47 : vector<1x1x32x32xf32> to vector<32x32xf32>
    %cst_42 = arith.constant dense<0.000000e+00> : vector<384x32xf32>
    %49 = tpu.matmul %46, %48, %cst_42 {dimension_numbers = #tpu.dot_dimension_numbers<[1], [0], [0], [1], [0, 0, 1, 1], [], []>} : vector<384x32xf32>, vector<32x32xf32>, vector<384x32xf32> -> vector<384x32xf32>
    %50 = arith.addf %45, %49 : vector<384x32xf32>
    %51 = vector.extract_strided_slice %9 {offsets = [48, 0], sizes = [384, 32], strides = [1, 1]} : vector<432x32xf32> to vector<384x32xf32>
    %c2_43 = arith.constant 2 : index
    %c2_44 = arith.constant 2 : index
    %c0_45 = arith.constant 0 : index
    %c0_46 = arith.constant 0 : index
    %52 = vector.load %arg2[%c2_43, %c2_44, %c0_45, %c0_46] : memref<3x3x32x32xf32, #tpu.memory_space<vmem>>, vector<1x1x32x32xf32>
    %53 = vector.shape_cast %52 : vector<1x1x32x32xf32> to vector<32x32xf32>
    %cst_47 = arith.constant dense<0.000000e+00> : vector<384x32xf32>
    %54 = tpu.matmul %51, %53, %cst_47 {dimension_numbers = #tpu.dot_dimension_numbers<[1], [0], [0], [1], [0, 0, 1, 1], [], []>} : vector<384x32xf32>, vector<32x32xf32>, vector<384x32xf32> -> vector<384x32xf32>
    %55 = arith.addf %50, %54 : vector<384x32xf32>
    %c0_48 = arith.constant 0 : index
    %c0_49 = arith.constant 0 : index
    %56 = vector.load %arg3[%c0_48, %c0_49] : memref<1x32xf32, #tpu.memory_space<vmem>>, vector<1x32xf32>
    %57 = vector.broadcast %56 : vector<1x32xf32> to vector<384x32xf32>
    %58 = arith.addf %55, %57 : vector<384x32xf32>
    %cst_50 = arith.constant 0.000000e+00 : f32
    %59 = vector.broadcast %cst_50 : f32 to vector<384x32xf32>
    %60 = arith.maximumf %58, %59 : vector<384x32xf32>
    %61 = tpu.iota {dimensions = array<i32: 1>} : vector<16x24x1xi32>
    %c16_i32 = arith.constant 16 : i32
    %62 = vector.broadcast %c16_i32 : i32 to vector<16x24x1xi32>
    %63 = arith.cmpi slt, %61, %62 : vector<16x24x1xi32>
    %64 = vector.shape_cast %60 : vector<384x32xf32> to vector<16x24x32xf32>
    %cst_51 = arith.constant 0.000000e+00 : f32
    %65 = vector.shape_cast %63 : vector<16x24x1xi1> to vector<16x24x1xi1>
    %66 = vector.broadcast %65 : vector<16x24x1xi1> to vector<16x24x32xi1>
    %67 = vector.broadcast %cst_51 : f32 to vector<16x24x32xf32>
    %68 = arith.select %66, %64, %67 : vector<16x24x32xi1>, vector<16x24x32xf32>
    %69 = vector.shape_cast %68 : vector<16x24x32xf32> to vector<384x32xf32>
    %70 = tpu.concatenate %3, %69, %3 in 0 : vector<48x32xf32>, vector<384x32xf32>, vector<48x32xf32> -> vector<480x32xf32>
    %71 = vector.extract_strided_slice %70 {offsets = [23, 0], sizes = [432, 32], strides = [1, 1]} : vector<480x32xf32> to vector<432x32xf32>
    %72 = vector.extract_strided_slice %70 {offsets = [24, 0], sizes = [432, 32], strides = [1, 1]} : vector<480x32xf32> to vector<432x32xf32>
    %73 = vector.extract_strided_slice %70 {offsets = [25, 0], sizes = [432, 32], strides = [1, 1]} : vector<480x32xf32> to vector<432x32xf32>
    %cst_52 = arith.constant 0.000000e+00 : f32
    %74 = vector.broadcast %cst_52 : f32 to vector<384x32xf32>
    %75 = vector.extract_strided_slice %71 {offsets = [0, 0], sizes = [384, 32], strides = [1, 1]} : vector<432x32xf32> to vector<384x32xf32>
    %c0_53 = arith.constant 0 : index
    %c0_54 = arith.constant 0 : index
    %c0_55 = arith.constant 0 : index
    %c0_56 = arith.constant 0 : index
    %76 = vector.load %arg4[%c0_53, %c0_54, %c0_55, %c0_56] : memref<3x3x32x32xf32, #tpu.memory_space<vmem>>, vector<1x1x32x32xf32>
    %77 = vector.shape_cast %76 : vector<1x1x32x32xf32> to vector<32x32xf32>
    %cst_57 = arith.constant dense<0.000000e+00> : vector<384x32xf32>
    %78 = tpu.matmul %75, %77, %cst_57 {dimension_numbers = #tpu.dot_dimension_numbers<[1], [0], [0], [1], [0, 0, 1, 1], [], []>} : vector<384x32xf32>, vector<32x32xf32>, vector<384x32xf32> -> vector<384x32xf32>
    %79 = arith.addf %74, %78 : vector<384x32xf32>
    %80 = vector.extract_strided_slice %72 {offsets = [0, 0], sizes = [384, 32], strides = [1, 1]} : vector<432x32xf32> to vector<384x32xf32>
    %c0_58 = arith.constant 0 : index
    %c1_59 = arith.constant 1 : index
    %c0_60 = arith.constant 0 : index
    %c0_61 = arith.constant 0 : index
    %81 = vector.load %arg4[%c0_58, %c1_59, %c0_60, %c0_61] : memref<3x3x32x32xf32, #tpu.memory_space<vmem>>, vector<1x1x32x32xf32>
    %82 = vector.shape_cast %81 : vector<1x1x32x32xf32> to vector<32x32xf32>
    %cst_62 = arith.constant dense<0.000000e+00> : vector<384x32xf32>
    %83 = tpu.matmul %80, %82, %cst_62 {dimension_numbers = #tpu.dot_dimension_numbers<[1], [0], [0], [1], [0, 0, 1, 1], [], []>} : vector<384x32xf32>, vector<32x32xf32>, vector<384x32xf32> -> vector<384x32xf32>
    %84 = arith.addf %79, %83 : vector<384x32xf32>
    %85 = vector.extract_strided_slice %73 {offsets = [0, 0], sizes = [384, 32], strides = [1, 1]} : vector<432x32xf32> to vector<384x32xf32>
    %c0_63 = arith.constant 0 : index
    %c2_64 = arith.constant 2 : index
    %c0_65 = arith.constant 0 : index
    %c0_66 = arith.constant 0 : index
    %86 = vector.load %arg4[%c0_63, %c2_64, %c0_65, %c0_66] : memref<3x3x32x32xf32, #tpu.memory_space<vmem>>, vector<1x1x32x32xf32>
    %87 = vector.shape_cast %86 : vector<1x1x32x32xf32> to vector<32x32xf32>
    %cst_67 = arith.constant dense<0.000000e+00> : vector<384x32xf32>
    %88 = tpu.matmul %85, %87, %cst_67 {dimension_numbers = #tpu.dot_dimension_numbers<[1], [0], [0], [1], [0, 0, 1, 1], [], []>} : vector<384x32xf32>, vector<32x32xf32>, vector<384x32xf32> -> vector<384x32xf32>
    %89 = arith.addf %84, %88 : vector<384x32xf32>
    %90 = vector.extract_strided_slice %71 {offsets = [24, 0], sizes = [384, 32], strides = [1, 1]} : vector<432x32xf32> to vector<384x32xf32>
    %c1_68 = arith.constant 1 : index
    %c0_69 = arith.constant 0 : index
    %c0_70 = arith.constant 0 : index
    %c0_71 = arith.constant 0 : index
    %91 = vector.load %arg4[%c1_68, %c0_69, %c0_70, %c0_71] : memref<3x3x32x32xf32, #tpu.memory_space<vmem>>, vector<1x1x32x32xf32>
    %92 = vector.shape_cast %91 : vector<1x1x32x32xf32> to vector<32x32xf32>
    %cst_72 = arith.constant dense<0.000000e+00> : vector<384x32xf32>
    %93 = tpu.matmul %90, %92, %cst_72 {dimension_numbers = #tpu.dot_dimension_numbers<[1], [0], [0], [1], [0, 0, 1, 1], [], []>} : vector<384x32xf32>, vector<32x32xf32>, vector<384x32xf32> -> vector<384x32xf32>
    %94 = arith.addf %89, %93 : vector<384x32xf32>
    %95 = vector.extract_strided_slice %72 {offsets = [24, 0], sizes = [384, 32], strides = [1, 1]} : vector<432x32xf32> to vector<384x32xf32>
    %c1_73 = arith.constant 1 : index
    %c1_74 = arith.constant 1 : index
    %c0_75 = arith.constant 0 : index
    %c0_76 = arith.constant 0 : index
    %96 = vector.load %arg4[%c1_73, %c1_74, %c0_75, %c0_76] : memref<3x3x32x32xf32, #tpu.memory_space<vmem>>, vector<1x1x32x32xf32>
    %97 = vector.shape_cast %96 : vector<1x1x32x32xf32> to vector<32x32xf32>
    %cst_77 = arith.constant dense<0.000000e+00> : vector<384x32xf32>
    %98 = tpu.matmul %95, %97, %cst_77 {dimension_numbers = #tpu.dot_dimension_numbers<[1], [0], [0], [1], [0, 0, 1, 1], [], []>} : vector<384x32xf32>, vector<32x32xf32>, vector<384x32xf32> -> vector<384x32xf32>
    %99 = arith.addf %94, %98 : vector<384x32xf32>
    %100 = vector.extract_strided_slice %73 {offsets = [24, 0], sizes = [384, 32], strides = [1, 1]} : vector<432x32xf32> to vector<384x32xf32>
    %c1_78 = arith.constant 1 : index
    %c2_79 = arith.constant 2 : index
    %c0_80 = arith.constant 0 : index
    %c0_81 = arith.constant 0 : index
    %101 = vector.load %arg4[%c1_78, %c2_79, %c0_80, %c0_81] : memref<3x3x32x32xf32, #tpu.memory_space<vmem>>, vector<1x1x32x32xf32>
    %102 = vector.shape_cast %101 : vector<1x1x32x32xf32> to vector<32x32xf32>
    %cst_82 = arith.constant dense<0.000000e+00> : vector<384x32xf32>
    %103 = tpu.matmul %100, %102, %cst_82 {dimension_numbers = #tpu.dot_dimension_numbers<[1], [0], [0], [1], [0, 0, 1, 1], [], []>} : vector<384x32xf32>, vector<32x32xf32>, vector<384x32xf32> -> vector<384x32xf32>
    %104 = arith.addf %99, %103 : vector<384x32xf32>
    %105 = vector.extract_strided_slice %71 {offsets = [48, 0], sizes = [384, 32], strides = [1, 1]} : vector<432x32xf32> to vector<384x32xf32>
    %c2_83 = arith.constant 2 : index
    %c0_84 = arith.constant 0 : index
    %c0_85 = arith.constant 0 : index
    %c0_86 = arith.constant 0 : index
    %106 = vector.load %arg4[%c2_83, %c0_84, %c0_85, %c0_86] : memref<3x3x32x32xf32, #tpu.memory_space<vmem>>, vector<1x1x32x32xf32>
    %107 = vector.shape_cast %106 : vector<1x1x32x32xf32> to vector<32x32xf32>
    %cst_87 = arith.constant dense<0.000000e+00> : vector<384x32xf32>
    %108 = tpu.matmul %105, %107, %cst_87 {dimension_numbers = #tpu.dot_dimension_numbers<[1], [0], [0], [1], [0, 0, 1, 1], [], []>} : vector<384x32xf32>, vector<32x32xf32>, vector<384x32xf32> -> vector<384x32xf32>
    %109 = arith.addf %104, %108 : vector<384x32xf32>
    %110 = vector.extract_strided_slice %72 {offsets = [48, 0], sizes = [384, 32], strides = [1, 1]} : vector<432x32xf32> to vector<384x32xf32>
    %c2_88 = arith.constant 2 : index
    %c1_89 = arith.constant 1 : index
    %c0_90 = arith.constant 0 : index
    %c0_91 = arith.constant 0 : index
    %111 = vector.load %arg4[%c2_88, %c1_89, %c0_90, %c0_91] : memref<3x3x32x32xf32, #tpu.memory_space<vmem>>, vector<1x1x32x32xf32>
    %112 = vector.shape_cast %111 : vector<1x1x32x32xf32> to vector<32x32xf32>
    %cst_92 = arith.constant dense<0.000000e+00> : vector<384x32xf32>
    %113 = tpu.matmul %110, %112, %cst_92 {dimension_numbers = #tpu.dot_dimension_numbers<[1], [0], [0], [1], [0, 0, 1, 1], [], []>} : vector<384x32xf32>, vector<32x32xf32>, vector<384x32xf32> -> vector<384x32xf32>
    %114 = arith.addf %109, %113 : vector<384x32xf32>
    %115 = vector.extract_strided_slice %73 {offsets = [48, 0], sizes = [384, 32], strides = [1, 1]} : vector<432x32xf32> to vector<384x32xf32>
    %c2_93 = arith.constant 2 : index
    %c2_94 = arith.constant 2 : index
    %c0_95 = arith.constant 0 : index
    %c0_96 = arith.constant 0 : index
    %116 = vector.load %arg4[%c2_93, %c2_94, %c0_95, %c0_96] : memref<3x3x32x32xf32, #tpu.memory_space<vmem>>, vector<1x1x32x32xf32>
    %117 = vector.shape_cast %116 : vector<1x1x32x32xf32> to vector<32x32xf32>
    %cst_97 = arith.constant dense<0.000000e+00> : vector<384x32xf32>
    %118 = tpu.matmul %115, %117, %cst_97 {dimension_numbers = #tpu.dot_dimension_numbers<[1], [0], [0], [1], [0, 0, 1, 1], [], []>} : vector<384x32xf32>, vector<32x32xf32>, vector<384x32xf32> -> vector<384x32xf32>
    %119 = arith.addf %114, %118 : vector<384x32xf32>
    %c0_98 = arith.constant 0 : index
    %c0_99 = arith.constant 0 : index
    %120 = vector.load %arg5[%c0_98, %c0_99] : memref<1x32xf32, #tpu.memory_space<vmem>>, vector<1x32xf32>
    %121 = vector.broadcast %120 : vector<1x32xf32> to vector<384x32xf32>
    %122 = arith.addf %119, %121 : vector<384x32xf32>
    %123 = vector.shape_cast %122 : vector<384x32xf32> to vector<16x24x32xf32>
    %124 = vector.extract_strided_slice %123 {offsets = [0, 0, 0], sizes = [16, 16, 32], strides = [1, 1, 1]} : vector<16x24x32xf32> to vector<16x16x32xf32>
    %cst_100 = arith.constant 5.000000e-01 : f32
    %125 = vector.broadcast %cst_100 : f32 to vector<16x16x32xf32>
    %126 = arith.mulf %124, %125 : vector<16x16x32xf32>
    %127 = arith.addf %1, %126 : vector<16x16x32xf32>
    %128 = vector.shape_cast %127 : vector<16x16x32xf32> to vector<1x16x16x32xf32>
    %c0_101 = arith.constant 0 : index
    %c0_102 = arith.constant 0 : index
    %c0_103 = arith.constant 0 : index
    %c0_104 = arith.constant 0 : index
    %129 = vector.load %arg6[%c0_101, %c0_102, %c0_103, %c0_104] : memref<1x16x16x32xf32, #tpu.memory_space<vmem>>, vector<1x16x16x32xf32>
    tpu.vector_store %arg6[%c0_101, %c0_102, %c0_103, %c0_104], %128 {strides = array<i32>} : memref<1x16x16x32xf32, #tpu.memory_space<vmem>>, vector<1x16x16x32xf32>,
    return
  }
  func.func @transform_0(%arg0: i32) -> (i32, i32, i32, i32) {
    %c0_i32 = arith.constant 0 : i32
    %c0_i32_0 = arith.constant 0 : i32
    %c0_i32_1 = arith.constant 0 : i32
    %c0_i32_2 = arith.constant 0 : i32
    return %arg0, %c0_i32, %c0_i32_0, %c0_i32_1 : i32, i32, i32, i32
  }
  func.func @transform_1(%arg0: i32) -> (i32, i32, i32, i32) {
    %c0_i32 = arith.constant 0 : i32
    %c0_i32_0 = arith.constant 0 : i32
    %c0_i32_1 = arith.constant 0 : i32
    %c0_i32_2 = arith.constant 0 : i32
    %c0_i32_3 = arith.constant 0 : i32
    return %c0_i32, %c0_i32_0, %c0_i32_1, %c0_i32_2 : i32, i32, i32, i32
  }
  func.func @transform_2(%arg0: i32) -> (i32, i32) {
    %c0_i32 = arith.constant 0 : i32
    %c0_i32_0 = arith.constant 0 : i32
    %c0_i32_1 = arith.constant 0 : i32
    return %c0_i32, %c0_i32_0 : i32, i32
  }
  func.func @transform_3(%arg0: i32) -> (i32, i32, i32, i32) {
    %c0_i32 = arith.constant 0 : i32
    %c0_i32_0 = arith.constant 0 : i32
    %c0_i32_1 = arith.constant 0 : i32
    %c0_i32_2 = arith.constant 0 : i32
    %c0_i32_3 = arith.constant 0 : i32
    return %c0_i32, %c0_i32_0, %c0_i32_1, %c0_i32_2 : i32, i32, i32, i32
  }
  func.func @transform_4(%arg0: i32) -> (i32, i32) {
    %c0_i32 = arith.constant 0 : i32
    %c0_i32_0 = arith.constant 0 : i32
    %c0_i32_1 = arith.constant 0 : i32
    return %c0_i32, %c0_i32_0 : i32, i32
  }
  func.func @transform_5(%arg0: i32) -> (i32, i32, i32, i32) {
    %c0_i32 = arith.constant 0 : i32
    %c0_i32_0 = arith.constant 0 : i32
    %c0_i32_1 = arith.constant 0 : i32
    %c0_i32_2 = arith.constant 0 : i32
    return %arg0, %c0_i32, %c0_i32_0, %c0_i32_1 : i32, i32, i32, i32
  }
}

</mosaic_0001>

<bundles_post_ra>
// kernel: tpu_custom_call.1
= control target key start
LH: loop header
LB: loop body
LE: loop exit
PB: predicated region body
PF: predicated region fallthrough
CT: control target
= control target key end

     0   :  { %10 = vsyncpa [#allocation3], 0  ;;  %s15109_s0 = inlined_call_operand.hbm [shape: f32[2,16,16,32], index: 0, kind: input, shape index: {}]   ;;  %s15110_s1 = inlined_call_operand.hbm [shape: f32[3,3,32,32], index: 1, kind: input, shape index: {}]   ;;  %s15111_s2 = inlined_call_operand.vmem [shape: f32[1,32], index: 2, kind: input, shape index: {}]   ;;  %s15112_s3 = inlined_call_operand.hbm [shape: f32[3,3,32,32], index: 3, kind: input, shape index: {}]   ;;  %s15113_s4 = inlined_call_operand.vmem [shape: f32[1,32], index: 4, kind: input, shape index: {}]   ;;  %s15114_s5 = inlined_call_operand.hbm [shape: f32[2,16,16,32], index: 5, kind: output, shape index: {}]  }
   0x1   :  { %12 = vsyncpa [#allocation3 + $0x1], 0 }
   0x2   :  { %13 = vsyncpa [#allocation6], 0 }
   0x3   :  { %14 = vsyncpa [#allocation4], 0 }
   0x4   :  { %16 = vsyncpa [#allocation4 + $0x1], 0  ;;  %s11180_s18 = smov 0   ;;  %s11182_s19 = smov 0  }
   0x5   :  { %s11184_s20 = smov 0   ;;  %s11186_s21 = smov 0  }
   0x6 LB: > { %s11201_s22 = sadd.s32 4294967295, %s11139_s21   ;;  %s7699_s23 = sadd.s32 4294967294, %s11139_s21   ;;  %s11139_s21 = sphi %s11186_s21, %s15973_s21   ;;  %s11135_s20 = sphi %s11184_s20, %s15972_s20   ;;  %s11131_s19 = sphi %s11182_s19, %s15971_s19   ;;  %s11127_s18 = sphi %s11180_s18, %s15970_s18  }
   0x7   : > { %p42_p0 = scmp.ne.s32.totalorder %s11131_s19, %s11127_s18  ;;  %p15115_p1 = scmp.eq.s32.totalorder %s11201_s22, 0 }
   0x8   : > { %p150_p2 = scmp.eq.s32.totalorder %s11201_s22, 1  ;;  %p156_p3 = scmp.eq.s32.totalorder %s7699_s23, 1 }
   0x9   : > { %p11210_p4 = por %p15115_p1, %p42_p0  ;;  %p7700_p5 = scmp.ge.s32.totalorder %s11139_s21, 1 }
   0xa   : > { %p11215_p6 = por %p156_p3, %p42_p0  ;;  %p163_p7 = scmp.lt.s32.totalorder %s11139_s21, 3 }
   0xb   : > { %s15394_s24 = scalar_select %p11210_p4, 1, 0 }
   0xc   : > { %s15395_s25 = scalar_select %p11215_p6, 1, 0 }
   0xd   : > { %p11220_p8 = pnand %p7700_p5, %p163_p7  ;;  %s11141_s27 = smov [#allocation5]  }
   0xe   : > { %s175_s28 = sshll.u32 %s11141_s27, 4  ;;  %s11142_s30 = smov [#allocation7]   ;;  %s176_s28 = int_to_ptr.vmem [resolvable:$true] %s175_s28 }
   0xf   : > { %s15396_s26 = scalar_select %p11220_p8, 1, 0 }
  0x10   : > { %p10869_p9 = pneg %p11220_p8  ;;  %s191_s6 = sshll.u32 %s11142_s30, 4  ;;  %s192_s6 = int_to_ptr.vmem [resolvable:$true] %s191_s6 }
  0x11   : > { %s11002_s7 = scalar_lea.vmem %s176_s28, 4608  ;;  %p11010_p5 = scmp.lt.s32.totalorder %s176_s28, %s176_s28 }
  0x12   : > { %p11229_p11 = pnand %p10869_p9, %p15115_p1  ;;  %p11003_p13 = scmp.ne.s32.totalorder %s176_s28, %s11002_s7 }
  0x13   : > { %p11011_p7 = scmp.lt.s32.totalorder %s11002_s7, %s11002_s7 }
  0x14   : > { %p10993_p12 = pneg %p11229_p11 }
  0x15   : > { %p11012_p10 = por %p11011_p7, %p11010_p5 }
  0x16   : > { %p11005_p0 = pnand %p11003_p13, %p10993_p12 }
  0x18   : > { %p11006_p3 = pneg %p11005_p0 }
  0x1a   : > { %p11013_p9 = pnand %p11012_p10, %p11006_p3 }
  0x1c   : > { %11016 = shalt.err (!%p11013_p9)
}
  0x1d   : > { %s15116_s8 = smov 128   ;;  %s11144_s9 = smov 8  }
  0x1e   : > { %10872 = dma.hbm_to_vmem [thread:$0]  (!%p11229_p11), %s15110_s1, 4608, %s176_s28, [#allocation6], %s15116_s8, %s15116_s8, %s11144_s9  }
  0x1f   : > { %s11028_s12 = scalar_lea.vmem %s192_s6, 4608  ;;  %p11036_p10 = scmp.lt.s32.totalorder %s192_s6, %s192_s6 }
  0x20   : > { %p11029_p13 = scmp.ne.s32.totalorder %s192_s6, %s11028_s12  ;;  %p11037_p3 = scmp.lt.s32.totalorder %s11028_s12, %s11028_s12 }
  0x22   : > { %p11031_p0 = pnand %p11029_p13, %p10993_p12  ;;  %p11038_p7 = por %p11037_p3, %p11036_p10 }
  0x24   : > { %p11032_p5 = pneg %p11031_p0 }
  0x26   : > { %p11039_p9 = pnand %p11038_p7, %p11032_p5 }
  0x28   : > { %11042 = shalt.err (!%p11039_p9)
}
  0x29   : > { %10875 = dma.hbm_to_vmem [thread:$0]  (!%p11229_p11), %s15112_s3, 4608, %s192_s6, [#allocation6], %s15116_s8, %s15116_s8, %s11144_s9  }
  0x2a   : > { %s11258_s15 = sadd.s32 1, %s11139_s21   ;;  %s29_s16 = sadd.s32 1, %s11135_s20 }
  0x2b   : > { %s26_s17 = ssub.s32 %s11139_s21, %s11258_s15  ;;  %p36_p12 = scmp.ne.s32.totalorder %s11135_s20, %s11131_s19 }
  0x2c   : > { %p27_p13 = scmp.eq.s32.totalorder %s26_s17, 0  ;;  %p37_p0 = scmp.eq.s32.totalorder %s11139_s21, 0 }
  0x2d   : > { %p11268_p5 = por %p150_p2, %p36_p12  ;;  %p10886_p10 = scmp.lt.s32.totalorder %s11139_s21, 2 }
  0x2e   : > { %s11274_s27 = scalar_select %p27_p13, %s11135_s20, %s29_s16  }
  0x2f   : > { %s15398_s23 = scalar_select %p11268_p5, 1, 0 }
  0x30   : > { %p38_p3 = por %p37_p0, %p36_p12  ;;  %s208_s28 = sand.u32 1, %s11135_s20  }
  0x31   : > { %s7704_s29 = sshll.u32 %s208_s28, 8  ;;  %s8479_s30 = sshll.u32 %s11139_s21, 12 }
  0x32   : > { %s11281_s10 = scalar_lea.hbm %s15109_s0, %s8479_s30  ;;  %s212_s11 = scalar_lea.vmem [#allocation2], %s7704_s29 }
  0x33   : > { %s219_s12 = sshll.u32 %s212_s11, 4  ;;  %p11285_p2 = pnand %p10886_p10, %p38_p3  ;;  %s11283_s12 = int_to_ptr.vmem [resolvable:$true] %s219_s12 }
  0x34   : > { %s11289_s14 = scalar_lea.sflag [#allocation3], %s208_s28  ;;  %s11043_s16 = scalar_lea.hbm %s11281_s10, 4096 }
  0x35   : > { %p11044_p11 = scmp.ne.s32.totalorder %s11281_s10, %s11043_s16  ;;  %p11045_p7 = pneg %p11285_p2 }
  0x36   : > { %s11048_s29 = scalar_lea.hbm %s15109_s0, 8192  ;;  %p11049_p13 = scmp.lt.s32.totalorder %s11281_s10, %s15109_s0 }
  0x37   : > { %p11046_p9 = pnand %p11045_p7, %p11044_p11  ;;  %p11050_p0 = scmp.lt.s32.totalorder %s11048_s29, %s11043_s16 }
  0x39   : > { %p11047_p12 = pneg %p11046_p9  ;;  %p11051_p10 = por %p11050_p0, %p11049_p13 }
  0x3b   : > { %p11052_p3 = pnand %p11051_p10, %p11047_p12 }
  0x3d   : > { %11055 = shalt.err (!%p11052_p3)
}
  0x3e   : > { %s11056_s28 = scalar_lea.vmem %s11283_s12, 4096  ;;  %s11145_s11 = smov [#allocation2]  }
  0x3f   : > { %p11057_p1 = scmp.ne.s32.totalorder %s11283_s12, %s11056_s28  ;;  %s11061_s8 = sshll.u32 %s11145_s11, 4  ;;  %s11062_s8 = int_to_ptr.vmem [resolvable:$false] %s11061_s8 }
  0x40   : > { %s11063_s17 = scalar_lea.vmem %s11062_s8, 8192  ;;  %p11064_p9 = scmp.lt.s32.totalorder %s11283_s12, %s11062_s8 }
  0x41   : > { %p11059_p6 = pnand %p11057_p1, %p11045_p7  ;;  %p11065_p5 = scmp.lt.s32.totalorder %s11063_s17, %s11056_s28 }
  0x43   : > { %p11060_p11 = pneg %p11059_p6  ;;  %p11066_p4 = por %p11065_p5, %p11064_p9 }
  0x45   : > { %p11067_p8 = pnand %p11066_p4, %p11060_p11 }
  0x47   : > { %11070 = shalt.err (!%p11067_p8)
}
  0x48   : > { %s15400_s16 = smov 128   ;;  %p15401_p1 = scmp.ne.s32.totalorder %s15396_s26, 0 }
  0x49   : > { %10879 = dma.hbm_to_vmem [thread:$0]  (!%p11285_p2), %s11281_s10, 4096, %s11283_s12, %s11289_s14, %s15400_s16, %s15400_s16, %s11144_s9  }
  0x4a   : > { %231 = sbr.rel (%p15401_p1) target bundleno = 1370 (0x55a), region = 40 }
  0x4f   : > { %s11316_s30 = sand.u32 1, %s11131_s19   ;;  %p15402_p4 = scmp.ne.s32.totalorder %s15394_s24, 0 }
  0x50   : > { %s7708_s8 = sshll.u32 %s11316_s30, 8  ;;  %s234_s29 = scalar_lea.sflag [#allocation3], %s11316_s30 }
  0x51   : > { %s11322_s13 = scalar_lea.vmem [#allocation2], %s7708_s8 }
  0x52   : > { %11114 = dma.done.wait (%p15402_p4), %s234_s29, 4096  }
  0x53   : > { %11116 = vsyncadd (%p15402_p4), %s234_s29, 4294963200  ;;  %p15403_p6 = scmp.eq.s32.totalorder %s11201_s22, 0 }
  0x55   : > { %11118 = dma.done.wait (%p15403_p6), [#allocation6], 9216   ;;  %p15404_p8 = pmov %p15403_p6 }
  0x56   : > { %vm313_vm0 = vcmask 261120   ;;  %v15120_v0 = vmov 0.0   ;;  %v312_v2 = vld [vmem:[#allocation5 + $0x38] sm:$0xff]  ;;  %v311_v4 = vld [vmem:[#allocation5 + $0x30] sm:$0xff]  ;;  %v310_v6 = vld [vmem:[#allocation5 + $0x28] sm:$0xff]  ;;  %vm712_vm1 = vcmask 1040384  }
  0x57   : > { %11120 = vsyncadd (%p15404_p8), [#allocation6], 4294958080  ;;  %9425 = vmatprep.mubr.f32.mxu0 %v15120_v0  ;;  %v11334_v1 = vrot.slane %v15120_v0, 7  ;;  %v307_v3 = vld [vmem:[#allocation5 + $0x18] sm:$0xff]  ;;  %9417 = vmatprep.subr.mxu0 %v312_v2  ;;  %v306_v5 = vld [vmem:[#allocation5 + $0x10] sm:$0xff]  ;;  %vm1193_vm2 = vcmask 1046528  }
  0x58   : > { %9497 = vmatprep.subr.mxu1 %v307_v3  ;;  %9418 = vmatpush3.msra.mxu0 %v312_v2  ;;  %v305_v7 = vld [vmem:[#allocation5 + $0x8] sm:$0xff]  ;;  %v11339_v8 = vld [vmem:[%s11322_s13] sm:$0xff]  ;;  %v1191_v13 = vld [vmem:[#allocation5 + $0x58] sm:$0xff]  ;;  %s14904_s6 = scalar_lea.vmem [#allocation8], %s7708_s8  ;;  %s8480_s7 = sshll.u32 %s11201_s22, 12 }
  0x59   : > { %15405 = vst [vmem:[#allocation12_spill] sm:$0xff] %v11334_v1  ;;  %9505 = vmatprep.mubr.msk.f32.mxu1 %vm313_vm0, %v11334_v1  ;;  %9498 = vmatpush3.msra.mxu1 %v307_v3  ;;  %15406 = vst [vmem:[#allocation13_spill] sm:$0xff] %v11339_v8  ;;  %v309_v9 = vld [vmem:[#allocation5 + $0x20] sm:$0xff]  ;;  %v11342_v11 = vld [vmem:[%s11322_s13 + $0x8] sm:$0xff]  ;;  %v715_v12 = vrot.slane %v11339_v8, 7  ;;  %s7607_s28 = sshll.u32 %s14904_s6, 4  ;;  %s15061_s16 = scalar_lea.hbm %s15114_s5, %s8480_s7  ;;  %s15063_s28 = int_to_ptr.vmem [resolvable:$true] %s7607_s28 }
  0x5a   : > { %9419 = vmatprep.subr.mxu0 %v311_v4  ;;  %9499 = vmatprep.subr.mxu1 %v306_v5  ;;  %v304_v10 = vld [vmem:[#allocation5] sm:$0xff]  ;;  %15407 = vst [vmem:[#allocation14_spill] sm:$0xff] %v11342_v11  ;;  %v717_v14 = vrot.slane %v11342_v11, 7  ;;  %v11347_v15 = vld [vmem:[%s11322_s13 + $0x10] sm:$0xff]  ;;  %v11364_v20 = vld [vmem:[%s11322_s13 + $0x18] sm:$0xff]  ;;  %s7594_s8 = scalar_lea.sflag [#allocation4], %s11316_s30 }
  0x5b   : > { %9420 = vmatpush3.msra.mxu0 %v311_v4  ;;  %9500 = vmatpush3.msra.mxu1 %v306_v5  ;;  %v1190_v16 = vld [vmem:[#allocation5 + $0x50] sm:$0xff]  ;;  %v11355_v17 = vsel %vm712_vm1, %v11334_v1, %v715_v12  ;;  %v720_v19 = vrot.slane %v11347_v15, 7  ;;  %v1189_v21 = vld [vmem:[#allocation5 + $0x48] sm:$0xff]  ;;  %v1724_v22 = vld [vmem:[#allocation5 + $0x78] sm:$0xff]  ;;  %v722_v24 = vrot.slane %v11364_v20, 7  ;;  %s11071_s29 = scalar_lea.vmem %s15063_s28, 4096 }
  0x5c   : > { %9421 = vmatprep.subr.mxu0 %v310_v6  ;;  %9501 = vmatprep.subr.mxu1 %v305_v7  ;;  %v11360_v18 = vsel %vm712_vm1, %v715_v12, %v717_v14  ;;  %v11376_v23 = vsel %vm712_vm1, %v717_v14, %v11334_v1  ;;  %v11384_v26 = vld [vmem:[%s11322_s13 + $0x20] sm:$0xff]  ;;  %v11387_v27 = vld [vmem:[%s11322_s13 + $0x28] sm:$0xff]  ;;  %v1723_v29 = vld [vmem:[#allocation5 + $0x70] sm:$0xff]  ;;  %p11072_p5 = scmp.ne.s32.totalorder %s15063_s28, %s11071_s29  ;;  %p15967_p2 = scmp.ne.s32.totalorder %s15398_s23, 0 }
  0x5d   : > { %9422 = vmatpush3.msra.mxu0 %v310_v6  ;;  %9502 = vmatpush3.msra.mxu1 %v305_v7  ;;  %v11381_v25 = vsel %vm712_vm1, %v11334_v1, %v720_v19  ;;  %v1188_v28 = vld [vmem:[#allocation5 + $0x40] sm:$0xff]  ;;  %v11397_v30 = vsel %vm712_vm1, %v720_v19, %v722_v24  ;;  %v725_v31 = vrot.slane %v11384_v26, 7  ;;  %v11402_v32 = vsel %vm712_vm1, %v722_v24, %v11334_v1  ;;  %v11406_v34 = vld [vmem:[%s11322_s13 + $0x30] sm:$0xff]  ;;  %v1722_v35 = vld [vmem:[#allocation5 + $0x68] sm:$0xff]  ;;  %s11147_s22 = smov [#allocation8]  }
  0x5e   : > { %9423 = vmatprep.subr.mxu0 %v309_v9  ;;  %9503 = vmatprep.subr.mxu1 %v304_v10  ;;  %15408 = vst [vmem:[#allocation15_spill] sm:$0xff] %v11381_v25  ;;  %15409 = vst [vmem:[#allocation16_spill] sm:$0xff] %v11397_v30  ;;  %v727_v33 = vrot.slane %v11387_v27, 7  ;;  %v11412_v36 = vld [vmem:[#allocation5 + $0x98] sm:$0xff]  ;;  %v730_v39 = vrot.slane %v11406_v34, 7  ;;  %v1721_v41 = vld [vmem:[#allocation5 + $0x60] sm:$0xff]  ;;  %p11073_p7 = pnand %p11072_p5, %p15967_p2 }
  0x5f   : > { %9424 = vmatpush3.msra.mxu0 %v309_v9  ;;  %9504 = vmatpush3.msra.mxu1 %v304_v10  ;;  %15410 = vst [vmem:[#allocation17_spill] sm:$0xff] %v11402_v32  ;;  %v11419_v37 = vsel %vm712_vm1, %v11334_v1, %v725_v31  ;;  %v11426_v40 = vld [vmem:[%s11322_s13 + $0x38] sm:$0xff]  ;;  %v11447_v45 = vld [vmem:[%s11322_s13 + $0x40] sm:$0xff]  ;;  %v11450_v46 = vld [vmem:[%s11322_s13 + $0x48] sm:$0xff]  ;;  %s11075_s24 = sshll.u32 %s11147_s22, 4  ;;  %s11076_s24 = int_to_ptr.vmem [resolvable:$false] %s11075_s24 }
  0x60   : > { %9426 = vmatmul.mubr.f32.vlgmr.msra.gmra.mxu0 %v15120_v0  ;;  %9506 = vmatmul.mubr.msk.f32.vlgmr.msra.gmra.mxu1 %vm313_vm0, %v11334_v1  ;;  %15411 = vst [vmem:[#allocation18_spill] sm:$0xff] %v11419_v37  ;;  %v11422_v38 = vsel %vm712_vm1, %v725_v31, %v727_v33  ;;  %v11439_v42 = vsel %vm712_vm1, %v727_v33, %v11334_v1  ;;  %v732_v43 = vrot.slane %v11426_v40, 7  ;;  %v735_v48 = vrot.slane %v11447_v45, 7  ;;  %v11469_v51 = vld [vmem:[%s11322_s13 + $0x50] sm:$0xff]  ;;  %v11487_v55 = vld [vmem:[%s11322_s13 + $0x58] sm:$0xff]  ;;  %v11507_v59 = vld [vmem:[%s11322_s13 + $0x60] sm:$0xff]  ;;  %p11074_p12 = pneg %p11073_p7  ;;  %p11078_p13 = scmp.lt.s32.totalorder %s15063_s28, %s11076_s24 }
  0x61   : > { %9577 = vmatprep.subr.mxu0 %v1191_v13  ;;  %9428 = vmatprep.mubr.f32.mxu0 %v15120_v0  ;;  %15412 = vst [vmem:[#allocation19_spill] sm:$0xff] %v11422_v38  ;;  %15413 = vst [vmem:[#allocation20_spill] sm:$0xff] %v11439_v42  ;;  %v11444_v44 = vsel %vm712_vm1, %v11334_v1, %v730_v39  ;;  %v737_v50 = vrot.slane %v11450_v46, 7  ;;  %v740_v54 = vrot.slane %v11469_v51, 7  ;;  %v742_v57 = vrot.slane %v11487_v55, 7  ;;  %v11510_v60 = vld [vmem:[%s11322_s13 + $0x68] sm:$0xff] }
  0x62   : > { %9578 = vmatpush3.msra.mxu0 %v1191_v13  ;;  %9508 = vmatprep.mubr.msk.f32.mxu1 %vm313_vm0, %v11334_v1  ;;  %15414 = vst [vmem:[#allocation21_spill] sm:$0xff] %v11444_v44  ;;  %v11460_v47 = vsel %vm712_vm1, %v730_v39, %v732_v43  ;;  %v11465_v49 = vsel %vm712_vm1, %v732_v43, %v11334_v1  ;;  %v745_v62 = vrot.slane %v11507_v59, 7  ;;  %v747_v2 = vrot.slane %v11510_v60, 7  ;;  %v11529_v3 = vld [vmem:[%s11322_s13 + $0x70] sm:$0xff]  ;;  %v11547_v7 = vld [vmem:[%s11322_s13 + $0x78] sm:$0xff]  ;;  %v11567_v13 = vld [vmem:[%s11322_s13 + $0x80] sm:$0xff] }
  0x63   : > { %9579 = vmatprep.subr.mxu0 %v1190_v16  ;;  %9657 = vmatprep.subr.mxu1 %v1724_v22  ;;  %15415 = vst [vmem:[#allocation22_spill] sm:$0xff] %v11460_v47  ;;  %15416 = vst [vmem:[#allocation23_spill] sm:$0xff] %v11465_v49  ;;  %v11480_v52 = vsel %vm712_vm1, %v11334_v1, %v735_v48  ;;  %v11483_v53 = vsel %vm712_vm1, %v735_v48, %v737_v50  ;;  %v750_v6 = vrot.slane %v11529_v3, 7  ;;  %v11570_v14 = vld [vmem:[%s11322_s13 + $0x88] sm:$0xff]  ;;  %v11589_v24 = vld [vmem:[%s11322_s13 + $0x90] sm:$0xff]  ;;  %s11077_s26 = scalar_lea.vmem %s11076_s24, 8192 }
  0x64   : > { %9429 = vmatmul.mubr.msk.f32.gmra.mxu0 %vm313_vm0, %v11339_v8  ;;  %9509 = vmatmul.mubr.msk.f32.gmra.mxu1 %vm313_vm0, %v11355_v17  ;;  %15417 = vst [vmem:[#allocation24_spill] sm:$0xff] %v11480_v52  ;;  %15418 = vst [vmem:[#allocation25_spill] sm:$0xff] %v11483_v53  ;;  %v11499_v56 = vsel %vm712_vm1, %v737_v50, %v11334_v1  ;;  %v11504_v58 = vsel %vm712_vm1, %v11334_v1, %v740_v54  ;;  %v752_v10 = vrot.slane %v11547_v7, 7  ;;  %v11607_v33 = vld [vmem:[%s11322_s13 + $0x98] sm:$0xff]  ;;  %v11627_v43 = vld [vmem:[%s11322_s13 + $0xa0] sm:$0xff]  ;;  %p11079_p0 = scmp.lt.s32.totalorder %s11077_s26, %s11071_s29 }
  0x65   : > { %9431 = vmatprep.mubr.msk.f32.mxu0 %vm313_vm0, %v11342_v11  ;;  %9511 = vmatprep.mubr.msk.f32.mxu1 %vm313_vm0, %v11360_v18  ;;  %15419 = vst [vmem:[#allocation26_spill] sm:$0xff] %v11499_v56  ;;  %15420 = vst [vmem:[#allocation27_spill] sm:$0xff] %v11504_v58  ;;  %v11520_v61 = vsel %vm712_vm1, %v740_v54, %v742_v57  ;;  %v11525_v63 = vsel %vm712_vm1, %v742_v57, %v11334_v1  ;;  %v755_v19 = vrot.slane %v11567_v13, 7  ;;  %v11630_v48 = vld [vmem:[%s11322_s13 + $0xa8] sm:$0xff]  ;;  %v11635_v50 = vld [vmem:[#allocation5 + $0xb8] sm:$0xff] }
  0x66   : > { %9580 = vmatpush3.msra.mxu0 %v1190_v16  ;;  %9658 = vmatpush3.msra.mxu1 %v1724_v22  ;;  %15421 = vst [vmem:[#allocation28_spill] sm:$0xff] %v11520_v61  ;;  %15422 = vst [vmem:[#allocation29_spill] sm:$0xff] %v11525_v63  ;;  %v11540_v4 = vsel %vm712_vm1, %v11334_v1, %v745_v62  ;;  %v11543_v5 = vsel %vm712_vm1, %v745_v62, %v747_v2  ;;  %v757_v22 = vrot.slane %v11570_v14, 7  ;;  %p11080_p10 = por %p11079_p0, %p11078_p13 }
  0x67   : > { %9581 = vmatprep.subr.mxu0 %v1189_v21  ;;  %9659 = vmatprep.subr.mxu1 %v1723_v29  ;;  %15423 = vst [vmem:[#allocation30_spill] sm:$0xff] %v11540_v4  ;;  %15424 = vst [vmem:[#allocation31_spill] sm:$0xff] %v11543_v5  ;;  %v11559_v9 = vsel %vm712_vm1, %v747_v2, %v11334_v1  ;;  %v11564_v12 = vsel %vm712_vm1, %v11334_v1, %v750_v6  ;;  %v760_v31 = vrot.slane %v11589_v24, 7 }
  0x68   : > { %9432 = vmatmul.mubr.f32.gmra.mxu0 %v15120_v0  ;;  %9512 = vmatmul.mubr.msk.f32.gmra.mxu1 %vm313_vm0, %v11376_v23  ;;  %15425 = vst [vmem:[#allocation32_spill] sm:$0xff] %v11559_v9  ;;  %15426 = vst [vmem:[#allocation33_spill] sm:$0xff] %v11564_v12  ;;  %v11580_v16 = vsel %vm712_vm1, %v750_v6, %v752_v10  ;;  %v762_v39 = vrot.slane %v11607_v33, 7  ;;  %v765_v57 = vrot.slane %v11627_v43, 7  ;;  %v767_v2 = vrot.slane %v11630_v48, 7  ;;  %v11652_v6 = vld [vmem:[%s11322_s13 + $0xb0] sm:$0xff]  ;;  %p11081_p3 = pnand %p11080_p10, %p11074_p12 }
  0x69   : > { %9434 = vmatprep.mubr.msk.f32.mxu0 %vm313_vm0, %v11347_v15  ;;  %9514 = vmatprep.mubr.msk.f32.mxu1 %vm313_vm0, %v11381_v25  ;;  %15427 = vst [vmem:[#allocation34_spill] sm:$0xff] %v11580_v16  ;;  %15429 = vst [vmem:[#allocation36_spill] sm:$0xff] %v11589_v24 }
  0x6a   : > { %9582 = vmatpush3.msra.mxu0 %v1189_v21  ;;  %9660 = vmatpush3.msra.mxu1 %v1723_v29  ;;  %v11585_v21 = vsel %vm712_vm1, %v752_v10, %v11334_v1  ;;  %v11603_v29 = vsel %vm712_vm1, %v755_v19, %v757_v22  ;;  %15432 = vst [vmem:[#allocation39_spill] sm:$0xff] %v11607_v33  ;;  %15435 = vst [vmem:[#allocation42_spill] sm:$0xff] %v11627_v43 }
  0x6b   : > { %9583 = vmatprep.subr.mxu0 %v1188_v28  ;;  %9661 = vmatprep.subr.mxu1 %v1722_v35  ;;  %15428 = vst [vmem:[#allocation35_spill] sm:$0xff] %v11585_v21  ;;  %15431 = vst [vmem:[#allocation38_spill] sm:$0xff] %v11603_v29  ;;  %v11642_v54 = vsel %vm712_vm1, %v760_v31, %v762_v39  ;;  %v11647_v62 = vsel %vm712_vm1, %v762_v39, %v11334_v1 }
  0x6c   : > { %9435 = vmatmul.mubr.msk.f32.gmra.mxu0 %vm313_vm0, %v11364_v20  ;;  %9515 = vmatmul.mubr.msk.f32.gmra.mxu1 %vm313_vm0, %v11397_v30  ;;  %15436 = vst [vmem:[#allocation43_spill] sm:$0xff] %v11630_v48  ;;  %15437 = vst [vmem:[#allocation44_spill] sm:$0xff] %v11642_v54  ;;  %v11663_v10 = vsel %vm712_vm1, %v11334_v1, %v765_v57  ;;  %v11682_v39 = vsel %vm712_vm1, %v767_v2, %v11334_v1 }
  0x6d   : > { %9437 = vmatprep.mubr.f32.mxu0 %v15120_v0  ;;  %9517 = vmatprep.mubr.msk.f32.mxu1 %vm313_vm0, %v11402_v32  ;;  %15438 = vst [vmem:[#allocation45_spill] sm:$0xff] %v11647_v62  ;;  %15439 = vst [vmem:[#allocation46_spill] sm:$0xff] %v11652_v6 }
  0x6e   : > { %9584 = vmatpush3.msra.mxu0 %v1188_v28  ;;  %9662 = vmatpush3.msra.mxu1 %v1722_v35  ;;  %v11600_v28 = vsel %vm712_vm1, %v11334_v1, %v755_v19  ;;  %v11619_v35 = vsel %vm712_vm1, %v757_v22, %v11334_v1  ;;  %15440 = vst [vmem:[#allocation47_spill] sm:$0xff] %v11663_v10  ;;  %v770_v22 = vrot.slane %v11652_v6, 7  ;;  %15443 = vst [vmem:[#allocation50_spill] sm:$0xff] %v11682_v39 }
  0x6f   : > { %9737 = vmatprep.subr.mxu0 %v11412_v36  ;;  %9663 = vmatprep.subr.mxu1 %v1721_v41  ;;  %15430 = vst [vmem:[#allocation37_spill] sm:$0xff] %v11600_v28  ;;  %15433 = vst [vmem:[#allocation40_spill] sm:$0xff] %v11619_v35  ;;  %v11666_v19 = vsel %vm712_vm1, %v765_v57, %v767_v2 }
  0x70   : > { %9438 = vmatmul.mubr.msk.f32.gmra.mxu0 %vm313_vm0, %v11384_v26  ;;  %9518 = vmatmul.mubr.msk.f32.gmra.mxu1 %vm313_vm0, %v11419_v37  ;;  %15441 = vst [vmem:[#allocation48_spill] sm:$0xff] %v11666_v19 }
  0x71   : > { %9440 = vmatprep.mubr.msk.f32.mxu0 %vm313_vm0, %v11387_v27  ;;  %9520 = vmatprep.mubr.msk.f32.mxu1 %vm313_vm0, %v11422_v38 }
  0x72   : > { %9664 = vmatpush3.msra.mxu1 %v1721_v41  ;;  %v11624_v41 = vsel %vm712_vm1, %v11334_v1, %v760_v31  ;;  %v11670_v31 = vld [vmem:[%s11322_s13 + $0xb8] sm:$0xff] }
  0x73   : > { %15434 = vst [vmem:[#allocation41_spill] sm:$0xff] %v11624_v41  ;;  %9817 = vmatprep.subr.mxu1 %v11635_v50  ;;  %15442 = vst [vmem:[#allocation49_spill] sm:$0xff] %v11670_v31  ;;  %v772_v57 = vrot.slane %v11670_v31, 7 }
  0x74   : > { %9441 = vmatmul.mubr.f32.gmra.mxu0 %v15120_v0  ;;  %9521 = vmatmul.mubr.msk.f32.gmra.mxu1 %vm313_vm0, %v11439_v42 }
  0x75   : > { %9443 = vmatprep.mubr.msk.f32.mxu0 %vm313_vm0, %v11406_v34  ;;  %9523 = vmatprep.mubr.msk.f32.mxu1 %vm313_vm0, %v11444_v44  ;;  %v11703_v2 = vsel %vm712_vm1, %v770_v22, %v772_v57 }
  0x76   : > { %15448 = vst [vmem:[#allocation54_spill] sm:$0xff] %v11703_v2 }
  0x78   : > { %9444 = vmatmul.mubr.msk.f32.gmra.mxu0 %vm313_vm0, %v11426_v40  ;;  %9524 = vmatmul.mubr.msk.f32.gmra.mxu1 %vm313_vm0, %v11460_v47 }
  0x79   : > { %9446 = vmatprep.mubr.f32.mxu0 %v15120_v0  ;;  %9526 = vmatprep.mubr.msk.f32.mxu1 %vm313_vm0, %v11465_v49 }
  0x7c   : > { %9447 = vmatmul.mubr.msk.f32.gmra.mxu0 %vm313_vm0, %v11447_v45  ;;  %9527 = vmatmul.mubr.msk.f32.gmra.mxu1 %vm313_vm0, %v11480_v52 }
  0x7d   : > { %9449 = vmatprep.mubr.msk.f32.mxu0 %vm313_vm0, %v11450_v46  ;;  %9529 = vmatprep.mubr.msk.f32.mxu1 %vm313_vm0, %v11483_v53 }
  0x80   : > { %9450 = vmatmul.mubr.f32.gmra.mxu0 %v15120_v0  ;;  %9530 = vmatmul.mubr.msk.f32.gmra.mxu1 %vm313_vm0, %v11499_v56 }
  0x81   : > { %9452 = vmatprep.mubr.msk.f32.mxu0 %vm313_vm0, %v11469_v51  ;;  %9532 = vmatprep.mubr.msk.f32.mxu1 %vm313_vm0, %v11504_v58 }
  0x84   : > { %9453 = vmatmul.mubr.msk.f32.gmra.mxu0 %vm313_vm0, %v11487_v55  ;;  %9533 = vmatmul.mubr.msk.f32.gmra.mxu1 %vm313_vm0, %v11520_v61 }
  0x85   : > { %9455 = vmatprep.mubr.f32.mxu0 %v15120_v0  ;;  %9535 = vmatprep.mubr.msk.f32.mxu1 %vm313_vm0, %v11525_v63 }
  0x88   : > { %9456 = vmatmul.mubr.msk.f32.gmra.mxu0 %vm313_vm0, %v11507_v59  ;;  %9536 = vmatmul.mubr.msk.f32.gmra.mxu1 %vm313_vm0, %v11540_v4 }
  0x89   : > { %9458 = vmatprep.mubr.msk.f32.mxu0 %vm313_vm0, %v11510_v60  ;;  %9538 = vmatprep.mubr.msk.f32.mxu1 %vm313_vm0, %v11543_v5 }
  0x8c   : > { %9459 = vmatmul.mubr.f32.gmra.mxu0 %v15120_v0  ;;  %9539 = vmatmul.mubr.msk.f32.gmra.mxu1 %vm313_vm0, %v11559_v9 }
  0x8d   : > { %9461 = vmatprep.mubr.msk.f32.mxu0 %vm313_vm0, %v11529_v3  ;;  %9541 = vmatprep.mubr.msk.f32.mxu1 %vm313_vm0, %v11564_v12 }
  0x90   : > { %9462 = vmatmul.mubr.msk.f32.gmra.mxu0 %vm313_vm0, %v11547_v7  ;;  %9542 = vmatmul.mubr.msk.f32.gmra.mxu1 %vm313_vm0, %v11580_v16 }
  0x91   : > { %9464 = vmatprep.mubr.f32.mxu0 %v15120_v0  ;;  %9544 = vmatprep.mubr.msk.f32.mxu1 %vm313_vm0, %v11585_v21 }
  0x94   : > { %9465 = vmatmul.mubr.msk.f32.gmra.mxu0 %vm313_vm0, %v11567_v13  ;;  %9545 = vmatmul.mubr.msk.f32.gmra.mxu1 %vm313_vm0, %v11600_v28 }
  0x95   : > { %9467 = vmatprep.mubr.msk.f32.mxu0 %vm313_vm0, %v11570_v14  ;;  %9547 = vmatprep.mubr.msk.f32.mxu1 %vm313_vm0, %v11603_v29 }
  0x98   : > { %9468 = vmatmul.mubr.f32.gmra.mxu0 %v15120_v0  ;;  %9548 = vmatmul.mubr.msk.f32.gmra.mxu1 %vm313_vm0, %v11619_v35 }
  0x99   : > { %9470 = vmatprep.mubr.msk.f32.mxu0 %vm313_vm0, %v11589_v24  ;;  %9550 = vmatprep.mubr.msk.f32.mxu1 %vm313_vm0, %v11624_v41  ;;  %v11712_v41 = vld [vmem:[%s11322_s13 + $0xd0] sm:$0xff] }
  0x9a   : > { %15450 = vst [vmem:[#allocation56_spill] sm:$0xff] %v11712_v41 }
  0x9c   : > { %9471 = vmatmul.mubr.msk.f32.gmra.mxu0 %vm313_vm0, %v11607_v33  ;;  %9551 = vmatmul.mubr.msk.f32.gmra.mxu1 %vm313_vm0, %v11642_v54 }
  0x9d   : > { %9473 = vmatprep.mubr.f32.mxu0 %v15120_v0  ;;  %9553 = vmatprep.mubr.msk.f32.mxu1 %vm313_vm0, %v11647_v62  ;;  %v11687_v0 = vsel %vm712_vm1, %v11334_v1, %v770_v22  ;;  %v11690_v62 = vld [vmem:[%s11322_s13 + $0xc0] sm:$0xff] }
  0x9e   : > { %15444 = vst [vmem:[#allocation51_spill] sm:$0xff] %v11687_v0  ;;  %15445 = vst [vmem:[#allocation52_spill] sm:$0xff] %v11690_v62 }
  0xa0   : > { %9474 = vmatmul.mubr.msk.f32.gmra.mxu0 %vm313_vm0, %v11627_v43  ;;  %9554 = vmatmul.mubr.msk.f32.gmra.mxu1 %vm313_vm0, %v11663_v10  ;;  %v11693_v10 = vld [vmem:[%s11322_s13 + $0xc8] sm:$0xff]  ;;  %v15447_v43 = vmov 0.0  }
  0xa1   : > { %9476 = vmatprep.mubr.msk.f32.mxu0 %vm313_vm0, %v11630_v48  ;;  %9556 = vmatprep.mubr.msk.f32.mxu1 %vm313_vm0, %v11666_v19  ;;  %15446 = vst [vmem:[#allocation53_spill] sm:$0xff] %v11693_v10  ;;  %v775_v19 = vrot.slane %v11690_v62, 7  ;;  %v11708_v48 = vsel %vm712_vm1, %v772_v57, %v11334_v1  ;;  %v777_v54 = vrot.slane %v11693_v10, 7 }
  0xa2   : > { %15449 = vst [vmem:[#allocation55_spill] sm:$0xff] %v11708_v48 }
  0xa3   : > { %v11723_v22 = vsel %vm712_vm1, %v11334_v1, %v775_v19  ;;  %v11726_v57 = vsel %vm712_vm1, %v775_v19, %v777_v54  ;;  %v11742_v19 = vsel %vm712_vm1, %v777_v54, %v11334_v1 }
  0xa4   : > { %9477 = vmatmul.mubr.f32.gmra.mxu0 %v15447_v43  ;;  %9557 = vmatmul.mubr.msk.f32.gmra.mxu1 %vm313_vm0, %v11682_v39  ;;  %15451 = vst [vmem:[#allocation57_spill] sm:$0xff] %v11723_v22  ;;  %15452 = vst [vmem:[#allocation58_spill] sm:$0xff] %v11726_v57 }
  0xa5   : > { %9479 = vmatprep.mubr.msk.f32.mxu0 %vm313_vm0, %v11652_v6  ;;  %9559 = vmatprep.mubr.msk.f32.mxu1 %vm313_vm0, %v11687_v0  ;;  %v780_v0 = vrot.slane %v11712_v41, 7  ;;  %v11730_v6 = vld [vmem:[%s11322_s13 + $0xd8] sm:$0xff]  ;;  %15454 = vst [vmem:[#allocation60_spill] sm:$0xff] %v11742_v19 }
  0xa6   : > { %15453 = vst [vmem:[#allocation59_spill] sm:$0xff] %v11730_v6 }
  0xa8   : > { %9480 = vmatmul.mubr.msk.f32.gmra.mxu0 %vm313_vm0, %v11670_v31  ;;  %9560 = vmatmul.mubr.msk.f32.gmra.mxu1 %vm313_vm0, %v11703_v2  ;;  %v11747_v2 = vsel %vm712_vm1, %v11334_v1, %v780_v0  ;;  %v11753_v31 = vld [vmem:[%s11322_s13 + $0xe8] sm:$0xff] }
  0xa9   : > { %9482 = vmatprep.mubr.f32.mxu0 %v15447_v43  ;;  %9562 = vmatprep.mubr.msk.f32.mxu1 %vm313_vm0, %v11708_v48  ;;  %v782_v48 = vrot.slane %v11730_v6, 7  ;;  %15455 = vst [vmem:[#allocation61_spill] sm:$0xff] %v11747_v2  ;;  %15457 = vst [vmem:[#allocation63_spill] sm:$0xff] %v11753_v31 }
  0xab   : > { %v11763_v54 = vsel %vm712_vm1, %v780_v0, %v782_v48 }
  0xac   : > { %9483 = vmatmul.mubr.msk.f32.gmra.mxu0 %vm313_vm0, %v11690_v62  ;;  %9563 = vmatmul.mubr.msk.f32.gmra.mxu1 %vm313_vm0, %v11723_v22  ;;  %v11750_v62 = vld [vmem:[%s11322_s13 + $0xe0] sm:$0xff]  ;;  %15458 = vst [vmem:[#allocation64_spill] sm:$0xff] %v11763_v54  ;;  %v787_v22 = vrot.slane %v11753_v31, 7 }
  0xad   : > { %9485 = vmatprep.mubr.msk.f32.mxu0 %vm313_vm0, %v11693_v10  ;;  %9565 = vmatprep.mubr.msk.f32.mxu1 %vm313_vm0, %v11726_v57  ;;  %15456 = vst [vmem:[#allocation62_spill] sm:$0xff] %v11750_v62  ;;  %v785_v57 = vrot.slane %v11750_v62, 7  ;;  %v11768_v10 = vsel %vm712_vm1, %v782_v48, %v11334_v1 }
  0xae   : > { %15459 = vst [vmem:[#allocation65_spill] sm:$0xff] %v11768_v10 }
  0xaf   : > { %v11780_v0 = vsel %vm712_vm1, %v11334_v1, %v785_v57  ;;  %v11783_v48 = vsel %vm712_vm1, %v785_v57, %v787_v22  ;;  %v1196_v57 = vrot.slane %v11339_v8, 1  ;;  %v1203_v8 = vrot.slane %v11364_v20, 1 }
  0xb0   : > { %9486 = vmatmul.mubr.f32.gmra.mxu0 %v15447_v43  ;;  %9566 = vmatmul.mubr.msk.f32.gmra.mxu1 %vm313_vm0, %v11742_v19  ;;  %15460 = vst [vmem:[#allocation66_spill] sm:$0xff] %v11780_v0  ;;  %15461 = vst [vmem:[#allocation67_spill] sm:$0xff] %v11783_v48 }
  0xb1   : > { %9488 = vmatprep.mubr.msk.f32.mxu0 %vm313_vm0, %v11712_v41  ;;  %9568 = vmatprep.mubr.msk.f32.mxu1 %vm313_vm0, %v11747_v2 }
  0xb4   : > { %9489 = vmatmul.mubr.msk.f32.gmra.mxu0 %vm313_vm0, %v11730_v6  ;;  %9569 = vmatmul.mubr.msk.f32.gmra.mxu1 %vm313_vm0, %v11763_v54  ;;  %v11798_v54 = vrot.slane %v15447_v43, 1 }
  0xb5   : > { %9491 = vmatprep.mubr.f32.mxu0 %v15447_v43  ;;  %9571 = vmatprep.mubr.msk.f32.mxu1 %vm313_vm0, %v11768_v10  ;;  %v11795_v10 = vsel %vm712_vm1, %v787_v22, %v11334_v1  ;;  %v1198_v22 = vrot.slane %v11342_v11, 1 }
  0xb6   : > { %15462 = vst [vmem:[#allocation68_spill] sm:$0xff] %v11795_v10  ;;  %15463 = vst [vmem:[#allocation69_spill] sm:$0xff] %v11798_v54  ;;  %v1197_v1 = vsel %vm1193_vm2, %v11798_v54, %v1196_v57 }
  0xb7   : > { %v11825_v11 = vsel %vm1193_vm2, %v1198_v22, %v11798_v54 }
  0xb8   : > { %9492 = vmatmul.mubr.msk.f32.gmra.mxu0 %vm313_vm0, %v11750_v62  ;;  %9572 = vmatmul.mubr.msk.f32.gmra.mxu1 %vm313_vm0, %v11780_v0 }
  0xb9   : > { %9494 = vmatprep.mubr.msk.f32.mxu0 %vm313_vm0, %v11753_v31  ;;  %9574 = vmatprep.mubr.msk.f32.mxu1 %vm313_vm0, %v11783_v48  ;;  %v2093_v48 = vld [vmem:[#allocation5 + $0x90] sm:$0xff] }
  0xbc   : > { %9495 = vmatmul.mubr.f32.gmra.mxu0 %v15447_v43  ;;  %9575 = vmatmul.mubr.msk.f32.gmra.mxu1 %vm313_vm0, %v11795_v10  ;;  %v11818_v43 = vsel %vm1193_vm2, %v1196_v57, %v1198_v22  ;;  %v2454_v57 = vld [vmem:[#allocation5 + $0xa8] sm:$0xff]  ;;  %v11853_v22 = vsel %vm1193_vm2, %v1203_v8, %v11798_v54 }
  0xbd   : > { %9585 = vmatprep.mubr.msk.f32.mxu0 %vm313_vm0, %v11798_v54  ;;  %9665 = vmatprep.mubr.msk.f32.mxu1 %vm313_vm0, %v11355_v17  ;;  %v1201_v17 = vrot.slane %v11347_v15, 1 }
  0xc0   : > { %9586 = vmatmul.mubr.msk.f32.vlgmr.msra.gmra.mxu0 %vm313_vm0, %v11798_v54  ;;  %9666 = vmatmul.mubr.msk.f32.vlgmr.msra.gmra.mxu1 %vm313_vm0, %v11360_v18  ;;  %v2092_v18 = vld [vmem:[#allocation5 + $0x88] sm:$0xff] }
  0xc1   : > { %9738 = vmatpush3.msra.mxu0 %v11412_v36  ;;  %9588 = vmatprep.mubr.msk.f32.mxu0 %vm313_vm0, %v1197_v1  ;;  %v2455_v1 = vld [vmem:[#allocation5 + $0xb0] sm:$0xff]  ;;  %v11842_v36 = vsel %vm1193_vm2, %v1201_v17, %v1203_v8 }
  0xc2   : > { %9668 = vmatprep.mubr.msk.f32.mxu1 %vm313_vm0, %v11376_v23  ;;  %9739 = vmatprep.subr.mxu0 %v2093_v48  ;;  %v11837_v23 = vsel %vm1193_vm2, %v11798_v54, %v1201_v17  ;;  %v1208_v17 = vrot.slane %v11387_v27, 1 }
  0xc3   : > { %9740 = vmatpush3.msra.mxu0 %v2093_v48  ;;  %9818 = vmatpush3.msra.mxu1 %v11635_v50  ;;  %v1206_v50 = vrot.slane %v11384_v26, 1  ;;  %v2091_v48 = vld [vmem:[#allocation5 + $0x80] sm:$0xff] }
  0xc4   : > { %9589 = vmatmul.mubr.msk.f32.gmra.mxu0 %vm313_vm0, %v11818_v43  ;;  %9669 = vmatmul.mubr.msk.f32.gmra.mxu1 %vm313_vm0, %v11381_v25  ;;  %v15476_v25 = vld [vmem:[#allocation45_spill] sm:$0xff] }
  0xc5   : > { %9591 = vmatprep.mubr.msk.f32.mxu0 %vm313_vm0, %v11825_v11  ;;  %9671 = vmatprep.mubr.msk.f32.mxu1 %vm313_vm0, %v11397_v30  ;;  %v11871_v8 = vsel %vm1193_vm2, %v1206_v50, %v1208_v17 }
  0xc6   : > { %9741 = vmatprep.subr.mxu0 %v2092_v18  ;;  %9819 = vmatprep.subr.mxu1 %v2455_v1 }
  0xc7   : > { %9742 = vmatpush3.msra.mxu0 %v2092_v18  ;;  %9820 = vmatpush3.msra.mxu1 %v2455_v1  ;;  %v11860_v18 = vsel %vm1193_vm2, %v11798_v54, %v1206_v50  ;;  %v2453_v1 = vld [vmem:[#allocation5 + $0xa0] sm:$0xff] }
  0xc8   : > { %9592 = vmatmul.mubr.msk.f32.gmra.mxu0 %vm313_vm0, %v11837_v23  ;;  %9672 = vmatmul.mubr.msk.f32.gmra.mxu1 %vm313_vm0, %v11402_v32  ;;  %v11862_v32 = vld [vmem:[#allocation5 + $0xd8] sm:$0xff] }
  0xc9   : > { %9594 = vmatprep.mubr.msk.f32.mxu0 %vm313_vm0, %v11842_v36  ;;  %9674 = vmatprep.mubr.msk.f32.mxu1 %vm313_vm0, %v11419_v37  ;;  %v1213_v37 = vrot.slane %v11426_v40, 1 }
  0xca   : > { %9743 = vmatprep.subr.mxu0 %v2091_v48  ;;  %9821 = vmatprep.subr.mxu1 %v2454_v57 }
  0xcb   : > { %9744 = vmatpush3.msra.mxu0 %v2091_v48  ;;  %9822 = vmatpush3.msra.mxu1 %v2454_v57  ;;  %v1211_v48 = vrot.slane %v11406_v34, 1  ;;  %v11878_v57 = vsel %vm1193_vm2, %v1208_v17, %v11798_v54 }
  0xcc   : > { %9595 = vmatmul.mubr.msk.f32.gmra.mxu0 %vm313_vm0, %v11853_v22  ;;  %9675 = vmatmul.mubr.msk.f32.gmra.mxu1 %vm313_vm0, %v11422_v38  ;;  %v15475_v38 = vld [vmem:[#allocation42_spill] sm:$0xff] }
  0xcd   : > { %9597 = vmatprep.mubr.msk.f32.mxu0 %vm313_vm0, %v11860_v18  ;;  %9677 = vmatprep.mubr.msk.f32.mxu1 %vm313_vm0, %v11439_v42  ;;  %v11890_v50 = vsel %vm1193_vm2, %v11798_v54, %v1211_v48  ;;  %v11895_v17 = vsel %vm1193_vm2, %v1211_v48, %v1213_v37  ;;  %v1218_v48 = vrot.slane %v11450_v46, 1  ;;  %v1223_v42 = vrot.slane %v11487_v55, 1 }
  0xce   : > { %9823 = vmatprep.subr.mxu1 %v2453_v1  ;;  %9897 = vmatprep.subr.mxu0 %v11862_v32  ;;  %v1246_v30 = vrot.slane %v15475_v38, 1 }
  0xcf   : > { %9824 = vmatpush3.msra.mxu1 %v2453_v1  ;;  %v1216_v1 = vrot.slane %v11447_v45, 1 }
  0xd0   : > { %9598 = vmatmul.mubr.msk.f32.gmra.mxu0 %vm313_vm0, %v11871_v8  ;;  %9678 = vmatmul.mubr.msk.f32.gmra.mxu1 %vm313_vm0, %v11444_v44  ;;  %v11906_v44 = vsel %vm1193_vm2, %v1213_v37, %v11798_v54  ;;  %v12065_v38 = vsel %vm1193_vm2, %v11798_v54, %v1246_v30 }
  0xd1   : > { %9600 = vmatprep.mubr.msk.f32.mxu0 %vm313_vm0, %v11878_v57  ;;  %9680 = vmatprep.mubr.msk.f32.mxu1 %vm313_vm0, %v11460_v47  ;;  %v11913_v47 = vsel %vm1193_vm2, %v11798_v54, %v1216_v1  ;;  %v11922_v37 = vsel %vm1193_vm2, %v1216_v1, %v1218_v48  ;;  %15480 = vst [vmem:[#allocation80_spill] sm:$0xff] %v12065_v38 }
  0xd4   : > { %9601 = vmatmul.mubr.msk.f32.gmra.mxu0 %vm313_vm0, %v11890_v50  ;;  %9681 = vmatmul.mubr.msk.f32.gmra.mxu1 %vm313_vm0, %v11465_v49  ;;  %v11929_v49 = vsel %vm1193_vm2, %v1218_v48, %v11798_v54 }
  0xd5   : > { %9603 = vmatprep.mubr.msk.f32.mxu0 %vm313_vm0, %v11895_v17  ;;  %9683 = vmatprep.mubr.msk.f32.mxu1 %vm313_vm0, %v11480_v52  ;;  %v1221_v52 = vrot.slane %v11469_v51, 1 }
  0xd7   : > { %v11940_v1 = vsel %vm1193_vm2, %v11798_v54, %v1221_v52  ;;  %v11945_v48 = vsel %vm1193_vm2, %v1221_v52, %v1223_v42  ;;  %v1228_v52 = vrot.slane %v11510_v60, 1 }
  0xd8   : > { %9604 = vmatmul.mubr.msk.f32.gmra.mxu0 %vm313_vm0, %v11906_v44  ;;  %9684 = vmatmul.mubr.msk.f32.gmra.mxu1 %vm313_vm0, %v11483_v53  ;;  %v1233_v53 = vrot.slane %v11547_v7, 1 }
  0xd9   : > { %9606 = vmatprep.mubr.msk.f32.mxu0 %vm313_vm0, %v11913_v47  ;;  %9686 = vmatprep.mubr.msk.f32.mxu1 %vm313_vm0, %v11499_v56  ;;  %v1226_v56 = vrot.slane %v11507_v59, 1 }
  0xdc   : > { %9607 = vmatmul.mubr.msk.f32.gmra.mxu0 %vm313_vm0, %v11922_v37  ;;  %9687 = vmatmul.mubr.msk.f32.gmra.mxu1 %vm313_vm0, %v11504_v58  ;;  %v11956_v58 = vsel %vm1193_vm2, %v1223_v42, %v11798_v54  ;;  %v11972_v42 = vsel %vm1193_vm2, %v1226_v56, %v1228_v52 }
  0xdd   : > { %9609 = vmatprep.mubr.msk.f32.mxu0 %vm313_vm0, %v11929_v49  ;;  %9689 = vmatprep.mubr.msk.f32.mxu1 %vm313_vm0, %v11520_v61  ;;  %v11963_v61 = vsel %vm1193_vm2, %v11798_v54, %v1226_v56 }
  0xe0   : > { %9610 = vmatmul.mubr.msk.f32.gmra.mxu0 %vm313_vm0, %v11940_v1  ;;  %9690 = vmatmul.mubr.msk.f32.gmra.mxu1 %vm313_vm0, %v11525_v63  ;;  %v11979_v63 = vsel %vm1193_vm2, %v1228_v52, %v11798_v54 }
  0xe1   : > { %9612 = vmatprep.mubr.msk.f32.mxu0 %vm313_vm0, %v11945_v48  ;;  %9692 = vmatprep.mubr.msk.f32.mxu1 %vm313_vm0, %v11540_v4  ;;  %v1231_v4 = vrot.slane %v11529_v3, 1  ;;  %15464 = vst [vmem:[#allocation70_spill] sm:$0xff] %v11979_v63 }
  0xe3   : > { %v11990_v56 = vsel %vm1193_vm2, %v11798_v54, %v1231_v4  ;;  %v11995_v52 = vsel %vm1193_vm2, %v1231_v4, %v1233_v53  ;;  %v1238_v4 = vrot.slane %v11570_v14, 1 }
  0xe4   : > { %9613 = vmatmul.mubr.msk.f32.gmra.mxu0 %vm313_vm0, %v11956_v58  ;;  %9693 = vmatmul.mubr.msk.f32.gmra.mxu1 %vm313_vm0, %v11543_v5  ;;  %15465 = vst [vmem:[#allocation71_spill] sm:$0xff] %v11990_v56  ;;  %15466 = vst [vmem:[#allocation72_spill] sm:$0xff] %v11995_v52  ;;  %v1243_v5 = vrot.slane %v11607_v33, 1  ;;  %v15478_v33 = vld [vmem:[#allocation47_spill] sm:$0xff] }
  0xe5   : > { %9615 = vmatprep.mubr.msk.f32.mxu0 %vm313_vm0, %v11963_v61  ;;  %9695 = vmatprep.mubr.msk.f32.mxu1 %vm313_vm0, %v11559_v9  ;;  %v1236_v9 = vrot.slane %v11567_v13, 1 }
  0xe8   : > { %9616 = vmatmul.mubr.msk.f32.gmra.mxu0 %vm313_vm0, %v11972_v42  ;;  %9696 = vmatmul.mubr.msk.f32.gmra.mxu1 %vm313_vm0, %v11564_v12  ;;  %v12006_v12 = vsel %vm1193_vm2, %v1233_v53, %v11798_v54  ;;  %v12022_v53 = vsel %vm1193_vm2, %v1236_v9, %v1238_v4 }
  0xe9   : > { %9618 = vmatprep.mubr.msk.f32.mxu0 %vm313_vm0, %v11979_v63  ;;  %9698 = vmatprep.mubr.msk.f32.mxu1 %vm313_vm0, %v11580_v16  ;;  %15467 = vst [vmem:[#allocation73_spill] sm:$0xff] %v12006_v12  ;;  %v12013_v16 = vsel %vm1193_vm2, %v11798_v54, %v1236_v9  ;;  %15469 = vst [vmem:[#allocation75_spill] sm:$0xff] %v12022_v53 }
  0xea   : > { %15468 = vst [vmem:[#allocation74_spill] sm:$0xff] %v12013_v16 }
  0xec   : > { %9619 = vmatmul.mubr.msk.f32.gmra.mxu0 %vm313_vm0, %v11990_v56  ;;  %9699 = vmatmul.mubr.msk.f32.gmra.mxu1 %vm313_vm0, %v11585_v21  ;;  %v12029_v21 = vsel %vm1193_vm2, %v1238_v4, %v11798_v54 }
  0xed   : > { %9621 = vmatprep.mubr.msk.f32.mxu0 %vm313_vm0, %v11995_v52  ;;  %9701 = vmatprep.mubr.msk.f32.mxu1 %vm313_vm0, %v11600_v28  ;;  %v1241_v28 = vrot.slane %v11589_v24, 1  ;;  %15470 = vst [vmem:[#allocation76_spill] sm:$0xff] %v12029_v21  ;;  %v12061_v24 = vld [vmem:[#allocation5 + $0xf8] sm:$0xff] }
  0xee   : > { %9977 = vmatprep.subr.mxu1 %v12061_v24 }
  0xef   : > { %v12040_v9 = vsel %vm1193_vm2, %v11798_v54, %v1241_v28  ;;  %v12045_v4 = vsel %vm1193_vm2, %v1241_v28, %v1243_v5  ;;  %v15479_v28 = vld [vmem:[#allocation43_spill] sm:$0xff] }
  0xf0   : > { %9622 = vmatmul.mubr.msk.f32.gmra.mxu0 %vm313_vm0, %v12006_v12  ;;  %9702 = vmatmul.mubr.msk.f32.gmra.mxu1 %vm313_vm0, %v11603_v29  ;;  %v15471_v29 = vld [vmem:[#allocation41_spill] sm:$0xff]  ;;  %15472 = vst [vmem:[#allocation77_spill] sm:$0xff] %v12040_v9  ;;  %15474 = vst [vmem:[#allocation78_spill] sm:$0xff] %v12045_v4 }
  0xf1   : > { %9624 = vmatprep.mubr.msk.f32.mxu0 %vm313_vm0, %v12013_v16  ;;  %9704 = vmatprep.mubr.msk.f32.mxu1 %vm313_vm0, %v11619_v35  ;;  %v15473_v35 = vld [vmem:[#allocation44_spill] sm:$0xff] }
  0xf4   : > { %9625 = vmatmul.mubr.msk.f32.gmra.mxu0 %vm313_vm0, %v12022_v53  ;;  %9705 = vmatmul.mubr.msk.f32.gmra.mxu1 %vm313_vm0, %v15471_v29  ;;  %v12056_v29 = vsel %vm1193_vm2, %v1243_v5, %v11798_v54 }
  0xf5   : > { %9627 = vmatprep.mubr.msk.f32.mxu0 %vm313_vm0, %v12029_v21  ;;  %9707 = vmatprep.mubr.msk.f32.mxu1 %vm313_vm0, %v15473_v35  ;;  %15477 = vst [vmem:[#allocation79_spill] sm:$0xff] %v12056_v29  ;;  %v1248_v35 = vrot.slane %v15479_v28, 1 }
  0xf7   : > { %v12075_v5 = vsel %vm1193_vm2, %v1246_v30, %v1248_v35 }
  0xf8   : > { %9628 = vmatmul.mubr.msk.f32.gmra.mxu0 %vm313_vm0, %v12040_v9  ;;  %9708 = vmatmul.mubr.msk.f32.gmra.mxu1 %vm313_vm0, %v15476_v25  ;;  %v15481_v25 = vld [vmem:[#allocation48_spill] sm:$0xff]  ;;  %15482 = vst [vmem:[#allocation81_spill] sm:$0xff] %v12075_v5  ;;  %v15485_v9 = vld [vmem:[#allocation49_spill] sm:$0xff] }
  0xf9   : > { %9630 = vmatprep.mubr.msk.f32.mxu0 %vm313_vm0, %v12045_v4  ;;  %9710 = vmatprep.mubr.msk.f32.mxu1 %vm313_vm0, %v15478_v33  ;;  %v15483_v33 = vld [vmem:[#allocation46_spill] sm:$0xff]  ;;  %v12082_v4 = vsel %vm1193_vm2, %v1248_v35, %v11798_v54 }
  0xfa   : > { %v1251_v28 = vrot.slane %v15483_v33, 1  ;;  %15484 = vst [vmem:[#allocation82_spill] sm:$0xff] %v12082_v4 }
  0xfc   : > { %9631 = vmatmul.mubr.msk.f32.gmra.mxu0 %vm313_vm0, %v12056_v29  ;;  %9711 = vmatmul.mubr.msk.f32.gmra.mxu1 %vm313_vm0, %v15481_v25  ;;  %v1253_v29 = vrot.slane %v15485_v9, 1  ;;  %v15486_v25 = vld [vmem:[#allocation51_spill] sm:$0xff]  ;;  %v12093_v30 = vsel %vm1193_vm2, %v11798_v54, %v1251_v28  ;;  %v15490_v9 = vld [vmem:[#allocation52_spill] sm:$0xff] }
  0xfd   : > { %9633 = vmatprep.mubr.msk.f32.mxu0 %vm313_vm0, %v12065_v38  ;;  %9713 = vmatprep.mubr.msk.f32.mxu1 %vm313_vm0, %v11682_v39  ;;  %15487 = vst [vmem:[#allocation83_spill] sm:$0xff] %v12093_v30  ;;  %v15488_v39 = vld [vmem:[#allocation54_spill] sm:$0xff]  ;;  %v1256_v33 = vrot.slane %v15490_v9, 1 }
  0xfe   : > { %v12098_v35 = vsel %vm1193_vm2, %v1251_v28, %v1253_v29  ;;  %v15494_v28 = vld [vmem:[#allocation53_spill] sm:$0xff] }
  0xff   : > { %15489 = vst [vmem:[#allocation84_spill] sm:$0xff] %v12098_v35  ;;  %v12116_v9 = vsel %vm1193_vm2, %v11798_v54, %v1256_v33 }
 0x100   : > { %9634 = vmatmul.mubr.msk.f32.gmra.mxu0 %vm313_vm0, %v12075_v5  ;;  %9714 = vmatmul.mubr.msk.f32.gmra.mxu1 %vm313_vm0, %v15486_v25  ;;  %v15491_v5 = vld [vmem:[#allocation55_spill] sm:$0xff]  ;;  %v12109_v25 = vsel %vm1193_vm2, %v1253_v29, %v11798_v54  ;;  %15495 = vst [vmem:[#allocation86_spill] sm:$0xff] %v12116_v9 }
 0x101   : > { %9636 = vmatprep.mubr.msk.f32.mxu0 %vm313_vm0, %v12082_v4  ;;  %9716 = vmatprep.mubr.msk.f32.mxu1 %vm313_vm0, %v15488_v39  ;;  %15492 = vst [vmem:[#allocation85_spill] sm:$0xff] %v12109_v25  ;;  %v15493_v4 = vld [vmem:[#allocation57_spill] sm:$0xff]  ;;  %v1258_v39 = vrot.slane %v15494_v28, 1 }
 0x103   : > { %v12125_v29 = vsel %vm1193_vm2, %v1256_v33, %v1258_v39  ;;  %v12132_v28 = vsel %vm1193_vm2, %v1258_v39, %v11798_v54 }
 0x104   : > { %9637 = vmatmul.mubr.msk.f32.gmra.mxu0 %vm313_vm0, %v12093_v30  ;;  %9717 = vmatmul.mubr.msk.f32.gmra.mxu1 %vm313_vm0, %v15491_v5  ;;  %v15496_v5 = vld [vmem:[#allocation58_spill] sm:$0xff]  ;;  %15497 = vst [vmem:[#allocation87_spill] sm:$0xff] %v12125_v29  ;;  %15498 = vst [vmem:[#allocation88_spill] sm:$0xff] %v12132_v28 }
 0x105   : > { %9639 = vmatprep.mubr.msk.f32.mxu0 %vm313_vm0, %v12098_v35  ;;  %9719 = vmatprep.mubr.msk.f32.mxu1 %vm313_vm0, %v15493_v4  ;;  %v1261_v4 = vrot.slane %v11712_v41, 1  ;;  %v12155_v41 = vld [vmem:[%s11322_s13 + $0xf8] sm:$0xff] }
 0x106   : > { %15502 = vst [vmem:[#allocation91_spill] sm:$0xff] %v12155_v41 }
 0x107   : > { %v12143_v33 = vsel %vm1193_vm2, %v11798_v54, %v1261_v4 }
 0x108   : > { %9640 = vmatmul.mubr.msk.f32.gmra.mxu0 %vm313_vm0, %v12109_v25  ;;  %9720 = vmatmul.mubr.msk.f32.gmra.mxu1 %vm313_vm0, %v15496_v5  ;;  %v1263_v25 = vrot.slane %v11730_v6, 1  ;;  %15499 = vst [vmem:[#allocation89_spill] sm:$0xff] %v12143_v33  ;;  %v1266_v5 = vrot.slane %v11750_v62, 1  ;;  %v12152_v6 = vld [vmem:[%s11322_s13 + $0xf0] sm:$0xff] }
 0x109   : > { %9642 = vmatprep.mubr.msk.f32.mxu0 %vm313_vm0, %v12116_v9  ;;  %9722 = vmatprep.mubr.msk.f32.mxu1 %vm313_vm0, %v11742_v19  ;;  %v15500_v19 = vld [vmem:[#allocation64_spill] sm:$0xff]  ;;  %v1726_v62 = vrot.slane %v12152_v6, 7 }
 0x10a   : > { %v12148_v39 = vsel %vm1193_vm2, %v1261_v4, %v1263_v25  ;;  %v1268_v4 = vrot.slane %v11753_v31, 1 }
 0x10b   : > { %15501 = vst [vmem:[#allocation90_spill] sm:$0xff] %v12148_v39 }
 0x10c   : > { %9643 = vmatmul.mubr.msk.f32.gmra.mxu0 %vm313_vm0, %v12125_v29  ;;  %9723 = vmatmul.mubr.msk.f32.gmra.mxu1 %vm313_vm0, %v11747_v2  ;;  %v15503_v2 = vld [vmem:[#allocation65_spill] sm:$0xff] }
 0x10d   : > { %9645 = vmatprep.mubr.msk.f32.mxu0 %vm313_vm0, %v12132_v28  ;;  %9725 = vmatprep.mubr.msk.f32.mxu1 %vm313_vm0, %v15500_v19  ;;  %v12165_v19 = vsel %vm1193_vm2, %v1263_v25, %v11798_v54  ;;  %v12183_v25 = vsel %vm1193_vm2, %v1266_v5, %v1268_v4 }
 0x10e   : > { %15504 = vst [vmem:[#allocation92_spill] sm:$0xff] %v12165_v19  ;;  %15507 = vst [vmem:[#allocation94_spill] sm:$0xff] %v12183_v25 }
 0x110   : > { %9646 = vmatmul.mubr.msk.f32.gmra.mxu0 %vm313_vm0, %v12143_v33  ;;  %9726 = vmatmul.mubr.msk.f32.gmra.mxu1 %vm313_vm0, %v15503_v2  ;;  %v12173_v33 = vsel %vm1193_vm2, %v11798_v54, %v1266_v5  ;;  %v1728_v2 = vrot.slane %v12155_v41, 7  ;;  %v15219_v41 = vrot.slane %v12152_v6, 1 }
 0x111   : > { %9648 = vmatprep.mubr.msk.f32.mxu0 %vm313_vm0, %v12148_v39  ;;  %9728 = vmatprep.mubr.msk.f32.mxu1 %vm313_vm0, %v11780_v0  ;;  %15505 = vst [vmem:[#allocation93_spill] sm:$0xff] %v12173_v33  ;;  %v15506_v39 = vld [vmem:[#allocation67_spill] sm:$0xff]  ;;  %v15508_v0 = vld [vmem:[#allocation12_spill] sm:$0xff] }
 0x112   : > { %v12189_v31 = vsel %vm712_vm1, %v15508_v0, %v1726_v62  ;;  %v12209_v5 = vsel %vm1193_vm2, %v11798_v54, %v15219_v41  ;;  %v2820_v41 = vld [vmem:[#allocation5 + $0xd0] sm:$0xff] }
 0x113   : > { %15509 = vst [vmem:[#allocation95_spill] sm:$0xff] %v12189_v31  ;;  %15512 = vst [vmem:[#allocation98_spill] sm:$0xff] %v12209_v5 }
 0x114   : > { %9649 = vmatmul.mubr.msk.f32.gmra.mxu0 %vm313_vm0, %v12165_v19  ;;  %9729 = vmatmul.mubr.msk.f32.gmra.mxu1 %vm313_vm0, %v15506_v39  ;;  %v12194_v19 = vsel %vm1193_vm2, %v1268_v4, %v11798_v54  ;;  %v12197_v39 = vsel %vm712_vm1, %v1726_v62, %v1728_v2  ;;  %v12215_v62 = vsel %vm712_vm1, %v1728_v2, %v15508_v0  ;;  %v15514_v4 = vld [vmem:[#allocation13_spill] sm:$0xff]  ;;  %v15516_v0 = vmov 0.0  }
 0x115   : > { %9651 = vmatprep.mubr.msk.f32.mxu0 %vm313_vm0, %v12173_v33  ;;  %9731 = vmatprep.mubr.msk.f32.mxu1 %vm313_vm0, %v11795_v10  ;;  %15510 = vst [vmem:[#allocation96_spill] sm:$0xff] %v12194_v19  ;;  %15511 = vst [vmem:[#allocation97_spill] sm:$0xff] %v12197_v39  ;;  %v2819_v54 = vld [vmem:[#allocation5 + $0xc8] sm:$0xff] }
 0x116   : > { %15513 = vst [vmem:[#allocation99_spill] sm:$0xff] %v12215_v62 }
 0x118   : > { %9652 = vmatmul.mubr.msk.f32.gmra.mxu0 %vm313_vm0, %v12183_v25  ;;  %9732 = vmatmul.mubr.msk.f32.gmra.mxu1 %vm313_vm0, %v12189_v31 }
 0x119   : > { %9654 = vmatprep.mubr.msk.f32.mxu0 %vm313_vm0, %v12194_v19  ;;  %9734 = vmatprep.mubr.msk.f32.mxu1 %vm313_vm0, %v12197_v39  ;;  %v15515_v39 = vld [vmem:[#allocation14_spill] sm:$0xff] }
 0x11c   : > { %9655 = vmatmul.mubr.msk.f32.gmra.mxu0 %vm313_vm0, %v12209_v5  ;;  %9735 = vmatmul.mubr.msk.f32.gmra.mxu1 %vm313_vm0, %v12215_v62 }
 0x11d   : > { %9745 = vmatprep.mubr.msk.f32.mxu0 %vm313_vm0, %v15514_v4  ;;  %9825 = vmatprep.mubr.msk.f32.mxu1 %vm313_vm0, %v11818_v43 }
 0x120   : > { %v9427_v31 = vpop.f32.mrf.mxu0  ;;  %v9507_v10 = vpop.f32.mrf.mxu1  ;;  %9746 = vmatmul.mubr.msk.f32.vlgmr.msra.gmra.mxu0 %vm313_vm0, %v15515_v39  ;;  %9826 = vmatmul.mubr.msk.f32.vlgmr.msra.gmra.mxu1 %vm313_vm0, %v11825_v11  ;;  %v3178_v39 = vld [vmem:[#allocation5 + $0xf0] sm:$0xff] }
 0x121   : > { %v12229_v2 = vadd.f32 %v9507_v10, %v9427_v31  ;;  %9898 = vmatpush3.msra.mxu0 %v11862_v32  ;;  %9748 = vmatprep.mubr.f32.mxu0 %v15516_v0 }
 0x122   : > { %v473_v62 = vpop.f32.mrf.mxu0  ;;  %v948_v4 = vpop.f32.mrf.mxu1  ;;  %9828 = vmatprep.mubr.msk.f32.mxu1 %vm313_vm0, %v11837_v23  ;;  %9899 = vmatprep.subr.mxu0 %v2820_v41  ;;  %v3177_v23 = vld [vmem:[#allocation5 + $0xe8] sm:$0xff] }
 0x123   : > { %v12235_v43 = vadd.f32 %v948_v4, %v473_v62  ;;  %9900 = vmatpush3.msra.mxu0 %v2820_v41  ;;  %9978 = vmatpush3.msra.mxu1 %v12061_v24  ;;  %v2818_v24 = vld [vmem:[#allocation5 + $0xc0] sm:$0xff] }
 0x124   : > { %v9430_v11 = vpop.f32.mrf.mxu0  ;;  %v9510_v10 = vpop.f32.mrf.mxu1  ;;  %9749 = vmatmul.mubr.msk.f32.gmra.mxu0 %vm313_vm0, %v11347_v15  ;;  %9829 = vmatmul.mubr.msk.f32.gmra.mxu1 %vm313_vm0, %v11842_v36 }
 0x125   : > { %v12242_v32 = vadd.f32 %v9510_v10, %v9430_v11  ;;  %9751 = vmatprep.mubr.msk.f32.mxu0 %vm313_vm0, %v11364_v20  ;;  %9831 = vmatprep.mubr.msk.f32.mxu1 %vm313_vm0, %v11853_v22  ;;  %v12257_v11 = vld [vmem:[#allocation5 + $0x118] sm:$0xff] }
 0x126   : > { %v483_v41 = vpop.f32.mrf.mxu0  ;;  %v958_v31 = vpop.f32.mrf.mxu1  ;;  %9901 = vmatprep.subr.mxu0 %v2819_v54  ;;  %9979 = vmatprep.subr.mxu1 %v3178_v39 }
 0x127   : > { %9902 = vmatpush3.msra.mxu0 %v2819_v54  ;;  %9980 = vmatpush3.msra.mxu1 %v3178_v39  ;;  %v3176_v39 = vld [vmem:[#allocation5 + $0xe0] sm:$0xff] }
 0x128   : > { %v9433_v15 = vpop.f32.mrf.mxu0  ;;  %v9513_v62 = vpop.f32.mrf.mxu1  ;;  %9752 = vmatmul.mubr.f32.gmra.mxu0 %v15516_v0  ;;  %9832 = vmatmul.mubr.msk.f32.gmra.mxu1 %vm313_vm0, %v11860_v18 }
 0x129   : > { %9754 = vmatprep.mubr.msk.f32.mxu0 %vm313_vm0, %v11384_v26  ;;  %9834 = vmatprep.mubr.msk.f32.mxu1 %vm313_vm0, %v11871_v8 }
 0x12a   : > { %v493_v20 = vpop.f32.mrf.mxu0  ;;  %v968_v4 = vpop.f32.mrf.mxu1  ;;  %9903 = vmatprep.subr.mxu0 %v2818_v24  ;;  %9981 = vmatprep.subr.mxu1 %v3177_v23 }
 0x12b   : > { %v12255_v54 = vadd.f32 %v968_v4, %v493_v20  ;;  %9904 = vmatpush3.msra.mxu0 %v2818_v24  ;;  %9982 = vmatpush3.msra.mxu1 %v3177_v23 }
 0x12c   : > { %v9436_v10 = vpop.f32.mrf.mxu0  ;;  %v9516_v41 = vpop.f32.mrf.mxu1  ;;  %9755 = vmatmul.mubr.msk.f32.gmra.mxu0 %vm313_vm0, %v11387_v27  ;;  %9835 = vmatmul.mubr.msk.f32.gmra.mxu1 %vm313_vm0, %v11878_v57 }
 0x12d   : > { %v12263_v26 = vadd.f32 %v9516_v41, %v9436_v10  ;;  %9757 = vmatprep.mubr.f32.mxu0 %v15516_v0  ;;  %9837 = vmatprep.mubr.msk.f32.mxu1 %vm313_vm0, %v11890_v50 }
 0x12e   : > { %v503_v31 = vpop.f32.mrf.mxu0  ;;  %v978_v24 = vpop.f32.mrf.mxu1  ;;  %9983 = vmatprep.subr.mxu1 %v3176_v39  ;;  %10057 = vmatprep.subr.mxu0 %v12257_v11 }
 0x12f   : > { %v12269_v23 = vadd.f32 %v978_v24, %v503_v31  ;;  %9984 = vmatpush3.msra.mxu1 %v3176_v39 }
 0x130   : > { %v9439_v15 = vpop.f32.mrf.mxu0  ;;  %v9519_v27 = vpop.f32.mrf.mxu1  ;;  %9758 = vmatmul.mubr.msk.f32.gmra.mxu0 %vm313_vm0, %v11406_v34  ;;  %9838 = vmatmul.mubr.msk.f32.gmra.mxu1 %vm313_vm0, %v11895_v17 }
 0x131   : > { %v12275_v62 = vadd.f32 %v9519_v27, %v9439_v15  ;;  %9760 = vmatprep.mubr.msk.f32.mxu0 %vm313_vm0, %v11426_v40  ;;  %9840 = vmatprep.mubr.msk.f32.mxu1 %vm313_vm0, %v11906_v44 }
 0x132   : > { %v513_v20 = vpop.f32.mrf.mxu0  ;;  %v988_v4 = vpop.f32.mrf.mxu1 }
 0x134   : > { %v9442_v10 = vpop.f32.mrf.mxu0  ;;  %v9522_v39 = vpop.f32.mrf.mxu1  ;;  %9761 = vmatmul.mubr.f32.gmra.mxu0 %v15516_v0  ;;  %9841 = vmatmul.mubr.msk.f32.gmra.mxu1 %vm313_vm0, %v11913_v47 }
 0x135   : > { %9763 = vmatprep.mubr.msk.f32.mxu0 %vm313_vm0, %v11447_v45  ;;  %9843 = vmatprep.mubr.msk.f32.mxu1 %vm313_vm0, %v11922_v37 }
 0x136   : > { %v523_v34 = vpop.f32.mrf.mxu0  ;;  %v998_v40 = vpop.f32.mrf.mxu1 }
 0x137   : > { %v12288_v41 = vadd.f32 %v998_v40, %v523_v34 }
 0x138   : > { %v9445_v31 = vpop.f32.mrf.mxu0  ;;  %v9525_v24 = vpop.f32.mrf.mxu1  ;;  %9764 = vmatmul.mubr.msk.f32.gmra.mxu0 %vm313_vm0, %v11450_v46  ;;  %9844 = vmatmul.mubr.msk.f32.gmra.mxu1 %vm313_vm0, %v11929_v49 }
 0x139   : > { %v12294_v15 = vadd.f32 %v9525_v24, %v9445_v31  ;;  %9766 = vmatprep.mubr.f32.mxu0 %v15516_v0  ;;  %9846 = vmatprep.mubr.msk.f32.mxu1 %vm313_vm0, %v11940_v1 }
 0x13a   : > { %v533_v45 = vpop.f32.mrf.mxu0  ;;  %v1008_v27 = vpop.f32.mrf.mxu1 }
 0x13b   : > { %v12299_v20 = vadd.f32 %v1008_v27, %v533_v45 }
 0x13c   : > { %v9448_v4 = vpop.f32.mrf.mxu0  ;;  %v9528_v10 = vpop.f32.mrf.mxu1  ;;  %9767 = vmatmul.mubr.msk.f32.gmra.mxu0 %vm313_vm0, %v11469_v51  ;;  %9847 = vmatmul.mubr.msk.f32.gmra.mxu1 %vm313_vm0, %v11945_v48 }
 0x13d   : > { %v12305_v46 = vadd.f32 %v9528_v10, %v9448_v4  ;;  %9769 = vmatprep.mubr.msk.f32.mxu0 %vm313_vm0, %v11487_v55  ;;  %9849 = vmatprep.mubr.msk.f32.mxu1 %vm313_vm0, %v11956_v58 }
 0x13e   : > { %v543_v39 = vpop.f32.mrf.mxu0  ;;  %v1018_v34 = vpop.f32.mrf.mxu1 }
 0x140   : > { %v9451_v40 = vpop.f32.mrf.mxu0  ;;  %v9531_v31 = vpop.f32.mrf.mxu1  ;;  %9770 = vmatmul.mubr.f32.gmra.mxu0 %v15516_v0  ;;  %9850 = vmatmul.mubr.msk.f32.gmra.mxu1 %vm313_vm0, %v11963_v61 }
 0x141   : > { %9772 = vmatprep.mubr.msk.f32.mxu0 %vm313_vm0, %v11507_v59  ;;  %9852 = vmatprep.mubr.msk.f32.mxu1 %vm313_vm0, %v11972_v42 }
 0x142   : > { %v553_v51 = vpop.f32.mrf.mxu0  ;;  %v1028_v55 = vpop.f32.mrf.mxu1 }
 0x143   : > { %v12318_v24 = vadd.f32 %v1028_v55, %v553_v51 }
 0x144   : > { %v9454_v45 = vpop.f32.mrf.mxu0  ;;  %v9534_v27 = vpop.f32.mrf.mxu1  ;;  %9773 = vmatmul.mubr.msk.f32.gmra.mxu0 %vm313_vm0, %v11510_v60  ;;  %9853 = vmatmul.mubr.msk.f32.gmra.mxu1 %vm313_vm0, %v11979_v63  ;;  %v15547_v63 = vld [vmem:[#allocation19_spill] sm:$0xff] }
 0x145   : > { %v12324_v4 = vadd.f32 %v9534_v27, %v9454_v45  ;;  %9775 = vmatprep.mubr.f32.mxu0 %v15516_v0  ;;  %9855 = vmatprep.mubr.msk.f32.mxu1 %vm313_vm0, %v11990_v56  ;;  %v15546_v56 = vld [vmem:[#allocation18_spill] sm:$0xff] }
 0x146   : > { %v563_v59 = vpop.f32.mrf.mxu0  ;;  %v1038_v10 = vpop.f32.mrf.mxu1 }
 0x147   : > { %v12329_v39 = vadd.f32 %v1038_v10, %v563_v59 }
 0x148   : > { %v9457_v34 = vpop.f32.mrf.mxu0  ;;  %v9537_v40 = vpop.f32.mrf.mxu1  ;;  %9776 = vmatmul.mubr.msk.f32.gmra.mxu0 %vm313_vm0, %v11529_v3  ;;  %9856 = vmatmul.mubr.msk.f32.gmra.mxu1 %vm313_vm0, %v11995_v52  ;;  %v3535_v52 = vld [vmem:[#allocation5 + $0x108] sm:$0xff] }
 0x149   : > { %v12335_v60 = vadd.f32 %v9537_v40, %v9457_v34  ;;  %9778 = vmatprep.mubr.msk.f32.mxu0 %vm313_vm0, %v11547_v7  ;;  %9858 = vmatprep.mubr.msk.f32.mxu1 %vm313_vm0, %v12006_v12  ;;  %v15543_v12 = vld [vmem:[#allocation15_spill] sm:$0xff] }
 0x14a   : > { %v573_v31 = vpop.f32.mrf.mxu0  ;;  %v1048_v51 = vpop.f32.mrf.mxu1 }
 0x14c   : > { %v9460_v55 = vpop.f32.mrf.mxu0  ;;  %v9540_v45 = vpop.f32.mrf.mxu1  ;;  %9779 = vmatmul.mubr.f32.gmra.mxu0 %v15516_v0  ;;  %9859 = vmatmul.mubr.msk.f32.gmra.mxu1 %vm313_vm0, %v12013_v16 }
 0x14d   : > { %9781 = vmatprep.mubr.msk.f32.mxu0 %vm313_vm0, %v11567_v13  ;;  %9861 = vmatprep.mubr.msk.f32.mxu1 %vm313_vm0, %v12022_v53  ;;  %v15517_v13 = vld [vmem:[#allocation77_spill] sm:$0xff]  ;;  %v15526_v53 = vld [vmem:[#allocation46_spill] sm:$0xff] }
 0x14e   : > { %v583_v3 = vpop.f32.mrf.mxu0  ;;  %v1058_v7 = vpop.f32.mrf.mxu1 }
 0x14f   : > { %v12348_v27 = vadd.f32 %v1058_v7, %v583_v3  ;;  %v15518_v3 = vld [vmem:[#allocation36_spill] sm:$0xff] }
 0x150   : > { %v9463_v59 = vpop.f32.mrf.mxu0  ;;  %v9543_v10 = vpop.f32.mrf.mxu1  ;;  %9782 = vmatmul.mubr.msk.f32.gmra.mxu0 %vm313_vm0, %v11570_v14  ;;  %9862 = vmatmul.mubr.msk.f32.gmra.mxu1 %vm313_vm0, %v12029_v21  ;;  %v15519_v14 = vld [vmem:[#allocation78_spill] sm:$0xff] }
 0x151   : > { %v12354_v34 = vadd.f32 %v9543_v10, %v9463_v59  ;;  %9784 = vmatprep.mubr.f32.mxu0 %v15516_v0  ;;  %9864 = vmatprep.mubr.msk.f32.mxu1 %vm313_vm0, %v15517_v13  ;;  %v15520_v59 = vld [vmem:[#allocation39_spill] sm:$0xff] }
 0x152   : > { %v593_v40 = vpop.f32.mrf.mxu0  ;;  %v1068_v31 = vpop.f32.mrf.mxu1  ;;  %v15521_v10 = vld [vmem:[#allocation79_spill] sm:$0xff] }
 0x153   : > { %v12359_v51 = vadd.f32 %v1068_v31, %v593_v40 }
 0x154   : > { %v9466_v55 = vpop.f32.mrf.mxu0  ;;  %v9546_v45 = vpop.f32.mrf.mxu1  ;;  %9785 = vmatmul.mubr.msk.f32.gmra.mxu0 %vm313_vm0, %v15518_v3  ;;  %9865 = vmatmul.mubr.msk.f32.gmra.mxu1 %vm313_vm0, %v15519_v14  ;;  %v15522_v3 = vld [vmem:[#allocation42_spill] sm:$0xff] }
 0x155   : > { %v12365_v7 = vadd.f32 %v9546_v45, %v9466_v55  ;;  %9787 = vmatprep.mubr.msk.f32.mxu0 %vm313_vm0, %v15520_v59  ;;  %9867 = vmatprep.mubr.msk.f32.mxu1 %vm313_vm0, %v15521_v10  ;;  %v15523_v55 = vld [vmem:[#allocation81_spill] sm:$0xff] }
 0x156   : > { %v603_v13 = vpop.f32.mrf.mxu0  ;;  %v1078_v21 = vpop.f32.mrf.mxu1 }
 0x157   : > { %v15524_v21 = vld [vmem:[#allocation43_spill] sm:$0xff] }
 0x158   : > { %v9469_v40 = vpop.f32.mrf.mxu0  ;;  %v9549_v31 = vpop.f32.mrf.mxu1  ;;  %9788 = vmatmul.mubr.f32.gmra.mxu0 %v15516_v0  ;;  %9868 = vmatmul.mubr.msk.f32.gmra.mxu1 %vm313_vm0, %v12065_v38 }
 0x159   : > { %9790 = vmatprep.mubr.msk.f32.mxu0 %vm313_vm0, %v15522_v3  ;;  %9870 = vmatprep.mubr.msk.f32.mxu1 %vm313_vm0, %v15523_v55  ;;  %v15525_v40 = vld [vmem:[#allocation82_spill] sm:$0xff] }
 0x15a   : > { %v613_v45 = vpop.f32.mrf.mxu0  ;;  %v1088_v59 = vpop.f32.mrf.mxu1 }
 0x15b   : > { %v12378_v14 = vadd.f32 %v1088_v59, %v613_v45 }
 0x15c   : > { %v9472_v10 = vpop.f32.mrf.mxu0  ;;  %v9552_v13 = vpop.f32.mrf.mxu1  ;;  %9791 = vmatmul.mubr.msk.f32.gmra.mxu0 %vm313_vm0, %v15524_v21  ;;  %9871 = vmatmul.mubr.msk.f32.gmra.mxu1 %vm313_vm0, %v15525_v40 }
 0x15d   : > { %v12384_v31 = vadd.f32 %v9552_v13, %v9472_v10  ;;  %9793 = vmatprep.mubr.f32.mxu0 %v15516_v0  ;;  %9873 = vmatprep.mubr.msk.f32.mxu1 %vm313_vm0, %v12093_v30  ;;  %v15527_v10 = vld [vmem:[#allocation49_spill] sm:$0xff] }
 0x15e   : > { %v623_v3 = vpop.f32.mrf.mxu0  ;;  %v1098_v55 = vpop.f32.mrf.mxu1  ;;  %v15528_v13 = vld [vmem:[#allocation85_spill] sm:$0xff] }
 0x15f   : > { %v12389_v38 = vadd.f32 %v1098_v55, %v623_v3 }
 0x160   : > { %v9475_v45 = vpop.f32.mrf.mxu0  ;;  %v9555_v59 = vpop.f32.mrf.mxu1  ;;  %9794 = vmatmul.mubr.msk.f32.gmra.mxu0 %vm313_vm0, %v15526_v53  ;;  %9874 = vmatmul.mubr.msk.f32.gmra.mxu1 %vm313_vm0, %v12098_v35  ;;  %v15529_v53 = vld [vmem:[#allocation52_spill] sm:$0xff] }
 0x161   : > { %v12395_v21 = vadd.f32 %v9555_v59, %v9475_v45  ;;  %9796 = vmatprep.mubr.msk.f32.mxu0 %vm313_vm0, %v15527_v10  ;;  %9876 = vmatprep.mubr.msk.f32.mxu1 %vm313_vm0, %v15528_v13  ;;  %v15532_v35 = vld [vmem:[#allocation56_spill] sm:$0xff] }
 0x162   : > { %v633_v30 = vpop.f32.mrf.mxu0  ;;  %v1108_v40 = vpop.f32.mrf.mxu1 }
 0x163   : > { %v15530_v40 = vld [vmem:[#allocation53_spill] sm:$0xff] }
 0x164   : > { %v9478_v55 = vpop.f32.mrf.mxu0  ;;  %v9558_v3 = vpop.f32.mrf.mxu1  ;;  %9797 = vmatmul.mubr.f32.gmra.mxu0 %v15516_v0  ;;  %9877 = vmatmul.mubr.msk.f32.gmra.mxu1 %vm313_vm0, %v12116_v9 }
 0x165   : > { %9799 = vmatprep.mubr.msk.f32.mxu0 %vm313_vm0, %v15529_v53  ;;  %9879 = vmatprep.mubr.msk.f32.mxu1 %vm313_vm0, %v12125_v29  ;;  %v15531_v3 = vld [vmem:[#allocation89_spill] sm:$0xff] }
 0x166   : > { %v643_v45 = vpop.f32.mrf.mxu0  ;;  %v1118_v59 = vpop.f32.mrf.mxu1 }
 0x167   : > { %v12408_v10 = vadd.f32 %v1118_v59, %v643_v45 }
 0x168   : > { %v9481_v13 = vpop.f32.mrf.mxu0  ;;  %v9561_v30 = vpop.f32.mrf.mxu1  ;;  %9800 = vmatmul.mubr.msk.f32.gmra.mxu0 %vm313_vm0, %v15530_v40  ;;  %9880 = vmatmul.mubr.msk.f32.gmra.mxu1 %vm313_vm0, %v12132_v28  ;;  %v15533_v40 = vld [vmem:[#allocation90_spill] sm:$0xff] }
 0x169   : > { %v12414_v55 = vadd.f32 %v9561_v30, %v9481_v13  ;;  %9802 = vmatprep.mubr.f32.mxu0 %v15516_v0  ;;  %9882 = vmatprep.mubr.msk.f32.mxu1 %vm313_vm0, %v15531_v3  ;;  %v15534_v13 = vld [vmem:[#allocation59_spill] sm:$0xff]  ;;  %v15535_v30 = vld [vmem:[#allocation92_spill] sm:$0xff] }
 0x16a   : > { %v653_v53 = vpop.f32.mrf.mxu0  ;;  %v1128_v29 = vpop.f32.mrf.mxu1 }
 0x16b   : > { %v12419_v9 = vadd.f32 %v1128_v29, %v653_v53 }
 0x16c   : > { %v9484_v45 = vpop.f32.mrf.mxu0  ;;  %v9564_v59 = vpop.f32.mrf.mxu1  ;;  %9803 = vmatmul.mubr.msk.f32.gmra.mxu0 %vm313_vm0, %v15532_v35  ;;  %9883 = vmatmul.mubr.msk.f32.gmra.mxu1 %vm313_vm0, %v15533_v40  ;;  %v15536_v35 = vld [vmem:[#allocation62_spill] sm:$0xff] }
 0x16d   : > { %v12425_v28 = vadd.f32 %v9564_v59, %v9484_v45  ;;  %9805 = vmatprep.mubr.msk.f32.mxu0 %vm313_vm0, %v15534_v13  ;;  %9885 = vmatprep.mubr.msk.f32.mxu1 %vm313_vm0, %v15535_v30  ;;  %v15537_v45 = vld [vmem:[#allocation91_spill] sm:$0xff] }
 0x16e   : > { %v663_v3 = vpop.f32.mrf.mxu0  ;;  %v1138_v16 = vpop.f32.mrf.mxu1  ;;  %v2457_v59 = vrot.slane %v15537_v45, 1 }
 0x170   : > { %v9487_v29 = vpop.f32.mrf.mxu0  ;;  %v9567_v53 = vpop.f32.mrf.mxu1  ;;  %9806 = vmatmul.mubr.f32.gmra.mxu0 %v15516_v0  ;;  %9886 = vmatmul.mubr.msk.f32.gmra.mxu1 %vm313_vm0, %v12173_v33  ;;  %v15541_v33 = vld [vmem:[#allocation69_spill] sm:$0xff] }
 0x171   : > { %9808 = vmatprep.mubr.msk.f32.mxu0 %vm313_vm0, %v15536_v35  ;;  %9888 = vmatprep.mubr.msk.f32.mxu1 %vm313_vm0, %v12183_v25  ;;  %v15538_v29 = vld [vmem:[#allocation63_spill] sm:$0xff]  ;;  %v15539_v35 = vrot.slane %v12152_v6, 1 }
 0x172   : > { %v673_v13 = vpop.f32.mrf.mxu0  ;;  %v1148_v40 = vpop.f32.mrf.mxu1 }
 0x173   : > { %v12439_v30 = vadd.f32 %v1148_v40, %v673_v13  ;;  %v12453_v40 = vsel %vm1193_vm2, %v15539_v35, %v2457_v59 }
 0x174   : > { %v9490_v16 = vpop.f32.mrf.mxu0  ;;  %v9570_v3 = vpop.f32.mrf.mxu1  ;;  %9809 = vmatmul.mubr.msk.f32.gmra.mxu0 %vm313_vm0, %v15538_v29  ;;  %9889 = vmatmul.mubr.msk.f32.gmra.mxu1 %vm313_vm0, %v12194_v19  ;;  %15540 = vst [vmem:[#allocation13_spill] sm:$0xff] %v12453_v40  ;;  %v12457_v29 = vsel %vm1193_vm2, %v2457_v59, %v15541_v33 }
 0x175   : > { %v12445_v53 = vadd.f32 %v9570_v3, %v9490_v16  ;;  %9811 = vmatprep.mubr.f32.mxu0 %v15516_v0  ;;  %9891 = vmatprep.mubr.msk.f32.mxu1 %vm313_vm0, %v12209_v5  ;;  %15542 = vst [vmem:[#allocation14_spill] sm:$0xff] %v12457_v29 }
 0x176   : > { %v683_v13 = vpop.f32.mrf.mxu0  ;;  %v1158_v25 = vpop.f32.mrf.mxu1 }
 0x177   : > { %v12459_v19 = vadd.f32 %v1158_v25, %v683_v13 }
 0x178   : > { %v9493_v16 = vpop.f32.mrf.mxu0  ;;  %v9573_v3 = vpop.f32.mrf.mxu1  ;;  %9812 = vmatmul.mubr.msk.f32.gmra.mxu0 %vm313_vm0, %v12152_v6  ;;  %9892 = vmatmul.mubr.msk.f32.gmra.mxu1 %vm313_vm0, %v12453_v40 }
 0x179   : > { %v12465_v5 = vadd.f32 %v9573_v3, %v9493_v16  ;;  %9814 = vmatprep.mubr.msk.f32.mxu0 %vm313_vm0, %v15537_v45  ;;  %9894 = vmatprep.mubr.msk.f32.mxu1 %vm313_vm0, %v12457_v29  ;;  %v10929_v16 = vld [vmem:[%s11322_s13 + $0x10] sm:$0xff] }
 0x17a   : > { %v693_v59 = vpop.f32.mrf.mxu0  ;;  %v1168_v25 = vpop.f32.mrf.mxu1 }
 0x17b   : > { %v3536_v59 = vld [vmem:[#allocation5 + $0x110] sm:$0xff]  ;;  %v15544_v25 = vld [vmem:[#allocation16_spill] sm:$0xff] }
 0x17c   : > { %v9496_v35 = vpop.f32.mrf.mxu0  ;;  %v9576_v13 = vpop.f32.mrf.mxu1  ;;  %9815 = vmatmul.mubr.f32.gmra.mxu0 %v15516_v0  ;;  %9895 = vmatmul.mubr.msk.f32.gmra.mxu1 %vm313_vm0, %v15541_v33 }
 0x17d   : > { %9905 = vmatprep.mubr.msk.f32.mxu0 %vm313_vm0, %v15543_v12  ;;  %9985 = vmatprep.mubr.msk.f32.mxu1 %vm313_vm0, %v10929_v16  ;;  %v10930_v13 = vld [vmem:[%s11322_s13 + $0x18] sm:$0xff]  ;;  %v15545_v12 = vld [vmem:[#allocation17_spill] sm:$0xff] }
 0x17e   : > { %v703_v45 = vpop.f32.mrf.mxu0  ;;  %v1178_v3 = vpop.f32.mrf.mxu1 }
 0x17f   : > { %v12478_v40 = vadd.f32 %v1178_v3, %v703_v45 }
 0x180   : > { %v9587_v29 = vpop.f32.mrf.mxu0  ;;  %9906 = vmatmul.mubr.msk.f32.vlgmr.msra.gmra.mxu0 %vm313_vm0, %v15544_v25  ;;  %v9667_v35 = vpop.f32.mrf.mxu1  ;;  %9986 = vmatmul.mubr.msk.f32.vlgmr.msra.gmra.mxu1 %vm313_vm0, %v10930_v13 }
 0x181   : > { %v1673_v33 = vadd.f32 %v9587_v29, %v12229_v2  ;;  %10058 = vmatpush3.msra.mxu0 %v12257_v11  ;;  %9908 = vmatprep.mubr.msk.f32.mxu0 %vm313_vm0, %v15545_v12  ;;  %v10931_v11 = vld [vmem:[%s11322_s13 + $0x20] sm:$0xff] }
 0x182   : > { %v1433_v16 = vpop.f32.mrf.mxu0  ;;  %v1803_v45 = vpop.f32.mrf.mxu1  ;;  %9988 = vmatprep.mubr.f32.mxu1 %v15516_v0  ;;  %10059 = vmatprep.subr.mxu0 %v3536_v59 }
 0x183   : > { %v1672_v3 = vadd.f32 %v1433_v16, %v12235_v43  ;;  %v12490_v25 = vadd.f32 %v9667_v35, %v1673_v33  ;;  %10060 = vmatpush3.msra.mxu0 %v3536_v59  ;;  %v10932_v33 = vld [vmem:[%s11322_s13 + $0x28] sm:$0xff] }
 0x184   : > { %v9590_v13 = vpop.f32.mrf.mxu0  ;;  %9909 = vmatmul.mubr.msk.f32.gmra.mxu0 %vm313_vm0, %v15546_v56  ;;  %v9670_v2 = vpop.f32.mrf.mxu1  ;;  %9989 = vmatmul.mubr.msk.f32.gmra.mxu1 %vm313_vm0, %v10931_v11  ;;  %v3534_v56 = vld [vmem:[#allocation5 + $0x100] sm:$0xff] }
 0x185   : > { %v1675_v29 = vadd.f32 %v9590_v13, %v12242_v32  ;;  %v12497_v12 = vadd.f32 %v1803_v45, %v1672_v3  ;;  %9911 = vmatprep.mubr.msk.f32.mxu0 %vm313_vm0, %v15547_v63  ;;  %9991 = vmatprep.mubr.msk.f32.mxu1 %vm313_vm0, %v10932_v33  ;;  %v15548_v11 = vld [vmem:[#allocation20_spill] sm:$0xff]  ;;  %v15549_v45 = vld [vmem:[#allocation21_spill] sm:$0xff]  ;;  %v10933_v63 = vld [vmem:[%s11322_s13 + $0x30] sm:$0xff] }
 0x186   : > { %v1443_v43 = vpop.f32.mrf.mxu0  ;;  %v1813_v59 = vpop.f32.mrf.mxu1  ;;  %10061 = vmatprep.subr.mxu0 %v3535_v52 }
 0x187   : > { %v12503_v35 = vadd.f32 %v9670_v2, %v1675_v29  ;;  %10062 = vmatpush3.msra.mxu0 %v3535_v52  ;;  %v15550_v29 = vld [vmem:[#allocation22_spill] sm:$0xff]  ;;  %v10934_v43 = vld [vmem:[%s11322_s13 + $0x38] sm:$0xff] }
 0x188   : > { %v9593_v16 = vpop.f32.mrf.mxu0  ;;  %9912 = vmatmul.mubr.msk.f32.gmra.mxu0 %vm313_vm0, %v15548_v11  ;;  %v9673_v32 = vpop.f32.mrf.mxu1  ;;  %9992 = vmatmul.mubr.f32.gmra.mxu1 %v15516_v0  ;;  %v15551_v11 = vld [vmem:[#allocation23_spill] sm:$0xff] }
 0x189   : > { %9914 = vmatprep.mubr.msk.f32.mxu0 %vm313_vm0, %v15549_v45  ;;  %9994 = vmatprep.mubr.msk.f32.mxu1 %vm313_vm0, %v10933_v63 }
 0x18a   : > { %v1453_v3 = vpop.f32.mrf.mxu0  ;;  %v1823_v13 = vpop.f32.mrf.mxu1  ;;  %10063 = vmatprep.subr.mxu0 %v3534_v56 }
 0x18b   : > { %v1676_v52 = vadd.f32 %v1453_v3, %v12255_v54  ;;  %10064 = vmatpush3.msra.mxu0 %v3534_v56  ;;  %v15552_v3 = vld [vmem:[#allocation24_spill] sm:$0xff] }
 0x18c   : > { %v9596_v2 = vpop.f32.mrf.mxu0  ;;  %9915 = vmatmul.mubr.msk.f32.gmra.mxu0 %vm313_vm0, %v15550_v29  ;;  %v9676_v33 = vpop.f32.mrf.mxu1  ;;  %9995 = vmatmul.mubr.msk.f32.gmra.mxu1 %vm313_vm0, %v10934_v43  ;;  %v10936_v43 = vld [vmem:[%s11322_s13 + $0x48] sm:$0xff] }
 0x18d   : > { %v1679_v59 = vadd.f32 %v9596_v2, %v12263_v26  ;;  %v12518_v16 = vadd.f32 %v1823_v13, %v1676_v52  ;;  %9917 = vmatprep.mubr.msk.f32.mxu0 %vm313_vm0, %v15551_v11  ;;  %9997 = vmatprep.mubr.f32.mxu1 %v15516_v0  ;;  %v10935_v26 = vld [vmem:[%s11322_s13 + $0x40] sm:$0xff]  ;;  %v15553_v2 = vld [vmem:[#allocation25_spill] sm:$0xff] }
 0x18e   : > { %v1463_v54 = vpop.f32.mrf.mxu0  ;;  %v1833_v56 = vpop.f32.mrf.mxu1 }
 0x18f   : > { %v1678_v32 = vadd.f32 %v1463_v54, %v12269_v23  ;;  %v12524_v45 = vadd.f32 %v9676_v33, %v1679_v59  ;;  %v15554_v54 = vld [vmem:[#allocation26_spill] sm:$0xff] }
 0x190   : > { %v9599_v63 = vpop.f32.mrf.mxu0  ;;  %9918 = vmatmul.mubr.msk.f32.gmra.mxu0 %vm313_vm0, %v15552_v3  ;;  %v9679_v29 = vpop.f32.mrf.mxu1  ;;  %9998 = vmatmul.mubr.msk.f32.gmra.mxu1 %vm313_vm0, %v10935_v26 }
 0x191   : > { %v1681_v13 = vadd.f32 %v9599_v63, %v12275_v62  ;;  %v12531_v52 = vadd.f32 %v1833_v56, %v1678_v32  ;;  %9920 = vmatprep.mubr.msk.f32.mxu0 %vm313_vm0, %v15553_v2  ;;  %10000 = vmatprep.mubr.msk.f32.mxu1 %vm313_vm0, %v10936_v43  ;;  %v15555_v62 = vld [vmem:[#allocation27_spill] sm:$0xff]  ;;  %v10937_v56 = vld [vmem:[%s11322_s13 + $0x50] sm:$0xff] }
 0x192   : > { %v1473_v23 = vpop.f32.mrf.mxu0  ;;  %v1843_v33 = vpop.f32.mrf.mxu1  ;;  %v10938_v43 = vld [vmem:[%s11322_s13 + $0x58] sm:$0xff] }
 0x193   : > { %v12537_v59 = vadd.f32 %v9679_v29, %v1681_v13  ;;  %v15556_v29 = vld [vmem:[#allocation28_spill] sm:$0xff] }
 0x194   : > { %v9602_v11 = vpop.f32.mrf.mxu0  ;;  %9921 = vmatmul.mubr.msk.f32.gmra.mxu0 %vm313_vm0, %v15554_v54  ;;  %v9682_v3 = vpop.f32.mrf.mxu1  ;;  %10001 = vmatmul.mubr.f32.gmra.mxu1 %v15516_v0 }
 0x195   : > { %9923 = vmatprep.mubr.msk.f32.mxu0 %vm313_vm0, %v15555_v62  ;;  %10003 = vmatprep.mubr.msk.f32.mxu1 %vm313_vm0, %v10937_v56  ;;  %v15557_v11 = vld [vmem:[#allocation29_spill] sm:$0xff] }
 0x196   : > { %v1483_v32 = vpop.f32.mrf.mxu0  ;;  %v1853_v63 = vpop.f32.mrf.mxu1 }
 0x197   : > { %v1682_v26 = vadd.f32 %v1483_v32, %v12288_v41  ;;  %v15558_v32 = vld [vmem:[#allocation30_spill] sm:$0xff] }
 0x198   : > { %v9605_v2 = vpop.f32.mrf.mxu0  ;;  %9924 = vmatmul.mubr.msk.f32.gmra.mxu0 %vm313_vm0, %v15556_v29  ;;  %v9685_v13 = vpop.f32.mrf.mxu1  ;;  %10004 = vmatmul.mubr.msk.f32.gmra.mxu1 %vm313_vm0, %v10938_v43  ;;  %v10940_v43 = vld [vmem:[%s11322_s13 + $0x68] sm:$0xff] }
 0x199   : > { %v1685_v23 = vadd.f32 %v9605_v2, %v12294_v15  ;;  %v12552_v33 = vadd.f32 %v1853_v63, %v1682_v26  ;;  %9926 = vmatprep.mubr.msk.f32.mxu0 %vm313_vm0, %v15557_v11  ;;  %10006 = vmatprep.mubr.f32.mxu1 %v15516_v0  ;;  %v10939_v15 = vld [vmem:[%s11322_s13 + $0x60] sm:$0xff]  ;;  %v15559_v2 = vld [vmem:[#allocation31_spill] sm:$0xff] }
 0x19a   : > { %v1493_v41 = vpop.f32.mrf.mxu0  ;;  %v1863_v54 = vpop.f32.mrf.mxu1 }
 0x19b   : > { %v1684_v3 = vadd.f32 %v1493_v41, %v12299_v20  ;;  %v12558_v62 = vadd.f32 %v9685_v13, %v1685_v23  ;;  %v15560_v41 = vld [vmem:[#allocation32_spill] sm:$0xff] }
 0x19c   : > { %v9608_v56 = vpop.f32.mrf.mxu0  ;;  %9927 = vmatmul.mubr.msk.f32.gmra.mxu0 %vm313_vm0, %v15558_v32  ;;  %v9688_v29 = vpop.f32.mrf.mxu1  ;;  %10007 = vmatmul.mubr.msk.f32.gmra.mxu1 %vm313_vm0, %v10939_v15 }
 0x19d   : > { %v1687_v63 = vadd.f32 %v9608_v56, %v12305_v46  ;;  %v12565_v26 = vadd.f32 %v1863_v54, %v1684_v3  ;;  %9929 = vmatprep.mubr.msk.f32.mxu0 %vm313_vm0, %v15559_v2  ;;  %10009 = vmatprep.mubr.msk.f32.mxu1 %vm313_vm0, %v10940_v43  ;;  %v15561_v46 = vld [vmem:[#allocation33_spill] sm:$0xff]  ;;  %v10941_v54 = vld [vmem:[%s11322_s13 + $0x70] sm:$0xff]  ;;  %v10942_v43 = vld [vmem:[%s11322_s13 + $0x78] sm:$0xff] }
 0x19e   : > { %v1503_v20 = vpop.f32.mrf.mxu0  ;;  %v1873_v13 = vpop.f32.mrf.mxu1 }
 0x19f   : > { %v12571_v23 = vadd.f32 %v9688_v29, %v1687_v63  ;;  %v15562_v29 = vld [vmem:[#allocation34_spill] sm:$0xff] }
 0x1a0   : > { %v9611_v11 = vpop.f32.mrf.mxu0  ;;  %9930 = vmatmul.mubr.msk.f32.gmra.mxu0 %vm313_vm0, %v15560_v41  ;;  %v9691_v32 = vpop.f32.mrf.mxu1  ;;  %10010 = vmatmul.mubr.f32.gmra.mxu1 %v15516_v0 }
 0x1a1   : > { %9932 = vmatprep.mubr.msk.f32.mxu0 %vm313_vm0, %v15561_v46  ;;  %10012 = vmatprep.mubr.msk.f32.mxu1 %vm313_vm0, %v10941_v54  ;;  %v15563_v11 = vld [vmem:[#allocation35_spill] sm:$0xff] }
 0x1a2   : > { %v1513_v3 = vpop.f32.mrf.mxu0  ;;  %v1883_v56 = vpop.f32.mrf.mxu1 }
 0x1a3   : > { %v1688_v15 = vadd.f32 %v1513_v3, %v12318_v24  ;;  %v15564_v3 = vld [vmem:[#allocation37_spill] sm:$0xff] }
 0x1a4   : > { %v9614_v2 = vpop.f32.mrf.mxu0  ;;  %9933 = vmatmul.mubr.msk.f32.gmra.mxu0 %vm313_vm0, %v15562_v29  ;;  %v9694_v63 = vpop.f32.mrf.mxu1  ;;  %10013 = vmatmul.mubr.msk.f32.gmra.mxu1 %vm313_vm0, %v10942_v43  ;;  %v10944_v43 = vld [vmem:[%s11322_s13 + $0x88] sm:$0xff] }
 0x1a5   : > { %v1691_v20 = vadd.f32 %v9614_v2, %v12324_v4  ;;  %v12586_v13 = vadd.f32 %v1883_v56, %v1688_v15  ;;  %9935 = vmatprep.mubr.msk.f32.mxu0 %vm313_vm0, %v15563_v11  ;;  %10015 = vmatprep.mubr.f32.mxu1 %v15516_v0  ;;  %v10943_v4 = vld [vmem:[%s11322_s13 + $0x80] sm:$0xff]  ;;  %v15565_v2 = vld [vmem:[#allocation38_spill] sm:$0xff] }
 0x1a6   : > { %v1523_v24 = vpop.f32.mrf.mxu0  ;;  %v1893_v41 = vpop.f32.mrf.mxu1 }
 0x1a7   : > { %v1690_v32 = vadd.f32 %v1523_v24, %v12329_v39  ;;  %v12592_v46 = vadd.f32 %v9694_v63, %v1691_v20  ;;  %v15566_v24 = vld [vmem:[#allocation40_spill] sm:$0xff] }
 0x1a8   : > { %v9617_v54 = vpop.f32.mrf.mxu0  ;;  %9936 = vmatmul.mubr.msk.f32.gmra.mxu0 %vm313_vm0, %v15564_v3  ;;  %v9697_v29 = vpop.f32.mrf.mxu1  ;;  %10016 = vmatmul.mubr.msk.f32.gmra.mxu1 %vm313_vm0, %v10943_v4 }
 0x1a9   : > { %v1693_v56 = vadd.f32 %v9617_v54, %v12335_v60  ;;  %v12599_v15 = vadd.f32 %v1893_v41, %v1690_v32  ;;  %9938 = vmatprep.mubr.msk.f32.mxu0 %vm313_vm0, %v15565_v2  ;;  %10018 = vmatprep.mubr.msk.f32.mxu1 %vm313_vm0, %v10944_v43  ;;  %v15567_v60 = vld [vmem:[#allocation41_spill] sm:$0xff]  ;;  %v10945_v41 = vld [vmem:[%s11322_s13 + $0x90] sm:$0xff]  ;;  %v10946_v43 = vld [vmem:[%s11322_s13 + $0x98] sm:$0xff] }
 0x1aa   : > { %v1533_v39 = vpop.f32.mrf.mxu0  ;;  %v1903_v63 = vpop.f32.mrf.mxu1 }
 0x1ab   : > { %v12605_v20 = vadd.f32 %v9697_v29, %v1693_v56  ;;  %v15568_v29 = vld [vmem:[#allocation44_spill] sm:$0xff] }
 0x1ac   : > { %v9620_v11 = vpop.f32.mrf.mxu0  ;;  %9939 = vmatmul.mubr.msk.f32.gmra.mxu0 %vm313_vm0, %v15566_v24  ;;  %v9700_v3 = vpop.f32.mrf.mxu1  ;;  %10019 = vmatmul.mubr.f32.gmra.mxu1 %v15516_v0 }
 0x1ad   : > { %9941 = vmatprep.mubr.msk.f32.mxu0 %vm313_vm0, %v15567_v60  ;;  %10021 = vmatprep.mubr.msk.f32.mxu1 %vm313_vm0, %v10945_v41  ;;  %v15569_v11 = vld [vmem:[#allocation45_spill] sm:$0xff] }
 0x1ae   : > { %v1543_v32 = vpop.f32.mrf.mxu0  ;;  %v1913_v54 = vpop.f32.mrf.mxu1 }
 0x1af   : > { %v1694_v4 = vadd.f32 %v1543_v32, %v12348_v27  ;;  %v15570_v32 = vld [vmem:[#allocation47_spill] sm:$0xff] }
 0x1b0   : > { %v9623_v2 = vpop.f32.mrf.mxu0  ;;  %9942 = vmatmul.mubr.msk.f32.gmra.mxu0 %vm313_vm0, %v15568_v29  ;;  %v9703_v56 = vpop.f32.mrf.mxu1  ;;  %10022 = vmatmul.mubr.msk.f32.gmra.mxu1 %vm313_vm0, %v10946_v43  ;;  %v10948_v43 = vld [vmem:[%s11322_s13 + $0xa8] sm:$0xff] }
 0x1b1   : > { %v1697_v39 = vadd.f32 %v9623_v2, %v12354_v34  ;;  %v12620_v63 = vadd.f32 %v1913_v54, %v1694_v4  ;;  %9944 = vmatprep.mubr.msk.f32.mxu0 %vm313_vm0, %v15569_v11  ;;  %10024 = vmatprep.mubr.f32.mxu1 %v15516_v0  ;;  %v10947_v34 = vld [vmem:[%s11322_s13 + $0xa0] sm:$0xff] }
 0x1b2   : > { %v1553_v27 = vpop.f32.mrf.mxu0  ;;  %v1923_v24 = vpop.f32.mrf.mxu1  ;;  %v15571_v2 = vld [vmem:[#allocation48_spill] sm:$0xff] }
 0x1b3   : > { %v1696_v3 = vadd.f32 %v1553_v27, %v12359_v51  ;;  %v12626_v60 = vadd.f32 %v9703_v56, %v1697_v39  ;;  %v15572_v27 = vld [vmem:[#allocation50_spill] sm:$0xff] }
 0x1b4   : > { %v9626_v41 = vpop.f32.mrf.mxu0  ;;  %9945 = vmatmul.mubr.msk.f32.gmra.mxu0 %vm313_vm0, %v15570_v32  ;;  %v9706_v29 = vpop.f32.mrf.mxu1  ;;  %10025 = vmatmul.mubr.msk.f32.gmra.mxu1 %vm313_vm0, %v10947_v34 }
 0x1b5   : > { %v1699_v54 = vadd.f32 %v9626_v41, %v12365_v7  ;;  %v12633_v4 = vadd.f32 %v1923_v24, %v1696_v3  ;;  %9947 = vmatprep.mubr.msk.f32.mxu0 %vm313_vm0, %v15571_v2  ;;  %10027 = vmatprep.mubr.msk.f32.mxu1 %vm313_vm0, %v10948_v43  ;;  %v15573_v7 = vld [vmem:[#allocation51_spill] sm:$0xff]  ;;  %v10949_v24 = vld [vmem:[%s11322_s13 + $0xb0] sm:$0xff] }
 0x1b6   : > { %v1563_v51 = vpop.f32.mrf.mxu0  ;;  %v1933_v56 = vpop.f32.mrf.mxu1  ;;  %v10950_v43 = vld [vmem:[%s11322_s13 + $0xb8] sm:$0xff] }
 0x1b7   : > { %v12639_v39 = vadd.f32 %v9706_v29, %v1699_v54  ;;  %v15574_v29 = vld [vmem:[#allocation54_spill] sm:$0xff] }
 0x1b8   : > { %v9629_v11 = vpop.f32.mrf.mxu0  ;;  %9948 = vmatmul.mubr.msk.f32.gmra.mxu0 %vm313_vm0, %v15572_v27  ;;  %v9709_v32 = vpop.f32.mrf.mxu1  ;;  %10028 = vmatmul.mubr.f32.gmra.mxu1 %v15516_v0 }
 0x1b9   : > { %9950 = vmatprep.mubr.msk.f32.mxu0 %vm313_vm0, %v15573_v7  ;;  %10030 = vmatprep.mubr.msk.f32.mxu1 %vm313_vm0, %v10949_v24  ;;  %v15575_v11 = vld [vmem:[#allocation55_spill] sm:$0xff] }
 0x1ba   : > { %v1573_v3 = vpop.f32.mrf.mxu0  ;;  %v1943_v41 = vpop.f32.mrf.mxu1 }
 0x1bb   : > { %v1700_v34 = vadd.f32 %v1573_v3, %v12378_v14  ;;  %v15576_v3 = vld [vmem:[#allocation57_spill] sm:$0xff] }
 0x1bc   : > { %v9632_v2 = vpop.f32.mrf.mxu0  ;;  %9951 = vmatmul.mubr.msk.f32.gmra.mxu0 %vm313_vm0, %v15574_v29  ;;  %v9712_v54 = vpop.f32.mrf.mxu1  ;;  %10031 = vmatmul.mubr.msk.f32.gmra.mxu1 %vm313_vm0, %v10950_v43  ;;  %v10952_v43 = vld [vmem:[%s11322_s13 + $0xc8] sm:$0xff] }
 0x1bd   : > { %v1703_v51 = vadd.f32 %v9632_v2, %v12384_v31  ;;  %v12654_v56 = vadd.f32 %v1943_v41, %v1700_v34  ;;  %9953 = vmatprep.mubr.msk.f32.mxu0 %vm313_vm0, %v15575_v11  ;;  %10033 = vmatprep.mubr.f32.mxu1 %v15516_v0  ;;  %v10951_v31 = vld [vmem:[%s11322_s13 + $0xc0] sm:$0xff]  ;;  %v15577_v2 = vld [vmem:[#allocation58_spill] sm:$0xff] }
 0x1be   : > { %v1583_v14 = vpop.f32.mrf.mxu0  ;;  %v1953_v27 = vpop.f32.mrf.mxu1 }
 0x1bf   : > { %v1702_v32 = vadd.f32 %v1583_v14, %v12389_v38  ;;  %v12660_v7 = vadd.f32 %v9712_v54, %v1703_v51  ;;  %v15578_v14 = vld [vmem:[#allocation60_spill] sm:$0xff] }
 0x1c0   : > { %v9635_v24 = vpop.f32.mrf.mxu0  ;;  %9954 = vmatmul.mubr.msk.f32.gmra.mxu0 %vm313_vm0, %v15576_v3  ;;  %v9715_v29 = vpop.f32.mrf.mxu1  ;;  %10034 = vmatmul.mubr.msk.f32.gmra.mxu1 %vm313_vm0, %v10951_v31 }
 0x1c1   : > { %v1705_v41 = vadd.f32 %v9635_v24, %v12395_v21  ;;  %v12667_v34 = vadd.f32 %v1953_v27, %v1702_v32  ;;  %9956 = vmatprep.mubr.msk.f32.mxu0 %vm313_vm0, %v15577_v2  ;;  %10036 = vmatprep.mubr.msk.f32.mxu1 %vm313_vm0, %v10952_v43  ;;  %v15579_v21 = vld [vmem:[#allocation61_spill] sm:$0xff]  ;;  %v10953_v27 = vld [vmem:[%s11322_s13 + $0xd0] sm:$0xff]  ;;  %v4063_v32 = vld [vmem:[#allocation7 + $0x38] sm:$0xff] }
 0x1c2   : > { %v1593_v38 = vpop.f32.mrf.mxu0  ;;  %v1963_v54 = vpop.f32.mrf.mxu1  ;;  %10137 = vmatprep.subr.mxu1 %v4063_v32  ;;  %v15582_v2 = vld [vmem:[#allocation64_spill] sm:$0xff] }
 0x1c3   : > { %v12673_v51 = vadd.f32 %v9715_v29, %v1705_v41  ;;  %10138 = vmatpush3.msra.mxu1 %v4063_v32  ;;  %v10954_v38 = vld [vmem:[%s11322_s13 + $0xd8] sm:$0xff]  ;;  %v15586_v32 = vld [vmem:[#allocation66_spill] sm:$0xff] }
 0x1c4   : > { %v9638_v11 = vpop.f32.mrf.mxu0  ;;  %9957 = vmatmul.mubr.msk.f32.gmra.mxu0 %vm313_vm0, %v15578_v14  ;;  %v9718_v3 = vpop.f32.mrf.mxu1  ;;  %10037 = vmatmul.mubr.f32.gmra.mxu1 %v15516_v0 }
 0x1c5   : > { %9959 = vmatprep.mubr.msk.f32.mxu0 %vm313_vm0, %v15579_v21  ;;  %10039 = vmatprep.mubr.msk.f32.mxu1 %vm313_vm0, %v10953_v27  ;;  %v15583_v11 = vld [vmem:[#allocation65_spill] sm:$0xff] }
 0x1c6   : > { %v1603_v24 = vpop.f32.mrf.mxu0  ;;  %v12682_v31 = vpop.f32.mrf.mxu1 }
 0x1c7   : > { %15580 = vst [vmem:[#allocation36_spill] sm:$0xff] %v12682_v31  ;;  %v12685_v29 = vadd.f32 %v1603_v24, %v12408_v10 }
 0x1c8   : > { %v9641_v41 = vpop.f32.mrf.mxu0  ;;  %9960 = vmatmul.mubr.msk.f32.gmra.mxu0 %vm313_vm0, %v15582_v2  ;;  %v9721_v43 = vpop.f32.mrf.mxu1  ;;  %10040 = vmatmul.mubr.msk.f32.gmra.mxu1 %vm313_vm0, %v10954_v38  ;;  %v10955_v2 = vld [vmem:[%s11322_s13 + $0xe0] sm:$0xff]  ;;  %v10956_v38 = vld [vmem:[%s11322_s13 + $0xe8] sm:$0xff] }
 0x1c9   : > { %15581 = vst [vmem:[#allocation39_spill] sm:$0xff] %v12685_v29  ;;  %v1709_v54 = vadd.f32 %v9641_v41, %v12414_v55  ;;  %9962 = vmatprep.mubr.msk.f32.mxu0 %vm313_vm0, %v15583_v11  ;;  %10042 = vmatprep.mubr.f32.mxu1 %v15516_v0  ;;  %v15587_v41 = vld [vmem:[#allocation67_spill] sm:$0xff] }
 0x1ca   : > { %v1613_v10 = vpop.f32.mrf.mxu0  ;;  %v12695_v14 = vpop.f32.mrf.mxu1 }
 0x1cb   : > { %15584 = vst [vmem:[#allocation42_spill] sm:$0xff] %v12695_v14  ;;  %v12698_v3 = vadd.f32 %v1613_v10, %v12419_v9  ;;  %v12700_v21 = vadd.f32 %v9721_v43, %v1709_v54  ;;  %v15588_v10 = vld [vmem:[#allocation68_spill] sm:$0xff] }
 0x1cc   : > { %v9644_v27 = vpop.f32.mrf.mxu0  ;;  %9963 = vmatmul.mubr.msk.f32.gmra.mxu0 %vm313_vm0, %v15586_v32  ;;  %v9724_v24 = vpop.f32.mrf.mxu1  ;;  %10043 = vmatmul.mubr.msk.f32.gmra.mxu1 %vm313_vm0, %v10955_v2  ;;  %v15589_v2 = vld [vmem:[#allocation95_spill] sm:$0xff] }
 0x1cd   : > { %15585 = vst [vmem:[#allocation43_spill] sm:$0xff] %v12698_v3  ;;  %v1711_v55 = vadd.f32 %v9644_v27, %v12425_v28  ;;  %9965 = vmatprep.mubr.msk.f32.mxu0 %vm313_vm0, %v15587_v41  ;;  %10045 = vmatprep.mubr.msk.f32.mxu1 %vm313_vm0, %v10956_v38 }
 0x1ce   : > { %v1623_v9 = vpop.f32.mrf.mxu0  ;;  %v1993_v43 = vpop.f32.mrf.mxu1 }
 0x1cf   : > { %v12711_v54 = vadd.f32 %v9724_v24, %v1711_v55  ;;  %v15592_v55 = vld [vmem:[#allocation97_spill] sm:$0xff]  ;;  %v10957_v9 = vld [vmem:[%s11322_s13 + $0xf8] sm:$0xff] }
 0x1d0   : > { %v9647_v11 = vpop.f32.mrf.mxu0  ;;  %9966 = vmatmul.mubr.msk.f32.gmra.mxu0 %vm313_vm0, %v15588_v10  ;;  %v9727_v32 = vpop.f32.mrf.mxu1  ;;  %10046 = vmatmul.mubr.f32.gmra.mxu1 %v15516_v0 }
 0x1d1   : > { %9968 = vmatprep.mubr.msk.f32.mxu0 %vm313_vm0, %v15589_v2  ;;  %10048 = vmatprep.mubr.msk.f32.mxu1 %vm313_vm0, %v12152_v6  ;;  %v15593_v11 = vld [vmem:[#allocation99_spill] sm:$0xff] }
 0x1d2   : > { %v1633_v28 = vpop.f32.mrf.mxu0  ;;  %v12720_v27 = vpop.f32.mrf.mxu1 }
 0x1d3   : > { %15590 = vst [vmem:[#allocation46_spill] sm:$0xff] %v12720_v27  ;;  %v12723_v41 = vadd.f32 %v1633_v28, %v12439_v30  ;;  %v15596_v28 = vld [vmem:[#allocation12_spill] sm:$0xff] }
 0x1d4   : > { %v9650_v24 = vpop.f32.mrf.mxu0  ;;  %9969 = vmatmul.mubr.msk.f32.gmra.mxu0 %vm313_vm0, %v15592_v55  ;;  %v9730_v38 = vpop.f32.mrf.mxu1  ;;  %10049 = vmatmul.mubr.msk.f32.gmra.mxu1 %vm313_vm0, %v10957_v9 }
 0x1d5   : > { %15591 = vst [vmem:[#allocation49_spill] sm:$0xff] %v12723_v41  ;;  %v1715_v43 = vadd.f32 %v9650_v24, %v12445_v53  ;;  %9971 = vmatprep.mubr.msk.f32.mxu0 %vm313_vm0, %v15593_v11  ;;  %10051 = vmatprep.mubr.f32.mxu1 %v15516_v0 }
 0x1d6   : > { %v1643_v6 = vpop.f32.mrf.mxu0  ;;  %v12733_v10 = vpop.f32.mrf.mxu1 }
 0x1d7   : > { %15594 = vst [vmem:[#allocation52_spill] sm:$0xff] %v12733_v10  ;;  %v12736_v30 = vadd.f32 %v1643_v6, %v12459_v19  ;;  %v12738_v32 = vadd.f32 %v9730_v38, %v1715_v43  ;;  %v15634_v10 = vld [vmem:[#allocation98_spill] sm:$0xff] }
 0x1d8   : > { %v9653_v2 = vpop.f32.mrf.mxu0  ;;  %9972 = vmatmul.mubr.msk.f32.gmra.mxu0 %vm313_vm0, %v15596_v28  ;;  %v9733_v55 = vpop.f32.mrf.mxu1  ;;  %10052 = vmatmul.mubr.f32.gmra.mxu1 %v15516_v0 }
 0x1d9   : > { %15595 = vst [vmem:[#allocation53_spill] sm:$0xff] %v12736_v30  ;;  %v1717_v53 = vadd.f32 %v9653_v2, %v12465_v5  ;;  %9974 = vmatprep.mubr.msk.f32.mxu0 %vm313_vm0, %v15596_v28  ;;  %10054 = vmatprep.mubr.f32.mxu1 %v15516_v0  ;;  %v4062_v5 = vld [vmem:[#allocation7 + $0x30] sm:$0xff] }
 0x1da   : > { %v1653_v24 = vpop.f32.mrf.mxu0  ;;  %v2023_v9 = vpop.f32.mrf.mxu1  ;;  %10139 = vmatprep.subr.mxu1 %v4062_v5 }
 0x1db   : > { %v12747_v19 = vadd.f32 %v9733_v55, %v1717_v53  ;;  %10140 = vmatpush3.msra.mxu1 %v4062_v5 }
 0x1dc   : > { %v9656_v38 = vpop.f32.mrf.mxu0  ;;  %9975 = vmatmul.mubr.msk.f32.gmra.mxu0 %vm313_vm0, %v15596_v28  ;;  %v9736_v43 = vpop.f32.mrf.mxu1  ;;  %10055 = vmatmul.mubr.f32.gmra.mxu1 %v15516_v0 }
 0x1dd   : > { %10065 = vmatprep.mubr.msk.f32.mxu0 %vm313_vm0, %v11842_v36  ;;  %10145 = vmatprep.mubr.f32.mxu1 %v15516_v0 }
 0x1de   : > { %v1663_v11 = vpop.f32.mrf.mxu0  ;;  %v12755_v6 = vpop.f32.mrf.mxu1 }
 0x1df   : > { %15597 = vst [vmem:[#allocation56_spill] sm:$0xff] %v12755_v6  ;;  %v12758_v2 = vadd.f32 %v1663_v11, %v12478_v40 }
 0x1e0   : > { %v9747_v55 = vpop.f32.mrf.mxu0  ;;  %10066 = vmatmul.mubr.msk.f32.vlgmr.msra.gmra.mxu0 %vm313_vm0, %v11853_v22  ;;  %v9827_v53 = vpop.f32.mrf.mxu1 }
 0x1e1   : > { %15598 = vst [vmem:[#allocation59_spill] sm:$0xff] %v12758_v2  ;;  %v2405_v24 = vadd.f32 %v9747_v55, %v12490_v25  ;;  %10068 = vmatprep.mubr.msk.f32.mxu0 %vm313_vm0, %v11860_v18 }
 0x1e2   : > { %v2165_v36 = vpop.f32.mrf.mxu0  ;;  %v12765_v9 = vpop.f32.mrf.mxu1 }
 0x1e3   : > { %v12768_v38 = vadd.f32 %v2165_v36, %v12497_v12  ;;  %v12770_v43 = vadd.f32 %v9827_v53, %v2405_v24 }
 0x1e4   : > { %v9750_v40 = vpop.f32.mrf.mxu0  ;;  %10069 = vmatmul.mubr.msk.f32.gmra.mxu0 %vm313_vm0, %v11871_v8  ;;  %v9830_v5 = vpop.f32.mrf.mxu1 }
 0x1e5   : > { %v2407_v22 = vadd.f32 %v9750_v40, %v12503_v35  ;;  %10071 = vmatprep.mubr.msk.f32.mxu0 %vm313_vm0, %v11878_v57 }
 0x1e6   : > { %v2175_v25 = vpop.f32.mrf.mxu0  ;;  %v2540_v18 = vpop.f32.mrf.mxu1 }
 0x1e7   : > { %v12777_v11 = vadd.f32 %v9830_v5, %v2407_v22 }
 0x1e8   : > { %v9753_v55 = vpop.f32.mrf.mxu0  ;;  %10072 = vmatmul.mubr.msk.f32.gmra.mxu0 %vm313_vm0, %v11890_v50  ;;  %v9833_v12 = vpop.f32.mrf.mxu1 }
 0x1e9   : > { %10074 = vmatprep.mubr.msk.f32.mxu0 %vm313_vm0, %v11895_v17  ;;  %v4061_v55 = vld [vmem:[#allocation7 + $0x28] sm:$0xff] }
 0x1ea   : > { %v2185_v53 = vpop.f32.mrf.mxu0  ;;  %v12783_v8 = vpop.f32.mrf.mxu1  ;;  %10141 = vmatprep.subr.mxu1 %v4061_v55 }
 0x1eb   : > { %v12786_v35 = vadd.f32 %v2185_v53, %v12518_v16  ;;  %10142 = vmatpush3.msra.mxu1 %v4061_v55  ;;  %v15602_v55 = vld [vmem:[#allocation73_spill] sm:$0xff] }
 0x1ec   : > { %v9756_v24 = vpop.f32.mrf.mxu0  ;;  %10075 = vmatmul.mubr.msk.f32.gmra.mxu0 %vm313_vm0, %v11906_v44  ;;  %v9836_v57 = vpop.f32.mrf.mxu1 }
 0x1ed   : > { %v2411_v36 = vadd.f32 %v9756_v24, %v12524_v45  ;;  %10077 = vmatprep.mubr.msk.f32.mxu0 %vm313_vm0, %v11913_v47 }
 0x1ee   : > { %v2195_v50 = vpop.f32.mrf.mxu0  ;;  %v12793_v40 = vpop.f32.mrf.mxu1 }
 0x1ef   : > { %v12796_v17 = vadd.f32 %v2195_v50, %v12531_v52  ;;  %v12798_v5 = vadd.f32 %v9836_v57, %v2411_v36 }
 0x1f0   : > { %v9759_v16 = vpop.f32.mrf.mxu0  ;;  %10078 = vmatmul.mubr.msk.f32.gmra.mxu0 %vm313_vm0, %v11922_v37  ;;  %v9839_v22 = vpop.f32.mrf.mxu1 }
 0x1f1   : > { %v2413_v44 = vadd.f32 %v9759_v16, %v12537_v59  ;;  %10080 = vmatprep.mubr.msk.f32.mxu0 %vm313_vm0, %v11929_v49  ;;  %v15599_v16 = vld [vmem:[#allocation70_spill] sm:$0xff] }
 0x1f2   : > { %v2205_v45 = vpop.f32.mrf.mxu0  ;;  %v2570_v47 = vpop.f32.mrf.mxu1 }
 0x1f3   : > { %v12805_v25 = vadd.f32 %v9839_v22, %v2413_v44  ;;  %v15600_v45 = vld [vmem:[#allocation71_spill] sm:$0xff]  ;;  %v15601_v47 = vld [vmem:[#allocation72_spill] sm:$0xff] }
 0x1f4   : > { %v9762_v18 = vpop.f32.mrf.mxu0  ;;  %10081 = vmatmul.mubr.msk.f32.gmra.mxu0 %vm313_vm0, %v11940_v1  ;;  %v9842_v52 = vpop.f32.mrf.mxu1 }
 0x1f5   : > { %10083 = vmatprep.mubr.msk.f32.mxu0 %vm313_vm0, %v11945_v48 }
 0x1f6   : > { %v2215_v37 = vpop.f32.mrf.mxu0  ;;  %v12811_v12 = vpop.f32.mrf.mxu1 }
 0x1f7   : > { %v12814_v59 = vadd.f32 %v2215_v37, %v12552_v33 }
 0x1f8   : > { %v9765_v49 = vpop.f32.mrf.mxu0  ;;  %10084 = vmatmul.mubr.msk.f32.gmra.mxu0 %vm313_vm0, %v11956_v58  ;;  %v9845_v53 = vpop.f32.mrf.mxu1 }
 0x1f9   : > { %v2417_v1 = vadd.f32 %v9765_v49, %v12558_v62  ;;  %10086 = vmatprep.mubr.msk.f32.mxu0 %vm313_vm0, %v11963_v61 }
 0x1fa   : > { %v2225_v48 = vpop.f32.mrf.mxu0  ;;  %v12821_v24 = vpop.f32.mrf.mxu1 }
 0x1fb   : > { %v12824_v57 = vadd.f32 %v2225_v48, %v12565_v26  ;;  %v12826_v36 = vadd.f32 %v9845_v53, %v2417_v1  ;;  %v15603_v53 = vld [vmem:[#allocation74_spill] sm:$0xff] }
 0x1fc   : > { %v9768_v33 = vpop.f32.mrf.mxu0  ;;  %10087 = vmatmul.mubr.msk.f32.gmra.mxu0 %vm313_vm0, %v11972_v42  ;;  %v9848_v50 = vpop.f32.mrf.mxu1 }
 0x1fd   : > { %v2419_v58 = vadd.f32 %v9768_v33, %v12571_v23  ;;  %10089 = vmatprep.mubr.msk.f32.mxu0 %vm313_vm0, %v15599_v16 }
 0x1fe   : > { %v2235_v62 = vpop.f32.mrf.mxu0  ;;  %v2600_v61 = vpop.f32.mrf.mxu1 }
 0x1ff   : > { %v12833_v22 = vadd.f32 %v9848_v50, %v2419_v58  ;;  %v15604_v58 = vld [vmem:[#allocation75_spill] sm:$0xff]  ;;  %v15605_v61 = vld [vmem:[#allocation76_spill] sm:$0xff] }
 0x200   : > { %v9771_v44 = vpop.f32.mrf.mxu0  ;;  %10090 = vmatmul.mubr.msk.f32.gmra.mxu0 %vm313_vm0, %v15600_v45  ;;  %v9851_v26 = vpop.f32.mrf.mxu1 }
 0x201   : > { %10092 = vmatprep.mubr.msk.f32.mxu0 %vm313_vm0, %v15601_v47  ;;  %v15606_v47 = vld [vmem:[#allocation77_spill] sm:$0xff] }
 0x202   : > { %v2245_v18 = vpop.f32.mrf.mxu0  ;;  %v12839_v42 = vpop.f32.mrf.mxu1 }
 0x203   : > { %v12842_v23 = vadd.f32 %v2245_v18, %v12586_v13  ;;  %v15607_v18 = vld [vmem:[#allocation78_spill] sm:$0xff] }
 0x204   : > { %v9774_v52 = vpop.f32.mrf.mxu0  ;;  %10093 = vmatmul.mubr.msk.f32.gmra.mxu0 %vm313_vm0, %v15602_v55  ;;  %v9854_v37 = vpop.f32.mrf.mxu1 }
 0x205   : > { %v2423_v49 = vadd.f32 %v9774_v52, %v12592_v46  ;;  %10095 = vmatprep.mubr.msk.f32.mxu0 %vm313_vm0, %v15603_v53  ;;  %v4060_v52 = vld [vmem:[#allocation7 + $0x20] sm:$0xff]  ;;  %v15608_v53 = vld [vmem:[#allocation79_spill] sm:$0xff] }
 0x206   : > { %v2255_v1 = vpop.f32.mrf.mxu0  ;;  %v12849_v48 = vpop.f32.mrf.mxu1  ;;  %10143 = vmatprep.subr.mxu1 %v4060_v52 }
 0x207   : > { %v12852_v33 = vadd.f32 %v2255_v1, %v12599_v15  ;;  %v12854_v50 = vadd.f32 %v9854_v37, %v2423_v49  ;;  %10144 = vmatpush3.msra.mxu1 %v4060_v52 }
 0x208   : > { %v9777_v13 = vpop.f32.mrf.mxu0  ;;  %10096 = vmatmul.mubr.msk.f32.gmra.mxu0 %vm313_vm0, %v15604_v58  ;;  %v9857_v16 = vpop.f32.mrf.mxu1  ;;  %10146 = vmatmul.mubr.f32.vlgmr.msra.gmra.mxu1 %v15516_v0  ;;  %v15609_v58 = vld [vmem:[#allocation80_spill] sm:$0xff] }
 0x209   : > { %v2425_v62 = vadd.f32 %v9777_v13, %v12605_v20  ;;  %10098 = vmatprep.mubr.msk.f32.mxu0 %vm313_vm0, %v15605_v61  ;;  %10148 = vmatprep.mubr.f32.mxu1 %v15516_v0 }
 0x20a   : > { %v2265_v46 = vpop.f32.mrf.mxu0  ;;  %v2630_v44 = vpop.f32.mrf.mxu1 }
 0x20b   : > { %v12861_v45 = vadd.f32 %v9857_v16, %v2425_v62  ;;  %v15612_v44 = vld [vmem:[#allocation81_spill] sm:$0xff] }
 0x20c   : > { %v9780_v26 = vpop.f32.mrf.mxu0  ;;  %10099 = vmatmul.mubr.msk.f32.gmra.mxu0 %vm313_vm0, %v15606_v47  ;;  %v9860_v15 = vpop.f32.mrf.mxu1  ;;  %v15613_v47 = vld [vmem:[#allocation82_spill] sm:$0xff] }
 0x20d   : > { %10101 = vmatprep.mubr.msk.f32.mxu0 %vm313_vm0, %v15607_v18 }
 0x20e   : > { %v2275_v55 = vpop.f32.mrf.mxu0  ;;  %v12867_v37 = vpop.f32.mrf.mxu1 }
 0x20f   : > { %v12870_v20 = vadd.f32 %v2275_v55, %v12620_v63 }
 0x210   : > { %v9783_v49 = vpop.f32.mrf.mxu0  ;;  %10102 = vmatmul.mubr.msk.f32.gmra.mxu0 %vm313_vm0, %v15608_v53  ;;  %v9863_v1 = vpop.f32.mrf.mxu1  ;;  %v15615_v53 = vld [vmem:[#allocation84_spill] sm:$0xff] }
 0x211   : > { %v2429_v13 = vadd.f32 %v9783_v49, %v12626_v60  ;;  %10104 = vmatprep.mubr.msk.f32.mxu0 %vm313_vm0, %v15609_v58  ;;  %v15614_v49 = vld [vmem:[#allocation83_spill] sm:$0xff] }
 0x212   : > { %v2285_v16 = vpop.f32.mrf.mxu0  ;;  %v12879_v62 = vpop.f32.mrf.mxu1  ;;  %v4058_v58 = vld [vmem:[#allocation7 + $0x18] sm:$0xff] }
 0x213   : > { %15610 = vst [vmem:[#allocation62_spill] sm:$0xff] %v12879_v62  ;;  %v12882_v63 = vadd.f32 %v2285_v16, %v12633_v4  ;;  %v12884_v61 = vadd.f32 %v9863_v1, %v2429_v13  ;;  %10217 = vmatprep.subr.mxu0 %v4058_v58 }
 0x214   : > { %v9786_v46 = vpop.f32.mrf.mxu0  ;;  %10105 = vmatmul.mubr.msk.f32.gmra.mxu0 %vm313_vm0, %v15612_v44  ;;  %v9866_v26 = vpop.f32.mrf.mxu1 }
 0x215   : > { %15611 = vst [vmem:[#allocation91_spill] sm:$0xff] %v12882_v63  ;;  %v2431_v60 = vadd.f32 %v9786_v46, %v12639_v39  ;;  %10107 = vmatprep.mubr.msk.f32.mxu0 %vm313_vm0, %v15613_v47  ;;  %v15618_v46 = vld [vmem:[#allocation85_spill] sm:$0xff]  ;;  %v15619_v47 = vld [vmem:[#allocation86_spill] sm:$0xff]  ;;  %10218 = vmatpush3.msra.mxu0 %v4058_v58 }
 0x216   : > { %v2295_v15 = vpop.f32.mrf.mxu0  ;;  %v2660_v18 = vpop.f32.mrf.mxu1 }
 0x217   : > { %v12891_v52 = vadd.f32 %v9866_v26, %v2431_v60  ;;  %v4057_v26 = vld [vmem:[#allocation7 + $0x10] sm:$0xff] }
 0x218   : > { %v9789_v55 = vpop.f32.mrf.mxu0  ;;  %10108 = vmatmul.mubr.msk.f32.gmra.mxu0 %vm313_vm0, %v15614_v49  ;;  %v9869_v4 = vpop.f32.mrf.mxu1  ;;  %10219 = vmatprep.subr.mxu0 %v4057_v26 }
 0x219   : > { %10110 = vmatprep.mubr.msk.f32.mxu0 %vm313_vm0, %v15615_v53  ;;  %v4056_v55 = vld [vmem:[#allocation7 + $0x8] sm:$0xff]  ;;  %10220 = vmatpush3.msra.mxu0 %v4057_v26  ;;  %v15622_v53 = vld [vmem:[#allocation87_spill] sm:$0xff] }
 0x21a   : > { %v2305_v1 = vpop.f32.mrf.mxu0  ;;  %v12897_v13 = vpop.f32.mrf.mxu1  ;;  %10221 = vmatprep.subr.mxu0 %v4056_v55  ;;  %v15624_v26 = vld [vmem:[#allocation89_spill] sm:$0xff] }
 0x21b   : > { %15616 = vst [vmem:[#allocation63_spill] sm:$0xff] %v12897_v13  ;;  %v12900_v39 = vadd.f32 %v2305_v1, %v12654_v56  ;;  %v4055_v1 = vld [vmem:[#allocation7] sm:$0xff]  ;;  %10222 = vmatpush3.msra.mxu0 %v4056_v55 }
 0x21c   : > { %v9792_v16 = vpop.f32.mrf.mxu0  ;;  %10111 = vmatmul.mubr.msk.f32.gmra.mxu0 %vm313_vm0, %v15618_v46  ;;  %v9872_v44 = vpop.f32.mrf.mxu1  ;;  %10223 = vmatprep.subr.mxu0 %v4055_v1  ;;  %v15628_v55 = vld [vmem:[#allocation92_spill] sm:$0xff] }
 0x21d   : > { %15617 = vst [vmem:[#allocation15_spill] sm:$0xff] %v12900_v39  ;;  %v2435_v60 = vadd.f32 %v9792_v16, %v12660_v7  ;;  %10113 = vmatprep.mubr.msk.f32.mxu0 %vm313_vm0, %v15619_v47  ;;  %v15623_v16 = vld [vmem:[#allocation88_spill] sm:$0xff]  ;;  %10224 = vmatpush3.msra.mxu0 %v4055_v1  ;;  %v15629_v1 = vld [vmem:[#allocation93_spill] sm:$0xff] }
 0x21e   : > { %v2315_v15 = vpop.f32.mrf.mxu0  ;;  %v12907_v18 = vpop.f32.mrf.mxu1 }
 0x21f   : > { %15620 = vst [vmem:[#allocation16_spill] sm:$0xff] %v12907_v18  ;;  %v12910_v56 = vadd.f32 %v2315_v15, %v12667_v34  ;;  %v12912_v49 = vadd.f32 %v9872_v44, %v2435_v60  ;;  %v15625_v15 = vld [vmem:[#allocation90_spill] sm:$0xff] }
 0x220   : > { %v9795_v4 = vpop.f32.mrf.mxu0  ;;  %10114 = vmatmul.mubr.msk.f32.gmra.mxu0 %vm313_vm0, %v15622_v53  ;;  %v9875_v7 = vpop.f32.mrf.mxu1 }
 0x221   : > { %15621 = vst [vmem:[#allocation17_spill] sm:$0xff] %v12910_v56  ;;  %v2437_v58 = vadd.f32 %v9795_v4, %v12673_v51  ;;  %10116 = vmatprep.mubr.msk.f32.mxu0 %vm313_vm0, %v15623_v16 }
 0x222   : > { %v2325_v46 = vpop.f32.mrf.mxu0  ;;  %v2690_v47 = vpop.f32.mrf.mxu1 }
 0x223   : > { %v12919_v34 = vadd.f32 %v9875_v7, %v2437_v58  ;;  %v4961_v58 = vld [vmem:[#allocation7 + $0x58] sm:$0xff] }
 0x224   : > { %v9798_v44 = vpop.f32.mrf.mxu0  ;;  %10117 = vmatmul.mubr.msk.f32.gmra.mxu0 %vm313_vm0, %v15624_v26  ;;  %v9878_v60 = vpop.f32.mrf.mxu1  ;;  %10297 = vmatprep.subr.mxu1 %v4961_v58 }
 0x225   : > { %10119 = vmatprep.mubr.msk.f32.mxu0 %vm313_vm0, %v15625_v15  ;;  %10298 = vmatpush3.msra.mxu1 %v4961_v58  ;;  %v15632_v60 = vld [vmem:[#allocation94_spill] sm:$0xff] }
 0x226   : > { %v12925_v53 = vpop.f32.mrf.mxu0  ;;  %v12927_v51 = vpop.f32.mrf.mxu1 }
 0x227   : > { %15626 = vst [vmem:[#allocation18_spill] sm:$0xff] %v12925_v53  ;;  %15627 = vst [vmem:[#allocation19_spill] sm:$0xff] %v12927_v51 }
 0x228   : > { %v9801_v4 = vpop.f32.mrf.mxu0  ;;  %10120 = vmatmul.mubr.msk.f32.gmra.mxu0 %vm313_vm0, %v15628_v55  ;;  %v9881_v16 = vpop.f32.mrf.mxu1 }
 0x229   : > { %v2441_v7 = vadd.f32 %v9801_v4, %v12700_v21  ;;  %10122 = vmatprep.mubr.msk.f32.mxu0 %vm313_vm0, %v15629_v1  ;;  %v15633_v21 = vld [vmem:[#allocation96_spill] sm:$0xff] }
 0x22a   : > { %v12934_v46 = vpop.f32.mrf.mxu0  ;;  %v12936_v47 = vpop.f32.mrf.mxu1 }
 0x22b   : > { %15630 = vst [vmem:[#allocation20_spill] sm:$0xff] %v12934_v46  ;;  %15631 = vst [vmem:[#allocation21_spill] sm:$0xff] %v12936_v47  ;;  %v12938_v44 = vadd.f32 %v9881_v16, %v2441_v7  ;;  %v15635_v7 = vld [vmem:[#allocation13_spill] sm:$0xff] }
 0x22c   : > { %v9804_v26 = vpop.f32.mrf.mxu0  ;;  %10123 = vmatmul.mubr.msk.f32.gmra.mxu0 %vm313_vm0, %v15632_v60  ;;  %v9884_v15 = vpop.f32.mrf.mxu1 }
 0x22d   : > { %v2443_v55 = vadd.f32 %v9804_v26, %v12711_v54  ;;  %10125 = vmatprep.mubr.msk.f32.mxu0 %vm313_vm0, %v15633_v21  ;;  %v15638_v26 = vld [vmem:[#allocation14_spill] sm:$0xff] }
 0x22e   : > { %v2355_v4 = vpop.f32.mrf.mxu0  ;;  %v2720_v1 = vpop.f32.mrf.mxu1 }
 0x22f   : > { %v12945_v6 = vadd.f32 %v9884_v15, %v2443_v55  ;;  %v15639_v55 = vld [vmem:[#allocation69_spill] sm:$0xff] }
 0x230   : > { %v9807_v2 = vpop.f32.mrf.mxu0  ;;  %10126 = vmatmul.mubr.msk.f32.gmra.mxu0 %vm313_vm0, %v15634_v10  ;;  %v9887_v16 = vpop.f32.mrf.mxu1 }
 0x231   : > { %10128 = vmatprep.mubr.msk.f32.mxu0 %vm313_vm0, %v15635_v7 }
 0x232   : > { %v12951_v58 = vpop.f32.mrf.mxu0  ;;  %v12953_v60 = vpop.f32.mrf.mxu1 }
 0x233   : > { %15636 = vst [vmem:[#allocation22_spill] sm:$0xff] %v12951_v58  ;;  %15637 = vst [vmem:[#allocation23_spill] sm:$0xff] %v12953_v60 }
 0x234   : > { %v9810_v54 = vpop.f32.mrf.mxu0  ;;  %10129 = vmatmul.mubr.msk.f32.gmra.mxu0 %vm313_vm0, %v15638_v26  ;;  %v9890_v21 = vpop.f32.mrf.mxu1 }
 0x235   : > { %v2447_v15 = vadd.f32 %v9810_v54, %v12738_v32  ;;  %10131 = vmatprep.mubr.msk.f32.mxu0 %vm313_vm0, %v15639_v55 }
 0x236   : > { %v12960_v2 = vpop.f32.mrf.mxu0  ;;  %v12962_v10 = vpop.f32.mrf.mxu1 }
 0x237   : > { %15640 = vst [vmem:[#allocation24_spill] sm:$0xff] %v12960_v2  ;;  %15641 = vst [vmem:[#allocation25_spill] sm:$0xff] %v12962_v10  ;;  %v12964_v4 = vadd.f32 %v9890_v21, %v2447_v15 }
 0x238   : > { %v9813_v1 = vpop.f32.mrf.mxu0  ;;  %10132 = vmatmul.mubr.msk.f32.gmra.mxu0 %vm313_vm0, %v15639_v55  ;;  %v9893_v16 = vpop.f32.mrf.mxu1 }
 0x239   : > { %v2449_v7 = vadd.f32 %v9813_v1, %v12747_v19  ;;  %10134 = vmatprep.mubr.msk.f32.mxu0 %vm313_vm0, %v15639_v55 }
 0x23a   : > { %v2385_v32 = vpop.f32.mrf.mxu0  ;;  %v2750_v54 = vpop.f32.mrf.mxu1 }
 0x23b   : > { %v12971_v26 = vadd.f32 %v9893_v16, %v2449_v7 }
 0x23c   : > { %v9816_v60 = vpop.f32.mrf.mxu0  ;;  %10135 = vmatmul.mubr.msk.f32.gmra.mxu0 %vm313_vm0, %v15639_v55  ;;  %v9896_v21 = vpop.f32.mrf.mxu1 }
 0x23d   : > { %10225 = vmatprep.mubr.msk.f32.mxu0 %vm313_vm0, %v15596_v28  ;;  %v4960_v60 = vld [vmem:[#allocation7 + $0x50] sm:$0xff] }
 0x23e   : > { %v12977_v15 = vpop.f32.mrf.mxu0  ;;  %v12979_v10 = vpop.f32.mrf.mxu1  ;;  %10299 = vmatprep.subr.mxu1 %v4960_v60 }
 0x23f   : > { %15642 = vst [vmem:[#allocation26_spill] sm:$0xff] %v12977_v15  ;;  %15643 = vst [vmem:[#allocation27_spill] sm:$0xff] %v12979_v10  ;;  %10300 = vmatpush3.msra.mxu1 %v4960_v60 }
 0x240   : > { %v9907_v19 = vpop.f32.mrf.mxu0  ;;  %v9987_v1 = vpop.f32.mrf.mxu1  ;;  %10226 = vmatmul.mubr.msk.f32.vlgmr.msra.gmra.mxu0 %vm313_vm0, %v15596_v28 }
 0x241   : > { %v3128_v16 = vadd.f32 %v9907_v19, %v12770_v43  ;;  %10228 = vmatprep.mubr.msk.f32.mxu0 %vm313_vm0, %v15596_v28 }
 0x242   : > { %v12986_v7 = vpop.f32.mrf.mxu0  ;;  %v12988_v32 = vpop.f32.mrf.mxu1 }
 0x243   : > { %v12990_v54 = vadd.f32 %v9987_v1, %v3128_v16 }
 0x244   : > { %v9910_v21 = vpop.f32.mrf.mxu0  ;;  %v9990_v10 = vpop.f32.mrf.mxu1 }
 0x245   : > { %v3130_v15 = vadd.f32 %v9910_v21, %v12777_v11 }
 0x246   : > { %v2898_v55 = vpop.f32.mrf.mxu0  ;;  %v3256_v2 = vpop.f32.mrf.mxu1 }
 0x247   : > { %v12993_v30 = vadd.f32 %v9990_v10, %v3130_v15 }
 0x248   : > { %v9913_v43 = vpop.f32.mrf.mxu0  ;;  %v9993_v19 = vpop.f32.mrf.mxu1 }
 0x24a   : > { %v12995_v58 = vpop.f32.mrf.mxu0  ;;  %v12997_v27 = vpop.f32.mrf.mxu1 }
 0x24c   : > { %v9916_v41 = vpop.f32.mrf.mxu0  ;;  %v9996_v47 = vpop.f32.mrf.mxu1 }
 0x24d   : > { %v3134_v1 = vadd.f32 %v9916_v41, %v12798_v5 }
 0x24e   : > { %v13000_v16 = vpop.f32.mrf.mxu0  ;;  %v13002_v60 = vpop.f32.mrf.mxu1 }
 0x24f   : > { %v13004_v46 = vadd.f32 %v9996_v47, %v3134_v1  ;;  %v4959_v47 = vld [vmem:[#allocation7 + $0x48] sm:$0xff] }
 0x250   : > { %v9919_v11 = vpop.f32.mrf.mxu0  ;;  %v9999_v55 = vpop.f32.mrf.mxu1  ;;  %10301 = vmatprep.subr.mxu1 %v4959_v47 }
 0x251   : > { %v3136_v2 = vadd.f32 %v9919_v11, %v12805_v25  ;;  %10302 = vmatpush3.msra.mxu1 %v4959_v47 }
 0x252   : > { %v2928_v10 = vpop.f32.mrf.mxu0  ;;  %v3286_v15 = vpop.f32.mrf.mxu1 }
 0x253   : > { %v13007_v21 = vadd.f32 %v9999_v55, %v3136_v2 }
 0x254   : > { %v9922_v43 = vpop.f32.mrf.mxu0  ;;  %v10002_v19 = vpop.f32.mrf.mxu1 }
 0x256   : > { %v13009_v51 = vpop.f32.mrf.mxu0  ;;  %v13011_v14 = vpop.f32.mrf.mxu1 }
 0x258   : > { %v9925_v41 = vpop.f32.mrf.mxu0  ;;  %v10005_v5 = vpop.f32.mrf.mxu1 }
 0x259   : > { %v3140_v3 = vadd.f32 %v9925_v41, %v12826_v36 }
 0x25a   : > { %v13014_v1 = vpop.f32.mrf.mxu0  ;;  %v13016_v53 = vpop.f32.mrf.mxu1 }
 0x25b   : > { %v13018_v25 = vadd.f32 %v10005_v5, %v3140_v3 }
 0x25c   : > { %v9928_v11 = vpop.f32.mrf.mxu0  ;;  %v10008_v55 = vpop.f32.mrf.mxu1 }
 0x25d   : > { %v3142_v2 = vadd.f32 %v9928_v11, %v12833_v22 }
 0x25e   : > { %v2958_v10 = vpop.f32.mrf.mxu0  ;;  %v3316_v15 = vpop.f32.mrf.mxu1 }
 0x25f   : > { %v13021_v43 = vadd.f32 %v10008_v55, %v3142_v2 }
 0x260   : > { %v9931_v19 = vpop.f32.mrf.mxu0  ;;  %v10011_v31 = vpop.f32.mrf.mxu1 }
 0x262   : > { %v13023_v36 = vpop.f32.mrf.mxu0  ;;  %v13025_v41 = vpop.f32.mrf.mxu1 }
 0x264   : > { %v9934_v29 = vpop.f32.mrf.mxu0  ;;  %v10014_v18 = vpop.f32.mrf.mxu1 }
 0x265   : > { %v3146_v3 = vadd.f32 %v9934_v29, %v12854_v50 }
 0x266   : > { %v13028_v5 = vpop.f32.mrf.mxu0  ;;  %v13030_v47 = vpop.f32.mrf.mxu1 }
 0x267   : > { %v13032_v56 = vadd.f32 %v10014_v18, %v3146_v3  ;;  %v4958_v18 = vld [vmem:[#allocation7 + $0x40] sm:$0xff] }
 0x268   : > { %v9937_v22 = vpop.f32.mrf.mxu0  ;;  %v10017_v11 = vpop.f32.mrf.mxu1  ;;  %10303 = vmatprep.subr.mxu1 %v4958_v18 }
 0x269   : > { %v3148_v55 = vadd.f32 %v9937_v22, %v12861_v45  ;;  %10304 = vmatpush3.msra.mxu1 %v4958_v18 }
 0x26a   : > { %v2988_v2 = vpop.f32.mrf.mxu0  ;;  %v3346_v31 = vpop.f32.mrf.mxu1 }
 0x26b   : > { %v13035_v10 = vadd.f32 %v10017_v11, %v3148_v55 }
 0x26c   : > { %v9940_v15 = vpop.f32.mrf.mxu0  ;;  %v10020_v19 = vpop.f32.mrf.mxu1 }
 0x26e   : > { %v13037_v13 = vpop.f32.mrf.mxu0  ;;  %v13039_v39 = vpop.f32.mrf.mxu1 }
 0x26f   : > { %15644 = vst [vmem:[#allocation28_spill] sm:$0xff] %v13039_v39 }
 0x270   : > { %v9943_v29 = vpop.f32.mrf.mxu0  ;;  %v10023_v50 = vpop.f32.mrf.mxu1 }
 0x271   : > { %v3152_v62 = vadd.f32 %v9943_v29, %v12884_v61 }
 0x272   : > { %v13042_v3 = vpop.f32.mrf.mxu0  ;;  %v13044_v63 = vpop.f32.mrf.mxu1 }
 0x273   : > { %15645 = vst [vmem:[#allocation29_spill] sm:$0xff] %v13042_v3  ;;  %15646 = vst [vmem:[#allocation30_spill] sm:$0xff] %v13044_v63  ;;  %v13046_v45 = vadd.f32 %v10023_v50, %v3152_v62 }
 0x274   : > { %v9946_v22 = vpop.f32.mrf.mxu0  ;;  %v10026_v11 = vpop.f32.mrf.mxu1 }
 0x275   : > { %15647 = vst [vmem:[#allocation31_spill] sm:$0xff] %v13046_v45  ;;  %v3154_v55 = vadd.f32 %v9946_v22, %v12891_v52 }
 0x276   : > { %v3018_v2 = vpop.f32.mrf.mxu0  ;;  %v3376_v31 = vpop.f32.mrf.mxu1 }
 0x277   : > { %v13049_v15 = vadd.f32 %v10026_v11, %v3154_v55  ;;  %v5472_v11 = vld [vmem:[#allocation7 + $0x78] sm:$0xff]  ;;  %v5471_v31 = vld [vmem:[#allocation7 + $0x70] sm:$0xff] }
 0x278   : > { %v9949_v19 = vpop.f32.mrf.mxu0  ;;  %v10029_v39 = vpop.f32.mrf.mxu1  ;;  %10377 = vmatprep.subr.mxu0 %v5472_v11 }
 0x279   : > { %10378 = vmatpush3.msra.mxu0 %v5472_v11 }
 0x27a   : > { %v13051_v61 = vpop.f32.mrf.mxu0  ;;  %v13053_v29 = vpop.f32.mrf.mxu1  ;;  %10379 = vmatprep.subr.mxu0 %v5471_v31 }
 0x27b   : > { %10380 = vmatpush3.msra.mxu0 %v5471_v31 }
 0x27c   : > { %v9952_v3 = vpop.f32.mrf.mxu0  ;;  %v10032_v63 = vpop.f32.mrf.mxu1 }
 0x27d   : > { %v3158_v62 = vadd.f32 %v9952_v3, %v12912_v49 }
 0x27e   : > { %v13056_v50 = vpop.f32.mrf.mxu0  ;;  %v13058_v18 = vpop.f32.mrf.mxu1 }
 0x27f   : > { %15648 = vst [vmem:[#allocation32_spill] sm:$0xff] %v13056_v50  ;;  %15649 = vst [vmem:[#allocation33_spill] sm:$0xff] %v13058_v18  ;;  %v13060_v45 = vadd.f32 %v10032_v63, %v3158_v62  ;;  %v5470_v50 = vld [vmem:[#allocation7 + $0x68] sm:$0xff]  ;;  %v13065_v63 = vld [vmem:[#allocation7 + $0x98] sm:$0xff] }
 0x280   : > { %v9955_v52 = vpop.f32.mrf.mxu0  ;;  %v10035_v22 = vpop.f32.mrf.mxu1  ;;  %10381 = vmatprep.subr.mxu0 %v5470_v50  ;;  %15652 = vst [vmem:[#allocation37_spill] sm:$0xff] %v13065_v63  ;;  %10457 = vmatprep.subr.mxu1 %v13065_v63 }
 0x281   : > { %15650 = vst [vmem:[#allocation34_spill] sm:$0xff] %v13060_v45  ;;  %v3160_v55 = vadd.f32 %v9955_v52, %v12919_v34  ;;  %10382 = vmatpush3.msra.mxu0 %v5470_v50  ;;  %v5469_v34 = vld [vmem:[#allocation7 + $0x60] sm:$0xff] }
 0x282   : > { %v3048_v39 = vpop.f32.mrf.mxu0  ;;  %v3406_v2 = vpop.f32.mrf.mxu1  ;;  %10383 = vmatprep.subr.mxu0 %v5469_v34 }
 0x283   : > { %v13063_v19 = vadd.f32 %v10035_v22, %v3160_v55  ;;  %10384 = vmatpush3.msra.mxu0 %v5469_v34 }
 0x284   : > { %v9958_v49 = vpop.f32.mrf.mxu0  ;;  %v10038_v3 = vpop.f32.mrf.mxu1 }
 0x285   : > { %15651 = vst [vmem:[#allocation35_spill] sm:$0xff] %v13063_v19 }
 0x286   : > { %v13067_v62 = vpop.f32.mrf.mxu0  ;;  %v13069_v45 = vpop.f32.mrf.mxu1 }
 0x287   : > { %15653 = vst [vmem:[#allocation38_spill] sm:$0xff] %v13067_v62  ;;  %15654 = vst [vmem:[#allocation40_spill] sm:$0xff] %v13069_v45 }
 0x288   : > { %v9961_v52 = vpop.f32.mrf.mxu0  ;;  %v10041_v22 = vpop.f32.mrf.mxu1 }
 0x289   : > { %v3164_v11 = vadd.f32 %v9961_v52, %v12938_v44 }
 0x28a   : > { %v13073_v55 = vpop.f32.mrf.mxu0  ;;  %v13075_v39 = vpop.f32.mrf.mxu1 }
 0x28b   : > { %15655 = vst [vmem:[#allocation41_spill] sm:$0xff] %v13075_v39  ;;  %v13077_v2 = vadd.f32 %v10041_v22, %v3164_v11 }
 0x28c   : > { %v9964_v31 = vpop.f32.mrf.mxu0  ;;  %v10044_v49 = vpop.f32.mrf.mxu1 }
 0x28d   : > { %15656 = vst [vmem:[#allocation44_spill] sm:$0xff] %v13077_v2  ;;  %v3166_v3 = vadd.f32 %v9964_v31, %v12945_v6 }
 0x28e   : > { %v3078_v50 = vpop.f32.mrf.mxu0  ;;  %v3436_v45 = vpop.f32.mrf.mxu1 }
 0x28f   : > { %v13080_v63 = vadd.f32 %v10044_v49, %v3166_v3  ;;  %v2769_v49 = vadd.f32 %v12765_v9, %v12768_v38  ;;  %v2773_v9 = vadd.f32 %v12783_v8, %v12786_v35 }
 0x290   : > { %v9967_v19 = vpop.f32.mrf.mxu0  ;;  %v10047_v62 = vpop.f32.mrf.mxu1 }
 0x292   : > { %v13082_v18 = vpop.f32.mrf.mxu0  ;;  %v13084_v34 = vpop.f32.mrf.mxu1 }
 0x293   : > { %15657 = vst [vmem:[#allocation45_spill] sm:$0xff] %v13084_v34 }
 0x294   : > { %v9970_v44 = vpop.f32.mrf.mxu0  ;;  %v10050_v52 = vpop.f32.mrf.mxu1 }
 0x295   : > { %v3170_v39 = vadd.f32 %v9970_v44, %v12964_v4  ;;  %v3127_v4 = vadd.f32 %v12986_v7, %v2769_v49  ;;  %v3131_v7 = vadd.f32 %v12995_v58, %v2773_v9 }
 0x296   : > { %v13087_v22 = vpop.f32.mrf.mxu0  ;;  %v13089_v11 = vpop.f32.mrf.mxu1 }
 0x297   : > { %15658 = vst [vmem:[#allocation47_spill] sm:$0xff] %v13089_v11  ;;  %v13091_v2 = vadd.f32 %v10050_v52, %v3170_v39  ;;  %v13104_v39 = vld [vmem:[%s15111_s2] ss:$0 sm:$0xff]  ;;  %v3489_v35 = vadd.f32 %v12997_v27, %v3131_v7 }
 0x298   : > { %v9973_v6 = vpop.f32.mrf.mxu0  ;;  %v10053_v45 = vpop.f32.mrf.mxu1 }
 0x299   : > { %v3172_v31 = vadd.f32 %v9973_v6, %v12971_v26  ;;  %v3485_v26 = vadd.f32 %v12988_v32, %v3127_v4  ;;  %v2775_v32 = vadd.f32 %v12793_v40, %v12796_v17 }
 0x29a   : > { %v3108_v19 = vpop.f32.mrf.mxu0  ;;  %v3466_v62 = vpop.f32.mrf.mxu1 }
 0x29b   : > { %v13096_v3 = vadd.f32 %v10053_v45, %v3172_v31  ;;  %v3133_v58 = vadd.f32 %v13000_v16, %v2775_v32 }
 0x29c   : > { %v9976_v50 = vpop.f32.mrf.mxu0  ;;  %v10056_v34 = vpop.f32.mrf.mxu1 }
 0x29d   : > { %v3491_v9 = vadd.f32 %v13002_v60, %v3133_v58 }
 0x29e   : > { %v13099_v44 = vpop.f32.mrf.mxu0 }
 0x29f   : > { %15659 = vst [vmem:[#allocation48_spill] sm:$0xff] %v13099_v44  ;;  %v15698_v44 = vld [vmem:[#allocation36_spill] sm:$0xff] }
 0x2a0   : > { %v10067_v11 = vpop.f32.mrf.mxu0 }
 0x2a1   : > { %v3844_v52 = vadd.f32 %v10067_v11, %v12990_v54 }
 0x2a2   : > { %v3604_v38 = vpop.f32.mrf.mxu0 }
 0x2a3   : > { %v3899_v34 = vadd.f32 %v13104_v39, %v3844_v52  ;;  %v3843_v6 = vadd.f32 %v3604_v38, %v3485_v26 }
 0x2a4   : > { %v10070_v45 = vpop.f32.mrf.mxu0 }
 0x2a5   : > { %v13112_v31 = vmax.f32 %v3899_v34, 0.0  ;;  %v3898_v19 = vadd.f32 %v13104_v39, %v3843_v6  ;;  %v3846_v62 = vadd.f32 %v10070_v45, %v12993_v30  ;;  %v2779_v6 = vadd.f32 %v12811_v12, %v12814_v59 }
 0x2a6   : > { %v3614_v49 = vpop.f32.mrf.mxu0 }
 0x2a7   : > { %v13118_v54 = vmax.f32 %v3898_v19, 0.0  ;;  %v3901_v8 = vadd.f32 %v13104_v39, %v3846_v62  ;;  %v4490_v4 = vrot.slane %v13112_v31, 7  ;;  %v3137_v62 = vadd.f32 %v13009_v51, %v2779_v6 }
 0x2a8   : > { %v10073_v11 = vpop.f32.mrf.mxu0 }
 0x2a9   : > { %15660 = vst [vmem:[#allocation50_spill] sm:$0xff] %v13118_v54  ;;  %v13123_v50 = vmax.f32 %v3901_v8, 0.0  ;;  %10149 = vmatmul.mubr.msk.f32.gmra.mxu1 %vm313_vm0, %v13118_v54  ;;  %v4488_v30 = vrot.slane %v13118_v54, 7 }
 0x2aa   : > { %v3624_v26 = vpop.f32.mrf.mxu0  ;;  %10151 = vmatprep.mubr.msk.f32.mxu1 %vm313_vm0, %v13112_v31 }
 0x2ab   : > { %v3847_v40 = vadd.f32 %v3624_v26, %v3489_v35  ;;  %v13133_v27 = vsel %vm712_vm1, %v15596_v28, %v4488_v30  ;;  %v13136_v17 = vsel %vm712_vm1, %v4488_v30, %v4490_v4  ;;  %v4494_v52 = vrot.slane %v13123_v50, 7 }
 0x2ac   : > { %v10076_v16 = vpop.f32.mrf.mxu0  ;;  %10229 = vmatmul.mubr.msk.f32.gmra.mxu0 %vm313_vm0, %v13133_v27  ;;  %v2781_v35 = vadd.f32 %v12821_v24, %v12824_v57  ;;  %v3495_v26 = vadd.f32 %v13011_v14, %v3137_v62  ;;  %v2785_v62 = vadd.f32 %v12839_v42, %v12842_v23 }
 0x2ad   : > { %v3902_v38 = vadd.f32 %v13104_v39, %v3847_v40  ;;  %v3850_v34 = vadd.f32 %v10076_v16, %v13004_v46  ;;  %10152 = vmatmul.mubr.f32.gmra.mxu1 %v15516_v0  ;;  %10231 = vmatprep.mubr.msk.f32.mxu0 %vm313_vm0, %v13136_v17  ;;  %v13156_v46 = vsel %vm712_vm1, %v4490_v4, %v15596_v28 }
 0x2ae   : > { %v3634_v7 = vpop.f32.mrf.mxu0  ;;  %10154 = vmatprep.mubr.msk.f32.mxu1 %vm313_vm0, %v13123_v50  ;;  %v13163_v12 = vsel %vm712_vm1, %v15596_v28, %v4494_v52  ;;  %v3139_v24 = vadd.f32 %v13014_v1, %v2781_v35 }
 0x2af   : > { %v13151_v45 = vmax.f32 %v3902_v38, 0.0  ;;  %v3905_v60 = vadd.f32 %v13104_v39, %v3850_v34  ;;  %v3849_v19 = vadd.f32 %v3634_v7, %v3491_v9  ;;  %15661 = vst [vmem:[#allocation51_spill] sm:$0xff] %v13163_v12 }
 0x2b0   : > { %v10079_v49 = vpop.f32.mrf.mxu0  ;;  %10232 = vmatmul.mubr.msk.f32.gmra.mxu0 %vm313_vm0, %v13156_v46  ;;  %v3497_v7 = vadd.f32 %v13016_v53, %v3139_v24 }
 0x2b1   : > { %v13165_v59 = vmax.f32 %v3905_v60, 0.0  ;;  %v3904_v32 = vadd.f32 %v13104_v39, %v3849_v19  ;;  %v3852_v8 = vadd.f32 %v10079_v49, %v13007_v21  ;;  %10155 = vmatmul.mubr.msk.f32.gmra.mxu1 %vm313_vm0, %v13151_v45  ;;  %10234 = vmatprep.mubr.msk.f32.mxu0 %vm313_vm0, %v13163_v12  ;;  %v4496_v51 = vrot.slane %v13151_v45, 7 }
 0x2b2   : > { %v3644_v11 = vpop.f32.mrf.mxu0  ;;  %10157 = vmatprep.mubr.f32.mxu1 %v15516_v0 }
 0x2b3   : > { %v13177_v58 = vmax.f32 %v3904_v32, 0.0  ;;  %v3907_v30 = vadd.f32 %v13104_v39, %v3852_v8  ;;  %v13181_v21 = vsel %vm712_vm1, %v4494_v52, %v4496_v51  ;;  %v13185_v4 = vsel %vm712_vm1, %v4496_v51, %v15596_v28 }
 0x2b4   : > { %15662 = vst [vmem:[#allocation54_spill] sm:$0xff] %v13181_v21  ;;  %15663 = vst [vmem:[#allocation55_spill] sm:$0xff] %v13185_v4  ;;  %v10082_v40 = vpop.f32.mrf.mxu0  ;;  %10235 = vmatmul.mubr.msk.f32.gmra.mxu0 %vm313_vm0, %v13181_v21  ;;  %v4502_v52 = vrot.slane %v13165_v59, 7  ;;  %v3143_v51 = vadd.f32 %v13023_v36, %v2785_v62 }
 0x2b5   : > { %v13191_v57 = vmax.f32 %v3907_v30, 0.0  ;;  %10158 = vmatmul.mubr.msk.f32.gmra.mxu1 %vm313_vm0, %v13177_v58  ;;  %10237 = vmatprep.mubr.msk.f32.mxu0 %vm313_vm0, %v13185_v4  ;;  %v4500_v16 = vrot.slane %v13177_v58, 7 }
 0x2b6   : > { %v3654_v9 = vpop.f32.mrf.mxu0  ;;  %10160 = vmatprep.mubr.msk.f32.mxu1 %vm313_vm0, %v13165_v59 }
 0x2b7   : > { %v3853_v14 = vadd.f32 %v3654_v9, %v3495_v26  ;;  %v13203_v1 = vsel %vm712_vm1, %v15596_v28, %v4500_v16  ;;  %v13206_v38 = vsel %vm712_vm1, %v4500_v16, %v4502_v52  ;;  %v4506_v6 = vrot.slane %v13191_v57, 7 }
 0x2b8   : > { %15664 = vst [vmem:[#allocation57_spill] sm:$0xff] %v13203_v1  ;;  %15665 = vst [vmem:[#allocation58_spill] sm:$0xff] %v13206_v38  ;;  %v10085_v34 = vpop.f32.mrf.mxu0  ;;  %10238 = vmatmul.mubr.msk.f32.gmra.mxu0 %vm313_vm0, %v13203_v1  ;;  %v2787_v26 = vadd.f32 %v12849_v48, %v12852_v33  ;;  %v3501_v9 = vadd.f32 %v13025_v41, %v3143_v51  ;;  %v2791_v51 = vadd.f32 %v12867_v37, %v12870_v20 }
 0x2b9   : > { %v3908_v60 = vadd.f32 %v13104_v39, %v3853_v14  ;;  %v3856_v19 = vadd.f32 %v10085_v34, %v13018_v25  ;;  %10161 = vmatmul.mubr.f32.gmra.mxu1 %v15516_v0  ;;  %10240 = vmatprep.mubr.msk.f32.mxu0 %vm313_vm0, %v13206_v38  ;;  %v13226_v25 = vsel %vm712_vm1, %v4502_v52, %v15596_v28 }
 0x2ba   : > { %v3664_v49 = vpop.f32.mrf.mxu0  ;;  %10163 = vmatprep.mubr.msk.f32.mxu1 %vm313_vm0, %v13191_v57  ;;  %15666 = vst [vmem:[#allocation60_spill] sm:$0xff] %v13226_v25  ;;  %v13233_v42 = vsel %vm712_vm1, %v15596_v28, %v4506_v6  ;;  %v3145_v48 = vadd.f32 %v13028_v5, %v2787_v26 }
 0x2bb   : > { %v13221_v32 = vmax.f32 %v3908_v60, 0.0  ;;  %v3911_v53 = vadd.f32 %v13104_v39, %v3856_v19  ;;  %v3855_v8 = vadd.f32 %v3664_v49, %v3497_v7  ;;  %15667 = vst [vmem:[#allocation61_spill] sm:$0xff] %v13233_v42 }
 0x2bc   : > { %v10088_v35 = vpop.f32.mrf.mxu0  ;;  %10241 = vmatmul.mubr.msk.f32.gmra.mxu0 %vm313_vm0, %v13226_v25  ;;  %v3503_v49 = vadd.f32 %v13030_v47, %v3145_v48 }
 0x2bd   : > { %v13235_v23 = vmax.f32 %v3911_v53, 0.0  ;;  %v3910_v11 = vadd.f32 %v13104_v39, %v3855_v8  ;;  %v3858_v30 = vadd.f32 %v10088_v35, %v13021_v43  ;;  %10164 = vmatmul.mubr.msk.f32.gmra.mxu1 %vm313_vm0, %v13221_v32  ;;  %10243 = vmatprep.mubr.msk.f32.mxu0 %vm313_vm0, %v13233_v42  ;;  %v4508_v36 = vrot.slane %v13221_v32, 7 }
 0x2be   : > { %v3674_v40 = vpop.f32.mrf.mxu0  ;;  %10166 = vmatprep.mubr.f32.mxu1 %v15516_v0 }
 0x2bf   : > { %v13247_v24 = vmax.f32 %v3910_v11, 0.0  ;;  %v3913_v16 = vadd.f32 %v13104_v39, %v3858_v30  ;;  %v13251_v43 = vsel %vm712_vm1, %v4506_v6, %v4508_v36  ;;  %v13255_v52 = vsel %vm712_vm1, %v4508_v36, %v15596_v28 }
 0x2c0   : > { %15668 = vst [vmem:[#allocation64_spill] sm:$0xff] %v13251_v43  ;;  %15669 = vst [vmem:[#allocation65_spill] sm:$0xff] %v13255_v52  ;;  %v10091_v14 = vpop.f32.mrf.mxu0  ;;  %10244 = vmatmul.mubr.msk.f32.gmra.mxu0 %vm313_vm0, %v13251_v43  ;;  %v4514_v6 = vrot.slane %v13235_v23, 7  ;;  %v3149_v36 = vadd.f32 %v13037_v13, %v2791_v51 }
 0x2c1   : > { %v13261_v33 = vmax.f32 %v3913_v16, 0.0  ;;  %10167 = vmatmul.mubr.msk.f32.gmra.mxu1 %vm313_vm0, %v13247_v24  ;;  %10246 = vmatprep.mubr.msk.f32.mxu0 %vm313_vm0, %v13255_v52  ;;  %v4512_v34 = vrot.slane %v13247_v24, 7  ;;  %v15676_v14 = vld [vmem:[#allocation62_spill] sm:$0xff] }
 0x2c2   : > { %v3684_v7 = vpop.f32.mrf.mxu0  ;;  %10169 = vmatprep.mubr.msk.f32.mxu1 %vm313_vm0, %v13235_v23 }
 0x2c3   : > { %v3859_v41 = vadd.f32 %v3684_v7, %v3501_v9  ;;  %v13273_v5 = vsel %vm712_vm1, %v15596_v28, %v4512_v34  ;;  %v13276_v60 = vsel %vm712_vm1, %v4512_v34, %v4514_v6  ;;  %v4518_v62 = vrot.slane %v13261_v33, 7  ;;  %v15675_v9 = vld [vmem:[#allocation91_spill] sm:$0xff] }
 0x2c4   : > { %15670 = vst [vmem:[#allocation66_spill] sm:$0xff] %v13273_v5  ;;  %15671 = vst [vmem:[#allocation67_spill] sm:$0xff] %v13276_v60  ;;  %v10094_v19 = vpop.f32.mrf.mxu0  ;;  %10247 = vmatmul.mubr.msk.f32.gmra.mxu0 %vm313_vm0, %v13273_v5  ;;  %v2793_v48 = vadd.f32 %v15676_v14, %v15675_v9  ;;  %v15684_v9 = vld [vmem:[#allocation30_spill] sm:$0xff] }
 0x2c5   : > { %v3914_v53 = vadd.f32 %v13104_v39, %v3859_v41  ;;  %v3862_v8 = vadd.f32 %v10094_v19, %v13032_v56  ;;  %10170 = vmatmul.mubr.f32.gmra.mxu1 %v15516_v0  ;;  %10249 = vmatprep.mubr.msk.f32.mxu0 %vm313_vm0, %v13276_v60  ;;  %v13296_v56 = vsel %vm712_vm1, %v4514_v6, %v15596_v28  ;;  %v15679_v19 = vld [vmem:[#allocation28_spill] sm:$0xff] }
 0x2c6   : > { %v3694_v35 = vpop.f32.mrf.mxu0  ;;  %10172 = vmatprep.mubr.msk.f32.mxu1 %vm313_vm0, %v13261_v33  ;;  %15672 = vst [vmem:[#allocation68_spill] sm:$0xff] %v13296_v56  ;;  %v13303_v37 = vsel %vm712_vm1, %v15596_v28, %v4518_v62 }
 0x2c7   : > { %v13291_v11 = vmax.f32 %v3914_v53, 0.0  ;;  %v3917_v47 = vadd.f32 %v13104_v39, %v3862_v8  ;;  %v3861_v30 = vadd.f32 %v3694_v35, %v3503_v49  ;;  %15673 = vst [vmem:[#allocation95_spill] sm:$0xff] %v13303_v37  ;;  %v3507_v49 = vadd.f32 %v15679_v19, %v3149_v36  ;;  %v15680_v8 = vld [vmem:[#allocation29_spill] sm:$0xff]  ;;  %v15686_v19 = vld [vmem:[#allocation15_spill] sm:$0xff] }
 0x2c8   : > { %v10097_v26 = vpop.f32.mrf.mxu0  ;;  %10250 = vmatmul.mubr.msk.f32.gmra.mxu0 %vm313_vm0, %v13296_v56  ;;  %v3151_v51 = vadd.f32 %v15680_v8, %v2793_v48 }
 0x2c9   : > { %v13305_v20 = vmax.f32 %v3917_v47, 0.0  ;;  %v3916_v40 = vadd.f32 %v13104_v39, %v3861_v30  ;;  %v3864_v16 = vadd.f32 %v10097_v26, %v13035_v10  ;;  %10173 = vmatmul.mubr.msk.f32.gmra.mxu1 %vm313_vm0, %v13291_v11  ;;  %10252 = vmatprep.mubr.msk.f32.mxu0 %vm313_vm0, %v13303_v37  ;;  %v4520_v13 = vrot.slane %v13291_v11, 7 }
 0x2ca   : > { %v3704_v34 = vpop.f32.mrf.mxu0  ;;  %10175 = vmatprep.mubr.f32.mxu1 %v15516_v0  ;;  %v3509_v14 = vadd.f32 %v15684_v9, %v3151_v51 }
 0x2cb   : > { %15674 = vst [vmem:[#allocation97_spill] sm:$0xff] %v13305_v20  ;;  %v13317_v6 = vmax.f32 %v3916_v40, 0.0  ;;  %v3919_v7 = vadd.f32 %v13104_v39, %v3864_v16  ;;  %v13321_v10 = vsel %vm712_vm1, %v4518_v62, %v4520_v13  ;;  %v13325_v41 = vsel %vm712_vm1, %v4520_v13, %v15596_v28  ;;  %v15685_v34 = vld [vmem:[#allocation31_spill] sm:$0xff] }
 0x2cc   : > { %15677 = vst [vmem:[#allocation99_spill] sm:$0xff] %v13321_v10  ;;  %15678 = vst [vmem:[#allocation70_spill] sm:$0xff] %v13325_v41  ;;  %v10100_v53 = vpop.f32.mrf.mxu0  ;;  %10253 = vmatmul.mubr.msk.f32.gmra.mxu0 %vm313_vm0, %v13321_v10  ;;  %v4526_v47 = vrot.slane %v13305_v20, 7 }
 0x2cd   : > { %v13331_v35 = vmax.f32 %v3919_v7, 0.0  ;;  %10176 = vmatmul.mubr.msk.f32.gmra.mxu1 %vm313_vm0, %v13317_v6  ;;  %10255 = vmatprep.mubr.msk.f32.mxu0 %vm313_vm0, %v13325_v41  ;;  %v4524_v62 = vrot.slane %v13317_v6, 7 }
 0x2ce   : > { %v3714_v30 = vpop.f32.mrf.mxu0  ;;  %10178 = vmatprep.mubr.msk.f32.mxu1 %vm313_vm0, %v13305_v20 }
 0x2cf   : > { %15681 = vst [vmem:[#allocation71_spill] sm:$0xff] %v13331_v35  ;;  %v3865_v36 = vadd.f32 %v3714_v30, %v3507_v49  ;;  %v13343_v26 = vsel %vm712_vm1, %v15596_v28, %v4524_v62  ;;  %v13346_v40 = vsel %vm712_vm1, %v4524_v62, %v4526_v47  ;;  %v4530_v13 = vrot.slane %v13331_v35, 7  ;;  %v15687_v49 = vld [vmem:[#allocation63_spill] sm:$0xff] }
 0x2d0   : > { %15682 = vst [vmem:[#allocation72_spill] sm:$0xff] %v13343_v26  ;;  %15683 = vst [vmem:[#allocation73_spill] sm:$0xff] %v13346_v40  ;;  %v10103_v16 = vpop.f32.mrf.mxu0  ;;  %10256 = vmatmul.mubr.msk.f32.gmra.mxu0 %vm313_vm0, %v13343_v26  ;;  %v2797_v53 = vadd.f32 %v15687_v49, %v15686_v19 }
 0x2d1   : > { %v3920_v48 = vadd.f32 %v13104_v39, %v3865_v36  ;;  %v3868_v7 = vadd.f32 %v10103_v16, %v15685_v34  ;;  %10179 = vmatmul.mubr.f32.gmra.mxu1 %v15516_v0  ;;  %10258 = vmatprep.mubr.msk.f32.mxu0 %vm313_vm0, %v13346_v40  ;;  %v13366_v36 = vsel %vm712_vm1, %v4526_v47, %v15596_v28  ;;  %v15692_v47 = vld [vmem:[#allocation17_spill] sm:$0xff] }
 0x2d2   : > { %v3724_v8 = vpop.f32.mrf.mxu0  ;;  %10181 = vmatprep.mubr.msk.f32.mxu1 %vm313_vm0, %v13331_v35  ;;  %15689 = vst [vmem:[#allocation75_spill] sm:$0xff] %v13366_v36  ;;  %v3155_v16 = vadd.f32 %v13051_v61, %v2797_v53  ;;  %v13373_v34 = vsel %vm712_vm1, %v15596_v28, %v4530_v13 }
 0x2d3   : > { %v13361_v62 = vmax.f32 %v3920_v48, 0.0  ;;  %v3923_v51 = vadd.f32 %v13104_v39, %v3868_v7  ;;  %v3867_v30 = vadd.f32 %v3724_v8, %v3509_v14  ;;  %15690 = vst [vmem:[#allocation76_spill] sm:$0xff] %v13373_v34  ;;  %v15693_v7 = vld [vmem:[#allocation16_spill] sm:$0xff] }
 0x2d4   : > { %v10106_v9 = vpop.f32.mrf.mxu0  ;;  %10259 = vmatmul.mubr.msk.f32.gmra.mxu0 %vm313_vm0, %v13366_v36  ;;  %v2799_v49 = vadd.f32 %v15693_v7, %v15692_v47 }
 0x2d5   : > { %15688 = vst [vmem:[#allocation74_spill] sm:$0xff] %v13361_v62  ;;  %v13375_v19 = vmax.f32 %v3923_v51, 0.0  ;;  %v3922_v48 = vadd.f32 %v13104_v39, %v3867_v30  ;;  %v3870_v14 = vadd.f32 %v10106_v9, %v13049_v15  ;;  %10182 = vmatmul.mubr.msk.f32.gmra.mxu1 %vm313_vm0, %v13361_v62  ;;  %10261 = vmatprep.mubr.msk.f32.mxu0 %vm313_vm0, %v13373_v34  ;;  %v4532_v61 = vrot.slane %v13361_v62, 7  ;;  %v15697_v9 = vld [vmem:[#allocation39_spill] sm:$0xff] }
 0x2d6   : > { %v3734_v53 = vpop.f32.mrf.mxu0  ;;  %10184 = vmatprep.mubr.f32.mxu1 %v15516_v0  ;;  %v2076_v34 = vadd.f32 %v15698_v44, %v15697_v9  ;;  %v3513_v62 = vadd.f32 %v13053_v29, %v3155_v16  ;;  %v15704_v9 = vld [vmem:[#allocation43_spill] sm:$0xff] }
 0x2d7   : > { %15691 = vst [vmem:[#allocation77_spill] sm:$0xff] %v13375_v19  ;;  %v13387_v8 = vmax.f32 %v3922_v48, 0.0  ;;  %v3925_v51 = vadd.f32 %v13104_v39, %v3870_v14  ;;  %v13391_v15 = vsel %vm712_vm1, %v4530_v13, %v4532_v61  ;;  %v13395_v30 = vsel %vm712_vm1, %v4532_v61, %v15596_v28  ;;  %v15699_v48 = vld [vmem:[#allocation32_spill] sm:$0xff]  ;;  %v15701_v14 = vld [vmem:[#allocation18_spill] sm:$0xff] }
 0x2d8   : > { %15695 = vst [vmem:[#allocation79_spill] sm:$0xff] %v13391_v15  ;;  %15696 = vst [vmem:[#allocation80_spill] sm:$0xff] %v13395_v30  ;;  %v10109_v47 = vpop.f32.mrf.mxu0  ;;  %10262 = vmatmul.mubr.msk.f32.gmra.mxu0 %vm313_vm0, %v13391_v15  ;;  %v3157_v7 = vadd.f32 %v15699_v48, %v2799_v49  ;;  %v4538_v44 = vrot.slane %v13375_v19, 7  ;;  %v2438_v29 = vadd.f32 %v15701_v14, %v2076_v34  ;;  %v15706_v14 = vld [vmem:[#allocation33_spill] sm:$0xff] }
 0x2d9   : > { %15694 = vst [vmem:[#allocation78_spill] sm:$0xff] %v13387_v8  ;;  %v13403_v53 = vmax.f32 %v3925_v51, 0.0  ;;  %10185 = vmatmul.mubr.msk.f32.gmra.mxu1 %vm313_vm0, %v13387_v8  ;;  %10264 = vmatprep.mubr.msk.f32.mxu0 %vm313_vm0, %v13395_v30  ;;  %v4536_v13 = vrot.slane %v13387_v8, 7  ;;  %v15705_v47 = vld [vmem:[#allocation42_spill] sm:$0xff] }
 0x2da   : > { %v3744_v16 = vpop.f32.mrf.mxu0  ;;  %10187 = vmatprep.mubr.msk.f32.mxu1 %vm313_vm0, %v13375_v19  ;;  %v2078_v48 = vadd.f32 %v15705_v47, %v15704_v9  ;;  %v3515_v8 = vadd.f32 %v15706_v14, %v3157_v7  ;;  %v15709_v9 = vld [vmem:[#allocation20_spill] sm:$0xff]  ;;  %v15712_v14 = vld [vmem:[#allocation38_spill] sm:$0xff] }
 0x2db   : > { %15700 = vst [vmem:[#allocation81_spill] sm:$0xff] %v13403_v53  ;;  %v3871_v61 = vadd.f32 %v3744_v16, %v3513_v62  ;;  %v13416_v49 = vsel %vm712_vm1, %v15596_v28, %v4536_v13  ;;  %v13419_v51 = vsel %vm712_vm1, %v4536_v13, %v4538_v44  ;;  %v4542_v34 = vrot.slane %v13403_v53, 7  ;;  %v15707_v16 = vld [vmem:[#allocation34_spill] sm:$0xff]  ;;  %v15708_v13 = vld [vmem:[#allocation19_spill] sm:$0xff] }
 0x2dc   : > { %15702 = vst [vmem:[#allocation82_spill] sm:$0xff] %v13416_v49  ;;  %15703 = vst [vmem:[#allocation83_spill] sm:$0xff] %v13419_v51  ;;  %v10112_v30 = vpop.f32.mrf.mxu0  ;;  %10265 = vmatmul.mubr.msk.f32.gmra.mxu0 %vm313_vm0, %v13416_v49  ;;  %v2803_v15 = vadd.f32 %v15708_v13, %v2438_v29  ;;  %v2440_v47 = vadd.f32 %v15709_v9, %v2078_v48  ;;  %v13450_v48 = vld [vmem:[#allocation7 + $0xb8] sm:$0xff] }
 0x2dd   : > { %v3926_v62 = vadd.f32 %v13104_v39, %v3871_v61  ;;  %v3874_v19 = vadd.f32 %v10112_v30, %v15707_v16  ;;  %10188 = vmatmul.mubr.f32.gmra.mxu1 %v15516_v0  ;;  %10267 = vmatprep.mubr.msk.f32.mxu0 %vm313_vm0, %v13419_v51  ;;  %v13441_v30 = vsel %vm712_vm1, %v4538_v44, %v15596_v28  ;;  %v15716_v44 = vld [vmem:[#allocation21_spill] sm:$0xff] }
 0x2de   : > { %v3754_v36 = vpop.f32.mrf.mxu0  ;;  %10190 = vmatprep.mubr.msk.f32.mxu1 %vm313_vm0, %v13403_v53  ;;  %15711 = vst [vmem:[#allocation85_spill] sm:$0xff] %v13441_v30  ;;  %v3161_v16 = vadd.f32 %v15712_v14, %v2803_v15  ;;  %v13448_v29 = vsel %vm712_vm1, %v15596_v28, %v4542_v34  ;;  %v2805_v13 = vadd.f32 %v15716_v44, %v2440_v47  ;;  %v15722_v47 = vld [vmem:[#allocation40_spill] sm:$0xff] }
 0x2df   : > { %v13436_v49 = vmax.f32 %v3926_v62, 0.0  ;;  %v3929_v7 = vadd.f32 %v13104_v39, %v3874_v19  ;;  %v3873_v61 = vadd.f32 %v3754_v36, %v3515_v8  ;;  %15713 = vst [vmem:[#allocation86_spill] sm:$0xff] %v13448_v29  ;;  %v15715_v19 = vld [vmem:[#allocation35_spill] sm:$0xff]  ;;  %10537 = vmatprep.subr.mxu0 %v13450_v48 }
 0x2e0   : > { %v10115_v51 = vpop.f32.mrf.mxu0  ;;  %10268 = vmatmul.mubr.msk.f32.gmra.mxu0 %vm313_vm0, %v13441_v30  ;;  %v3519_v44 = vadd.f32 %v15722_v47, %v3161_v16  ;;  %v15727_v47 = vld [vmem:[#allocation52_spill] sm:$0xff] }
 0x2e1   : > { %15710 = vst [vmem:[#allocation84_spill] sm:$0xff] %v13436_v49  ;;  %v13452_v62 = vmax.f32 %v3929_v7, 0.0  ;;  %v3928_v36 = vadd.f32 %v13104_v39, %v3873_v61  ;;  %v3876_v8 = vadd.f32 %v10115_v51, %v15715_v19  ;;  %10191 = vmatmul.mubr.msk.f32.gmra.mxu1 %vm313_vm0, %v13436_v49  ;;  %10270 = vmatprep.mubr.msk.f32.mxu0 %vm313_vm0, %v13448_v29  ;;  %v4544_v15 = vrot.slane %v13436_v49, 7  ;;  %v15720_v19 = vld [vmem:[#allocation49_spill] sm:$0xff]  ;;  %v15721_v29 = vld [vmem:[#allocation46_spill] sm:$0xff] }
 0x2e2   : > { %v3764_v9 = vpop.f32.mrf.mxu0  ;;  %10193 = vmatprep.mubr.f32.mxu1 %v15516_v0  ;;  %v2082_v49 = vadd.f32 %v15721_v29, %v15720_v19 }
 0x2e3   : > { %15714 = vst [vmem:[#allocation87_spill] sm:$0xff] %v13452_v62  ;;  %v13464_v7 = vmax.f32 %v3928_v36, 0.0  ;;  %v3931_v61 = vadd.f32 %v13104_v39, %v3876_v8  ;;  %v13468_v51 = vsel %vm712_vm1, %v4542_v34, %v4544_v15  ;;  %v13472_v14 = vsel %vm712_vm1, %v4544_v15, %v15596_v28  ;;  %v15723_v8 = vld [vmem:[#allocation22_spill] sm:$0xff] }
 0x2e4   : > { %15718 = vst [vmem:[#allocation89_spill] sm:$0xff] %v13468_v51  ;;  %15719 = vst [vmem:[#allocation90_spill] sm:$0xff] %v13472_v14  ;;  %v10118_v9 = vpop.f32.mrf.mxu0  ;;  %10271 = vmatmul.mubr.msk.f32.gmra.mxu0 %vm313_vm0, %v13468_v51  ;;  %v3163_v36 = vadd.f32 %v13073_v55, %v2805_v13  ;;  %v4550_v29 = vrot.slane %v13452_v62, 7  ;;  %v2444_v16 = vadd.f32 %v15723_v8, %v2082_v49  ;;  %v15728_v8 = vld [vmem:[#allocation41_spill] sm:$0xff] }
 0x2e5   : > { %15717 = vst [vmem:[#allocation88_spill] sm:$0xff] %v13464_v7  ;;  %v13480_v30 = vmax.f32 %v3931_v61, 0.0  ;;  %10194 = vmatmul.mubr.msk.f32.gmra.mxu1 %vm313_vm0, %v13464_v7  ;;  %10273 = vmatprep.mubr.msk.f32.mxu0 %vm313_vm0, %v13472_v14  ;;  %v4548_v34 = vrot.slane %v13464_v7, 7  ;;  %v15726_v61 = vld [vmem:[#allocation53_spill] sm:$0xff] }
 0x2e6   : > { %v3774_v15 = vpop.f32.mrf.mxu0  ;;  %10196 = vmatprep.mubr.msk.f32.mxu1 %vm313_vm0, %v13452_v62  ;;  %v2084_v9 = vadd.f32 %v15727_v47, %v15726_v61  ;;  %v3521_v7 = vadd.f32 %v15728_v8, %v3163_v36  ;;  %v15731_v61 = vld [vmem:[#allocation24_spill] sm:$0xff] }
 0x2e7   : > { %v3877_v19 = vadd.f32 %v3774_v15, %v3519_v44  ;;  %v13493_v55 = vsel %vm712_vm1, %v15596_v28, %v4548_v34  ;;  %v13496_v13 = vsel %vm712_vm1, %v4548_v34, %v4550_v29  ;;  %v4554_v49 = vrot.slane %v13480_v30, 7  ;;  %v15729_v15 = vld [vmem:[#allocation44_spill] sm:$0xff]  ;;  %v15730_v34 = vld [vmem:[#allocation23_spill] sm:$0xff] }
 0x2e8   : > { %15724 = vst [vmem:[#allocation92_spill] sm:$0xff] %v13493_v55  ;;  %15725 = vst [vmem:[#allocation93_spill] sm:$0xff] %v13496_v13  ;;  %v10121_v14 = vpop.f32.mrf.mxu0  ;;  %10274 = vmatmul.mubr.msk.f32.gmra.mxu0 %vm313_vm0, %v13493_v55  ;;  %v2809_v51 = vadd.f32 %v15730_v34, %v2444_v16  ;;  %v2446_v47 = vadd.f32 %v15731_v61, %v2084_v9 }
 0x2e9   : > { %v3932_v44 = vadd.f32 %v13104_v39, %v3877_v19  ;;  %v3880_v62 = vadd.f32 %v10121_v14, %v15729_v15  ;;  %10197 = vmatmul.mubr.f32.gmra.mxu1 %v15516_v0  ;;  %10276 = vmatprep.mubr.msk.f32.mxu0 %vm313_vm0, %v13496_v13  ;;  %v13518_v14 = vsel %vm712_vm1, %v4550_v29, %v15596_v28 }
 0x2ea   : > { %v3784_v53 = vpop.f32.mrf.mxu0  ;;  %10199 = vmatprep.mubr.msk.f32.mxu1 %vm313_vm0, %v13480_v30  ;;  %15732 = vst [vmem:[#allocation94_spill] sm:$0xff] %v13518_v14  ;;  %v3167_v8 = vadd.f32 %v13082_v18, %v2809_v51  ;;  %v13525_v16 = vsel %vm712_vm1, %v15596_v28, %v4554_v49 }
 0x2eb   : > { %v13513_v55 = vmax.f32 %v3932_v44, 0.0  ;;  %v3935_v36 = vadd.f32 %v13104_v39, %v3880_v62  ;;  %v3879_v19 = vadd.f32 %v3784_v53, %v3521_v7  ;;  %15733 = vst [vmem:[#allocation96_spill] sm:$0xff] %v13525_v16  ;;  %v15735_v62 = vld [vmem:[#allocation25_spill] sm:$0xff] }
 0x2ec   : > { %v10124_v15 = vpop.f32.mrf.mxu0  ;;  %10277 = vmatmul.mubr.msk.f32.gmra.mxu0 %vm313_vm0, %v13518_v14  ;;  %v2811_v7 = vadd.f32 %v15735_v62, %v2446_v47 }
 0x2ed   : > { %v13527_v9 = vmax.f32 %v3935_v36, 0.0  ;;  %v3934_v44 = vadd.f32 %v13104_v39, %v3879_v19  ;;  %v3882_v53 = vadd.f32 %v10124_v15, %v13080_v63  ;;  %10200 = vmatmul.mubr.msk.f32.gmra.mxu1 %vm313_vm0, %v13513_v55  ;;  %10279 = vmatprep.mubr.msk.f32.mxu0 %vm313_vm0, %v13525_v16  ;;  %v4556_v18 = vrot.slane %v13513_v55, 7  ;;  %v15738_v36 = vld [vmem:[#allocation45_spill] sm:$0xff] }
 0x2ee   : > { %v3794_v51 = vpop.f32.mrf.mxu0  ;;  %10202 = vmatprep.mubr.f32.mxu1 %v15516_v0  ;;  %v3525_v19 = vadd.f32 %v15738_v36, %v3167_v8  ;;  %v3169_v47 = vadd.f32 %v13087_v22, %v2811_v7 }
 0x2ef   : > { %15734 = vst [vmem:[#allocation98_spill] sm:$0xff] %v13527_v9  ;;  %v13538_v29 = vmax.f32 %v3934_v44, 0.0  ;;  %v3937_v34 = vadd.f32 %v13104_v39, %v3882_v53  ;;  %v13542_v61 = vsel %vm712_vm1, %v4554_v49, %v4556_v18  ;;  %v13546_v63 = vsel %vm712_vm1, %v4556_v18, %v15596_v28 }
 0x2f0   : > { %15736 = vst [vmem:[#allocation13_spill] sm:$0xff] %v13542_v61  ;;  %15737 = vst [vmem:[#allocation14_spill] sm:$0xff] %v13546_v63  ;;  %v10127_v15 = vpop.f32.mrf.mxu0  ;;  %10280 = vmatmul.mubr.msk.f32.gmra.mxu0 %vm313_vm0, %v13542_v61  ;;  %v4562_v44 = vrot.slane %v13527_v9, 7 }
 0x2f1   : > { %v13552_v62 = vmax.f32 %v3937_v34, 0.0  ;;  %10203 = vmatmul.mubr.msk.f32.gmra.mxu1 %vm313_vm0, %v13538_v29  ;;  %10282 = vmatprep.mubr.msk.f32.mxu0 %vm313_vm0, %v13546_v63  ;;  %v4560_v49 = vrot.slane %v13538_v29, 7  ;;  %v15741_v34 = vld [vmem:[#allocation47_spill] sm:$0xff] }
 0x2f2   : > { %v3804_v53 = vpop.f32.mrf.mxu0  ;;  %10205 = vmatprep.mubr.msk.f32.mxu1 %vm313_vm0, %v13527_v9  ;;  %v3527_v36 = vadd.f32 %v15741_v34, %v3169_v47  ;;  %v13585_v47 = vsel %vm712_vm1, %v4562_v44, %v15596_v28 }
 0x2f3   : > { %v3883_v8 = vadd.f32 %v3804_v53, %v3525_v19  ;;  %v13564_v22 = vsel %vm712_vm1, %v15596_v28, %v4560_v49  ;;  %v13567_v18 = vsel %vm712_vm1, %v4560_v49, %v4562_v44  ;;  %v4566_v51 = vrot.slane %v13552_v62, 7  ;;  %15743 = vst [vmem:[#allocation29_spill] sm:$0xff] %v13585_v47 }
 0x2f4   : > { %15739 = vst [vmem:[#allocation91_spill] sm:$0xff] %v13564_v22  ;;  %15740 = vst [vmem:[#allocation62_spill] sm:$0xff] %v13567_v18  ;;  %v10130_v7 = vpop.f32.mrf.mxu0  ;;  %10283 = vmatmul.mubr.msk.f32.gmra.mxu0 %vm313_vm0, %v13564_v22 }
 0x2f5   : > { %v3938_v15 = vadd.f32 %v13104_v39, %v3883_v8  ;;  %v3886_v9 = vadd.f32 %v10130_v7, %v13091_v2  ;;  %10206 = vmatmul.mubr.f32.gmra.mxu1 %v15516_v0  ;;  %10285 = vmatprep.mubr.msk.f32.mxu0 %vm313_vm0, %v13567_v18  ;;  %v13591_v2 = vsel %vm712_vm1, %v15596_v28, %v4566_v51 }
 0x2f6   : > { %v3814_v19 = vpop.f32.mrf.mxu0  ;;  %10208 = vmatprep.mubr.msk.f32.mxu1 %vm313_vm0, %v13552_v62  ;;  %15744 = vst [vmem:[#allocation30_spill] sm:$0xff] %v13591_v2 }
 0x2f7   : > { %v13580_v49 = vmax.f32 %v3938_v15, 0.0  ;;  %v3941_v53 = vadd.f32 %v13104_v39, %v3886_v9  ;;  %v3885_v22 = vadd.f32 %v3814_v19, %v3527_v36 }
 0x2f8   : > { %v10133_v8 = vpop.f32.mrf.mxu0  ;;  %10286 = vmatmul.mubr.msk.f32.gmra.mxu0 %vm313_vm0, %v13585_v47 }
 0x2f9   : > { %15742 = vst [vmem:[#allocation28_spill] sm:$0xff] %v13580_v49  ;;  %v13593_v7 = vmax.f32 %v3941_v53, 0.0  ;;  %v3940_v34 = vadd.f32 %v13104_v39, %v3885_v22  ;;  %v13597_v15 = vadd.f32 %v10133_v8, %v13096_v3  ;;  %10209 = vmatmul.mubr.msk.f32.gmra.mxu1 %vm313_vm0, %v13580_v49  ;;  %10288 = vmatprep.mubr.msk.f32.mxu0 %vm313_vm0, %v13591_v2  ;;  %v4568_v9 = vrot.slane %v13580_v49, 7 }
 0x2fa   : > { %v3824_v44 = vpop.f32.mrf.mxu0  ;;  %10211 = vmatprep.mubr.f32.mxu1 %v15516_v0 }
 0x2fb   : > { %15745 = vst [vmem:[#allocation31_spill] sm:$0xff] %v13593_v7  ;;  %v13605_v36 = vmax.f32 %v3940_v34, 0.0  ;;  %v13608_v19 = vsel %vm712_vm1, %v4566_v51, %v4568_v9  ;;  %v13612_v3 = vsel %vm712_vm1, %v4568_v9, %v15596_v28  ;;  %v4574_v53 = vrot.slane %v13593_v7, 7  ;;  %v13622_v51 = vpop.f32.mrf.mxu1 }
 0x2fc   : > { %15747 = vst [vmem:[#allocation63_spill] sm:$0xff] %v13608_v19  ;;  %15748 = vst [vmem:[#allocation17_spill] sm:$0xff] %v13612_v3  ;;  %v10136_v39 = vpop.f32.mrf.mxu0  ;;  %10289 = vmatmul.mubr.msk.f32.gmra.mxu0 %vm313_vm0, %v13608_v19 }
 0x2fd   : > { %15746 = vst [vmem:[#allocation15_spill] sm:$0xff] %v13605_v36  ;;  %10212 = vmatmul.mubr.msk.f32.gmra.mxu1 %vm313_vm0, %v13605_v36  ;;  %10291 = vmatprep.mubr.msk.f32.mxu0 %vm313_vm0, %v13612_v3  ;;  %v4572_v22 = vrot.slane %v13605_v36, 7  ;;  %v10147_v44 = vpop.f32.mrf.mxu1  ;;  %v4963_v3 = vrot.slane %v13118_v54, 1  ;;  %v15752_v36 = vld [vmem:[#allocation69_spill] sm:$0xff]  ;;  %v4969_v54 = vrot.slane %v13123_v50, 1 }
 0x2fe   : > { %v13624_v8 = vpop.f32.mrf.mxu0  ;;  %10214 = vmatprep.mubr.msk.f32.mxu1 %vm313_vm0, %v13593_v7 }
 0x2ff   : > { %v13630_v34 = vsel %vm712_vm1, %v15596_v28, %v4572_v22  ;;  %v13633_v9 = vsel %vm712_vm1, %v4572_v22, %v4574_v53  ;;  %v13647_v22 = vsel %vm712_vm1, %v4574_v53, %v15596_v28  ;;  %v5810_v53 = vld [vmem:[#allocation7 + $0x88] sm:$0xff] }
 0x300   : > { %15749 = vst [vmem:[#allocation16_spill] sm:$0xff] %v13630_v34  ;;  %15750 = vst [vmem:[#allocation39_spill] sm:$0xff] %v13633_v9  ;;  %10292 = vmatmul.mubr.msk.f32.gmra.mxu0 %vm313_vm0, %v13630_v34  ;;  %v10227_v39 = vpop.f32.mrf.mxu0  ;;  %v5811_v34 = vld [vmem:[#allocation7 + $0x90] sm:$0xff] }
 0x301   : > { %10215 = vmatmul.mubr.f32.gmra.mxu1 %v15516_v0  ;;  %10294 = vmatprep.mubr.msk.f32.mxu0 %vm313_vm0, %v13633_v9  ;;  %v13641_v7 = vadd.f32 %v10227_v39, %v10147_v44  ;;  %15753 = vst [vmem:[#allocation32_spill] sm:$0xff] %v13647_v22  ;;  %v4964_v44 = vsel %vm1193_vm2, %v15752_v36, %v4963_v3  ;;  %v4965_v39 = vrot.slane %v13112_v31, 1 }
 0x302   : > { %10305 = vmatprep.mubr.msk.f32.mxu1 %vm313_vm0, %v15752_v36 }
 0x303   : > { %15751 = vst [vmem:[#allocation36_spill] sm:$0xff] %v13641_v7  ;;  %v15754_v7 = vld [vmem:[#allocation37_spill] sm:$0xff]  ;;  %v13663_v0 = vsel %vm1193_vm2, %v4963_v3, %v4965_v39  ;;  %v13684_v3 = vld [vmem:[#allocation7 + $0xd8] sm:$0xff] }
 0x304   : > { %10295 = vmatmul.mubr.msk.f32.gmra.mxu0 %vm313_vm0, %v13647_v22 }
 0x305   : > { %10306 = vmatmul.mubr.msk.f32.vlgmr.msra.gmra.mxu1 %vm313_vm0, %v15752_v36  ;;  %10385 = vmatprep.mubr.msk.f32.mxu0 %vm313_vm0, %v13133_v27  ;;  %v13672_v27 = vsel %vm1193_vm2, %v4965_v39, %v15752_v36 }
 0x306   : > { %10308 = vmatprep.mubr.msk.f32.mxu1 %vm313_vm0, %v4964_v44  ;;  %10458 = vmatpush3.msra.mxu1 %v15754_v7  ;;  %v4971_v7 = vrot.slane %v13151_v45, 1  ;;  %v5809_v44 = vld [vmem:[#allocation7 + $0x80] sm:$0xff] }
 0x307   : > { %10459 = vmatprep.subr.mxu1 %v5811_v34 }
 0x308   : > { %10386 = vmatmul.mubr.msk.f32.vlgmr.msra.gmra.mxu0 %vm313_vm0, %v13136_v17  ;;  %10460 = vmatpush3.msra.mxu1 %v5811_v34  ;;  %v13682_v17 = vsel %vm1193_vm2, %v15752_v36, %v4969_v54  ;;  %v13691_v34 = vsel %vm1193_vm2, %v4969_v54, %v4971_v7  ;;  %v13701_v39 = vsel %vm1193_vm2, %v4971_v7, %v15752_v36 }
 0x309   : > { %10309 = vmatmul.mubr.msk.f32.gmra.mxu1 %vm313_vm0, %v13663_v0  ;;  %10388 = vmatprep.mubr.msk.f32.mxu0 %vm313_vm0, %v13156_v46  ;;  %v6143_v46 = vld [vmem:[#allocation7 + $0xb0] sm:$0xff]  ;;  %15755 = vst [vmem:[#allocation18_spill] sm:$0xff] %v13691_v34  ;;  %15756 = vst [vmem:[#allocation43_spill] sm:$0xff] %v13701_v39 }
 0x30a   : > { %10311 = vmatprep.mubr.msk.f32.mxu1 %vm313_vm0, %v13672_v27  ;;  %10461 = vmatprep.subr.mxu1 %v5810_v53 }
 0x30b   : > { %10462 = vmatpush3.msra.mxu1 %v5810_v53  ;;  %10538 = vmatpush3.msra.mxu0 %v13450_v48  ;;  %v4975_v48 = vrot.slane %v13177_v58, 1  ;;  %v6142_v53 = vld [vmem:[#allocation7 + $0xa8] sm:$0xff] }
 0x30c   : > { %10389 = vmatmul.mubr.msk.f32.gmra.mxu0 %vm313_vm0, %v13163_v12  ;;  %10463 = vmatprep.subr.mxu1 %v5809_v44  ;;  %v15778_v12 = vld [vmem:[#allocation78_spill] sm:$0xff] }
 0x30d   : > { %10312 = vmatmul.mubr.msk.f32.gmra.mxu1 %vm313_vm0, %v13682_v17  ;;  %10391 = vmatprep.mubr.msk.f32.mxu0 %vm313_vm0, %v13181_v21  ;;  %v13709_v54 = vsel %vm1193_vm2, %v15752_v36, %v4975_v48 }
 0x30e   : > { %10314 = vmatprep.mubr.msk.f32.mxu1 %vm313_vm0, %v13691_v34  ;;  %10464 = vmatpush3.msra.mxu1 %v5809_v44  ;;  %15757 = vst [vmem:[#allocation42_spill] sm:$0xff] %v13709_v54  ;;  %v4977_v44 = vrot.slane %v13165_v59, 1 }
 0x30f   : > { %10539 = vmatprep.subr.mxu0 %v6143_v46  ;;  %10617 = vmatprep.subr.mxu1 %v13684_v3 }
 0x310   : > { %10392 = vmatmul.mubr.msk.f32.gmra.mxu0 %vm313_vm0, %v13185_v4  ;;  %v13717_v7 = vsel %vm1193_vm2, %v4975_v48, %v4977_v44  ;;  %v4981_v4 = vrot.slane %v13191_v57, 1  ;;  %v13726_v21 = vsel %vm1193_vm2, %v4977_v44, %v15752_v36 }
 0x311   : > { %10315 = vmatmul.mubr.msk.f32.gmra.mxu1 %vm313_vm0, %v13701_v39  ;;  %10394 = vmatprep.mubr.msk.f32.mxu0 %vm313_vm0, %v13203_v1  ;;  %15758 = vst [vmem:[#allocation33_spill] sm:$0xff] %v13717_v7  ;;  %v6141_v1 = vld [vmem:[#allocation7 + $0xa0] sm:$0xff]  ;;  %15759 = vst [vmem:[#allocation34_spill] sm:$0xff] %v13726_v21 }
 0x312   : > { %10317 = vmatprep.mubr.msk.f32.mxu1 %vm313_vm0, %v13709_v54  ;;  %10540 = vmatpush3.msra.mxu0 %v6143_v46  ;;  %v4983_v46 = vrot.slane %v13221_v32, 1  ;;  %v13735_v48 = vsel %vm1193_vm2, %v15752_v36, %v4981_v4 }
 0x313   : > { %10541 = vmatprep.subr.mxu0 %v6142_v53  ;;  %15760 = vst [vmem:[#allocation19_spill] sm:$0xff] %v13735_v48 }
 0x314   : > { %10395 = vmatmul.mubr.msk.f32.gmra.mxu0 %vm313_vm0, %v13206_v38  ;;  %v13742_v44 = vsel %vm1193_vm2, %v4981_v4, %v4983_v46 }
 0x315   : > { %10318 = vmatmul.mubr.msk.f32.gmra.mxu1 %vm313_vm0, %v13717_v7  ;;  %10397 = vmatprep.mubr.msk.f32.mxu0 %vm313_vm0, %v13226_v25  ;;  %15761 = vst [vmem:[#allocation20_spill] sm:$0xff] %v13742_v44  ;;  %v4987_v25 = vrot.slane %v13247_v24, 1 }
 0x316   : > { %10320 = vmatprep.mubr.msk.f32.mxu1 %vm313_vm0, %v13726_v21  ;;  %10542 = vmatpush3.msra.mxu0 %v6142_v53  ;;  %v13751_v53 = vsel %vm1193_vm2, %v4983_v46, %v15752_v36  ;;  %v4993_v46 = vrot.slane %v13261_v33, 1 }
 0x317   : > { %10543 = vmatprep.subr.mxu0 %v6141_v1  ;;  %15762 = vst [vmem:[#allocation38_spill] sm:$0xff] %v13751_v53  ;;  %v13759_v4 = vsel %vm1193_vm2, %v15752_v36, %v4987_v25 }
 0x318   : > { %10398 = vmatmul.mubr.msk.f32.gmra.mxu0 %vm313_vm0, %v13233_v42  ;;  %15763 = vst [vmem:[#allocation35_spill] sm:$0xff] %v13759_v4  ;;  %v15773_v42 = vld [vmem:[#allocation74_spill] sm:$0xff] }
 0x319   : > { %10321 = vmatmul.mubr.msk.f32.gmra.mxu1 %vm313_vm0, %v13735_v48  ;;  %10400 = vmatprep.mubr.msk.f32.mxu0 %vm313_vm0, %v13251_v43  ;;  %v4989_v43 = vrot.slane %v13235_v23, 1  ;;  %v5007_v38 = vrot.slane %v15773_v42, 1  ;;  %v5011_v42 = vrot.slane %v15778_v12, 1 }
 0x31a   : > { %10323 = vmatprep.mubr.msk.f32.mxu1 %vm313_vm0, %v13742_v44  ;;  %10544 = vmatpush3.msra.mxu0 %v6141_v1 }
 0x31b   : > { %v13767_v1 = vsel %vm1193_vm2, %v4987_v25, %v4989_v43  ;;  %v13785_v25 = vsel %vm1193_vm2, %v15752_v36, %v4993_v46 }
 0x31c   : > { %10401 = vmatmul.mubr.msk.f32.gmra.mxu0 %vm313_vm0, %v13255_v52  ;;  %15764 = vst [vmem:[#allocation21_spill] sm:$0xff] %v13767_v1  ;;  %v4995_v52 = vrot.slane %v13291_v11, 1  ;;  %15766 = vst [vmem:[#allocation46_spill] sm:$0xff] %v13785_v25 }
 0x31d   : > { %10324 = vmatmul.mubr.msk.f32.gmra.mxu1 %vm313_vm0, %v13751_v53  ;;  %10403 = vmatprep.mubr.msk.f32.mxu0 %vm313_vm0, %v13273_v5  ;;  %v13776_v5 = vsel %vm1193_vm2, %v4989_v43, %v15752_v36 }
 0x31e   : > { %10326 = vmatprep.mubr.msk.f32.mxu1 %vm313_vm0, %v13759_v4  ;;  %15765 = vst [vmem:[#allocation49_spill] sm:$0xff] %v13776_v5  ;;  %v13792_v43 = vsel %vm1193_vm2, %v4993_v46, %v4995_v52 }
 0x31f   : > { %15767 = vst [vmem:[#allocation40_spill] sm:$0xff] %v13792_v43 }
 0x320   : > { %10404 = vmatmul.mubr.msk.f32.gmra.mxu0 %vm313_vm0, %v13276_v60 }
 0x321   : > { %10327 = vmatmul.mubr.msk.f32.gmra.mxu1 %vm313_vm0, %v13767_v1  ;;  %10406 = vmatprep.mubr.msk.f32.mxu0 %vm313_vm0, %v13296_v56  ;;  %v4999_v56 = vrot.slane %v13317_v6, 1 }
 0x322   : > { %10329 = vmatprep.mubr.msk.f32.mxu1 %vm313_vm0, %v13776_v5 }
 0x323   : > { %v13809_v46 = vsel %vm1193_vm2, %v15752_v36, %v4999_v56 }
 0x324   : > { %10407 = vmatmul.mubr.msk.f32.gmra.mxu0 %vm313_vm0, %v13303_v37  ;;  %v13801_v37 = vsel %vm1193_vm2, %v4995_v52, %v15752_v36  ;;  %15769 = vst [vmem:[#allocation53_spill] sm:$0xff] %v13809_v46 }
 0x325   : > { %10330 = vmatmul.mubr.msk.f32.gmra.mxu1 %vm313_vm0, %v13785_v25  ;;  %10409 = vmatprep.mubr.msk.f32.mxu0 %vm313_vm0, %v13321_v10  ;;  %15768 = vst [vmem:[#allocation22_spill] sm:$0xff] %v13801_v37  ;;  %v5001_v10 = vrot.slane %v13305_v20, 1 }
 0x326   : > { %10332 = vmatprep.mubr.msk.f32.mxu1 %vm313_vm0, %v13792_v43 }
 0x327   : > { %v13817_v52 = vsel %vm1193_vm2, %v4999_v56, %v5001_v10  ;;  %v13826_v60 = vsel %vm1193_vm2, %v5001_v10, %v15752_v36 }
 0x328   : > { %10410 = vmatmul.mubr.msk.f32.gmra.mxu0 %vm313_vm0, %v13325_v41  ;;  %15770 = vst [vmem:[#allocation52_spill] sm:$0xff] %v13817_v52  ;;  %v5005_v41 = vrot.slane %v13331_v35, 1  ;;  %15772 = vst [vmem:[#allocation41_spill] sm:$0xff] %v13826_v60  ;;  %v15779_v35 = vld [vmem:[#allocation80_spill] sm:$0xff] }
 0x329   : > { %10333 = vmatmul.mubr.msk.f32.gmra.mxu1 %vm313_vm0, %v13801_v37  ;;  %10412 = vmatprep.mubr.msk.f32.mxu0 %vm313_vm0, %v13343_v26  ;;  %v15771_v26 = vld [vmem:[#allocation75_spill] sm:$0xff] }
 0x32a   : > { %10335 = vmatprep.mubr.msk.f32.mxu1 %vm313_vm0, %v13809_v46  ;;  %v13835_v56 = vsel %vm1193_vm2, %v15752_v36, %v5005_v41  ;;  %v13842_v10 = vsel %vm1193_vm2, %v5005_v41, %v5007_v38  ;;  %v13859_v41 = vsel %vm1193_vm2, %v15752_v36, %v5011_v42 }
 0x32b   : > { %15775 = vst [vmem:[#allocation44_spill] sm:$0xff] %v13835_v56  ;;  %15777 = vst [vmem:[#allocation23_spill] sm:$0xff] %v13842_v10 }
 0x32c   : > { %10413 = vmatmul.mubr.msk.f32.gmra.mxu0 %vm313_vm0, %v13346_v40  ;;  %v15774_v40 = vld [vmem:[#allocation76_spill] sm:$0xff]  ;;  %15782 = vst [vmem:[#allocation25_spill] sm:$0xff] %v13859_v41 }
 0x32d   : > { %10336 = vmatmul.mubr.msk.f32.gmra.mxu1 %vm313_vm0, %v13817_v52  ;;  %10415 = vmatprep.mubr.msk.f32.mxu0 %vm313_vm0, %v15771_v26  ;;  %v15776_v26 = vld [vmem:[#allocation79_spill] sm:$0xff] }
 0x32e   : > { %10338 = vmatprep.mubr.msk.f32.mxu1 %vm313_vm0, %v13826_v60  ;;  %v15789_v60 = vld [vmem:[#allocation84_spill] sm:$0xff] }
 0x330   : > { %10416 = vmatmul.mubr.msk.f32.gmra.mxu0 %vm313_vm0, %v15774_v40  ;;  %v13851_v40 = vsel %vm1193_vm2, %v5007_v38, %v15752_v36 }
 0x331   : > { %10339 = vmatmul.mubr.msk.f32.gmra.mxu1 %vm313_vm0, %v13835_v56  ;;  %10418 = vmatprep.mubr.msk.f32.mxu0 %vm313_vm0, %v15776_v26  ;;  %15780 = vst [vmem:[#allocation24_spill] sm:$0xff] %v13851_v40  ;;  %v15781_v56 = vld [vmem:[#allocation82_spill] sm:$0xff]  ;;  %v15783_v26 = vld [vmem:[#allocation77_spill] sm:$0xff] }
 0x332   : > { %10341 = vmatprep.mubr.msk.f32.mxu1 %vm313_vm0, %v13842_v10  ;;  %v5013_v12 = vrot.slane %v15783_v26, 1  ;;  %v15786_v10 = vld [vmem:[#allocation81_spill] sm:$0xff] }
 0x334   : > { %10419 = vmatmul.mubr.msk.f32.gmra.mxu0 %vm313_vm0, %v15779_v35  ;;  %v15784_v35 = vld [vmem:[#allocation83_spill] sm:$0xff]  ;;  %v13867_v38 = vsel %vm1193_vm2, %v5011_v42, %v5013_v12  ;;  %v13876_v26 = vsel %vm1193_vm2, %v5013_v12, %v15752_v36 }
 0x335   : > { %10342 = vmatmul.mubr.msk.f32.gmra.mxu1 %vm313_vm0, %v13851_v40  ;;  %10421 = vmatprep.mubr.msk.f32.mxu0 %vm313_vm0, %v15781_v56  ;;  %15785 = vst [vmem:[#allocation45_spill] sm:$0xff] %v13867_v38  ;;  %v5017_v40 = vrot.slane %v15786_v10, 1  ;;  %v15787_v56 = vld [vmem:[#allocation85_spill] sm:$0xff]  ;;  %15788 = vst [vmem:[#allocation47_spill] sm:$0xff] %v13876_v26 }
 0x336   : > { %10344 = vmatprep.mubr.msk.f32.mxu1 %vm313_vm0, %v13859_v41  ;;  %v5019_v41 = vrot.slane %v15789_v60, 1  ;;  %v15794_v60 = vld [vmem:[#allocation88_spill] sm:$0xff] }
 0x337   : > { %v13885_v42 = vsel %vm1193_vm2, %v15752_v36, %v5017_v40  ;;  %v5023_v10 = vrot.slane %v15794_v60, 1  ;;  %v15799_v60 = vld [vmem:[#allocation87_spill] sm:$0xff] }
 0x338   : > { %10422 = vmatmul.mubr.msk.f32.gmra.mxu0 %vm313_vm0, %v15784_v35  ;;  %v15790_v35 = vld [vmem:[#allocation86_spill] sm:$0xff]  ;;  %15791 = vst [vmem:[#allocation37_spill] sm:$0xff] %v13885_v42  ;;  %v13892_v12 = vsel %vm1193_vm2, %v5017_v40, %v5019_v41 }
 0x339   : > { %10345 = vmatmul.mubr.msk.f32.gmra.mxu1 %vm313_vm0, %v13867_v38  ;;  %10424 = vmatprep.mubr.msk.f32.mxu0 %vm313_vm0, %v15787_v56  ;;  %v15792_v56 = vld [vmem:[#allocation89_spill] sm:$0xff]  ;;  %15793 = vst [vmem:[#allocation100_spill] sm:$0xff] %v13892_v12  ;;  %v13903_v38 = vld [vmem:[#allocation7 + $0xf8] sm:$0xff]  ;;  %v13911_v40 = vsel %vm1193_vm2, %v15752_v36, %v5023_v10 }
 0x33a   : > { %10347 = vmatprep.mubr.msk.f32.mxu1 %vm313_vm0, %v13876_v26  ;;  %v15795_v26 = vld [vmem:[#allocation90_spill] sm:$0xff]  ;;  %15798 = vst [vmem:[#allocation102_spill] sm:$0xff] %v13911_v40  ;;  %10697 = vmatprep.subr.mxu0 %v13903_v38 }
 0x33c   : > { %10425 = vmatmul.mubr.msk.f32.gmra.mxu0 %vm313_vm0, %v15790_v35  ;;  %v13901_v35 = vsel %vm1193_vm2, %v5019_v41, %v15752_v36  ;;  %v15802_v41 = vld [vmem:[#allocation26_spill] sm:$0xff] }
 0x33d   : > { %10348 = vmatmul.mubr.msk.f32.gmra.mxu1 %vm313_vm0, %v13885_v42  ;;  %10427 = vmatprep.mubr.msk.f32.mxu0 %vm313_vm0, %v15792_v56  ;;  %15796 = vst [vmem:[#allocation101_spill] sm:$0xff] %v13901_v35  ;;  %v15797_v56 = vld [vmem:[#allocation92_spill] sm:$0xff]  ;;  %v15800_v42 = vld [vmem:[#allocation59_spill] sm:$0xff] }
 0x33e   : > { %10350 = vmatprep.mubr.msk.f32.mxu1 %vm313_vm0, %v13892_v12  ;;  %v5025_v12 = vrot.slane %v15799_v60, 1 }
 0x340   : > { %10428 = vmatmul.mubr.msk.f32.gmra.mxu0 %vm313_vm0, %v15795_v26  ;;  %v15801_v26 = vld [vmem:[#allocation56_spill] sm:$0xff] }
 0x341   : > { %10351 = vmatmul.mubr.msk.f32.gmra.mxu1 %vm313_vm0, %v13901_v35  ;;  %10430 = vmatprep.mubr.msk.f32.mxu0 %vm313_vm0, %v15797_v56  ;;  %v2088_v52 = vadd.f32 %v15801_v26, %v15800_v42  ;;  %v13923_v56 = vsel %vm1193_vm2, %v5023_v10, %v5025_v12  ;;  %v5029_v35 = vrot.slane %v13480_v30, 1  ;;  %v13932_v26 = vsel %vm1193_vm2, %v5025_v12, %v15752_v36  ;;  %v15805_v42 = vld [vmem:[#allocation27_spill] sm:$0xff] }
 0x342   : > { %10353 = vmatprep.mubr.msk.f32.mxu1 %vm313_vm0, %v13911_v40  ;;  %15803 = vst [vmem:[#allocation87_spill] sm:$0xff] %v13923_v56  ;;  %15804 = vst [vmem:[#allocation59_spill] sm:$0xff] %v13932_v26 }
 0x343   : > { %v2450_v20 = vadd.f32 %v15802_v41, %v2088_v52  ;;  %v5031_v52 = vrot.slane %v13513_v55, 1  ;;  %v13942_v41 = vsel %vm1193_vm2, %v15752_v36, %v5029_v35 }
 0x344   : > { %10431 = vmatmul.mubr.msk.f32.gmra.mxu0 %vm313_vm0, %v13496_v13  ;;  %15806 = vst [vmem:[#allocation56_spill] sm:$0xff] %v13942_v41  ;;  %v15808_v13 = vld [vmem:[#allocation48_spill] sm:$0xff] }
 0x345   : > { %10354 = vmatmul.mubr.msk.f32.gmra.mxu1 %vm313_vm0, %v13923_v56  ;;  %10433 = vmatprep.mubr.msk.f32.mxu0 %vm313_vm0, %v13518_v14  ;;  %v2815_v10 = vadd.f32 %v15805_v42, %v2450_v20  ;;  %v13949_v12 = vsel %vm1193_vm2, %v5029_v35, %v5031_v52  ;;  %v5035_v14 = vrot.slane %v13538_v29, 1  ;;  %v13959_v42 = vsel %vm1193_vm2, %v5031_v52, %v15752_v36 }
 0x346   : > { %10356 = vmatprep.mubr.msk.f32.mxu1 %vm313_vm0, %v13932_v26  ;;  %15807 = vst [vmem:[#allocation26_spill] sm:$0xff] %v13949_v12  ;;  %15809 = vst [vmem:[#allocation27_spill] sm:$0xff] %v13959_v42 }
 0x347   : > { %v3173_v20 = vadd.f32 %v15808_v13, %v2815_v10  ;;  %v13967_v35 = vsel %vm1193_vm2, %v15752_v36, %v5035_v14  ;;  %v15812_v13 = vld [vmem:[#allocation98_spill] sm:$0xff] }
 0x348   : > { %10434 = vmatmul.mubr.msk.f32.gmra.mxu0 %vm313_vm0, %v13525_v16  ;;  %15811 = vst [vmem:[#allocation48_spill] sm:$0xff] %v13967_v35  ;;  %v5037_v10 = vrot.slane %v15812_v13, 1 }
 0x349   : > { %10357 = vmatmul.mubr.msk.f32.gmra.mxu1 %vm313_vm0, %v13942_v41  ;;  %10436 = vmatprep.mubr.msk.f32.mxu0 %vm313_vm0, %v13542_v61  ;;  %v15810_v61 = vld [vmem:[#allocation91_spill] sm:$0xff]  ;;  %v3531_v16 = vadd.f32 %v13622_v51, %v3173_v20 }
 0x34a   : > { %10359 = vmatprep.mubr.msk.f32.mxu1 %vm313_vm0, %v13949_v12  ;;  %v13986_v51 = vsel %vm1193_vm2, %v5037_v10, %v15752_v36 }
 0x34b   : > { %v3889_v52 = vadd.f32 %v13624_v8, %v3531_v16  ;;  %15814 = vst [vmem:[#allocation103_spill] sm:$0xff] %v13986_v51  ;;  %v5043_v16 = vrot.slane %v13580_v49, 1 }
 0x34c   : > { %10437 = vmatmul.mubr.msk.f32.gmra.mxu0 %vm313_vm0, %v13546_v63  ;;  %v13977_v63 = vsel %vm1193_vm2, %v5035_v14, %v5037_v10  ;;  %v10958_v14 = vld [vmem:[%s15111_s2] ss:$0 sm:$0xff] }
 0x34d   : > { %10360 = vmatmul.mubr.msk.f32.gmra.mxu1 %vm313_vm0, %v13959_v42  ;;  %10439 = vmatprep.mubr.msk.f32.mxu0 %vm313_vm0, %v15810_v61  ;;  %15813 = vst [vmem:[#allocation98_spill] sm:$0xff] %v13977_v63  ;;  %v5041_v61 = vrot.slane %v13552_v62, 1  ;;  %v3943_v8 = vadd.f32 %v10958_v14, %v13597_v15  ;;  %v3944_v20 = vadd.f32 %v10958_v14, %v3889_v52  ;;  %v15818_v14 = vld [vmem:[#allocation17_spill] sm:$0xff] }
 0x34e   : > { %10362 = vmatprep.mubr.msk.f32.mxu1 %vm313_vm0, %v13967_v35 }
 0x34f   : > { %v14006_v10 = vsel %vm1193_vm2, %v5041_v61, %v5043_v16  ;;  %v14011_v15 = vmax.f32 %v3943_v8, 0.0  ;;  %v14013_v52 = vmax.f32 %v3944_v20, 0.0  ;;  %v15822_v8 = vld [vmem:[#allocation31_spill] sm:$0xff] }
 0x350   : > { %10440 = vmatmul.mubr.msk.f32.gmra.mxu0 %vm313_vm0, %v13567_v18  ;;  %15816 = vst [vmem:[#allocation105_spill] sm:$0xff] %v14006_v10  ;;  %v15817_v18 = vld [vmem:[#allocation15_spill] sm:$0xff]  ;;  %v5049_v20 = vrot.slane %v15822_v8, 1 }
 0x351   : > { %10363 = vmatmul.mubr.msk.f32.gmra.mxu1 %vm313_vm0, %v13977_v63  ;;  %10442 = vmatprep.mubr.msk.f32.mxu0 %vm313_vm0, %v13585_v47  ;;  %v13999_v47 = vsel %vm1193_vm2, %v15752_v36, %v5041_v61  ;;  %v5047_v49 = vrot.slane %v15817_v18, 1  ;;  %v15820_v61 = vld [vmem:[#allocation16_spill] sm:$0xff]  ;;  %v15356_v18 = vrot.slane %v14011_v15, 1 }
 0x352   : > { %10365 = vmatprep.mubr.msk.f32.mxu1 %vm313_vm0, %v13986_v51  ;;  %15815 = vst [vmem:[#allocation104_spill] sm:$0xff] %v13999_v47  ;;  %v14046_v8 = vsel %vm1193_vm2, %v5049_v20, %v15752_v36 }
 0x353   : > { %15824 = vst [vmem:[#allocation109_spill] sm:$0xff] %v14046_v8 }
 0x354   : > { %10443 = vmatmul.mubr.msk.f32.gmra.mxu0 %vm313_vm0, %v13591_v2  ;;  %v14019_v2 = vsel %vm1193_vm2, %v5043_v16, %v15752_v36  ;;  %v14036_v16 = vsel %vm1193_vm2, %v5047_v49, %v5049_v20  ;;  %v15828_v20 = vld [vmem:[#allocation50_spill] sm:$0xff] }
 0x355   : > { %10366 = vmatmul.mubr.msk.f32.gmra.mxu1 %vm313_vm0, %v13999_v47  ;;  %10445 = vmatprep.mubr.msk.f32.mxu0 %vm313_vm0, %v13608_v19  ;;  %15819 = vst [vmem:[#allocation106_spill] sm:$0xff] %v14019_v2  ;;  %v14027_v19 = vsel %vm1193_vm2, %v15752_v36, %v5047_v49  ;;  %15823 = vst [vmem:[#allocation108_spill] sm:$0xff] %v14036_v16 }
 0x356   : > { %10368 = vmatprep.mubr.msk.f32.mxu1 %vm313_vm0, %v14006_v10  ;;  %15821 = vst [vmem:[#allocation107_spill] sm:$0xff] %v14027_v19 }
 0x358   : > { %10446 = vmatmul.mubr.msk.f32.gmra.mxu0 %vm313_vm0, %v15818_v14  ;;  %v5475_v14 = vrot.slane %v14011_v15, 7 }
 0x359   : > { %10369 = vmatmul.mubr.msk.f32.gmra.mxu1 %vm313_vm0, %v14019_v2  ;;  %10448 = vmatprep.mubr.msk.f32.mxu0 %vm313_vm0, %v15820_v61  ;;  %v5477_v61 = vrot.slane %v14013_v52, 7 }
 0x35a   : > { %10371 = vmatprep.mubr.msk.f32.mxu1 %vm313_vm0, %v14027_v19  ;;  %v14052_v49 = vsel %vm712_vm1, %v15596_v28, %v5475_v14 }
 0x35b   : > { %15825 = vst [vmem:[#allocation110_spill] sm:$0xff] %v14052_v49 }
 0x35c   : > { %10449 = vmatmul.mubr.msk.f32.gmra.mxu0 %vm313_vm0, %v13633_v9  ;;  %v14060_v9 = vsel %vm1193_vm2, %v15752_v36, %v15356_v18  ;;  %v6480_v18 = vld [vmem:[#allocation7 + $0xd0] sm:$0xff] }
 0x35d   : > { %10372 = vmatmul.mubr.msk.f32.gmra.mxu1 %vm313_vm0, %v14036_v16  ;;  %10451 = vmatprep.mubr.msk.f32.mxu0 %vm313_vm0, %v13647_v22  ;;  %15826 = vst [vmem:[#allocation111_spill] sm:$0xff] %v14060_v9  ;;  %v14063_v22 = vsel %vm712_vm1, %v5475_v14, %v5477_v61  ;;  %v15830_v14 = vmov 0.0  }
 0x35e   : > { %10374 = vmatprep.mubr.msk.f32.mxu1 %vm313_vm0, %v14046_v8  ;;  %15827 = vst [vmem:[#allocation112_spill] sm:$0xff] %v14063_v22 }
 0x360   : > { %10452 = vmatmul.mubr.msk.f32.gmra.mxu0 %vm313_vm0, %v14052_v49  ;;  %v14073_v49 = vsel %vm712_vm1, %v5477_v61, %v15596_v28  ;;  %v14098_v28 = vld [vmem:[#allocation7 + $0x118] sm:$0xff] }
 0x361   : > { %10375 = vmatmul.mubr.msk.f32.gmra.mxu1 %vm313_vm0, %v14060_v9  ;;  %10454 = vmatprep.mubr.msk.f32.mxu0 %vm313_vm0, %v14063_v22  ;;  %15829 = vst [vmem:[#allocation50_spill] sm:$0xff] %v14073_v49  ;;  %v14083_v22 = vpop.f32.mrf.mxu1 }
 0x362   : > { %10465 = vmatprep.mubr.msk.f32.mxu1 %vm313_vm0, %v15828_v20  ;;  %v6479_v20 = vld [vmem:[#allocation7 + $0xc8] sm:$0xff] }
 0x364   : > { %10455 = vmatmul.mubr.msk.f32.gmra.mxu0 %vm313_vm0, %v14073_v49 }
 0x365   : > { %10466 = vmatmul.mubr.msk.f32.vlgmr.msra.gmra.mxu1 %vm313_vm0, %v13112_v31  ;;  %10545 = vmatprep.mubr.msk.f32.mxu0 %vm313_vm0, %v13663_v0  ;;  %v6478_v0 = vld [vmem:[#allocation7 + $0xc0] sm:$0xff]  ;;  %v14091_v31 = vpop.f32.mrf.mxu0 }
 0x366   : > { %10618 = vmatpush3.msra.mxu1 %v13684_v3  ;;  %10468 = vmatprep.mubr.f32.mxu1 %v15830_v14 }
 0x367   : > { %10619 = vmatprep.subr.mxu1 %v6480_v18 }
 0x368   : > { %10546 = vmatmul.mubr.msk.f32.vlgmr.msra.gmra.mxu0 %vm313_vm0, %v13672_v27  ;;  %10620 = vmatpush3.msra.mxu1 %v6480_v18  ;;  %v6809_v18 = vld [vmem:[#allocation7 + $0xf0] sm:$0xff] }
 0x369   : > { %v10150_v61 = vpop.f32.mrf.mxu1  ;;  %10469 = vmatmul.mubr.msk.f32.gmra.mxu1 %vm313_vm0, %v13123_v50  ;;  %10548 = vmatprep.mubr.msk.f32.mxu0 %vm313_vm0, %v13682_v17 }
 0x36a   : > { %10471 = vmatprep.mubr.msk.f32.mxu1 %vm313_vm0, %v13151_v45  ;;  %10621 = vmatprep.subr.mxu1 %v6479_v20 }
 0x36b   : > { %v4275_v3 = vpop.f32.mrf.mxu1  ;;  %10622 = vmatpush3.msra.mxu1 %v6479_v20  ;;  %10698 = vmatpush3.msra.mxu0 %v13903_v38 }
 0x36c   : > { %v10230_v27 = vpop.f32.mrf.mxu0  ;;  %10549 = vmatmul.mubr.msk.f32.gmra.mxu0 %vm313_vm0, %v13691_v34  ;;  %10623 = vmatprep.subr.mxu1 %v6478_v0 }
 0x36d   : > { %v14100_v17 = vadd.f32 %v10230_v27, %v10150_v61  ;;  %v10153_v49 = vpop.f32.mrf.mxu1  ;;  %10472 = vmatmul.mubr.f32.gmra.mxu1 %v15830_v14  ;;  %10551 = vmatprep.mubr.msk.f32.mxu0 %vm313_vm0, %v13701_v39  ;;  %v6808_v61 = vld [vmem:[#allocation7 + $0xe8] sm:$0xff] }
 0x36e   : > { %v4744_v3 = vpop.f32.mrf.mxu0  ;;  %10474 = vmatprep.mubr.msk.f32.mxu1 %vm313_vm0, %v13177_v58  ;;  %10624 = vmatpush3.msra.mxu1 %v6478_v0 }
 0x36f   : > { %v4284_v38 = vpop.f32.mrf.mxu1  ;;  %10699 = vmatprep.subr.mxu0 %v6809_v18  ;;  %10777 = vmatprep.subr.mxu1 %v14098_v28 }
 0x370   : > { %v10233_v20 = vpop.f32.mrf.mxu0  ;;  %10552 = vmatmul.mubr.msk.f32.gmra.mxu0 %vm313_vm0, %v13709_v54  ;;  %v6807_v54 = vld [vmem:[#allocation7 + $0xe0] sm:$0xff] }
 0x371   : > { %v10156_v49 = vpop.f32.mrf.mxu1  ;;  %10475 = vmatmul.mubr.msk.f32.gmra.mxu1 %vm313_vm0, %v13165_v59  ;;  %10554 = vmatprep.mubr.msk.f32.mxu0 %vm313_vm0, %v13717_v7 }
 0x372   : > { %v4753_v27 = vpop.f32.mrf.mxu0  ;;  %10477 = vmatprep.mubr.f32.mxu1 %v15830_v14  ;;  %10700 = vmatpush3.msra.mxu0 %v6809_v18 }
 0x373   : > { %v14115_v0 = vadd.f32 %v4753_v27, %v4284_v38  ;;  %v4293_v3 = vpop.f32.mrf.mxu1  ;;  %10701 = vmatprep.subr.mxu0 %v6808_v61 }
 0x374   : > { %v10236_v20 = vpop.f32.mrf.mxu0  ;;  %10555 = vmatmul.mubr.msk.f32.gmra.mxu0 %vm313_vm0, %v13726_v21 }
 0x375   : > { %v14119_v39 = vadd.f32 %v10236_v20, %v10156_v49  ;;  %v10159_v34 = vpop.f32.mrf.mxu1  ;;  %10478 = vmatmul.mubr.msk.f32.gmra.mxu1 %vm313_vm0, %v13191_v57  ;;  %10557 = vmatprep.mubr.msk.f32.mxu0 %vm313_vm0, %v13735_v48 }
 0x376   : > { %v4762_v7 = vpop.f32.mrf.mxu0  ;;  %10480 = vmatprep.mubr.msk.f32.mxu1 %vm313_vm0, %v13221_v32  ;;  %10702 = vmatpush3.msra.mxu0 %v6808_v61 }
 0x377   : > { %v14127_v18 = vadd.f32 %v4762_v7, %v4293_v3  ;;  %v4303_v38 = vpop.f32.mrf.mxu1  ;;  %10703 = vmatprep.subr.mxu0 %v6807_v54 }
 0x378   : > { %v10239_v27 = vpop.f32.mrf.mxu0  ;;  %10558 = vmatmul.mubr.msk.f32.gmra.mxu0 %vm313_vm0, %v13742_v44  ;;  %v15838_v44 = vld [vmem:[#allocation74_spill] sm:$0xff] }
 0x379   : > { %v14131_v49 = vadd.f32 %v10239_v27, %v10159_v34  ;;  %v10162_v20 = vpop.f32.mrf.mxu1  ;;  %10481 = vmatmul.mubr.f32.gmra.mxu1 %v15830_v14  ;;  %10560 = vmatprep.mubr.msk.f32.mxu0 %vm313_vm0, %v13751_v53  ;;  %v15837_v53 = vld [vmem:[#allocation44_spill] sm:$0xff] }
 0x37a   : > { %v4772_v48 = vpop.f32.mrf.mxu0  ;;  %10483 = vmatprep.mubr.msk.f32.mxu1 %vm313_vm0, %v13247_v24  ;;  %10704 = vmatpush3.msra.mxu0 %v6807_v54 }
 0x37b   : > { %v4312_v7 = vpop.f32.mrf.mxu1 }
 0x37c   : > { %v10242_v61 = vpop.f32.mrf.mxu0  ;;  %10561 = vmatmul.mubr.msk.f32.gmra.mxu0 %vm313_vm0, %v13759_v4  ;;  %v15836_v4 = vld [vmem:[#allocation71_spill] sm:$0xff] }
 0x37d   : > { %v10165_v3 = vpop.f32.mrf.mxu1  ;;  %10484 = vmatmul.mubr.msk.f32.gmra.mxu1 %vm313_vm0, %v13235_v23  ;;  %10563 = vmatprep.mubr.msk.f32.mxu0 %vm313_vm0, %v13767_v1 }
 0x37e   : > { %v4781_v34 = vpop.f32.mrf.mxu0  ;;  %10486 = vmatprep.mubr.f32.mxu1 %v15830_v14 }
 0x37f   : > { %v14145_v48 = vadd.f32 %v4781_v34, %v4312_v7  ;;  %v4321_v38 = vpop.f32.mrf.mxu1 }
 0x380   : > { %v10245_v27 = vpop.f32.mrf.mxu0  ;;  %10564 = vmatmul.mubr.msk.f32.gmra.mxu0 %vm313_vm0, %v13776_v5 }
 0x381   : > { %v14149_v54 = vadd.f32 %v10245_v27, %v10165_v3  ;;  %v10168_v20 = vpop.f32.mrf.mxu1  ;;  %10487 = vmatmul.mubr.msk.f32.gmra.mxu1 %vm313_vm0, %v13261_v33  ;;  %10566 = vmatprep.mubr.msk.f32.mxu0 %vm313_vm0, %v13785_v25 }
 0x382   : > { %v4790_v61 = vpop.f32.mrf.mxu0  ;;  %10489 = vmatprep.mubr.msk.f32.mxu1 %vm313_vm0, %v13291_v11 }
 0x383   : > { %v14157_v7 = vadd.f32 %v4790_v61, %v4321_v38  ;;  %v4331_v34 = vpop.f32.mrf.mxu1 }
 0x384   : > { %v10248_v1 = vpop.f32.mrf.mxu0  ;;  %10567 = vmatmul.mubr.msk.f32.gmra.mxu0 %vm313_vm0, %v13792_v43  ;;  %v15831_v34 = vld [vmem:[#allocation97_spill] sm:$0xff] }
 0x385   : > { %v14161_v3 = vadd.f32 %v10248_v1, %v10168_v20  ;;  %v10171_v27 = vpop.f32.mrf.mxu1  ;;  %10490 = vmatmul.mubr.f32.gmra.mxu1 %v15830_v14  ;;  %10569 = vmatprep.mubr.msk.f32.mxu0 %vm313_vm0, %v13801_v37  ;;  %v15832_v1 = vld [vmem:[#allocation52_spill] sm:$0xff]  ;;  %v15834_v43 = vld [vmem:[#allocation41_spill] sm:$0xff] }
 0x386   : > { %v4800_v25 = vpop.f32.mrf.mxu0  ;;  %10492 = vmatprep.mubr.msk.f32.mxu1 %vm313_vm0, %v13317_v6 }
 0x387   : > { %v4340_v5 = vpop.f32.mrf.mxu1 }
 0x388   : > { %v10251_v38 = vpop.f32.mrf.mxu0  ;;  %10570 = vmatmul.mubr.msk.f32.gmra.mxu0 %vm313_vm0, %v13809_v46 }
 0x389   : > { %v10174_v61 = vpop.f32.mrf.mxu1  ;;  %10493 = vmatmul.mubr.msk.f32.gmra.mxu1 %vm313_vm0, %v15831_v34  ;;  %10572 = vmatprep.mubr.msk.f32.mxu0 %vm313_vm0, %v15832_v1 }
 0x38a   : > { %v4809_v20 = vpop.f32.mrf.mxu0  ;;  %10495 = vmatprep.mubr.f32.mxu1 %v15830_v14 }
 0x38b   : > { %v14175_v27 = vadd.f32 %v4809_v20, %v4340_v5  ;;  %v4349_v25 = vpop.f32.mrf.mxu1 }
 0x38c   : > { %v10254_v37 = vpop.f32.mrf.mxu0  ;;  %10573 = vmatmul.mubr.msk.f32.gmra.mxu0 %vm313_vm0, %v15834_v43  ;;  %v15842_v43 = vld [vmem:[#allocation24_spill] sm:$0xff] }
 0x38d   : > { %15833 = vst [vmem:[#allocation97_spill] sm:$0xff] %v14175_v27  ;;  %v14179_v38 = vadd.f32 %v10254_v37, %v10174_v61  ;;  %v10177_v46 = vpop.f32.mrf.mxu1  ;;  %10496 = vmatmul.mubr.msk.f32.gmra.mxu1 %vm313_vm0, %v15836_v4  ;;  %10575 = vmatprep.mubr.msk.f32.mxu0 %vm313_vm0, %v15837_v53  ;;  %v15840_v27 = vld [vmem:[#allocation23_spill] sm:$0xff]  ;;  %v15853_v4 = vld [vmem:[#allocation100_spill] sm:$0xff] }
 0x38e   : > { %v4818_v1 = vpop.f32.mrf.mxu0  ;;  %10498 = vmatprep.mubr.msk.f32.mxu1 %vm313_vm0, %v15838_v44 }
 0x38f   : > { %15835 = vst [vmem:[#allocation113_spill] sm:$0xff] %v14179_v38  ;;  %v14187_v5 = vadd.f32 %v4818_v1, %v4349_v25  ;;  %v4359_v20 = vpop.f32.mrf.mxu1  ;;  %v15843_v38 = vld [vmem:[#allocation78_spill] sm:$0xff]  ;;  %v15844_v25 = vld [vmem:[#allocation25_spill] sm:$0xff] }
 0x390   : > { %v10257_v21 = vpop.f32.mrf.mxu0  ;;  %10576 = vmatmul.mubr.msk.f32.gmra.mxu0 %vm313_vm0, %v15840_v27  ;;  %v15848_v27 = vld [vmem:[#allocation47_spill] sm:$0xff] }
 0x391   : > { %15839 = vst [vmem:[#allocation114_spill] sm:$0xff] %v14187_v5  ;;  %v14191_v37 = vadd.f32 %v10257_v21, %v10177_v46  ;;  %v10180_v61 = vpop.f32.mrf.mxu1  ;;  %10499 = vmatmul.mubr.f32.gmra.mxu1 %v15830_v14  ;;  %10578 = vmatprep.mubr.msk.f32.mxu0 %vm313_vm0, %v15842_v43  ;;  %v15845_v5 = vld [vmem:[#allocation77_spill] sm:$0xff] }
 0x392   : > { %v4828_v53 = vpop.f32.mrf.mxu0  ;;  %10501 = vmatprep.mubr.msk.f32.mxu1 %vm313_vm0, %v15843_v38  ;;  %v15846_v21 = vld [vmem:[#allocation45_spill] sm:$0xff] }
 0x393   : > { %15841 = vst [vmem:[#allocation115_spill] sm:$0xff] %v14191_v37  ;;  %v4368_v44 = vpop.f32.mrf.mxu1  ;;  %v15850_v38 = vld [vmem:[#allocation81_spill] sm:$0xff]  ;;  %v15852_v37 = vld [vmem:[#allocation84_spill] sm:$0xff] }
 0x394   : > { %v10260_v1 = vpop.f32.mrf.mxu0  ;;  %10579 = vmatmul.mubr.msk.f32.gmra.mxu0 %vm313_vm0, %v15844_v25 }
 0x395   : > { %v10183_v20 = vpop.f32.mrf.mxu1  ;;  %10502 = vmatmul.mubr.msk.f32.gmra.mxu1 %vm313_vm0, %v15845_v5  ;;  %10581 = vmatprep.mubr.msk.f32.mxu0 %vm313_vm0, %v15846_v21  ;;  %v15851_v5 = vld [vmem:[#allocation37_spill] sm:$0xff] }
 0x396   : > { %v4837_v46 = vpop.f32.mrf.mxu0  ;;  %10504 = vmatprep.mubr.f32.mxu1 %v15830_v14 }
 0x397   : > { %v14205_v61 = vadd.f32 %v4837_v46, %v4368_v44  ;;  %v4377_v53 = vpop.f32.mrf.mxu1 }
 0x398   : > { %v10263_v43 = vpop.f32.mrf.mxu0  ;;  %10582 = vmatmul.mubr.msk.f32.gmra.mxu0 %vm313_vm0, %v15848_v27  ;;  %v15854_v27 = vld [vmem:[#allocation101_spill] sm:$0xff] }
 0x399   : > { %15847 = vst [vmem:[#allocation116_spill] sm:$0xff] %v14205_v61  ;;  %v14209_v1 = vadd.f32 %v10263_v43, %v10183_v20  ;;  %v10186_v25 = vpop.f32.mrf.mxu1  ;;  %10505 = vmatmul.mubr.msk.f32.gmra.mxu1 %vm313_vm0, %v15850_v38  ;;  %10584 = vmatprep.mubr.msk.f32.mxu0 %vm313_vm0, %v15851_v5 }
 0x39a   : > { %v4846_v21 = vpop.f32.mrf.mxu0  ;;  %10507 = vmatprep.mubr.msk.f32.mxu1 %vm313_vm0, %v15852_v37 }
 0x39b   : > { %15849 = vst [vmem:[#allocation117_spill] sm:$0xff] %v14209_v1  ;;  %v14217_v44 = vadd.f32 %v4846_v21, %v4377_v53  ;;  %v4387_v46 = vpop.f32.mrf.mxu1  ;;  %v15855_v1 = vld [vmem:[#allocation88_spill] sm:$0xff] }
 0x39c   : > { %v10266_v61 = vpop.f32.mrf.mxu0  ;;  %10585 = vmatmul.mubr.msk.f32.gmra.mxu0 %vm313_vm0, %v15853_v4  ;;  %v15864_v4 = vld [vmem:[#allocation54_spill] sm:$0xff] }
 0x39d   : > { %v14221_v43 = vadd.f32 %v10266_v61, %v10186_v25  ;;  %v10189_v20 = vpop.f32.mrf.mxu1  ;;  %10508 = vmatmul.mubr.f32.gmra.mxu1 %v15830_v14  ;;  %10587 = vmatprep.mubr.msk.f32.mxu0 %vm313_vm0, %v15854_v27 }
 0x39e   : > { %v4856_v5 = vpop.f32.mrf.mxu0  ;;  %10510 = vmatprep.mubr.msk.f32.mxu1 %vm313_vm0, %v15855_v1 }
 0x39f   : > { %v4396_v37 = vpop.f32.mrf.mxu1 }
 0x3a0   : > { %v10269_v21 = vpop.f32.mrf.mxu0  ;;  %10588 = vmatmul.mubr.msk.f32.gmra.mxu0 %vm313_vm0, %v13911_v40 }
 0x3a1   : > { %v10192_v53 = vpop.f32.mrf.mxu1  ;;  %10511 = vmatmul.mubr.msk.f32.gmra.mxu1 %vm313_vm0, %v15799_v60  ;;  %10590 = vmatprep.mubr.msk.f32.mxu0 %vm313_vm0, %v13923_v56 }
 0x3a2   : > { %v4865_v25 = vpop.f32.mrf.mxu0  ;;  %10513 = vmatprep.mubr.f32.mxu1 %v15830_v14 }
 0x3a3   : > { %v14235_v61 = vadd.f32 %v4865_v25, %v4396_v37  ;;  %v4405_v5 = vpop.f32.mrf.mxu1 }
 0x3a4   : > { %v10272_v46 = vpop.f32.mrf.mxu0  ;;  %10591 = vmatmul.mubr.msk.f32.gmra.mxu0 %vm313_vm0, %v13932_v26 }
 0x3a5   : > { %v14239_v20 = vadd.f32 %v10272_v46, %v10192_v53  ;;  %v10195_v21 = vpop.f32.mrf.mxu1  ;;  %10514 = vmatmul.mubr.msk.f32.gmra.mxu1 %vm313_vm0, %v13480_v30  ;;  %10593 = vmatprep.mubr.msk.f32.mxu0 %vm313_vm0, %v13942_v41 }
 0x3a6   : > { %v4874_v56 = vpop.f32.mrf.mxu0  ;;  %10516 = vmatprep.mubr.msk.f32.mxu1 %vm313_vm0, %v13513_v55 }
 0x3a7   : > { %v14247_v37 = vadd.f32 %v4874_v56, %v4405_v5  ;;  %v4415_v25 = vpop.f32.mrf.mxu1 }
 0x3a8   : > { %v10275_v40 = vpop.f32.mrf.mxu0  ;;  %10594 = vmatmul.mubr.msk.f32.gmra.mxu0 %vm313_vm0, %v13949_v12 }
 0x3a9   : > { %v14251_v53 = vadd.f32 %v10275_v40, %v10195_v21  ;;  %v10198_v46 = vpop.f32.mrf.mxu1  ;;  %10517 = vmatmul.mubr.f32.gmra.mxu1 %v15830_v14  ;;  %10596 = vmatprep.mubr.msk.f32.mxu0 %vm313_vm0, %v13959_v42 }
 0x3aa   : > { %v4884_v41 = vpop.f32.mrf.mxu0  ;;  %10519 = vmatprep.mubr.msk.f32.mxu1 %vm313_vm0, %v13538_v29 }
 0x3ab   : > { %v4424_v26 = vpop.f32.mrf.mxu1 }
 0x3ac   : > { %v10278_v56 = vpop.f32.mrf.mxu0  ;;  %10597 = vmatmul.mubr.msk.f32.gmra.mxu0 %vm313_vm0, %v13967_v35  ;;  %v15856_v35 = vld [vmem:[#allocation28_spill] sm:$0xff] }
 0x3ad   : > { %v10201_v5 = vpop.f32.mrf.mxu1  ;;  %10520 = vmatmul.mubr.msk.f32.gmra.mxu1 %vm313_vm0, %v15812_v13  ;;  %10599 = vmatprep.mubr.msk.f32.mxu0 %vm313_vm0, %v13977_v63 }
 0x3ae   : > { %v4893_v40 = vpop.f32.mrf.mxu0  ;;  %10522 = vmatprep.mubr.f32.mxu1 %v15830_v14 }
 0x3af   : > { %v14265_v21 = vadd.f32 %v4893_v40, %v4424_v26  ;;  %v4433_v41 = vpop.f32.mrf.mxu1 }
 0x3b0   : > { %v10281_v25 = vpop.f32.mrf.mxu0  ;;  %10600 = vmatmul.mubr.msk.f32.gmra.mxu0 %vm313_vm0, %v13986_v51  ;;  %v15857_v51 = vld [vmem:[#allocation15_spill] sm:$0xff] }
 0x3b1   : > { %v14269_v46 = vadd.f32 %v10281_v25, %v10201_v5  ;;  %v10204_v56 = vpop.f32.mrf.mxu1  ;;  %10523 = vmatmul.mubr.msk.f32.gmra.mxu1 %vm313_vm0, %v13552_v62  ;;  %10602 = vmatprep.mubr.msk.f32.mxu0 %vm313_vm0, %v13999_v47 }
 0x3b2   : > { %v4902_v63 = vpop.f32.mrf.mxu0  ;;  %10525 = vmatprep.mubr.msk.f32.mxu1 %vm313_vm0, %v15856_v35 }
 0x3b3   : > { %v14277_v26 = vadd.f32 %v4902_v63, %v4433_v41  ;;  %v4443_v40 = vpop.f32.mrf.mxu1 }
 0x3b4   : > { %v10284_v42 = vpop.f32.mrf.mxu0  ;;  %10603 = vmatmul.mubr.msk.f32.gmra.mxu0 %vm313_vm0, %v14006_v10  ;;  %v15858_v40 = vld [vmem:[#allocation31_spill] sm:$0xff]  ;;  %v15859_v10 = vrot.slane %v14011_v15, 1 }
 0x3b5   : > { %v14281_v5 = vadd.f32 %v10284_v42, %v10204_v56  ;;  %v10207_v25 = vpop.f32.mrf.mxu1  ;;  %10526 = vmatmul.mubr.f32.gmra.mxu1 %v15830_v14  ;;  %10605 = vmatprep.mubr.msk.f32.mxu0 %vm313_vm0, %v14019_v2 }
 0x3b6   : > { %v4912_v47 = vpop.f32.mrf.mxu0  ;;  %10528 = vmatprep.mubr.msk.f32.mxu1 %vm313_vm0, %v15857_v51  ;;  %v6145_v25 = vrot.slane %v14013_v52, 1 }
 0x3b7   : > { %v4452_v12 = vpop.f32.mrf.mxu1 }
 0x3b8   : > { %v10287_v63 = vpop.f32.mrf.mxu0  ;;  %10606 = vmatmul.mubr.msk.f32.gmra.mxu0 %vm313_vm0, %v14027_v19 }
 0x3b9   : > { %v10210_v41 = vpop.f32.mrf.mxu1  ;;  %10529 = vmatmul.mubr.msk.f32.gmra.mxu1 %vm313_vm0, %v15858_v40  ;;  %10608 = vmatprep.mubr.msk.f32.mxu0 %vm313_vm0, %v14036_v16 }
 0x3ba   : > { %v4921_v42 = vpop.f32.mrf.mxu0  ;;  %10531 = vmatprep.mubr.f32.mxu1 %v15830_v14 }
 0x3bb   : > { %v14295_v56 = vadd.f32 %v4921_v42, %v4452_v12  ;;  %v4461_v47 = vpop.f32.mrf.mxu1 }
 0x3bc   : > { %v10290_v2 = vpop.f32.mrf.mxu0  ;;  %10609 = vmatmul.mubr.msk.f32.gmra.mxu0 %vm313_vm0, %v14046_v8  ;;  %v14313_v8 = vsel %vm1193_vm2, %v15859_v10, %v6145_v25 }
 0x3bd   : > { %v14300_v63 = vadd.f32 %v10290_v2, %v10210_v41  ;;  %v10213_v19 = vpop.f32.mrf.mxu1  ;;  %10532 = vmatmul.mubr.msk.f32.gmra.mxu1 %vm313_vm0, %v14011_v15  ;;  %10611 = vmatprep.mubr.msk.f32.mxu0 %vm313_vm0, %v14060_v9  ;;  %15860 = vst [vmem:[#allocation81_spill] sm:$0xff] %v14313_v8  ;;  %v14319_v41 = vsel %vm1193_vm2, %v6145_v25, %v15752_v36 }
 0x3be   : > { %v4930_v16 = vpop.f32.mrf.mxu0  ;;  %10534 = vmatprep.mubr.msk.f32.mxu1 %vm313_vm0, %v14013_v52  ;;  %15861 = vst [vmem:[#allocation88_spill] sm:$0xff] %v14319_v41 }
 0x3bf   : > { %v14308_v12 = vadd.f32 %v4930_v16, %v4461_v47  ;;  %v4471_v42 = vpop.f32.mrf.mxu1  ;;  %v15863_v47 = vld [vmem:[#allocation51_spill] sm:$0xff] }
 0x3c0   : > { %v10293_v2 = vpop.f32.mrf.mxu0  ;;  %10612 = vmatmul.mubr.msk.f32.gmra.mxu0 %vm313_vm0, %v14313_v8  ;;  %v7135_v8 = vld [vmem:[#allocation7 + $0x110] sm:$0xff] }
 0x3c1   : > { %v14321_v9 = vadd.f32 %v10293_v2, %v10213_v19  ;;  %v10216_v27 = vpop.f32.mrf.mxu1  ;;  %10535 = vmatmul.mubr.f32.gmra.mxu1 %v15830_v14  ;;  %10614 = vmatprep.mubr.msk.f32.mxu0 %vm313_vm0, %v14319_v41  ;;  %v4735_v19 = vadd.f32 %v14091_v31, %v14083_v22  ;;  %v7134_v41 = vld [vmem:[#allocation7 + $0x108] sm:$0xff] }
 0x3c2   : > { %v4940_v16 = vpop.f32.mrf.mxu0  ;;  %10625 = vmatprep.mubr.msk.f32.mxu1 %vm313_vm0, %v15863_v47  ;;  %v15865_v27 = vld [vmem:[#allocation36_spill] sm:$0xff]  ;;  %v15866_v47 = vld [vmem:[#allocation55_spill] sm:$0xff]  ;;  %v15867_v31 = vld [vmem:[#allocation57_spill] sm:$0xff] }
 0x3c3   : > { %15862 = vst [vmem:[#allocation28_spill] sm:$0xff] %v14321_v9  ;;  %v4480_v10 = vpop.f32.mrf.mxu1 }
 0x3c4   : > { %v10296_v42 = vpop.f32.mrf.mxu0  ;;  %10615 = vmatmul.mubr.msk.f32.gmra.mxu0 %vm313_vm0, %v15752_v36 }
 0x3c5   : > { %v10307_v25 = vpop.f32.mrf.mxu1  ;;  %10626 = vmatmul.mubr.msk.f32.vlgmr.msra.gmra.mxu1 %vm313_vm0, %v15864_v4  ;;  %10705 = vmatprep.mubr.msk.f32.mxu0 %vm313_vm0, %v13123_v50 }
 0x3c6   : > { %v5437_v2 = vadd.f32 %v10307_v25, %v15865_v27  ;;  %v4949_v16 = vpop.f32.mrf.mxu0  ;;  %10628 = vmatprep.mubr.msk.f32.mxu1 %vm313_vm0, %v15866_v47  ;;  %10778 = vmatpush3.msra.mxu1 %v14098_v28  ;;  %v7133_v28 = vld [vmem:[#allocation7 + $0x100] sm:$0xff]  ;;  %v15868_v27 = vld [vmem:[#allocation58_spill] sm:$0xff] }
 0x3c7   : > { %v14340_v42 = vadd.f32 %v4949_v16, %v4480_v10  ;;  %v5213_v36 = vpop.f32.mrf.mxu1  ;;  %10779 = vmatprep.subr.mxu1 %v7135_v8  ;;  %v15870_v16 = vld [vmem:[#allocation61_spill] sm:$0xff] }
 0x3c8   : > { %v5436_v4 = vadd.f32 %v5213_v36, %v4735_v19  ;;  %v10387_v9 = vpop.f32.mrf.mxu0  ;;  %10706 = vmatmul.mubr.msk.f32.vlgmr.msra.gmra.mxu0 %vm313_vm0, %v13151_v45  ;;  %10780 = vmatpush3.msra.mxu1 %v7135_v8 }
 0x3c9   : > { %v14344_v50 = vadd.f32 %v10387_v9, %v5437_v2  ;;  %v10310_v22 = vpop.f32.mrf.mxu1  ;;  %10629 = vmatmul.mubr.msk.f32.gmra.mxu1 %vm313_vm0, %v15867_v31  ;;  %10708 = vmatprep.mubr.f32.mxu0 %v15830_v14  ;;  %v15869_v2 = vld [vmem:[#allocation60_spill] sm:$0xff] }
 0x3ca   : > { %v5438_v10 = vadd.f32 %v10310_v22, %v14100_v17  ;;  %v5553_v25 = vpop.f32.mrf.mxu0  ;;  %10631 = vmatprep.mubr.msk.f32.mxu1 %vm313_vm0, %v15868_v27  ;;  %10781 = vmatprep.subr.mxu1 %v7134_v41  ;;  %v15871_v22 = vld [vmem:[#allocation64_spill] sm:$0xff] }
 0x3cb   : > { %v14352_v36 = vadd.f32 %v5553_v25, %v5436_v4  ;;  %v5223_v45 = vpop.f32.mrf.mxu1  ;;  %10782 = vmatpush3.msra.mxu1 %v7134_v41 }
 0x3cc   : > { %v10390_v9 = vpop.f32.mrf.mxu0  ;;  %10709 = vmatmul.mubr.msk.f32.gmra.mxu0 %vm313_vm0, %v13177_v58  ;;  %10783 = vmatprep.subr.mxu1 %v7133_v28 }
 0x3cd   : > { %v14356_v8 = vadd.f32 %v10390_v9, %v5438_v10  ;;  %v10313_v19 = vpop.f32.mrf.mxu1  ;;  %10632 = vmatmul.mubr.msk.f32.gmra.mxu1 %vm313_vm0, %v15869_v2  ;;  %10711 = vmatprep.mubr.msk.f32.mxu0 %vm313_vm0, %v13165_v59  ;;  %v15872_v10 = vld [vmem:[#allocation65_spill] sm:$0xff]  ;;  %v15874_v2 = vld [vmem:[#allocation67_spill] sm:$0xff] }
 0x3ce   : > { %v5563_v17 = vpop.f32.mrf.mxu0  ;;  %10634 = vmatprep.mubr.msk.f32.mxu1 %vm313_vm0, %v15870_v16  ;;  %10784 = vmatpush3.msra.mxu1 %v7133_v28  ;;  %v15873_v19 = vld [vmem:[#allocation66_spill] sm:$0xff] }
 0x3cf   : > { %v5232_v41 = vpop.f32.mrf.mxu1 }
 0x3d0   : > { %v5439_v47 = vadd.f32 %v5232_v41, %v14115_v0  ;;  %v10393_v4 = vpop.f32.mrf.mxu0  ;;  %10712 = vmatmul.mubr.f32.gmra.mxu0 %v15830_v14 }
 0x3d1   : > { %v10316_v58 = vpop.f32.mrf.mxu1  ;;  %10635 = vmatmul.mubr.msk.f32.gmra.mxu1 %vm313_vm0, %v15871_v22  ;;  %10714 = vmatprep.mubr.msk.f32.mxu0 %vm313_vm0, %v13191_v57  ;;  %v15876_v4 = vld [vmem:[#allocation95_spill] sm:$0xff] }
 0x3d2   : > { %v5441_v59 = vadd.f32 %v10316_v58, %v14119_v39  ;;  %v5572_v31 = vpop.f32.mrf.mxu0  ;;  %10637 = vmatprep.mubr.msk.f32.mxu1 %vm313_vm0, %v15872_v10 }
 0x3d3   : > { %v14373_v28 = vadd.f32 %v5572_v31, %v5439_v47  ;;  %v5241_v25 = vpop.f32.mrf.mxu1  ;;  %v15875_v47 = vld [vmem:[#allocation68_spill] sm:$0xff]  ;;  %v15877_v31 = vld [vmem:[#allocation99_spill] sm:$0xff] }
 0x3d4   : > { %v5440_v0 = vadd.f32 %v5241_v25, %v14127_v18  ;;  %v10396_v27 = vpop.f32.mrf.mxu0  ;;  %10715 = vmatmul.mubr.msk.f32.gmra.mxu0 %vm313_vm0, %v13221_v32  ;;  %v15878_v25 = vld [vmem:[#allocation70_spill] sm:$0xff] }
 0x3d5   : > { %v14378_v45 = vadd.f32 %v10396_v27, %v5441_v59  ;;  %v10319_v9 = vpop.f32.mrf.mxu1  ;;  %10638 = vmatmul.mubr.msk.f32.gmra.mxu1 %vm313_vm0, %v15873_v19  ;;  %10717 = vmatprep.mubr.f32.mxu0 %v15830_v14 }
 0x3d6   : > { %v5442_v57 = vadd.f32 %v10319_v9, %v14131_v49  ;;  %v5581_v39 = vpop.f32.mrf.mxu0  ;;  %10640 = vmatprep.mubr.msk.f32.mxu1 %vm313_vm0, %v15874_v2  ;;  %v15880_v2 = vld [vmem:[#allocation73_spill] sm:$0xff] }
 0x3d7   : > { %v14386_v17 = vadd.f32 %v5581_v39, %v5440_v0  ;;  %v5251_v18 = vpop.f32.mrf.mxu1  ;;  %v15879_v39 = vld [vmem:[#allocation72_spill] sm:$0xff] }
 0x3d8   : > { %v10399_v16 = vpop.f32.mrf.mxu0  ;;  %10718 = vmatmul.mubr.msk.f32.gmra.mxu0 %vm313_vm0, %v13247_v24 }
 0x3d9   : > { %v14390_v32 = vadd.f32 %v10399_v16, %v5442_v57  ;;  %v10322_v41 = vpop.f32.mrf.mxu1  ;;  %10641 = vmatmul.mubr.msk.f32.gmra.mxu1 %vm313_vm0, %v15875_v47  ;;  %10720 = vmatprep.mubr.msk.f32.mxu0 %vm313_vm0, %v13235_v23  ;;  %v15881_v47 = vld [vmem:[#allocation75_spill] sm:$0xff] }
 0x3da   : > { %v5591_v49 = vpop.f32.mrf.mxu0  ;;  %10643 = vmatprep.mubr.msk.f32.mxu1 %vm313_vm0, %v15876_v4 }
 0x3db   : > { %v5260_v58 = vpop.f32.mrf.mxu1  ;;  %v15882_v49 = vld [vmem:[#allocation76_spill] sm:$0xff] }
 0x3dc   : > { %v5443_v22 = vadd.f32 %v5260_v58, %v14145_v48  ;;  %v10402_v59 = vpop.f32.mrf.mxu0  ;;  %10721 = vmatmul.mubr.f32.gmra.mxu0 %v15830_v14  ;;  %v15883_v58 = vld [vmem:[#allocation97_spill] sm:$0xff] }
 0x3dd   : > { %v10325_v24 = vpop.f32.mrf.mxu1  ;;  %10644 = vmatmul.mubr.msk.f32.gmra.mxu1 %vm313_vm0, %v15877_v31  ;;  %10723 = vmatprep.mubr.msk.f32.mxu0 %vm313_vm0, %v13261_v33  ;;  %v15885_v31 = vld [vmem:[#allocation71_spill] sm:$0xff] }
 0x3de   : > { %v5445_v10 = vadd.f32 %v10325_v24, %v14149_v54  ;;  %v5600_v23 = vpop.f32.mrf.mxu0  ;;  %10646 = vmatprep.mubr.msk.f32.mxu1 %vm313_vm0, %v15878_v25  ;;  %v15884_v24 = vld [vmem:[#allocation79_spill] sm:$0xff]  ;;  %v15887_v25 = vld [vmem:[#allocation80_spill] sm:$0xff] }
 0x3df   : > { %v14407_v0 = vadd.f32 %v5600_v23, %v5443_v22  ;;  %v5269_v27 = vpop.f32.mrf.mxu1 }
 0x3e0   : > { %v5444_v48 = vadd.f32 %v5269_v27, %v14157_v7  ;;  %v10405_v9 = vpop.f32.mrf.mxu0  ;;  %10724 = vmatmul.mubr.msk.f32.gmra.mxu0 %vm313_vm0, %v13291_v11 }
 0x3e1   : > { %v14412_v19 = vadd.f32 %v10405_v9, %v5445_v10  ;;  %v10328_v57 = vpop.f32.mrf.mxu1  ;;  %10647 = vmatmul.mubr.msk.f32.gmra.mxu1 %vm313_vm0, %v15879_v39  ;;  %10726 = vmatprep.mubr.f32.mxu0 %v15830_v14  ;;  %v15886_v10 = vld [vmem:[#allocation113_spill] sm:$0xff]  ;;  %v15888_v9 = vld [vmem:[#allocation114_spill] sm:$0xff] }
 0x3e2   : > { %v5446_v33 = vadd.f32 %v10328_v57, %v14161_v3  ;;  %v5609_v54 = vpop.f32.mrf.mxu0  ;;  %10649 = vmatprep.mubr.msk.f32.mxu1 %vm313_vm0, %v15880_v2 }
 0x3e3   : > { %v14420_v18 = vadd.f32 %v5609_v54, %v5444_v48  ;;  %v5279_v7 = vpop.f32.mrf.mxu1 }
 0x3e4   : > { %v10408_v16 = vpop.f32.mrf.mxu0  ;;  %10727 = vmatmul.mubr.msk.f32.gmra.mxu0 %vm313_vm0, %v13317_v6  ;;  %v15890_v7 = vld [vmem:[#allocation82_spill] sm:$0xff] }
 0x3e5   : > { %v14424_v11 = vadd.f32 %v10408_v16, %v5446_v33  ;;  %v10331_v41 = vpop.f32.mrf.mxu1  ;;  %10650 = vmatmul.mubr.msk.f32.gmra.mxu1 %vm313_vm0, %v15881_v47  ;;  %10729 = vmatprep.mubr.msk.f32.mxu0 %vm313_vm0, %v15831_v34  ;;  %v15889_v33 = vld [vmem:[#allocation74_spill] sm:$0xff]  ;;  %v15891_v16 = vld [vmem:[#allocation115_spill] sm:$0xff] }
 0x3e6   : > { %v5619_v3 = vpop.f32.mrf.mxu0  ;;  %10652 = vmatprep.mubr.msk.f32.mxu1 %vm313_vm0, %v15882_v49 }
 0x3e7   : > { %v5288_v4 = vpop.f32.mrf.mxu1  ;;  %v15892_v3 = vld [vmem:[#allocation83_spill] sm:$0xff] }
 0x3e8   : > { %v5447_v22 = vadd.f32 %v5288_v4, %v15883_v58  ;;  %v10411_v59 = vpop.f32.mrf.mxu0  ;;  %10730 = vmatmul.mubr.f32.gmra.mxu0 %v15830_v14 }
 0x3e9   : > { %v10334_v6 = vpop.f32.mrf.mxu1  ;;  %10653 = vmatmul.mubr.msk.f32.gmra.mxu1 %vm313_vm0, %v15884_v24  ;;  %10732 = vmatprep.mubr.msk.f32.mxu0 %vm313_vm0, %v15885_v31  ;;  %v15894_v24 = vld [vmem:[#allocation85_spill] sm:$0xff] }
 0x3ea   : > { %v5449_v23 = vadd.f32 %v10334_v6, %v15886_v10  ;;  %v5628_v34 = vpop.f32.mrf.mxu0  ;;  %10655 = vmatprep.mubr.msk.f32.mxu1 %vm313_vm0, %v15887_v25  ;;  %v15895_v31 = vld [vmem:[#allocation77_spill] sm:$0xff]  ;;  %v15897_v25 = vld [vmem:[#allocation116_spill] sm:$0xff] }
 0x3eb   : > { %v14441_v27 = vadd.f32 %v5628_v34, %v5447_v22  ;;  %v5297_v48 = vpop.f32.mrf.mxu1  ;;  %v15893_v22 = vld [vmem:[#allocation78_spill] sm:$0xff] }
 0x3ec   : > { %v5448_v57 = vadd.f32 %v5297_v48, %v15888_v9  ;;  %v10414_v39 = vpop.f32.mrf.mxu0  ;;  %10733 = vmatmul.mubr.msk.f32.gmra.mxu0 %vm313_vm0, %v15889_v33  ;;  %v15899_v33 = vld [vmem:[#allocation117_spill] sm:$0xff] }
 0x3ed   : > { %v14446_v54 = vadd.f32 %v10414_v39, %v5449_v23  ;;  %v10337_v2 = vpop.f32.mrf.mxu1  ;;  %10656 = vmatmul.mubr.msk.f32.gmra.mxu1 %vm313_vm0, %v15890_v7  ;;  %10735 = vmatprep.mubr.f32.mxu0 %v15830_v14  ;;  %v15896_v23 = vld [vmem:[#allocation86_spill] sm:$0xff]  ;;  %v15898_v39 = vld [vmem:[#allocation89_spill] sm:$0xff] }
 0x3ee   : > { %v5450_v41 = vadd.f32 %v10337_v2, %v15891_v16  ;;  %v5637_v47 = vpop.f32.mrf.mxu0  ;;  %10658 = vmatprep.mubr.msk.f32.mxu1 %vm313_vm0, %v15892_v3  ;;  %v15900_v16 = vld [vmem:[#allocation90_spill] sm:$0xff] }
 0x3ef   : > { %v14454_v49 = vadd.f32 %v5637_v47, %v5448_v57  ;;  %v5307_v4 = vpop.f32.mrf.mxu1 }
 0x3f0   : > { %v10417_v58 = vpop.f32.mrf.mxu0  ;;  %10736 = vmatmul.mubr.msk.f32.gmra.mxu0 %vm313_vm0, %v15893_v22 }
 0x3f1   : > { %v14458_v59 = vadd.f32 %v10417_v58, %v5450_v41  ;;  %v10340_v6 = vpop.f32.mrf.mxu1  ;;  %10659 = vmatmul.mubr.msk.f32.gmra.mxu1 %vm313_vm0, %v15894_v24  ;;  %10738 = vmatprep.mubr.msk.f32.mxu0 %vm313_vm0, %v15895_v31  ;;  %v15901_v58 = vld [vmem:[#allocation84_spill] sm:$0xff] }
 0x3f2   : > { %v5647_v10 = vpop.f32.mrf.mxu0  ;;  %10661 = vmatprep.mubr.msk.f32.mxu1 %vm313_vm0, %v15896_v23  ;;  %v15902_v24 = vld [vmem:[#allocation92_spill] sm:$0xff] }
 0x3f3   : > { %v5316_v34 = vpop.f32.mrf.mxu1  ;;  %v15903_v10 = vld [vmem:[#allocation93_spill] sm:$0xff] }
 0x3f4   : > { %v5451_v48 = vadd.f32 %v5316_v34, %v15897_v25  ;;  %v10420_v9 = vpop.f32.mrf.mxu0  ;;  %10739 = vmatmul.mubr.f32.gmra.mxu0 %v15830_v14 }
 0x3f5   : > { %v10343_v57 = vpop.f32.mrf.mxu1  ;;  %10662 = vmatmul.mubr.msk.f32.gmra.mxu1 %vm313_vm0, %v15898_v39  ;;  %10741 = vmatprep.mubr.msk.f32.mxu0 %vm313_vm0, %v15850_v38  ;;  %v15904_v9 = vld [vmem:[#allocation94_spill] sm:$0xff] }
 0x3f6   : > { %v5453_v2 = vadd.f32 %v10343_v57, %v15899_v33  ;;  %v5656_v7 = vpop.f32.mrf.mxu0  ;;  %10664 = vmatprep.mubr.msk.f32.mxu1 %vm313_vm0, %v15900_v16  ;;  %v15905_v57 = vld [vmem:[#allocation96_spill] sm:$0xff] }
 0x3f7   : > { %v14475_v41 = vadd.f32 %v5656_v7, %v5451_v48  ;;  %v5325_v47 = vpop.f32.mrf.mxu1  ;;  %v15906_v7 = vld [vmem:[#allocation13_spill] sm:$0xff] }
 0x3f8   : > { %v5452_v3 = vadd.f32 %v5325_v47, %v14217_v44  ;;  %v10423_v4 = vpop.f32.mrf.mxu0  ;;  %10742 = vmatmul.mubr.msk.f32.gmra.mxu0 %vm313_vm0, %v15901_v58  ;;  %v15907_v47 = vld [vmem:[#allocation14_spill] sm:$0xff] }
 0x3f9   : > { %v14480_v22 = vadd.f32 %v10423_v4, %v5453_v2  ;;  %v10346_v6 = vpop.f32.mrf.mxu1  ;;  %10665 = vmatmul.mubr.msk.f32.gmra.mxu1 %vm313_vm0, %v15902_v24  ;;  %10744 = vmatprep.mubr.f32.mxu0 %v15830_v14 }
 0x3fa   : > { %v5454_v38 = vadd.f32 %v10346_v6, %v14221_v43  ;;  %v5665_v31 = vpop.f32.mrf.mxu0  ;;  %10667 = vmatprep.mubr.msk.f32.mxu1 %vm313_vm0, %v15903_v10 }
 0x3fb   : > { %v14488_v23 = vadd.f32 %v5665_v31, %v5452_v3  ;;  %v5335_v44 = vpop.f32.mrf.mxu1  ;;  %v15909_v31 = vld [vmem:[#allocation62_spill] sm:$0xff] }
 0x3fc   : > { %v10426_v34 = vpop.f32.mrf.mxu0  ;;  %10745 = vmatmul.mubr.msk.f32.gmra.mxu0 %vm313_vm0, %v15855_v1 }
 0x3fd   : > { %v14492_v25 = vadd.f32 %v10426_v34, %v5454_v38  ;;  %v10349_v48 = vpop.f32.mrf.mxu1  ;;  %10668 = vmatmul.mubr.msk.f32.gmra.mxu1 %vm313_vm0, %v15904_v9  ;;  %10747 = vmatprep.mubr.msk.f32.mxu0 %vm313_vm0, %v15799_v60  ;;  %v15908_v38 = vld [vmem:[#allocation91_spill] sm:$0xff]  ;;  %v15911_v9 = vld [vmem:[#allocation30_spill] sm:$0xff] }
 0x3fe   : > { %v5675_v43 = vpop.f32.mrf.mxu0  ;;  %10670 = vmatprep.mubr.msk.f32.mxu1 %vm313_vm0, %v15905_v57  ;;  %v15910_v48 = vld [vmem:[#allocation29_spill] sm:$0xff] }
 0x3ff   : > { %v5344_v39 = vpop.f32.mrf.mxu1 }
 0x400   : > { %v5455_v33 = vadd.f32 %v5344_v39, %v14235_v61  ;;  %v10429_v2 = vpop.f32.mrf.mxu0  ;;  %10748 = vmatmul.mubr.f32.gmra.mxu0 %v15830_v14 }
 0x401   : > { %v10352_v1 = vpop.f32.mrf.mxu1  ;;  %10671 = vmatmul.mubr.msk.f32.gmra.mxu1 %vm313_vm0, %v15906_v7  ;;  %10750 = vmatprep.mubr.msk.f32.mxu0 %vm313_vm0, %v13480_v30 }
 0x402   : > { %v5457_v16 = vadd.f32 %v10352_v1, %v14239_v20  ;;  %v5684_v60 = vpop.f32.mrf.mxu0  ;;  %10673 = vmatprep.mubr.msk.f32.mxu1 %vm313_vm0, %v15907_v47  ;;  %v15913_v1 = vld [vmem:[#allocation17_spill] sm:$0xff] }
 0x403   : > { %v14509_v3 = vadd.f32 %v5684_v60, %v5455_v33  ;;  %v5353_v4 = vpop.f32.mrf.mxu1  ;;  %v15912_v33 = vld [vmem:[#allocation63_spill] sm:$0xff] }
 0x404   : > { %v5456_v61 = vadd.f32 %v5353_v4, %v14247_v37  ;;  %v10432_v58 = vpop.f32.mrf.mxu0  ;;  %10751 = vmatmul.mubr.msk.f32.gmra.mxu0 %vm313_vm0, %v13513_v55 }
 0x405   : > { %v14514_v6 = vadd.f32 %v10432_v58, %v5457_v16  ;;  %v10355_v24 = vpop.f32.mrf.mxu1  ;;  %10674 = vmatmul.mubr.msk.f32.gmra.mxu1 %vm313_vm0, %v15908_v38  ;;  %10753 = vmatprep.mubr.f32.mxu0 %v15830_v14  ;;  %v15915_v58 = vld [vmem:[#allocation39_spill] sm:$0xff] }
 0x406   : > { %v5458_v30 = vadd.f32 %v10355_v24, %v14251_v53  ;;  %v5693_v20 = vpop.f32.mrf.mxu0  ;;  %10676 = vmatprep.mubr.msk.f32.mxu1 %vm313_vm0, %v15909_v31  ;;  %v15917_v31 = vld [vmem:[#allocation110_spill] sm:$0xff] }
 0x407   : > { %v14522_v10 = vadd.f32 %v5693_v20, %v5456_v61  ;;  %v5363_v37 = vpop.f32.mrf.mxu1  ;;  %v15914_v61 = vld [vmem:[#allocation16_spill] sm:$0xff] }
 0x408   : > { %v10435_v44 = vpop.f32.mrf.mxu0  ;;  %10754 = vmatmul.mubr.msk.f32.gmra.mxu0 %vm313_vm0, %v13538_v29  ;;  %v15916_v20 = vld [vmem:[#allocation32_spill] sm:$0xff] }
 0x409   : > { %v14526_v55 = vadd.f32 %v10435_v44, %v5458_v30  ;;  %v10358_v34 = vpop.f32.mrf.mxu1  ;;  %10677 = vmatmul.mubr.msk.f32.gmra.mxu1 %vm313_vm0, %v15910_v48  ;;  %10756 = vmatprep.mubr.msk.f32.mxu0 %vm313_vm0, %v15812_v13  ;;  %v15918_v48 = vld [vmem:[#allocation112_spill] sm:$0xff] }
 0x40a   : > { %v5703_v53 = vpop.f32.mrf.mxu0  ;;  %10679 = vmatprep.mubr.msk.f32.mxu1 %vm313_vm0, %v15911_v9  ;;  %v15919_v9 = vld [vmem:[#allocation50_spill] sm:$0xff] }
 0x40b   : > { %v5372_v43 = vpop.f32.mrf.mxu1 }
 0x40c   : > { %v5459_v57 = vadd.f32 %v5372_v43, %v14265_v21  ;;  %v10438_v39 = vpop.f32.mrf.mxu0  ;;  %10757 = vmatmul.mubr.f32.gmra.mxu0 %v15830_v14 }
 0x40d   : > { %v10361_v29 = vpop.f32.mrf.mxu1  ;;  %10680 = vmatmul.mubr.msk.f32.gmra.mxu1 %vm313_vm0, %v15912_v33  ;;  %10759 = vmatprep.mubr.msk.f32.mxu0 %vm313_vm0, %v13552_v62 }
 0x40e   : > { %v5461_v2 = vadd.f32 %v10361_v29, %v14269_v46  ;;  %v5712_v13 = vpop.f32.mrf.mxu0  ;;  %10682 = vmatprep.mubr.msk.f32.mxu1 %vm313_vm0, %v15913_v1 }
 0x40f   : > { %v14543_v7 = vadd.f32 %v5712_v13, %v5459_v57  ;;  %v5381_v16 = vpop.f32.mrf.mxu1 }
 0x410   : > { %v5460_v21 = vadd.f32 %v5381_v16, %v14277_v26  ;;  %v10441_v60 = vpop.f32.mrf.mxu0  ;;  %10760 = vmatmul.mubr.msk.f32.gmra.mxu0 %vm313_vm0, %v15856_v35 }
 0x411   : > { %v14548_v47 = vadd.f32 %v10441_v60, %v5461_v2  ;;  %v10364_v4 = vpop.f32.mrf.mxu1  ;;  %10683 = vmatmul.mubr.msk.f32.gmra.mxu1 %vm313_vm0, %v15914_v61  ;;  %10762 = vmatprep.mubr.f32.mxu0 %v15830_v14  ;;  %v15920_v2 = vld [vmem:[#allocation12_spill] sm:$0xff] }
 0x412   : > { %v5462_v62 = vadd.f32 %v10364_v4, %v14281_v5  ;;  %v5721_v46 = vpop.f32.mrf.mxu0  ;;  %10685 = vmatprep.mubr.msk.f32.mxu1 %vm313_vm0, %v15915_v58  ;;  %v15922_v4 = vld [vmem:[#allocation18_spill] sm:$0xff] }
 0x413   : > { %v14556_v24 = vadd.f32 %v5721_v46, %v5460_v21  ;;  %v5391_v26 = vpop.f32.mrf.mxu1 }
 0x414   : > { %v10444_v38 = vpop.f32.mrf.mxu0  ;;  %10763 = vmatmul.mubr.msk.f32.gmra.mxu0 %vm313_vm0, %v15857_v51  ;;  %v15923_v26 = vld [vmem:[#allocation43_spill] sm:$0xff] }
 0x415   : > { %v14560_v35 = vadd.f32 %v10444_v38, %v5462_v62  ;;  %v10367_v30 = vpop.f32.mrf.mxu1  ;;  %10686 = vmatmul.mubr.msk.f32.gmra.mxu1 %vm313_vm0, %v15916_v20  ;;  %10765 = vmatprep.mubr.msk.f32.mxu0 %vm313_vm0, %v15858_v40  ;;  %v15924_v20 = vld [vmem:[#allocation42_spill] sm:$0xff] }
 0x416   : > { %v5731_v5 = vpop.f32.mrf.mxu0  ;;  %10688 = vmatprep.mubr.msk.f32.mxu1 %vm313_vm0, %v15917_v31 }
 0x417   : > { %v5400_v37 = vpop.f32.mrf.mxu1 }
 0x418   : > { %v5463_v44 = vadd.f32 %v5400_v37, %v14295_v56  ;;  %v10447_v34 = vpop.f32.mrf.mxu0  ;;  %10766 = vmatmul.mubr.f32.gmra.mxu0 %v15830_v14 }
 0x419   : > { %v10370_v51 = vpop.f32.mrf.mxu1  ;;  %10689 = vmatmul.mubr.msk.f32.gmra.mxu1 %vm313_vm0, %v15918_v48  ;;  %10768 = vmatprep.mubr.msk.f32.mxu0 %vm313_vm0, %v14011_v15  ;;  %v15921_v15 = vld [vmem:[#allocation28_spill] sm:$0xff] }
 0x41a   : > { %v5465_v53 = vadd.f32 %v10370_v51, %v14300_v63  ;;  %v5740_v40 = vpop.f32.mrf.mxu0  ;;  %10691 = vmatprep.mubr.msk.f32.mxu1 %vm313_vm0, %v15919_v9 }
 0x41b   : > { %v14577_v43 = vadd.f32 %v5740_v40, %v5463_v44  ;;  %v5409_v57 = vpop.f32.mrf.mxu1 }
 0x41c   : > { %v5464_v56 = vadd.f32 %v5409_v57, %v14308_v12  ;;  %v10450_v39 = vpop.f32.mrf.mxu0  ;;  %10769 = vmatmul.mubr.msk.f32.gmra.mxu0 %vm313_vm0, %v14013_v52 }
 0x41d   : > { %v14582_v29 = vadd.f32 %v10450_v39, %v5465_v53  ;;  %v10373_v33 = vpop.f32.mrf.mxu1  ;;  %10692 = vmatmul.mubr.msk.f32.gmra.mxu1 %vm313_vm0, %v15920_v2  ;;  %10771 = vmatprep.mubr.f32.mxu0 %v15830_v14 }
 0x41e   : > { %v5466_v63 = vadd.f32 %v10373_v33, %v15921_v15  ;;  %v5749_v13 = vpop.f32.mrf.mxu0  ;;  %10694 = vmatprep.mubr.msk.f32.mxu1 %vm313_vm0, %v15920_v2  ;;  %v15928_v33 = vld [vmem:[#allocation20_spill] sm:$0xff] }
 0x41f   : > { %v14590_v1 = vadd.f32 %v5749_v13, %v5464_v56  ;;  %v5419_v12 = vpop.f32.mrf.mxu1  ;;  %v15927_v56 = vld [vmem:[#allocation19_spill] sm:$0xff]  ;;  %v15929_v13 = vld [vmem:[#allocation38_spill] sm:$0xff] }
 0x420   : > { %v10453_v16 = vpop.f32.mrf.mxu0  ;;  %10772 = vmatmul.mubr.f32.gmra.mxu0 %v15830_v14 }
 0x421   : > { %v14593_v52 = vadd.f32 %v10453_v16, %v5466_v63  ;;  %v10376_v21 = vpop.f32.mrf.mxu1  ;;  %10695 = vmatmul.mubr.msk.f32.gmra.mxu1 %vm313_vm0, %v15920_v2  ;;  %10774 = vmatprep.mubr.f32.mxu0 %v15830_v14 }
 0x422   : > { %v5759_v60 = vpop.f32.mrf.mxu0  ;;  %10785 = vmatprep.mubr.msk.f32.mxu1 %vm313_vm0, %v15922_v4  ;;  %v15930_v21 = vld [vmem:[#allocation35_spill] sm:$0xff] }
 0x423   : > { %v5428_v61 = vpop.f32.mrf.mxu1 }
 0x424   : > { %v5467_v62 = vadd.f32 %v5428_v61, %v14340_v42  ;;  %v10456_v46 = vpop.f32.mrf.mxu0  ;;  %10775 = vmatmul.mubr.f32.gmra.mxu0 %v15830_v14  ;;  %v15925_v14 = vld [vmem:[#allocation33_spill] sm:$0xff] }
 0x425   : > { %v10467_v58 = vpop.f32.mrf.mxu1  ;;  %10786 = vmatmul.mubr.msk.f32.vlgmr.msra.gmra.mxu1 %vm313_vm0, %v15923_v26 }
 0x426   : > { %v6109_v38 = vadd.f32 %v10467_v58, %v14344_v50  ;;  %v5768_v30 = vpop.f32.mrf.mxu0  ;;  %10788 = vmatprep.mubr.msk.f32.mxu1 %vm313_vm0, %v15924_v20  ;;  %v15926_v50 = vld [vmem:[#allocation34_spill] sm:$0xff]  ;;  %v15931_v58 = vld [vmem:[#allocation21_spill] sm:$0xff] }
 0x427   : > { %v14607_v5 = vadd.f32 %v5768_v30, %v5467_v62  ;;  %v5885_v31 = vpop.f32.mrf.mxu1 }
 0x428   : > { %v6108_v37 = vadd.f32 %v5885_v31, %v14352_v36  ;;  %v10547_v44 = vpop.f32.mrf.mxu0 }
 0x429   : > { %v14610_v42 = vadd.f32 %v10547_v44, %v6109_v38  ;;  %v10470_v34 = vpop.f32.mrf.mxu1  ;;  %10789 = vmatmul.mubr.msk.f32.gmra.mxu1 %vm313_vm0, %v15925_v14  ;;  %v15933_v44 = vld [vmem:[#allocation46_spill] sm:$0xff]  ;;  %v15934_v14 = vld [vmem:[#allocation40_spill] sm:$0xff] }
 0x42a   : > { %v6110_v51 = vadd.f32 %v10470_v34, %v14356_v8  ;;  %v6222_v48 = vpop.f32.mrf.mxu0  ;;  %10791 = vmatprep.mubr.msk.f32.mxu1 %vm313_vm0, %v15926_v50 }
 0x42b   : > { %v14617_v53 = vadd.f32 %v6222_v48, %v6108_v37  ;;  %v5895_v40 = vpop.f32.mrf.mxu1 }
 0x42c   : > { %v10550_v9 = vpop.f32.mrf.mxu0  ;;  %v15935_v40 = vld [vmem:[#allocation22_spill] sm:$0xff] }
 0x42d   : > { %v14619_v57 = vadd.f32 %v10550_v9, %v6110_v51  ;;  %v10473_v36 = vpop.f32.mrf.mxu1  ;;  %10792 = vmatmul.mubr.msk.f32.gmra.mxu1 %vm313_vm0, %v15927_v56  ;;  %v15936_v56 = vld [vmem:[#allocation53_spill] sm:$0xff] }
 0x42e   : > { %v6232_v39 = vpop.f32.mrf.mxu0  ;;  %10794 = vmatprep.mubr.msk.f32.mxu1 %vm313_vm0, %v15928_v33 }
 0x42f   : > { %v5904_v2 = vpop.f32.mrf.mxu1 }
 0x430   : > { %v6111_v8 = vadd.f32 %v5904_v2, %v14373_v28  ;;  %v10553_v15 = vpop.f32.mrf.mxu0 }
 0x431   : > { %v10476_v63 = vpop.f32.mrf.mxu1  ;;  %10795 = vmatmul.mubr.msk.f32.gmra.mxu1 %vm313_vm0, %v15929_v13 }
 0x432   : > { %v6113_v12 = vadd.f32 %v10476_v63, %v14378_v45  ;;  %v6241_v16 = vpop.f32.mrf.mxu0  ;;  %10797 = vmatprep.mubr.msk.f32.mxu1 %vm313_vm0, %v15930_v21  ;;  %v15932_v45 = vld [vmem:[#allocation49_spill] sm:$0xff]  ;;  %v15937_v63 = vld [vmem:[#allocation52_spill] sm:$0xff] }
 0x433   : > { %v14631_v60 = vadd.f32 %v6241_v16, %v6111_v8  ;;  %v5913_v4 = vpop.f32.mrf.mxu1 }
 0x434   : > { %v6112_v61 = vadd.f32 %v5913_v4, %v14386_v17  ;;  %v10556_v62 = vpop.f32.mrf.mxu0 }
 0x435   : > { %v14634_v46 = vadd.f32 %v10556_v62, %v6113_v12  ;;  %v10479_v28 = vpop.f32.mrf.mxu1  ;;  %10798 = vmatmul.mubr.msk.f32.gmra.mxu1 %vm313_vm0, %v15931_v58  ;;  %v15939_v62 = vld [vmem:[#allocation44_spill] sm:$0xff]  ;;  %v15940_v58 = vld [vmem:[#allocation23_spill] sm:$0xff] }
 0x436   : > { %v6114_v26 = vadd.f32 %v10479_v28, %v14390_v32  ;;  %v6250_v38 = vpop.f32.mrf.mxu0  ;;  %10800 = vmatprep.mubr.msk.f32.mxu1 %vm313_vm0, %v15932_v45 }
 0x437   : > { %v14641_v30 = vadd.f32 %v6250_v38, %v6112_v61  ;;  %v5923_v20 = vpop.f32.mrf.mxu1 }
 0x438   : > { %v10559_v31 = vpop.f32.mrf.mxu0  ;;  %v15941_v20 = vld [vmem:[#allocation24_spill] sm:$0xff] }
 0x439   : > { %v14643_v37 = vadd.f32 %v10559_v31, %v6114_v26  ;;  %v10482_v17 = vpop.f32.mrf.mxu1  ;;  %10801 = vmatmul.mubr.msk.f32.gmra.mxu1 %vm313_vm0, %v15933_v44  ;;  %v15942_v44 = vld [vmem:[#allocation25_spill] sm:$0xff] }
 0x43a   : > { %v6260_v34 = vpop.f32.mrf.mxu0  ;;  %10803 = vmatprep.mubr.msk.f32.mxu1 %vm313_vm0, %v15934_v14 }
 0x43b   : > { %v5932_v51 = vpop.f32.mrf.mxu1 }
 0x43c   : > { %v6115_v32 = vadd.f32 %v5932_v51, %v14407_v0  ;;  %v10562_v48 = vpop.f32.mrf.mxu0 }
 0x43d   : > { %v10485_v50 = vpop.f32.mrf.mxu1  ;;  %10804 = vmatmul.mubr.msk.f32.gmra.mxu1 %vm313_vm0, %v15935_v40 }
 0x43e   : > { %v6117_v9 = vadd.f32 %v10485_v50, %v14412_v19  ;;  %v6269_v36 = vpop.f32.mrf.mxu0  ;;  %10806 = vmatprep.mubr.msk.f32.mxu1 %vm313_vm0, %v15936_v56  ;;  %v15938_v19 = vld [vmem:[#allocation41_spill] sm:$0xff] }
 0x43f   : > { %v14655_v39 = vadd.f32 %v6269_v36, %v6115_v32  ;;  %v5941_v33 = vpop.f32.mrf.mxu1  ;;  %v15943_v50 = vld [vmem:[#allocation45_spill] sm:$0xff] }
 0x440   : > { %v6116_v2 = vadd.f32 %v5941_v33, %v14420_v18  ;;  %v10565_v8 = vpop.f32.mrf.mxu0 }
 0x441   : > { %v14658_v15 = vadd.f32 %v10565_v8, %v6117_v9  ;;  %v10488_v0 = vpop.f32.mrf.mxu1  ;;  %10807 = vmatmul.mubr.msk.f32.gmra.mxu1 %vm313_vm0, %v15937_v63  ;;  %v15945_v8 = vld [vmem:[#allocation37_spill] sm:$0xff]  ;;  %v15946_v63 = vld [vmem:[#allocation100_spill] sm:$0xff] }
 0x442   : > { %v6118_v13 = vadd.f32 %v10488_v0, %v14424_v11  ;;  %v6278_v12 = vpop.f32.mrf.mxu0  ;;  %10809 = vmatprep.mubr.msk.f32.mxu1 %vm313_vm0, %v15938_v19 }
 0x443   : > { %v14665_v16 = vadd.f32 %v6278_v12, %v6116_v2  ;;  %v5951_v21 = vpop.f32.mrf.mxu1 }
 0x444   : > { %v10568_v4 = vpop.f32.mrf.mxu0  ;;  %v15947_v21 = vld [vmem:[#allocation101_spill] sm:$0xff] }
 0x445   : > { %v14667_v61 = vadd.f32 %v10568_v4, %v6118_v13  ;;  %v10491_v18 = vpop.f32.mrf.mxu1  ;;  %10810 = vmatmul.mubr.msk.f32.gmra.mxu1 %vm313_vm0, %v15939_v62  ;;  %v15948_v62 = vld [vmem:[#allocation102_spill] sm:$0xff] }
 0x446   : > { %v6288_v28 = vpop.f32.mrf.mxu0  ;;  %10812 = vmatprep.mubr.msk.f32.mxu1 %vm313_vm0, %v15940_v58 }
 0x447   : > { %v5960_v26 = vpop.f32.mrf.mxu1 }
 0x448   : > { %v6119_v11 = vadd.f32 %v5960_v26, %v14441_v27  ;;  %v10571_v38 = vpop.f32.mrf.mxu0 }
 0x449   : > { %v10494_v45 = vpop.f32.mrf.mxu1  ;;  %10813 = vmatmul.mubr.msk.f32.gmra.mxu1 %vm313_vm0, %v15941_v20 }
 0x44a   : > { %v6121_v31 = vadd.f32 %v10494_v45, %v14446_v54  ;;  %v6297_v17 = vpop.f32.mrf.mxu0  ;;  %10815 = vmatprep.mubr.msk.f32.mxu1 %vm313_vm0, %v15942_v44  ;;  %v15944_v54 = vld [vmem:[#allocation47_spill] sm:$0xff] }
 0x44b   : > { %v14679_v34 = vadd.f32 %v6297_v17, %v6119_v11  ;;  %v5969_v14 = vpop.f32.mrf.mxu1  ;;  %v15949_v45 = vld [vmem:[#allocation87_spill] sm:$0xff] }
 0x44c   : > { %v6120_v51 = vadd.f32 %v5969_v14, %v14454_v49  ;;  %v10574_v32 = vpop.f32.mrf.mxu0 }
 0x44d   : > { %v14682_v48 = vadd.f32 %v10574_v32, %v6121_v31  ;;  %v10497_v27 = vpop.f32.mrf.mxu1  ;;  %10816 = vmatmul.mubr.msk.f32.gmra.mxu1 %vm313_vm0, %v15943_v50  ;;  %v15951_v32 = vld [vmem:[#allocation56_spill] sm:$0xff]  ;;  %v15952_v50 = vld [vmem:[#allocation26_spill] sm:$0xff] }
 0x44e   : > { %v6122_v40 = vadd.f32 %v10497_v27, %v14458_v59  ;;  %v6306_v9 = vpop.f32.mrf.mxu0  ;;  %10818 = vmatprep.mubr.msk.f32.mxu1 %vm313_vm0, %v15944_v54 }
 0x44f   : > { %v14689_v36 = vadd.f32 %v6306_v9, %v6120_v51  ;;  %v5979_v56 = vpop.f32.mrf.mxu1 }
 0x450   : > { %v10577_v33 = vpop.f32.mrf.mxu0  ;;  %v15953_v56 = vld [vmem:[#allocation27_spill] sm:$0xff] }
 0x451   : > { %v14691_v2 = vadd.f32 %v10577_v33, %v6122_v40  ;;  %v10500_v49 = vpop.f32.mrf.mxu1  ;;  %10819 = vmatmul.mubr.msk.f32.gmra.mxu1 %vm313_vm0, %v15945_v8  ;;  %v15954_v8 = vld [vmem:[#allocation48_spill] sm:$0xff] }
 0x452   : > { %v6316_v0 = vpop.f32.mrf.mxu0  ;;  %10821 = vmatprep.mubr.msk.f32.mxu1 %vm313_vm0, %v15946_v63 }
 0x453   : > { %v5988_v13 = vpop.f32.mrf.mxu1 }
 0x454   : > { %v6123_v59 = vadd.f32 %v5988_v13, %v14475_v41  ;;  %v10580_v12 = vpop.f32.mrf.mxu0 }
 0x455   : > { %v10503_v19 = vpop.f32.mrf.mxu1  ;;  %10822 = vmatmul.mubr.msk.f32.gmra.mxu1 %vm313_vm0, %v15947_v21 }
 0x456   : > { %v6125_v4 = vadd.f32 %v10503_v19, %v14480_v22  ;;  %v6325_v18 = vpop.f32.mrf.mxu0  ;;  %10824 = vmatprep.mubr.msk.f32.mxu1 %vm313_vm0, %v15948_v62  ;;  %v15950_v22 = vld [vmem:[#allocation59_spill] sm:$0xff]  ;;  %v15955_v19 = vld [vmem:[#allocation98_spill] sm:$0xff] }
 0x457   : > { %v14703_v28 = vadd.f32 %v6325_v18, %v6123_v59  ;;  %v5997_v58 = vpop.f32.mrf.mxu1 }
 0x458   : > { %v6124_v26 = vadd.f32 %v5997_v58, %v14488_v23  ;;  %v10583_v11 = vpop.f32.mrf.mxu0 }
 0x459   : > { %v14706_v38 = vadd.f32 %v10583_v11, %v6125_v4  ;;  %v10506_v41 = vpop.f32.mrf.mxu1  ;;  %10825 = vmatmul.mubr.msk.f32.gmra.mxu1 %vm313_vm0, %v15949_v45  ;;  %v15957_v11 = vld [vmem:[#allocation104_spill] sm:$0xff]  ;;  %v15958_v45 = vld [vmem:[#allocation105_spill] sm:$0xff] }
 0x45a   : > { %v6126_v20 = vadd.f32 %v10506_v41, %v14492_v25  ;;  %v6334_v31 = vpop.f32.mrf.mxu0  ;;  %10827 = vmatprep.mubr.msk.f32.mxu1 %vm313_vm0, %v15950_v22 }
 0x45b   : > { %v14713_v17 = vadd.f32 %v6334_v31, %v6124_v26  ;;  %v6007_v44 = vpop.f32.mrf.mxu1 }
 0x45c   : > { %v10586_v14 = vpop.f32.mrf.mxu0  ;;  %v15959_v44 = vld [vmem:[#allocation106_spill] sm:$0xff] }
 0x45d   : > { %v14715_v51 = vadd.f32 %v10586_v14, %v6126_v20  ;;  %v10509_v23 = vpop.f32.mrf.mxu1  ;;  %10828 = vmatmul.mubr.msk.f32.gmra.mxu1 %vm313_vm0, %v15951_v32  ;;  %v15960_v32 = vld [vmem:[#allocation107_spill] sm:$0xff] }
 0x45e   : > { %v6344_v27 = vpop.f32.mrf.mxu0  ;;  %10830 = vmatprep.mubr.msk.f32.mxu1 %vm313_vm0, %v15952_v50 }
 0x45f   : > { %v6016_v40 = vpop.f32.mrf.mxu1 }
 0x460   : > { %v6127_v25 = vadd.f32 %v6016_v40, %v14509_v3  ;;  %v10589_v9 = vpop.f32.mrf.mxu0 }
 0x461   : > { %v10512_v54 = vpop.f32.mrf.mxu1  ;;  %10831 = vmatmul.mubr.msk.f32.gmra.mxu1 %vm313_vm0, %v15953_v56 }
 0x462   : > { %v6129_v33 = vadd.f32 %v10512_v54, %v14514_v6  ;;  %v6353_v49 = vpop.f32.mrf.mxu0  ;;  %10833 = vmatprep.mubr.msk.f32.mxu1 %vm313_vm0, %v15954_v8  ;;  %v15956_v6 = vld [vmem:[#allocation103_spill] sm:$0xff]  ;;  %v15961_v54 = vld [vmem:[#allocation108_spill] sm:$0xff] }
 0x463   : > { %v14727_v0 = vadd.f32 %v6353_v49, %v6127_v25  ;;  %v6025_v63 = vpop.f32.mrf.mxu1 }
 0x464   : > { %v6128_v13 = vadd.f32 %v6025_v63, %v14522_v10  ;;  %v10592_v59 = vpop.f32.mrf.mxu0 }
 0x465   : > { %v14730_v12 = vadd.f32 %v10592_v59, %v6129_v33  ;;  %v10515_v3 = vpop.f32.mrf.mxu1  ;;  %10834 = vmatmul.mubr.msk.f32.gmra.mxu1 %vm313_vm0, %v15955_v19  ;;  %v15963_v59 = vld [vmem:[#allocation111_spill] sm:$0xff]  ;;  %v15964_v19 = vld [vmem:[#allocation81_spill] sm:$0xff] }
 0x466   : > { %v6130_v21 = vadd.f32 %v10515_v3, %v14526_v55  ;;  %v6362_v4 = vpop.f32.mrf.mxu0  ;;  %10836 = vmatprep.mubr.msk.f32.mxu1 %vm313_vm0, %v15956_v6 }
 0x467   : > { %v14737_v18 = vadd.f32 %v6362_v4, %v6128_v13  ;;  %v6035_v62 = vpop.f32.mrf.mxu1 }
 0x468   : > { %v10595_v58 = vpop.f32.mrf.mxu0  ;;  %v15965_v62 = vld [vmem:[#allocation88_spill] sm:$0xff] }
 0x469   : > { %v14739_v26 = vadd.f32 %v10595_v58, %v6130_v21  ;;  %v10518_v10 = vpop.f32.mrf.mxu1  ;;  %10837 = vmatmul.mubr.msk.f32.gmra.mxu1 %vm313_vm0, %v15957_v11  ;;  %v15966_v11 = vld [vmem:[#allocation69_spill] sm:$0xff] }
 0x46a   : > { %v6372_v41 = vpop.f32.mrf.mxu0  ;;  %10839 = vmatprep.mubr.msk.f32.mxu1 %vm313_vm0, %v15958_v45 }
 0x46b   : > { %v6044_v20 = vpop.f32.mrf.mxu1 }
 0x46c   : > { %v6131_v55 = vadd.f32 %v6044_v20, %v14543_v7  ;;  %v10598_v31 = vpop.f32.mrf.mxu0 }
 0x46d   : > { %v10521_v22 = vpop.f32.mrf.mxu1  ;;  %10840 = vmatmul.mubr.msk.f32.gmra.mxu1 %vm313_vm0, %v15959_v44 }
 0x46e   : > { %v6133_v14 = vadd.f32 %v10521_v22, %v14548_v47  ;;  %v6381_v23 = vpop.f32.mrf.mxu0  ;;  %10842 = vmatprep.mubr.msk.f32.mxu1 %vm313_vm0, %v15960_v32  ;;  %v15962_v47 = vld [vmem:[#allocation109_spill] sm:$0xff] }
 0x46f   : > { %v14751_v27 = vadd.f32 %v6381_v23, %v6131_v55  ;;  %v6053_v50 = vpop.f32.mrf.mxu1 }
 0x470   : > { %v6132_v40 = vadd.f32 %v6053_v50, %v14556_v24  ;;  %v10601_v25 = vpop.f32.mrf.mxu0 }
 0x471   : > { %v14754_v9 = vadd.f32 %v10601_v25, %v6133_v14  ;;  %v10524_v7 = vpop.f32.mrf.mxu1  ;;  %10843 = vmatmul.mubr.msk.f32.gmra.mxu1 %vm313_vm0, %v15961_v54 }
 0x472   : > { %v6134_v56 = vadd.f32 %v10524_v7, %v14560_v35  ;;  %v6390_v33 = vpop.f32.mrf.mxu0  ;;  %10845 = vmatprep.mubr.msk.f32.mxu1 %vm313_vm0, %v15962_v47 }
 0x473   : > { %v14761_v49 = vadd.f32 %v6390_v33, %v6132_v40  ;;  %v6063_v8 = vpop.f32.mrf.mxu1 }
 0x474   : > { %v10604_v63 = vpop.f32.mrf.mxu0 }
 0x475   : > { %v14763_v13 = vadd.f32 %v10604_v63, %v6134_v56  ;;  %v10527_v24 = vpop.f32.mrf.mxu1  ;;  %10846 = vmatmul.mubr.msk.f32.gmra.mxu1 %vm313_vm0, %v15963_v59 }
 0x476   : > { %v6400_v3 = vpop.f32.mrf.mxu0  ;;  %10848 = vmatprep.mubr.msk.f32.mxu1 %vm313_vm0, %v15964_v19 }
 0x477   : > { %v6072_v21 = vpop.f32.mrf.mxu1 }
 0x478   : > { %v6135_v35 = vadd.f32 %v6072_v21, %v14577_v43  ;;  %v10607_v4 = vpop.f32.mrf.mxu0 }
 0x479   : > { %v10530_v6 = vpop.f32.mrf.mxu1  ;;  %10849 = vmatmul.mubr.msk.f32.gmra.mxu1 %vm313_vm0, %v15965_v62 }
 0x47a   : > { %v6137_v58 = vadd.f32 %v10530_v6, %v14582_v29  ;;  %v6409_v10 = vpop.f32.mrf.mxu0  ;;  %10851 = vmatprep.mubr.msk.f32.mxu1 %vm313_vm0, %v15966_v11 }
 0x47b   : > { %v14775_v41 = vadd.f32 %v6409_v10, %v6135_v35  ;;  %v6081_v45 = vpop.f32.mrf.mxu1 }
 0x47c   : > { %v6136_v20 = vadd.f32 %v6081_v45, %v14590_v1  ;;  %v10610_v55 = vpop.f32.mrf.mxu0 }
 0x47d   : > { %v14778_v31 = vadd.f32 %v10610_v55, %v6137_v58  ;;  %v10533_v43 = vpop.f32.mrf.mxu1  ;;  %10852 = vmatmul.mubr.msk.f32.gmra.mxu1 %vm313_vm0, %v15966_v11 }
 0x47e   : > { %v6138_v22 = vadd.f32 %v10533_v43, %v14593_v52  ;;  %v6418_v44 = vpop.f32.mrf.mxu0  ;;  %10854 = vmatprep.mubr.msk.f32.mxu1 %vm313_vm0, %v15966_v11 }
 0x47f   : > { %v14785_v29 = vadd.f32 %v6418_v44, %v6136_v20  ;;  %v6091_v14 = vpop.f32.mrf.mxu1 }
 0x480   : > { %v10613_v23 = vpop.f32.mrf.mxu0 }
 0x481   : > { %v14787_v32 = vadd.f32 %v10613_v23, %v6138_v22  ;;  %v10536_v1 = vpop.f32.mrf.mxu1  ;;  %10855 = vmatmul.mubr.msk.f32.gmra.mxu1 %vm313_vm0, %v15966_v11 }
 0x482   : > { %v6428_v50 = vpop.f32.mrf.mxu0 }
 0x483   : > { %v6100_v40 = vpop.f32.mrf.mxu1 }
 0x484   : > { %v6139_v25 = vadd.f32 %v6100_v40, %v14607_v5  ;;  %v10616_v7 = vpop.f32.mrf.mxu0 }
 0x485   : > { %v10627_v52 = vpop.f32.mrf.mxu1 }
 0x486   : > { %v6775_v54 = vadd.f32 %v10627_v52, %v14610_v42  ;;  %v6437_v56 = vpop.f32.mrf.mxu0 }
 0x487   : > { %v14793_v33 = vadd.f32 %v6437_v56, %v6139_v25  ;;  %v6551_v47 = vpop.f32.mrf.mxu1 }
 0x488   : > { %v6774_v8 = vadd.f32 %v6551_v47, %v14617_v53  ;;  %v10707_v63 = vpop.f32.mrf.mxu0 }
 0x489   : > { %v14796_v24 = vadd.f32 %v10707_v63, %v6775_v54  ;;  %v10630_v59 = vpop.f32.mrf.mxu1 }
 0x48a   : > { %v6776_v3 = vadd.f32 %v10630_v59, %v14619_v57  ;;  %v6877_v19 = vpop.f32.mrf.mxu0 }
 0x48b   : > { %v14799_v21 = vadd.f32 %v6877_v19, %v6774_v8  ;;  %v6561_v5 = vpop.f32.mrf.mxu1 }
 0x48c   : > { %v10710_v35 = vpop.f32.mrf.mxu0 }
 0x48d   : > { %v14801_v4 = vadd.f32 %v10710_v35, %v6776_v3  ;;  %v10633_v42 = vpop.f32.mrf.mxu1 }
 0x48e   : > { %v6887_v6 = vpop.f32.mrf.mxu0 }
 0x48f   : > { %v6570_v62 = vpop.f32.mrf.mxu1 }
 0x490   : > { %v6777_v58 = vadd.f32 %v6570_v62, %v14631_v60  ;;  %v10713_v10 = vpop.f32.mrf.mxu0 }
 0x491   : > { %v10636_v53 = vpop.f32.mrf.mxu1 }
 0x492   : > { %v6779_v11 = vadd.f32 %v10636_v53, %v14634_v46  ;;  %v6896_v45 = vpop.f32.mrf.mxu0 }
 0x493   : > { %v14805_v20 = vadd.f32 %v6896_v45, %v6777_v58  ;;  %v6579_v57 = vpop.f32.mrf.mxu1 }
 0x494   : > { %v6778_v55 = vadd.f32 %v6579_v57, %v14641_v30  ;;  %v10716_v43 = vpop.f32.mrf.mxu0 }
 0x495   : > { %v14808_v22 = vadd.f32 %v10716_v43, %v6779_v11  ;;  %v10639_v44 = vpop.f32.mrf.mxu1 }
 0x496   : > { %v6780_v14 = vadd.f32 %v10639_v44, %v14643_v37  ;;  %v6905_v23 = vpop.f32.mrf.mxu0 }
 0x497   : > { %v14811_v1 = vadd.f32 %v6905_v23, %v6778_v55  ;;  %v6589_v60 = vpop.f32.mrf.mxu1 }
 0x498   : > { %v10719_v50 = vpop.f32.mrf.mxu0 }
 0x499   : > { %v14813_v40 = vadd.f32 %v10719_v50, %v6780_v14  ;;  %v10642_v46 = vpop.f32.mrf.mxu1 }
 0x49a   : > { %v6915_v25 = vpop.f32.mrf.mxu0 }
 0x49b   : > { %v6598_v7 = vpop.f32.mrf.mxu1 }
 0x49c   : > { %v6781_v52 = vadd.f32 %v6598_v7, %v14655_v39  ;;  %v10722_v54 = vpop.f32.mrf.mxu0 }
 0x49d   : > { %v10645_v30 = vpop.f32.mrf.mxu1 }
 0x49e   : > { %v6783_v56 = vadd.f32 %v10645_v30, %v14658_v15  ;;  %v6924_v47 = vpop.f32.mrf.mxu0 }
 0x49f   : > { %v14817_v8 = vadd.f32 %v6924_v47, %v6781_v52  ;;  %v6607_v37 = vpop.f32.mrf.mxu1 }
 0x4a0   : > { %v6782_v63 = vadd.f32 %v6607_v37, %v14665_v16  ;;  %v10725_v59 = vpop.f32.mrf.mxu0 }
 0x4a1   : > { %v14820_v3 = vadd.f32 %v10725_v59, %v6783_v56  ;;  %v10648_v19 = vpop.f32.mrf.mxu1 }
 0x4a2   : > { %v6784_v5 = vadd.f32 %v10648_v19, %v14667_v61  ;;  %v6933_v35 = vpop.f32.mrf.mxu0 }
 0x4a3   : > { %v14823_v42 = vadd.f32 %v6933_v35, %v6782_v63  ;;  %v6617_v39 = vpop.f32.mrf.mxu1 }
 0x4a4   : > { %v10728_v6 = vpop.f32.mrf.mxu0 }
 0x4a5   : > { %v14825_v62 = vadd.f32 %v10728_v6, %v6784_v5  ;;  %v10651_v15 = vpop.f32.mrf.mxu1 }
 0x4a6   : > { %v6943_v58 = vpop.f32.mrf.mxu0 }
 0x4a7   : > { %v6626_v10 = vpop.f32.mrf.mxu1 }
 0x4a8   : > { %v6785_v53 = vadd.f32 %v6626_v10, %v14679_v34  ;;  %v10731_v11 = vpop.f32.mrf.mxu0 }
 0x4a9   : > { %v10654_v16 = vpop.f32.mrf.mxu1 }
 0x4aa   : > { %v6787_v45 = vadd.f32 %v10654_v16, %v14682_v48  ;;  %v6952_v57 = vpop.f32.mrf.mxu0 }
 0x4ab   : > { %v14829_v55 = vadd.f32 %v6952_v57, %v6785_v53  ;;  %v6635_v61 = vpop.f32.mrf.mxu1 }
 0x4ac   : > { %v6786_v43 = vadd.f32 %v6635_v61, %v14689_v36  ;;  %v10734_v44 = vpop.f32.mrf.mxu0 }
 0x4ad   : > { %v14832_v14 = vadd.f32 %v10734_v44, %v6787_v45  ;;  %v10657_v23 = vpop.f32.mrf.mxu1 }
 0x4ae   : > { %v6788_v60 = vadd.f32 %v10657_v23, %v14691_v2  ;;  %v6961_v50 = vpop.f32.mrf.mxu0 }
 0x4af   : > { %v14835_v46 = vadd.f32 %v6961_v50, %v6786_v43  ;;  %v6645_v34 = vpop.f32.mrf.mxu1 }
 0x4b0   : > { %v10737_v25 = vpop.f32.mrf.mxu0 }
 0x4b1   : > { %v14837_v7 = vadd.f32 %v10737_v25, %v6788_v60  ;;  %v10660_v48 = vpop.f32.mrf.mxu1 }
 0x4b2   : > { %v6971_v52 = vpop.f32.mrf.mxu0 }
 0x4b3   : > { %v6654_v54 = vpop.f32.mrf.mxu1 }
 0x4b4   : > { %v6789_v30 = vadd.f32 %v6654_v54, %v14703_v28  ;;  %v10740_v56 = vpop.f32.mrf.mxu0 }
 0x4b5   : > { %v10663_v36 = vpop.f32.mrf.mxu1 }
 0x4b6   : > { %v6791_v47 = vadd.f32 %v10663_v36, %v14706_v38  ;;  %v6980_v37 = vpop.f32.mrf.mxu0 }
 0x4b7   : > { %v14841_v63 = vadd.f32 %v6980_v37, %v6789_v30  ;;  %v6663_v2 = vpop.f32.mrf.mxu1 }
 0x4b8   : > { %v6790_v59 = vadd.f32 %v6663_v2, %v14713_v17  ;;  %v10743_v19 = vpop.f32.mrf.mxu0 }
 0x4b9   : > { %v14844_v5 = vadd.f32 %v10743_v19, %v6791_v47  ;;  %v10666_v35 = vpop.f32.mrf.mxu1 }
 0x4ba   : > { %v6792_v39 = vadd.f32 %v10666_v35, %v14715_v51  ;;  %v6989_v6 = vpop.f32.mrf.mxu0 }
 0x4bb   : > { %v14847_v15 = vadd.f32 %v6989_v6, %v6790_v59  ;;  %v6673_v28 = vpop.f32.mrf.mxu1 }
 0x4bc   : > { %v10746_v58 = vpop.f32.mrf.mxu0 }
 0x4bd   : > { %v14849_v10 = vadd.f32 %v10746_v58, %v6792_v39  ;;  %v10669_v38 = vpop.f32.mrf.mxu1 }
 0x4be   : > { %v6999_v53 = vpop.f32.mrf.mxu0 }
 0x4bf   : > { %v6682_v11 = vpop.f32.mrf.mxu1 }
 0x4c0   : > { %v6793_v16 = vadd.f32 %v6682_v11, %v14727_v0  ;;  %v10749_v45 = vpop.f32.mrf.mxu0 }
 0x4c1   : > { %v10672_v17 = vpop.f32.mrf.mxu1 }
 0x4c2   : > { %v6795_v57 = vadd.f32 %v10672_v17, %v14730_v12  ;;  %v7008_v61 = vpop.f32.mrf.mxu0 }
 0x4c3   : > { %v14853_v43 = vadd.f32 %v7008_v61, %v6793_v16  ;;  %v6691_v51 = vpop.f32.mrf.mxu1 }
 0x4c4   : > { %v6794_v44 = vadd.f32 %v6691_v51, %v14737_v18  ;;  %v10752_v23 = vpop.f32.mrf.mxu0 }
 0x4c5   : > { %v14856_v60 = vadd.f32 %v10752_v23, %v6795_v57  ;;  %v10675_v50 = vpop.f32.mrf.mxu1 }
 0x4c6   : > { %v6796_v34 = vadd.f32 %v10675_v50, %v14739_v26  ;;  %v7017_v25 = vpop.f32.mrf.mxu0 }
 0x4c7   : > { %v14859_v48 = vadd.f32 %v7017_v25, %v6794_v44  ;;  %v6701_v0 = vpop.f32.mrf.mxu1 }
 0x4c8   : > { %v10755_v52 = vpop.f32.mrf.mxu0 }
 0x4c9   : > { %v14861_v54 = vadd.f32 %v10755_v52, %v6796_v34  ;;  %v10678_v12 = vpop.f32.mrf.mxu1 }
 0x4ca   : > { %v7027_v30 = vpop.f32.mrf.mxu0 }
 0x4cb   : > { %v6710_v56 = vpop.f32.mrf.mxu1 }
 0x4cc   : > { %v6797_v36 = vadd.f32 %v6710_v56, %v14751_v27  ;;  %v10758_v47 = vpop.f32.mrf.mxu0 }
 0x4cd   : > { %v10681_v18 = vpop.f32.mrf.mxu1 }
 0x4ce   : > { %v6799_v37 = vadd.f32 %v10681_v18, %v14754_v9  ;;  %v7036_v2 = vpop.f32.mrf.mxu0 }
 0x4cf   : > { %v14865_v59 = vadd.f32 %v7036_v2, %v6797_v36  ;;  %v6719_v26 = vpop.f32.mrf.mxu1 }
 0x4d0   : > { %v6798_v19 = vadd.f32 %v6719_v26, %v14761_v49  ;;  %v10761_v35 = vpop.f32.mrf.mxu0 }
 0x4d1   : > { %v14868_v39 = vadd.f32 %v10761_v35, %v6799_v37  ;;  %v10684_v6 = vpop.f32.mrf.mxu1 }
 0x4d2   : > { %v6800_v28 = vadd.f32 %v10684_v6, %v14763_v13  ;;  %v7045_v58 = vpop.f32.mrf.mxu0 }
 0x4d3   : > { %v14871_v38 = vadd.f32 %v7045_v58, %v6798_v19  ;;  %v6729_v27 = vpop.f32.mrf.mxu1 }
 0x4d4   : > { %v10764_v53 = vpop.f32.mrf.mxu0 }
 0x4d5   : > { %v14873_v11 = vadd.f32 %v10764_v53, %v6800_v28  ;;  %v10687_v9 = vpop.f32.mrf.mxu1  ;;  %v10959_v53 = vld [vmem:[%s11322_s13 + $0x8] sm:$0xff] }
 0x4d6   : > { %v7055_v16 = vpop.f32.mrf.mxu0 }
 0x4d7   : > { %v6738_v45 = vpop.f32.mrf.mxu1 }
 0x4d8   : > { %v6801_v17 = vadd.f32 %v6738_v45, %v14775_v41  ;;  %v10767_v57 = vpop.f32.mrf.mxu0 }
 0x4d9   : > { %v10690_v49 = vpop.f32.mrf.mxu1 }
 0x4da   : > { %v6803_v61 = vadd.f32 %v10690_v49, %v14778_v31  ;;  %v7064_v51 = vpop.f32.mrf.mxu0  ;;  %v10961_v49 = vld [vmem:[%s11322_s13 + $0x10] sm:$0xff] }
 0x4db   : > { %v14877_v44 = vadd.f32 %v7064_v51, %v6801_v17  ;;  %v6747_v13 = vpop.f32.mrf.mxu1 }
 0x4dc   : > { %v6802_v23 = vadd.f32 %v6747_v13, %v14785_v29  ;;  %v10770_v50 = vpop.f32.mrf.mxu0 }
 0x4dd   : > { %v14880_v34 = vadd.f32 %v10770_v50, %v6803_v61  ;;  %v10693_v25 = vpop.f32.mrf.mxu1 }
 0x4de   : > { %v6804_v0 = vadd.f32 %v10693_v25, %v14787_v32  ;;  %v7073_v52 = vpop.f32.mrf.mxu0  ;;  %v14893_v32 = vld [vmem:[%s15113_s4] ss:$0 sm:$0xff] }
 0x4df   : > { %v14883_v12 = vadd.f32 %v7073_v52, %v6802_v23  ;;  %v6757_v41 = vpop.f32.mrf.mxu1 }
 0x4e0   : > { %v10773_v30 = vpop.f32.mrf.mxu0 }
 0x4e1   : > { %v14885_v56 = vadd.f32 %v10773_v30, %v6804_v0  ;;  %v10696_v31 = vpop.f32.mrf.mxu1 }
 0x4e2   : > { %v7083_v36 = vpop.f32.mrf.mxu0  ;;  %v10962_v31 = vld [vmem:[%s11322_s13 + $0x18] sm:$0xff] }
 0x4e3   : > { %v6766_v47 = vpop.f32.mrf.mxu1 }
 0x4e4   : > { %v14888_v18 = vadd.f32 %v6766_v47, %v14793_v33  ;;  %v10776_v29 = vpop.f32.mrf.mxu0 }
 0x4e5   : > { %v10787_v37 = vpop.f32.mrf.mxu1 }
 0x4e6   : > { %v7427_v2 = vadd.f32 %v10787_v37, %v14796_v24 }
 0x4e7   : > { %v7203_v26 = vpop.f32.mrf.mxu1 }
 0x4e8   : > { %v7466_v19 = vadd.f32 %v14893_v32, %v7427_v2  ;;  %v7426_v35 = vadd.f32 %v7203_v26, %v14799_v21  ;;  %v10960_v21 = vld [vmem:[%s11322_s13] sm:$0xff] }
 0x4e9   : > { %v10790_v6 = vpop.f32.mrf.mxu1 }
 0x4ea   : > { %v7498_v28 = vmul.f32 0.5, %v7466_v19  ;;  %v7465_v33 = vadd.f32 %v14893_v32, %v7426_v35  ;;  %v7428_v58 = vadd.f32 %v10790_v6, %v14801_v4  ;;  %v10964_v35 = vld [vmem:[%s11322_s13 + $0x20] sm:$0xff] }
 0x4eb   : > { %v7213_v27 = vpop.f32.mrf.mxu1 }
 0x4ec   : > { %v7530_v9 = vadd.f32 %v10959_v53, %v7498_v28  ;;  %v7497_v16 = vmul.f32 0.5, %v7465_v33  ;;  %v7467_v45 = vadd.f32 %v14893_v32, %v7428_v58 }
 0x4ed   : > { %v10793_v24 = vpop.f32.mrf.mxu1 }
 0x4ee   : > { %7562 = vst.msk [vmem:[%s14904_s6 + $0x8] sm:$0xff] %vm313_vm0, %v7530_v9  ;;  %v7529_v17 = vadd.f32 %v10960_v21, %v7497_v16  ;;  %v7499_v57 = vmul.f32 0.5, %v7467_v45 }
 0x4ef   : > { %v7222_v4 = vpop.f32.mrf.mxu1 }
 0x4f0   : > { %7561 = vst.msk [vmem:[%s14904_s6] sm:$0xff] %vm313_vm0, %v7529_v17  ;;  %v7531_v61 = vadd.f32 %v10961_v49, %v7499_v57  ;;  %v7429_v51 = vadd.f32 %v7222_v4, %v14805_v20  ;;  %v10966_v4 = vld [vmem:[%s11322_s13 + $0x38] sm:$0xff] }
 0x4f1   : > { %v10796_v13 = vpop.f32.mrf.mxu1 }
 0x4f2   : > { %7563 = vst.msk [vmem:[%s14904_s6 + $0x10] sm:$0xff] %vm313_vm0, %v7531_v61  ;;  %v7468_v23 = vadd.f32 %v14893_v32, %v7429_v51  ;;  %v7431_v50 = vadd.f32 %v10796_v13, %v14808_v22  ;;  %v10963_v22 = vld [vmem:[%s11322_s13 + $0x28] sm:$0xff] }
 0x4f3   : > { %v7231_v25 = vpop.f32.mrf.mxu1 }
 0x4f4   : > { %v7500_v0 = vmul.f32 0.5, %v7468_v23  ;;  %v7470_v52 = vadd.f32 %v14893_v32, %v7431_v50  ;;  %v7430_v41 = vadd.f32 %v7231_v25, %v14811_v1 }
 0x4f5   : > { %v10799_v30 = vpop.f32.mrf.mxu1 }
 0x4f6   : > { %v7532_v20 = vadd.f32 %v10962_v31, %v7500_v0  ;;  %v7502_v36 = vmul.f32 0.5, %v7470_v52  ;;  %v7469_v47 = vadd.f32 %v14893_v32, %v7430_v41  ;;  %v7432_v29 = vadd.f32 %v10799_v30, %v14813_v40  ;;  %v10965_v40 = vld [vmem:[%s11322_s13 + $0x30] sm:$0xff]  ;;  %v10968_v0 = vld [vmem:[%s11322_s13 + $0x40] sm:$0xff] }
 0x4f7   : > { %v7241_v37 = vpop.f32.mrf.mxu1 }
 0x4f8   : > { %7564 = vst.msk [vmem:[%s14904_s6 + $0x18] sm:$0xff] %vm313_vm0, %v7532_v20  ;;  %v7534_v2 = vadd.f32 %v10963_v22, %v7502_v36  ;;  %v7501_v26 = vmul.f32 0.5, %v7469_v47  ;;  %v7471_v19 = vadd.f32 %v14893_v32, %v7432_v29 }
 0x4f9   : > { %v10802_v1 = vpop.f32.mrf.mxu1 }
 0x4fa   : > { %7566 = vst.msk [vmem:[%s14904_s6 + $0x28] sm:$0xff] %vm313_vm0, %v7534_v2  ;;  %v7533_v6 = vadd.f32 %v10964_v35, %v7501_v26  ;;  %v7503_v28 = vmul.f32 0.5, %v7471_v19  ;;  %v10970_v1 = vld [vmem:[%s11322_s13 + $0x58] sm:$0xff] }
 0x4fb   : > { %v7250_v33 = vpop.f32.mrf.mxu1 }
 0x4fc   : > { %7565 = vst.msk [vmem:[%s14904_s6 + $0x20] sm:$0xff] %vm313_vm0, %v7533_v6  ;;  %v7535_v58 = vadd.f32 %v10965_v40, %v7503_v28  ;;  %v7433_v27 = vadd.f32 %v7250_v33, %v14817_v8 }
 0x4fd   : > { %v10805_v53 = vpop.f32.mrf.mxu1 }
 0x4fe   : > { %7567 = vst.msk [vmem:[%s14904_s6 + $0x30] sm:$0xff] %vm313_vm0, %v7535_v58  ;;  %v7472_v9 = vadd.f32 %v14893_v32, %v7433_v27  ;;  %v7435_v16 = vadd.f32 %v10805_v53, %v14820_v3  ;;  %v10967_v3 = vld [vmem:[%s11322_s13 + $0x48] sm:$0xff]  ;;  %v10972_v53 = vld [vmem:[%s11322_s13 + $0x60] sm:$0xff] }
 0x4ff   : > { %v7259_v45 = vpop.f32.mrf.mxu1 }
 0x500   : > { %v7504_v24 = vmul.f32 0.5, %v7472_v9  ;;  %v7474_v21 = vadd.f32 %v14893_v32, %v7435_v16  ;;  %v7434_v17 = vadd.f32 %v7259_v45, %v14823_v42 }
 0x501   : > { %v10808_v57 = vpop.f32.mrf.mxu1 }
 0x502   : > { %v7536_v8 = vadd.f32 %v10966_v4, %v7504_v24  ;;  %v7506_v49 = vmul.f32 0.5, %v7474_v21  ;;  %v7473_v61 = vadd.f32 %v14893_v32, %v7434_v17  ;;  %v7436_v51 = vadd.f32 %v10808_v57, %v14825_v62  ;;  %v10969_v62 = vld [vmem:[%s11322_s13 + $0x50] sm:$0xff] }
 0x503   : > { %v7269_v13 = vpop.f32.mrf.mxu1 }
 0x504   : > { %7568 = vst.msk [vmem:[%s14904_s6 + $0x38] sm:$0xff] %vm313_vm0, %v7536_v8  ;;  %v7538_v23 = vadd.f32 %v10967_v3, %v7506_v49  ;;  %v7505_v50 = vmul.f32 0.5, %v7473_v61  ;;  %v7475_v25 = vadd.f32 %v14893_v32, %v7436_v51  ;;  %v10974_v3 = vld [vmem:[%s11322_s13 + $0x78] sm:$0xff] }
 0x505   : > { %v10811_v42 = vpop.f32.mrf.mxu1 }
 0x506   : > { %7570 = vst.msk [vmem:[%s14904_s6 + $0x48] sm:$0xff] %vm313_vm0, %v7538_v23  ;;  %v7537_v52 = vadd.f32 %v10968_v0, %v7505_v50  ;;  %v7507_v41 = vmul.f32 0.5, %v7475_v25 }
 0x507   : > { %v7278_v30 = vpop.f32.mrf.mxu1 }
 0x508   : > { %7569 = vst.msk [vmem:[%s14904_s6 + $0x40] sm:$0xff] %vm313_vm0, %v7537_v52  ;;  %v7539_v31 = vadd.f32 %v10969_v62, %v7507_v41  ;;  %v7437_v20 = vadd.f32 %v7278_v30, %v14829_v55  ;;  %v10976_v30 = vld [vmem:[%s11322_s13 + $0x80] sm:$0xff] }
 0x509   : > { %v10814_v36 = vpop.f32.mrf.mxu1 }
 0x50a   : > { %7571 = vst.msk [vmem:[%s14904_s6 + $0x50] sm:$0xff] %vm313_vm0, %v7539_v31  ;;  %v7476_v47 = vadd.f32 %v14893_v32, %v7437_v20  ;;  %v7439_v29 = vadd.f32 %v10814_v36, %v14832_v14  ;;  %v10971_v14 = vld [vmem:[%s11322_s13 + $0x68] sm:$0xff] }
 0x50b   : > { %v7287_v37 = vpop.f32.mrf.mxu1 }
 0x50c   : > { %v7508_v22 = vmul.f32 0.5, %v7476_v47  ;;  %v7478_v2 = vadd.f32 %v14893_v32, %v7439_v29  ;;  %v7438_v26 = vadd.f32 %v7287_v37, %v14835_v46 }
 0x50d   : > { %v10817_v19 = vpop.f32.mrf.mxu1 }
 0x50e   : > { %v7540_v55 = vadd.f32 %v10970_v1, %v7508_v22  ;;  %v7510_v35 = vmul.f32 0.5, %v7478_v2  ;;  %v7477_v6 = vadd.f32 %v14893_v32, %v7438_v26  ;;  %v7440_v28 = vadd.f32 %v10817_v19, %v14837_v7  ;;  %v10973_v7 = vld [vmem:[%s11322_s13 + $0x70] sm:$0xff] }
 0x50f   : > { %v7297_v33 = vpop.f32.mrf.mxu1 }
 0x510   : > { %7572 = vst.msk [vmem:[%s14904_s6 + $0x58] sm:$0xff] %vm313_vm0, %v7540_v55  ;;  %v7542_v40 = vadd.f32 %v10971_v14, %v7510_v35  ;;  %v7509_v58 = vmul.f32 0.5, %v7477_v6  ;;  %v7479_v27 = vadd.f32 %v14893_v32, %v7440_v28  ;;  %v10978_v35 = vld [vmem:[%s11322_s13 + $0x98] sm:$0xff] }
 0x511   : > { %v10820_v46 = vpop.f32.mrf.mxu1 }
 0x512   : > { %7574 = vst.msk [vmem:[%s14904_s6 + $0x68] sm:$0xff] %vm313_vm0, %v7542_v40  ;;  %v7541_v9 = vadd.f32 %v10972_v53, %v7509_v58  ;;  %v7511_v16 = vmul.f32 0.5, %v7479_v27  ;;  %v10980_v46 = vld [vmem:[%s11322_s13 + $0xa0] sm:$0xff] }
 0x513   : > { %v7306_v45 = vpop.f32.mrf.mxu1 }
 0x514   : > { %7573 = vst.msk [vmem:[%s14904_s6 + $0x60] sm:$0xff] %vm313_vm0, %v7541_v9  ;;  %v7543_v24 = vadd.f32 %v10973_v7, %v7511_v16  ;;  %v7441_v21 = vadd.f32 %v7306_v45, %v14841_v63 }
 0x515   : > { %v10823_v17 = vpop.f32.mrf.mxu1 }
 0x516   : > { %7575 = vst.msk [vmem:[%s14904_s6 + $0x70] sm:$0xff] %vm313_vm0, %v7543_v24  ;;  %v7480_v57 = vadd.f32 %v14893_v32, %v7441_v21  ;;  %v7443_v4 = vadd.f32 %v10823_v17, %v14844_v5  ;;  %v10975_v5 = vld [vmem:[%s11322_s13 + $0x88] sm:$0xff] }
 0x517   : > { %v7315_v8 = vpop.f32.mrf.mxu1 }
 0x518   : > { %v7512_v49 = vmul.f32 0.5, %v7480_v57  ;;  %v7482_v61 = vadd.f32 %v14893_v32, %v7443_v4  ;;  %v7442_v51 = vadd.f32 %v7315_v8, %v14847_v15 }
 0x519   : > { %v10826_v13 = vpop.f32.mrf.mxu1 }
 0x51a   : > { %v7544_v63 = vadd.f32 %v10974_v3, %v7512_v49  ;;  %v7514_v23 = vmul.f32 0.5, %v7482_v61  ;;  %v7481_v50 = vadd.f32 %v14893_v32, %v7442_v51  ;;  %v7444_v25 = vadd.f32 %v10826_v13, %v14849_v10  ;;  %v10977_v10 = vld [vmem:[%s11322_s13 + $0x90] sm:$0xff]  ;;  %v10982_v51 = vld [vmem:[%s11322_s13 + $0xb8] sm:$0xff] }
 0x51b   : > { %v7325_v42 = vpop.f32.mrf.mxu1 }
 0x51c   : > { %7576 = vst.msk [vmem:[%s14904_s6 + $0x78] sm:$0xff] %vm313_vm0, %v7544_v63  ;;  %v7546_v0 = vadd.f32 %v10975_v5, %v7514_v23  ;;  %v7513_v52 = vmul.f32 0.5, %v7481_v50  ;;  %v7483_v41 = vadd.f32 %v14893_v32, %v7444_v25  ;;  %v10984_v5 = vld [vmem:[%s11322_s13 + $0xc0] sm:$0xff] }
 0x51d   : > { %v10829_v15 = vpop.f32.mrf.mxu1 }
 0x51e   : > { %7578 = vst.msk [vmem:[%s14904_s6 + $0x88] sm:$0xff] %vm313_vm0, %v7546_v0  ;;  %v7545_v62 = vadd.f32 %v10976_v30, %v7513_v52  ;;  %v7515_v31 = vmul.f32 0.5, %v7483_v41 }
 0x51f   : > { %v7334_v20 = vpop.f32.mrf.mxu1 }
 0x520   : > { %7577 = vst.msk [vmem:[%s14904_s6 + $0x80] sm:$0xff] %vm313_vm0, %v7545_v62  ;;  %v7547_v36 = vadd.f32 %v10977_v10, %v7515_v31  ;;  %v7445_v47 = vadd.f32 %v7334_v20, %v14853_v43 }
 0x521   : > { %v10832_v29 = vpop.f32.mrf.mxu1 }
 0x522   : > { %7579 = vst.msk [vmem:[%s14904_s6 + $0x90] sm:$0xff] %vm313_vm0, %v7547_v36  ;;  %v7484_v37 = vadd.f32 %v14893_v32, %v7445_v47  ;;  %v7447_v22 = vadd.f32 %v10832_v29, %v14856_v60  ;;  %v10979_v60 = vld [vmem:[%s11322_s13 + $0xa8] sm:$0xff] }
 0x523   : > { %v7343_v2 = vpop.f32.mrf.mxu1 }
 0x524   : > { %v7516_v26 = vmul.f32 0.5, %v7484_v37  ;;  %v7486_v19 = vadd.f32 %v14893_v32, %v7447_v22  ;;  %v7446_v1 = vadd.f32 %v7343_v2, %v14859_v48  ;;  %v10986_v22 = vld [vmem:[%s11322_s13 + $0xd8] sm:$0xff] }
 0x525   : > { %v10835_v55 = vpop.f32.mrf.mxu1 }
 0x526   : > { %v7548_v43 = vadd.f32 %v10978_v35, %v7516_v26  ;;  %v7518_v6 = vmul.f32 0.5, %v7486_v19  ;;  %v7485_v28 = vadd.f32 %v14893_v32, %v7446_v1  ;;  %v7448_v33 = vadd.f32 %v10835_v55, %v14861_v54  ;;  %v10981_v54 = vld [vmem:[%s11322_s13 + $0xb0] sm:$0xff]  ;;  %v7092_v1 = vpop.f32.mrf.mxu0  ;;  %v10987_v55 = vld [vmem:[%s11322_s13 + $0xe8] sm:$0xff] }
 0x527   : > { %v7353_v14 = vpop.f32.mrf.mxu1 }
 0x528   : > { %7580 = vst.msk [vmem:[%s14904_s6 + $0x98] sm:$0xff] %vm313_vm0, %v7548_v43  ;;  %v7550_v40 = vadd.f32 %v10979_v60, %v7518_v6  ;;  %v7517_v58 = vmul.f32 0.5, %v7485_v28  ;;  %v7487_v27 = vadd.f32 %v14893_v32, %v7448_v33  ;;  %v7131_v28 = vadd.f32 %v7092_v1, %v14888_v18 }
 0x529   : > { %v10838_v48 = vpop.f32.mrf.mxu1 }
 0x52a   : > { %7582 = vst.msk [vmem:[%s14904_s6 + $0xa8] sm:$0xff] %vm313_vm0, %v7550_v40  ;;  %v7549_v53 = vadd.f32 %v10980_v46, %v7517_v58  ;;  %v7519_v9 = vmul.f32 0.5, %v7487_v27  ;;  %v10989_v40 = vld [vmem:[%s11322_s13 + $0xf0] sm:$0xff]  ;;  %v10990_v46 = vld [vmem:[%s11322_s13 + $0xf8] sm:$0xff] }
 0x52b   : > { %v7362_v16 = vpop.f32.mrf.mxu1 }
 0x52c   : > { %7581 = vst.msk [vmem:[%s14904_s6 + $0xa0] sm:$0xff] %vm313_vm0, %v7549_v53  ;;  %v7551_v45 = vadd.f32 %v10981_v54, %v7519_v9  ;;  %v7449_v7 = vadd.f32 %v7362_v16, %v14865_v59 }
 0x52d   : > { %v10841_v24 = vpop.f32.mrf.mxu1 }
 0x52e   : > { %7583 = vst.msk [vmem:[%s14904_s6 + $0xb0] sm:$0xff] %vm313_vm0, %v7551_v45  ;;  %v7488_v21 = vadd.f32 %v14893_v32, %v7449_v7  ;;  %v7451_v17 = vadd.f32 %v10841_v24, %v14868_v39  ;;  %v10983_v39 = vld [vmem:[%s11322_s13 + $0xc8] sm:$0xff] }
 0x52f   : > { %v7371_v57 = vpop.f32.mrf.mxu1 }
 0x530   : > { %v7520_v4 = vmul.f32 0.5, %v7488_v21  ;;  %v7490_v8 = vadd.f32 %v14893_v32, %v7451_v17  ;;  %v7450_v49 = vadd.f32 %v7371_v57, %v14871_v38 }
 0x531   : > { %v10844_v61 = vpop.f32.mrf.mxu1 }
 0x532   : > { %v7552_v59 = vadd.f32 %v10982_v51, %v7520_v4  ;;  %v7522_v13 = vmul.f32 0.5, %v7490_v8  ;;  %v7489_v3 = vadd.f32 %v14893_v32, %v7450_v49  ;;  %v7452_v63 = vadd.f32 %v10844_v61, %v14873_v11  ;;  %v10985_v11 = vld [vmem:[%s11322_s13 + $0xd0] sm:$0xff] }
 0x533   : > { %v7381_v23 = vpop.f32.mrf.mxu1 }
 0x534   : > { %7584 = vst.msk [vmem:[%s14904_s6 + $0xb8] sm:$0xff] %vm313_vm0, %v7552_v59  ;;  %v7554_v50 = vadd.f32 %v10983_v39, %v7522_v13  ;;  %v7521_v25 = vmul.f32 0.5, %v7489_v3  ;;  %v7491_v42 = vadd.f32 %v14893_v32, %v7452_v63 }
 0x535   : > { %v10847_v38 = vpop.f32.mrf.mxu1 }
 0x536   : > { %7586 = vst.msk [vmem:[%s14904_s6 + $0xc8] sm:$0xff] %vm313_vm0, %v7554_v50  ;;  %v7553_v0 = vadd.f32 %v10984_v5, %v7521_v25  ;;  %v7523_v52 = vmul.f32 0.5, %v7491_v42 }
 0x537   : > { %v7390_v41 = vpop.f32.mrf.mxu1 }
 0x538   : > { %7585 = vst.msk [vmem:[%s14904_s6 + $0xc0] sm:$0xff] %vm313_vm0, %v7553_v0  ;;  %v7555_v15 = vadd.f32 %v10985_v11, %v7523_v52  ;;  %v7453_v30 = vadd.f32 %v7390_v41, %v14877_v44 }
 0x539   : > { %v10850_v62 = vpop.f32.mrf.mxu1 }
 0x53a   : > { %7587 = vst.msk [vmem:[%s14904_s6 + $0xd0] sm:$0xff] %vm313_vm0, %v7555_v15  ;;  %v7492_v31 = vadd.f32 %v14893_v32, %v7453_v30  ;;  %v7455_v20 = vadd.f32 %v10850_v62, %v14880_v34 }
 0x53b   : > { %v7399_v10 = vpop.f32.mrf.mxu1 }
 0x53c   : > { %v7524_v36 = vmul.f32 0.5, %v7492_v31  ;;  %v7494_v47 = vadd.f32 %v14893_v32, %v7455_v20  ;;  %v7454_v29 = vadd.f32 %v7399_v10, %v14883_v12 }
 0x53d   : > { %v10853_v37 = vpop.f32.mrf.mxu1 }
 0x53e   : > { %v7556_v44 = vadd.f32 %v10986_v22, %v7524_v36  ;;  %v7526_v2 = vmul.f32 0.5, %v7494_v47  ;;  %v7493_v26 = vadd.f32 %v14893_v32, %v7454_v29  ;;  %v7456_v19 = vadd.f32 %v10853_v37, %v14885_v56  ;;  %v10988_v56 = vld [vmem:[%s11322_s13 + $0xe0] sm:$0xff] }
 0x53f   : > { %v7409_v34 = vpop.f32.mrf.mxu1 }
 0x540   : > { %7588 = vst.msk [vmem:[%s14904_s6 + $0xd8] sm:$0xff] %vm313_vm0, %v7556_v44  ;;  %v7558_v35 = vadd.f32 %v10987_v55, %v7526_v2  ;;  %v7525_v12 = vmul.f32 0.5, %v7493_v26  ;;  %v7495_v43 = vadd.f32 %v14893_v32, %v7456_v19 }
 0x541   : > { %v10856_v6 = vpop.f32.mrf.mxu1 }
 0x542   : > { %7590 = vst.msk [vmem:[%s14904_s6 + $0xe8] sm:$0xff] %vm313_vm0, %v7558_v35  ;;  %v7557_v33 = vadd.f32 %v10988_v56, %v7525_v12  ;;  %v7527_v14 = vmul.f32 0.5, %v7495_v43 }
 0x543   : > { %v7418_v60 = vpop.f32.mrf.mxu1 }
 0x544   : > { %7589 = vst.msk [vmem:[%s14904_s6 + $0xe0] sm:$0xff] %vm313_vm0, %v7557_v33  ;;  %v7559_v58 = vadd.f32 %v10989_v40, %v7527_v14  ;;  %v7457_v27 = vadd.f32 %v7418_v60, %v7131_v28 }
 0x546   : > { %7591 = vst.msk [vmem:[%s14904_s6 + $0xf0] sm:$0xff] %vm313_vm0, %v7559_v58  ;;  %v7496_v48 = vadd.f32 %v14893_v32, %v7457_v27 }
 0x548   : > { %v7528_v18 = vmul.f32 0.5, %v7496_v48 }
 0x54a   : > { %v7560_v53 = vadd.f32 %v10990_v46, %v7528_v18 }
 0x54c   : > { %7592 = vst.msk [vmem:[%s14904_s6 + $0xf8] sm:$0xff] %vm313_vm0, %v7560_v53 }
 0x54d   : > { %11084 = shalt.err (!%p11081_p3)
}
 0x54e   : > { %s11085_s13 = scalar_lea.hbm %s15061_s16, 4096  ;;  %s11089_s12 = scalar_lea.hbm %s15114_s5, 8192 }
 0x54f   : > { %p11086_p11 = scmp.ne.s32.totalorder %s15061_s16, %s11085_s13  ;;  %p11090_p4 = scmp.lt.s32.totalorder %s15061_s16, %s15114_s5 }
 0x550   : > { %p11091_p6 = scmp.lt.s32.totalorder %s11089_s12, %s11085_s13 }
 0x551   : > { %p11087_p9 = pnand %p11086_p11, %p15967_p2 }
 0x552   : > { %p11092_p8 = por %p11091_p6, %p11090_p4 }
 0x553   : > { %p11088_p1 = pneg %p11087_p9 }
 0x555   : > { %p11093_p5 = pnand %p11092_p8, %p11088_p1 }
 0x557   : > { %11096 = shalt.err (!%p11093_p5)
}
 0x558   : > { %s11148_s7 = smov 128   ;;  %s11149_s11 = smov 8  }
 0x559   : > { %10867 = dma.vmem_to_hbm [thread:$0]  (%p15967_p2), %s15063_s28, 4096, %s15061_s16, %s7594_s8, %s11148_s7, %s11148_s7, %s11149_s11  }
 0x55a PF: > { %s7622_s17 = sand.u32 1, %s11127_s18   ;;  %p15968_p7 = scmp.ne.s32.totalorder %s15395_s25, 0 }
 0x55b   : > { %p15969_p12 = scmp.ge.s32.totalorder %s11139_s21, 2  ;;  %s7623_s29 = scalar_lea.sflag [#allocation4], %s7622_s17 }
 0x55d   : > { %p10881_p13 = pnand %p15969_p12, %p15968_p7 }
 0x55f   : > { %p10882_p0 = pneg %p10881_p13 }
 0x561   : > { %11122 = dma.done.wait (%p10882_p0), %s7623_s29, 4096  }
 0x562   : > { %11124 = vsyncadd (%p10882_p0), %s7623_s29, 4294963200  ;;  %p19_p10 = scmp.ge.s32.totalorder %s11258_s15, 4   ;;  %s15970_s18 = smov %s11131_s19 }
 0x563   : > { %s15971_s19 = smov %s11135_s20  ;;  %s15972_s20 = smov %s11274_s27 }
 0x564   : > { %s15973_s21 = smov %s11258_s15  ;;  %21 = sbr.rel (!%p19_p10) target bundleno = 6 (0x6), region = 109 }
 0x569   :  { %7628 = vsyncpa [#allocation3], 1 }
 0x56a   :  { %7630 = vsyncpa [#allocation3 + $0x1], 1 }
 0x56b   :  { %7631 = vsyncpa [#allocation6], 1 }
 0x56c   :  { %7632 = vsyncpa [#allocation4], 1 }
 0x56d   :  { %7634 = vsyncpa [#allocation4 + $0x1], 1 }

</bundles_post_ra>
